<compile_context>
chip_gen: v7x
topology: tpu7x:2x2x1
jax: 0.10.0
libtpu: 0.0.40
codegen_flags: <defaults>
</compile_context>

<pallas_src>
import functools

import jax
import jax.numpy as jnp
from jax.experimental import pallas as pl
from jax.experimental.pallas import tpu as pltpu


_TM_CAP = 256      # row-tile cap: multiple of 128, small enough for v5e's 16 MiB scoped VMEM
_LANES = 128       # lane-dense channel padding target


def _round_up(x, m):
    return (x + m - 1) // m * m


# ----------------------------------------------------------------------------
# Pallas kernels
# ----------------------------------------------------------------------------
def _matmul_affine_kernel(x_ref, w_ref, s_ref, b_ref, o_ref, *, relu):
    # x: (TM, Kp) bf16   w: (Kp, CP) bf16   s/b: (1, CP) f32   o: (TM, CP) f32
    acc = jnp.dot(x_ref[...], w_ref[...], preferred_element_type=jnp.float32)
    y = acc * s_ref[...] + b_ref[...]
    if relu:
        y = jnp.maximum(y, 0.0)
    o_ref[...] = y


def _matmul_residual_kernel(x_ref, w_ref, sc_ref, s_ref, b_ref, o_ref):
    # Fused: ReLU( (conv_acc + shortcut) * bn_scale + bn_shift )  (conv bias folded in shift)
    acc = jnp.dot(x_ref[...], w_ref[...], preferred_element_type=jnp.float32)
    y = (acc + sc_ref[...]) * s_ref[...] + b_ref[...]
    o_ref[...] = jnp.maximum(y, 0.0)


def _max_over_taps_kernel(x_ref, o_ref):
    # x: (KW, TM, C) -> o: (TM, C)   (elementwise max over the KW pool taps)
    o_ref[...] = jnp.max(x_ref[...], axis=0)


# ----------------------------------------------------------------------------
# im2col (channels-last): (N,T,H,W,C) -> (N*To*Ho*Wo, C*kt*kh*kw), tap-major K
# ----------------------------------------------------------------------------
def _im2col_cl(x, ksize, stride, padding):
    N, T, H, W, C = x.shape
    kt, kh, kw = ksize
    st, sh, sw = stride
    pt, ph, pw = padding
    xp = jnp.pad(x, ((0, 0), (pt, pt), (ph, ph), (pw, pw), (0, 0)))
    To = (T + 2 * pt - kt) // st + 1
    Ho = (H + 2 * ph - kh) // sh + 1
    Wo = (W + 2 * pw - kw) // sw + 1
    cols = []
    for dt in range(kt):
        for dh in range(kh):
            for dw in range(kw):
                cols.append(xp[:, dt:dt + st * To:st,
                               dh:dh + sh * Ho:sh,
                               dw:dw + sw * Wo:sw, :])
    patches = jnp.concatenate(cols, axis=-1)                  # (N,To,Ho,Wo, KS*C)
    patches = patches.reshape(N * To * Ho * Wo, C * kt * kh * kw)
    return patches, (To, Ho, Wo)


# ----------------------------------------------------------------------------
# Layer wrappers
# ----------------------------------------------------------------------------
def conv3d_fused(x, w, scale, shift, stride, padding, relu=False, shortcut=None):
    """Conv3d -> per-channel affine (BN+bias folded) -> optional residual add -> optional ReLU.

    x:        (N,T,H,W,Cany) channels-last f32 (extra lane-padding channels allowed)
    w:        (Cout, Cin, kt, kh, kw) PyTorch layout
    scale:    (Cout,) folded BN scale  (1.0 if no BN)
    shift:    (Cout,) folded BN shift with the conv bias already folded in
    shortcut: optional (N,To,Ho,Wo,CP) f32 residual added before the affine (implies ReLU)
    Returns   (N, To, Ho, Wo, CP=128) f32, channels zero-padded to 128 lanes.
    """
    N = x.shape[0]
    Cout, Cin, kt, kh, kw = w.shape

    # drop lane-padding channels before building patches (fused into the gather by XLA)
    x = x[..., :Cin]
    patches, (To, Ho, Wo) = _im2col_cl(x, (kt, kh, kw), stride, padding)
    M, K = patches.shape
    Kp = _round_up(K, 128)
    CP = _round_up(Cout, _LANES)

    tm = min(_TM_CAP, _round_up(M, 8))
    Mp = _round_up(M, tm)

    patches = jnp.pad(patches, ((0, Mp - M), (0, Kp - K))).astype(jnp.bfloat16)
    wmat = w.transpose(2, 3, 4, 1, 0).reshape(K, Cout)        # (K, Cout), tap-major rows
    wmat = jnp.pad(wmat, ((0, Kp - K), (0, CP - Cout))).astype(jnp.bfloat16)
    s = jnp.pad(scale.astype(jnp.float32), (0, CP - Cout)).reshape(1, CP)
    b = jnp.pad(shift.astype(jnp.float32), (0, CP - Cout)).reshape(1, CP)

    x_spec = pl.BlockSpec((tm, Kp), lambda i: (i, 0))
    w_spec = pl.BlockSpec((Kp, CP), lambda i: (0, 0))
    v_spec = pl.BlockSpec((1, CP), lambda i: (0, 0))
    o_spec = pl.BlockSpec((tm, CP), lambda i: (i, 0))
    cparams = pltpu.CompilerParams(dimension_semantics=("parallel",))
    out_shape = jax.ShapeDtypeStruct((Mp, CP), jnp.float32)
    grid = (Mp // tm,)

    if shortcut is None:
        out = pl.pallas_call(
            functools.partial(_matmul_affine_kernel, relu=relu),
            out_shape=out_shape,
            grid=grid,
            in_specs=[x_spec, w_spec, v_spec, v_spec],
            out_specs=o_spec,
            compiler_params=cparams,
        )(patches, wmat, s, b)
    else:
        scm = shortcut.reshape(M, CP).astype(jnp.float32)
        scm = jnp.pad(scm, ((0, Mp - M), (0, 0)))
        out = pl.pallas_call(
            _matmul_residual_kernel,
            out_shape=out_shape,
            grid=grid,
            in_specs=[x_spec, w_spec, o_spec, v_spec, v_spec],
            out_specs=o_spec,
            compiler_params=cparams,
        )(patches, wmat, scm, s, b)

    return out[:M].reshape(N, To, Ho, Wo, CP)


def maxpool3d_cl(x, ksize, stride, padding):
    """MaxPool3d on channels-last (N,T,H,W,C) input; C already lane-padded to 128."""
    N, T, H, W, C = x.shape
    kt, kh, kw = ksize
    st, sh, sw = stride
    pt, ph, pw = padding
    xp = jnp.pad(x, ((0, 0), (pt, pt), (ph, ph), (pw, pw), (0, 0)),
                 constant_values=-jnp.inf)
    To = (T + 2 * pt - kt) // st + 1
    Ho = (H + 2 * ph - kh) // sh + 1
    Wo = (W + 2 * pw - kw) // sw + 1
    views = []
    for dt in range(kt):
        for dh in range(kh):
            for dw in range(kw):
                views.append(xp[:, dt:dt + st * To:st,
                                dh:dh + sh * Ho:sh,
                                dw:dw + sw * Wo:sw, :])
    KW = len(views)
    M = N * To * Ho * Wo
    stacked = jnp.stack(views, axis=0).reshape(KW, M, C)

    tm = min(_TM_CAP, _round_up(M, 8))
    Mp = _round_up(M, tm)
    stacked = jnp.pad(stacked, ((0, 0), (0, Mp - M), (0, 0)))

    out = pl.pallas_call(
        _max_over_taps_kernel,
        out_shape=jax.ShapeDtypeStruct((Mp, C), jnp.float32),
        grid=(Mp // tm,),
        in_specs=[pl.BlockSpec((KW, tm, C), lambda i: (0, i, 0))],
        out_specs=pl.BlockSpec((tm, C), lambda i: (i, 0)),
        compiler_params=pltpu.CompilerParams(dimension_semantics=("parallel",)),
    )(stacked)

    return out[:M].reshape(N, To, Ho, Wo, C)


# ----------------------------------------------------------------------------
# Parameter initialization (deterministic, synthetic)
# ----------------------------------------------------------------------------
_EPS = 1e-5


def _bn_affine(key, c):
    k1, k2, k3, k4 = jax.random.split(key, 4)
    gamma = 1.0 + 0.1 * jax.random.normal(k1, (c,), jnp.float32)
    beta = 0.1 * jax.random.normal(k2, (c,), jnp.float32)
    mean = 0.05 * jax.random.normal(k3, (c,), jnp.float32)
    var = 0.5 + 0.1 * jnp.abs(jax.random.normal(k4, (c,), jnp.float32))
    scale = gamma / jnp.sqrt(var + _EPS)
    shift = beta - mean * scale
    return scale, shift


def _conv_init(key, cout, cin, kt, kh, kw):
    kw_, kb_ = jax.random.split(key)
    fan_in = cin * kt * kh * kw
    w = jax.random.normal(kw_, (cout, cin, kt, kh, kw), jnp.float32) * (fan_in ** -0.5)
    b = 0.01 * jax.random.normal(kb_, (cout,), jnp.float32)
    return w, b


def init_block3(key, din, dout, stride):
    ks = jax.random.split(key, 6)
    p = {}
    p['w1'], p['b1'] = _conv_init(ks[0], dout, din, 3, 3, 3)
    p['bn1_s'], p['bn1_sh'] = _bn_affine(ks[1], dout)
    p['w2'], p['b2'] = _conv_init(ks[2], dout, dout, 3, 3, 3)
    if stride != 1:
        p['ws'], p['bs'] = _conv_init(ks[3], dout, din, 1, 1, 1)
        p['bns_s'], p['bns_sh'] = _bn_affine(ks[4], dout)
    p['bnf_s'], p['bnf_sh'] = _bn_affine(ks[5], dout)
    return p


def init_imnet(key):
    ks = jax.random.split(key, 4)
    params = {}
    params['stem_w'], params['stem_b'] = _conv_init(ks[0], 64, 3, 5, 7, 7)
    params['stem_bn_s'], params['stem_bn_sh'] = _bn_affine(ks[1], 64)
    params['b1'] = init_block3(ks[2], 64, 64, stride=1)
    params['b2'] = init_block3(ks[3], 64, 64, stride=2)
    return params


# ----------------------------------------------------------------------------
# Forward pass (channels-last internally, NCDHW at the boundary)
# ----------------------------------------------------------------------------
def block3_forward(x, p, stride):
    # block3: conv3x3x3(stride) + BN1 + ReLU   (bias folded into BN shift)
    h = conv3d_fused(x, p['w1'], p['bn1_s'],
                     p['b1'] * p['bn1_s'] + p['bn1_sh'],
                     stride=(stride,) * 3, padding=(1, 1, 1), relu=True)
    # shortcut
    if stride == 1:
        sc = x
    else:
        sc = conv3d_fused(x, p['ws'], p['bns_s'],
                          p['bs'] * p['bns_s'] + p['bns_sh'],
                          stride=(stride,) * 3, padding=(0, 0, 0), relu=False)
    # second conv fused with residual add + final BN + ReLU:
    #   relu((conv2_acc + sc) * s_f + (b2*s_f + sh_f))
    return conv3d_fused(h, p['w2'], p['bnf_s'],
                        p['b2'] * p['bnf_s'] + p['bnf_sh'],
                        stride=(1, 1, 1), padding=(1, 1, 1),
                        relu=True, shortcut=sc)


@jax.jit
def imnet_forward(x, params):
    # single NCDHW -> NDHWC conversion at the boundary
    xcl = jnp.transpose(x, (0, 2, 3, 4, 1)).astype(jnp.float32)
    # stem: Conv3d(3,64,(5,7,7),stride=2,pad=(2,3,3)) + BN + ReLU
    h = conv3d_fused(xcl, params['stem_w'], params['stem_bn_s'],
                     params['stem_b'] * params['stem_bn_s'] + params['stem_bn_sh'],
                     stride=(2, 2, 2), padding=(2, 3, 3), relu=True)
    # MaxPool3d((1,3,3), stride=(1,2,2), padding=(0,1,1))
    h = maxpool3d_cl(h, (1, 3, 3), (1, 2, 2), (0, 1, 1))
    h = block3_forward(h, params['b1'], stride=1)
    h = block3_forward(h, params['b2'], stride=2)
    # drop lane-padding channels, back to NCDHW
    cout = params['b2']['w2'].shape[0]
    return jnp.transpose(h[..., :cout], (0, 4, 1, 2, 3))


# ----------------------------------------------------------------------------
if __name__ == "__main__":
    key = jax.random.PRNGKey(0)
    # small video clip: N=2, C=3, T=8, H=W=16 (NCDHW, like PyTorch)
    x = jax.random.normal(key, (2, 3, 8, 16, 16), jnp.float32)
    params = init_imnet(jax.random.PRNGKey(42))

    out = imnet_forward(x, params)
    out = jax.block_until_ready(out)

    # stem: (2,64,4,8,8) -> pool: (2,64,4,4,4) -> block3_1: same -> block3_2: (2,64,2,2,2)
    assert out.shape == (2, 64, 2, 2, 2), out.shape
    assert jnp.all(jnp.isfinite(out))
    assert jnp.all(out >= 0.0)  # final op is ReLU
    print("KERNEL_OK")
</pallas_src>

<mosaic_0001>
module attributes {stable_mosaic.version = 11 : i64} {
  func.func @_matmul_affine_kernel(%arg0: i32, %arg1: memref<256x768xbf16, #tpu.memory_space<vmem>>, %arg2: memref<768x128xbf16, #tpu.memory_space<vmem>>, %arg3: memref<1x128xf32, #tpu.memory_space<vmem>>, %arg4: memref<1x128xf32, #tpu.memory_space<vmem>>, %arg5: memref<256x128xf32, #tpu.memory_space<vmem>>) attributes {dimension_semantics = [#tpu.dimension_semantics<parallel>], iteration_bounds = array<i64: 2>, scalar_prefetch = 0 : i64, scratch_operands = 0 : i64, tpu.core_type = #tpu.core_type<tc>, window_params = [{transform_indices = @transform_0, window_bounds = array<i64: 256, 768>}, {pipeline_mode = #tpu.pipeline_mode<synchronous>, transform_indices = @transform_1, window_bounds = array<i64: 768, 128>}, {pipeline_mode = #tpu.pipeline_mode<synchronous>, transform_indices = @transform_2, window_bounds = array<i64: 1, 128>}, {pipeline_mode = #tpu.pipeline_mode<synchronous>, transform_indices = @transform_3, window_bounds = array<i64: 1, 128>}, {transform_indices = @transform_4, window_bounds = array<i64: 256, 128>}]} {
    %c0 = arith.constant 0 : index
    %c0_0 = arith.constant 0 : index
    %0 = vector.load %arg1[%c0, %c0_0] : memref<256x768xbf16, #tpu.memory_space<vmem>>, vector<256x768xbf16>
    %c0_1 = arith.constant 0 : index
    %c0_2 = arith.constant 0 : index
    %1 = vector.load %arg2[%c0_1, %c0_2] : memref<768x128xbf16, #tpu.memory_space<vmem>>, vector<768x128xbf16>
    %cst = arith.constant dense<0.000000e+00> : vector<256x128xf32>
    %2 = tpu.matmul %0, %1, %cst {dimension_numbers = #tpu.dot_dimension_numbers<[1], [0], [0], [1], [0, 0, 1, 1], [], []>} : vector<256x768xbf16>, vector<768x128xbf16>, vector<256x128xf32> -> vector<256x128xf32>
    %c0_3 = arith.constant 0 : index
    %c0_4 = arith.constant 0 : index
    %3 = vector.load %arg3[%c0_3, %c0_4] : memref<1x128xf32, #tpu.memory_space<vmem>>, vector<1x128xf32>
    %4 = vector.broadcast %3 : vector<1x128xf32> to vector<256x128xf32>
    %5 = arith.mulf %2, %4 : vector<256x128xf32>
    %c0_5 = arith.constant 0 : index
    %c0_6 = arith.constant 0 : index
    %6 = vector.load %arg4[%c0_5, %c0_6] : memref<1x128xf32, #tpu.memory_space<vmem>>, vector<1x128xf32>
    %7 = vector.broadcast %6 : vector<1x128xf32> to vector<256x128xf32>
    %8 = arith.addf %5, %7 : vector<256x128xf32>
    %cst_7 = arith.constant 0.000000e+00 : f32
    %9 = vector.broadcast %cst_7 : f32 to vector<256x128xf32>
    %10 = arith.maximumf %8, %9 : vector<256x128xf32>
    %c0_8 = arith.constant 0 : index
    %c0_9 = arith.constant 0 : index
    %11 = vector.load %arg5[%c0_8, %c0_9] : memref<256x128xf32, #tpu.memory_space<vmem>>, vector<256x128xf32>
    tpu.vector_store %arg5[%c0_8, %c0_9], %10 {strides = array<i32>} : memref<256x128xf32, #tpu.memory_space<vmem>>, vector<256x128xf32>,
    return
  }
  func.func @transform_0(%arg0: i32) -> (i32, i32) {
    %c0_i32 = arith.constant 0 : i32
    %c0_i32_0 = arith.constant 0 : i32
    return %arg0, %c0_i32 : i32, i32
  }
  func.func @transform_1(%arg0: i32) -> (i32, i32) {
    %c0_i32 = arith.constant 0 : i32
    %c0_i32_0 = arith.constant 0 : i32
    %c0_i32_1 = arith.constant 0 : i32
    return %c0_i32, %c0_i32_0 : i32, i32
  }
  func.func @transform_2(%arg0: i32) -> (i32, i32) {
    %c0_i32 = arith.constant 0 : i32
    %c0_i32_0 = arith.constant 0 : i32
    %c0_i32_1 = arith.constant 0 : i32
    return %c0_i32, %c0_i32_0 : i32, i32
  }
  func.func @transform_3(%arg0: i32) -> (i32, i32) {
    %c0_i32 = arith.constant 0 : i32
    %c0_i32_0 = arith.constant 0 : i32
    %c0_i32_1 = arith.constant 0 : i32
    return %c0_i32, %c0_i32_0 : i32, i32
  }
  func.func @transform_4(%arg0: i32) -> (i32, i32) {
    %c0_i32 = arith.constant 0 : i32
    %c0_i32_0 = arith.constant 0 : i32
    return %arg0, %c0_i32 : i32, i32
  }
}

module attributes {stable_mosaic.version = 11 : i64} {
  func.func @_max_over_taps_kernel(%arg0: i32, %arg1: memref<9x128x128xf32, #tpu.memory_space<vmem>>, %arg2: memref<128x128xf32, #tpu.memory_space<vmem>>) attributes {dimension_semantics = [#tpu.dimension_semantics<parallel>], iteration_bounds = array<i64: 1>, scalar_prefetch = 0 : i64, scratch_operands = 0 : i64, tpu.core_type = #tpu.core_type<tc>, window_params = [{transform_indices = @transform_0, window_bounds = array<i64: 9, 128, 128>}, {transform_indices = @transform_1, window_bounds = array<i64: 128, 128>}]} {
    %c0 = arith.constant 0 : index
    %c0_0 = arith.constant 0 : index
    %c0_1 = arith.constant 0 : index
    %0 = vector.load %arg1[%c0, %c0_0, %c0_1] : memref<9x128x128xf32, #tpu.memory_space<vmem>>, vector<9x128x128xf32>
    %cst = arith.constant dense<0xFF800000> : vector<128x128xf32>
    %1 = vector.multi_reduction <maximumf>, %0, %cst [0] : vector<9x128x128xf32> to vector<128x128xf32>
    %c0_2 = arith.constant 0 : index
    %c0_3 = arith.constant 0 : index
    %2 = vector.load %arg2[%c0_2, %c0_3] : memref<128x128xf32, #tpu.memory_space<vmem>>, vector<128x128xf32>
    tpu.vector_store %arg2[%c0_2, %c0_3], %1 {strides = array<i32>} : memref<128x128xf32, #tpu.memory_space<vmem>>, vector<128x128xf32>,
    return
  }
  func.func @transform_0(%arg0: i32) -> (i32, i32, i32) {
    %c0_i32 = arith.constant 0 : i32
    %c0_i32_0 = arith.constant 0 : i32
    %c0_i32_1 = arith.constant 0 : i32
    return %c0_i32, %arg0, %c0_i32_0 : i32, i32, i32
  }
  func.func @transform_1(%arg0: i32) -> (i32, i32) {
    %c0_i32 = arith.constant 0 : i32
    %c0_i32_0 = arith.constant 0 : i32
    return %arg0, %c0_i32 : i32, i32
  }
}

module attributes {stable_mosaic.version = 11 : i64} {
  func.func @_matmul_affine_kernel(%arg0: i32, %arg1: memref<128x1792xbf16, #tpu.memory_space<vmem>>, %arg2: memref<1792x128xbf16, #tpu.memory_space<vmem>>, %arg3: memref<1x128xf32, #tpu.memory_space<vmem>>, %arg4: memref<1x128xf32, #tpu.memory_space<vmem>>, %arg5: memref<128x128xf32, #tpu.memory_space<vmem>>) attributes {dimension_semantics = [#tpu.dimension_semantics<parallel>], iteration_bounds = array<i64: 1>, scalar_prefetch = 0 : i64, scratch_operands = 0 : i64, tpu.core_type = #tpu.core_type<tc>, window_params = [{transform_indices = @transform_0, window_bounds = array<i64: 128, 1792>}, {pipeline_mode = #tpu.pipeline_mode<synchronous>, transform_indices = @transform_1, window_bounds = array<i64: 1792, 128>}, {pipeline_mode = #tpu.pipeline_mode<synchronous>, transform_indices = @transform_2, window_bounds = array<i64: 1, 128>}, {pipeline_mode = #tpu.pipeline_mode<synchronous>, transform_indices = @transform_3, window_bounds = array<i64: 1, 128>}, {transform_indices = @transform_4, window_bounds = array<i64: 128, 128>}]} {
    %c0 = arith.constant 0 : index
    %c0_0 = arith.constant 0 : index
    %0 = vector.load %arg1[%c0, %c0_0] : memref<128x1792xbf16, #tpu.memory_space<vmem>>, vector<128x1792xbf16>
    %c0_1 = arith.constant 0 : index
    %c0_2 = arith.constant 0 : index
    %1 = vector.load %arg2[%c0_1, %c0_2] : memref<1792x128xbf16, #tpu.memory_space<vmem>>, vector<1792x128xbf16>
    %cst = arith.constant dense<0.000000e+00> : vector<128x128xf32>
    %2 = tpu.matmul %0, %1, %cst {dimension_numbers = #tpu.dot_dimension_numbers<[1], [0], [0], [1], [0, 0, 1, 1], [], []>} : vector<128x1792xbf16>, vector<1792x128xbf16>, vector<128x128xf32> -> vector<128x128xf32>
    %c0_3 = arith.constant 0 : index
    %c0_4 = arith.constant 0 : index
    %3 = vector.load %arg3[%c0_3, %c0_4] : memref<1x128xf32, #tpu.memory_space<vmem>>, vector<1x128xf32>
    %4 = vector.broadcast %3 : vector<1x128xf32> to vector<128x128xf32>
    %5 = arith.mulf %2, %4 : vector<128x128xf32>
    %c0_5 = arith.constant 0 : index
    %c0_6 = arith.constant 0 : index
    %6 = vector.load %arg4[%c0_5, %c0_6] : memref<1x128xf32, #tpu.memory_space<vmem>>, vector<1x128xf32>
    %7 = vector.broadcast %6 : vector<1x128xf32> to vector<128x128xf32>
    %8 = arith.addf %5, %7 : vector<128x128xf32>
    %cst_7 = arith.constant 0.000000e+00 : f32
    %9 = vector.broadcast %cst_7 : f32 to vector<128x128xf32>
    %10 = arith.maximumf %8, %9 : vector<128x128xf32>
    %c0_8 = arith.constant 0 : index
    %c0_9 = arith.constant 0 : index
    %11 = vector.load %arg5[%c0_8, %c0_9] : memref<128x128xf32, #tpu.memory_space<vmem>>, vector<128x128xf32>
    tpu.vector_store %arg5[%c0_8, %c0_9], %10 {strides = array<i32>} : memref<128x128xf32, #tpu.memory_space<vmem>>, vector<128x128xf32>,
    return
  }
  func.func @transform_0(%arg0: i32) -> (i32, i32) {
    %c0_i32 = arith.constant 0 : i32
    %c0_i32_0 = arith.constant 0 : i32
    return %arg0, %c0_i32 : i32, i32
  }
  func.func @transform_1(%arg0: i32) -> (i32, i32) {
    %c0_i32 = arith.constant 0 : i32
    %c0_i32_0 = arith.constant 0 : i32
    %c0_i32_1 = arith.constant 0 : i32
    return %c0_i32, %c0_i32_0 : i32, i32
  }
  func.func @transform_2(%arg0: i32) -> (i32, i32) {
    %c0_i32 = arith.constant 0 : i32
    %c0_i32_0 = arith.constant 0 : i32
    %c0_i32_1 = arith.constant 0 : i32
    return %c0_i32, %c0_i32_0 : i32, i32
  }
  func.func @transform_3(%arg0: i32) -> (i32, i32) {
    %c0_i32 = arith.constant 0 : i32
    %c0_i32_0 = arith.constant 0 : i32
    %c0_i32_1 = arith.constant 0 : i32
    return %c0_i32, %c0_i32_0 : i32, i32
  }
  func.func @transform_4(%arg0: i32) -> (i32, i32) {
    %c0_i32 = arith.constant 0 : i32
    %c0_i32_0 = arith.constant 0 : i32
    return %arg0, %c0_i32 : i32, i32
  }
}

module attributes {stable_mosaic.version = 11 : i64} {
  func.func @_matmul_residual_kernel(%arg0: i32, %arg1: memref<128x1792xbf16, #tpu.memory_space<vmem>>, %arg2: memref<1792x128xbf16, #tpu.memory_space<vmem>>, %arg3: memref<128x128xf32, #tpu.memory_space<vmem>>, %arg4: memref<1x128xf32, #tpu.memory_space<vmem>>, %arg5: memref<1x128xf32, #tpu.memory_space<vmem>>, %arg6: memref<128x128xf32, #tpu.memory_space<vmem>>) attributes {dimension_semantics = [#tpu.dimension_semantics<parallel>], iteration_bounds = array<i64: 1>, scalar_prefetch = 0 : i64, scratch_operands = 0 : i64, tpu.core_type = #tpu.core_type<tc>, window_params = [{transform_indices = @transform_0, window_bounds = array<i64: 128, 1792>}, {pipeline_mode = #tpu.pipeline_mode<synchronous>, transform_indices = @transform_1, window_bounds = array<i64: 1792, 128>}, {transform_indices = @transform_2, window_bounds = array<i64: 128, 128>}, {pipeline_mode = #tpu.pipeline_mode<synchronous>, transform_indices = @transform_3, window_bounds = array<i64: 1, 128>}, {pipeline_mode = #tpu.pipeline_mode<synchronous>, transform_indices = @transform_4, window_bounds = array<i64: 1, 128>}, {transform_indices = @transform_5, window_bounds = array<i64: 128, 128>}]} {
    %c0 = arith.constant 0 : index
    %c0_0 = arith.constant 0 : index
    %0 = vector.load %arg1[%c0, %c0_0] : memref<128x1792xbf16, #tpu.memory_space<vmem>>, vector<128x1792xbf16>
    %c0_1 = arith.constant 0 : index
    %c0_2 = arith.constant 0 : index
    %1 = vector.load %arg2[%c0_1, %c0_2] : memref<1792x128xbf16, #tpu.memory_space<vmem>>, vector<1792x128xbf16>
    %cst = arith.constant dense<0.000000e+00> : vector<128x128xf32>
    %2 = tpu.matmul %0, %1, %cst {dimension_numbers = #tpu.dot_dimension_numbers<[1], [0], [0], [1], [0, 0, 1, 1], [], []>} : vector<128x1792xbf16>, vector<1792x128xbf16>, vector<128x128xf32> -> vector<128x128xf32>
    %c0_3 = arith.constant 0 : index
    %c0_4 = arith.constant 0 : index
    %3 = vector.load %arg3[%c0_3, %c0_4] : memref<128x128xf32, #tpu.memory_space<vmem>>, vector<128x128xf32>
    %4 = arith.addf %2, %3 : vector<128x128xf32>
    %c0_5 = arith.constant 0 : index
    %c0_6 = arith.constant 0 : index
    %5 = vector.load %arg4[%c0_5, %c0_6] : memref<1x128xf32, #tpu.memory_space<vmem>>, vector<1x128xf32>
    %6 = vector.broadcast %5 : vector<1x128xf32> to vector<128x128xf32>
    %7 = arith.mulf %4, %6 : vector<128x128xf32>
    %c0_7 = arith.constant 0 : index
    %c0_8 = arith.constant 0 : index
    %8 = vector.load %arg5[%c0_7, %c0_8] : memref<1x128xf32, #tpu.memory_space<vmem>>, vector<1x128xf32>
    %9 = vector.broadcast %8 : vector<1x128xf32> to vector<128x128xf32>
    %10 = arith.addf %7, %9 : vector<128x128xf32>
    %cst_9 = arith.constant 0.000000e+00 : f32
    %11 = vector.broadcast %cst_9 : f32 to vector<128x128xf32>
    %12 = arith.maximumf %10, %11 : vector<128x128xf32>
    %c0_10 = arith.constant 0 : index
    %c0_11 = arith.constant 0 : index
    %13 = vector.load %arg6[%c0_10, %c0_11] : memref<128x128xf32, #tpu.memory_space<vmem>>, vector<128x128xf32>
    tpu.vector_store %arg6[%c0_10, %c0_11], %12 {strides = array<i32>} : memref<128x128xf32, #tpu.memory_space<vmem>>, vector<128x128xf32>,
    return
  }
  func.func @transform_0(%arg0: i32) -> (i32, i32) {
    %c0_i32 = arith.constant 0 : i32
    %c0_i32_0 = arith.constant 0 : i32
    return %arg0, %c0_i32 : i32, i32
  }
  func.func @transform_1(%arg0: i32) -> (i32, i32) {
    %c0_i32 = arith.constant 0 : i32
    %c0_i32_0 = arith.constant 0 : i32
    %c0_i32_1 = arith.constant 0 : i32
    return %c0_i32, %c0_i32_0 : i32, i32
  }
  func.func @transform_2(%arg0: i32) -> (i32, i32) {
    %c0_i32 = arith.constant 0 : i32
    %c0_i32_0 = arith.constant 0 : i32
    return %arg0, %c0_i32 : i32, i32
  }
  func.func @transform_3(%arg0: i32) -> (i32, i32) {
    %c0_i32 = arith.constant 0 : i32
    %c0_i32_0 = arith.constant 0 : i32
    %c0_i32_1 = arith.constant 0 : i32
    return %c0_i32, %c0_i32_0 : i32, i32
  }
  func.func @transform_4(%arg0: i32) -> (i32, i32) {
    %c0_i32 = arith.constant 0 : i32
    %c0_i32_0 = arith.constant 0 : i32
    %c0_i32_1 = arith.constant 0 : i32
    return %c0_i32, %c0_i32_0 : i32, i32
  }
  func.func @transform_5(%arg0: i32) -> (i32, i32) {
    %c0_i32 = arith.constant 0 : i32
    %c0_i32_0 = arith.constant 0 : i32
    return %arg0, %c0_i32 : i32, i32
  }
}

module attributes {stable_mosaic.version = 11 : i64} {
  func.func @_matmul_affine_kernel(%arg0: i32, %arg1: memref<16x1792xbf16, #tpu.memory_space<vmem>>, %arg2: memref<1792x128xbf16, #tpu.memory_space<vmem>>, %arg3: memref<1x128xf32, #tpu.memory_space<vmem>>, %arg4: memref<1x128xf32, #tpu.memory_space<vmem>>, %arg5: memref<16x128xf32, #tpu.memory_space<vmem>>) attributes {dimension_semantics = [#tpu.dimension_semantics<parallel>], iteration_bounds = array<i64: 1>, scalar_prefetch = 0 : i64, scratch_operands = 0 : i64, tpu.core_type = #tpu.core_type<tc>, window_params = [{transform_indices = @transform_0, window_bounds = array<i64: 16, 1792>}, {pipeline_mode = #tpu.pipeline_mode<synchronous>, transform_indices = @transform_1, window_bounds = array<i64: 1792, 128>}, {pipeline_mode = #tpu.pipeline_mode<synchronous>, transform_indices = @transform_2, window_bounds = array<i64: 1, 128>}, {pipeline_mode = #tpu.pipeline_mode<synchronous>, transform_indices = @transform_3, window_bounds = array<i64: 1, 128>}, {transform_indices = @transform_4, window_bounds = array<i64: 16, 128>}]} {
    %c0 = arith.constant 0 : index
    %c0_0 = arith.constant 0 : index
    %0 = vector.load %arg1[%c0, %c0_0] : memref<16x1792xbf16, #tpu.memory_space<vmem>>, vector<16x1792xbf16>
    %c0_1 = arith.constant 0 : index
    %c0_2 = arith.constant 0 : index
    %1 = vector.load %arg2[%c0_1, %c0_2] : memref<1792x128xbf16, #tpu.memory_space<vmem>>, vector<1792x128xbf16>
    %cst = arith.constant dense<0.000000e+00> : vector<16x128xf32>
    %2 = tpu.matmul %0, %1, %cst {dimension_numbers = #tpu.dot_dimension_numbers<[1], [0], [0], [1], [0, 0, 1, 1], [], []>} : vector<16x1792xbf16>, vector<1792x128xbf16>, vector<16x128xf32> -> vector<16x128xf32>
    %c0_3 = arith.constant 0 : index
    %c0_4 = arith.constant 0 : index
    %3 = vector.load %arg3[%c0_3, %c0_4] : memref<1x128xf32, #tpu.memory_space<vmem>>, vector<1x128xf32>
    %4 = vector.broadcast %3 : vector<1x128xf32> to vector<16x128xf32>
    %5 = arith.mulf %2, %4 : vector<16x128xf32>
    %c0_5 = arith.constant 0 : index
    %c0_6 = arith.constant 0 : index
    %6 = vector.load %arg4[%c0_5, %c0_6] : memref<1x128xf32, #tpu.memory_space<vmem>>, vector<1x128xf32>
    %7 = vector.broadcast %6 : vector<1x128xf32> to vector<16x128xf32>
    %8 = arith.addf %5, %7 : vector<16x128xf32>
    %cst_7 = arith.constant 0.000000e+00 : f32
    %9 = vector.broadcast %cst_7 : f32 to vector<16x128xf32>
    %10 = arith.maximumf %8, %9 : vector<16x128xf32>
    %c0_8 = arith.constant 0 : index
    %c0_9 = arith.constant 0 : index
    %11 = vector.load %arg5[%c0_8, %c0_9] : memref<16x128xf32, #tpu.memory_space<vmem>>, vector<16x128xf32>
    tpu.vector_store %arg5[%c0_8, %c0_9], %10 {strides = array<i32>} : memref<16x128xf32, #tpu.memory_space<vmem>>, vector<16x128xf32>,
    return
  }
  func.func @transform_0(%arg0: i32) -> (i32, i32) {
    %c0_i32 = arith.constant 0 : i32
    %c0_i32_0 = arith.constant 0 : i32
    return %arg0, %c0_i32 : i32, i32
  }
  func.func @transform_1(%arg0: i32) -> (i32, i32) {
    %c0_i32 = arith.constant 0 : i32
    %c0_i32_0 = arith.constant 0 : i32
    %c0_i32_1 = arith.constant 0 : i32
    return %c0_i32, %c0_i32_0 : i32, i32
  }
  func.func @transform_2(%arg0: i32) -> (i32, i32) {
    %c0_i32 = arith.constant 0 : i32
    %c0_i32_0 = arith.constant 0 : i32
    %c0_i32_1 = arith.constant 0 : i32
    return %c0_i32, %c0_i32_0 : i32, i32
  }
  func.func @transform_3(%arg0: i32) -> (i32, i32) {
    %c0_i32 = arith.constant 0 : i32
    %c0_i32_0 = arith.constant 0 : i32
    %c0_i32_1 = arith.constant 0 : i32
    return %c0_i32, %c0_i32_0 : i32, i32
  }
  func.func @transform_4(%arg0: i32) -> (i32, i32) {
    %c0_i32 = arith.constant 0 : i32
    %c0_i32_0 = arith.constant 0 : i32
    return %arg0, %c0_i32 : i32, i32
  }
}

module attributes {stable_mosaic.version = 11 : i64} {
  func.func @_matmul_affine_kernel(%arg0: i32, %arg1: memref<16x128xbf16, #tpu.memory_space<vmem>>, %arg2: memref<128x128xbf16, #tpu.memory_space<vmem>>, %arg3: memref<1x128xf32, #tpu.memory_space<vmem>>, %arg4: memref<1x128xf32, #tpu.memory_space<vmem>>, %arg5: memref<16x128xf32, #tpu.memory_space<vmem>>) attributes {dimension_semantics = [#tpu.dimension_semantics<parallel>], iteration_bounds = array<i64: 1>, scalar_prefetch = 0 : i64, scratch_operands = 0 : i64, tpu.core_type = #tpu.core_type<tc>, window_params = [{transform_indices = @transform_0, window_bounds = array<i64: 16, 128>}, {pipeline_mode = #tpu.pipeline_mode<synchronous>, transform_indices = @transform_1, window_bounds = array<i64: 128, 128>}, {pipeline_mode = #tpu.pipeline_mode<synchronous>, transform_indices = @transform_2, window_bounds = array<i64: 1, 128>}, {pipeline_mode = #tpu.pipeline_mode<synchronous>, transform_indices = @transform_3, window_bounds = array<i64: 1, 128>}, {transform_indices = @transform_4, window_bounds = array<i64: 16, 128>}]} {
    %c0 = arith.constant 0 : index
    %c0_0 = arith.constant 0 : index
    %0 = vector.load %arg1[%c0, %c0_0] : memref<16x128xbf16, #tpu.memory_space<vmem>>, vector<16x128xbf16>
    %c0_1 = arith.constant 0 : index
    %c0_2 = arith.constant 0 : index
    %1 = vector.load %arg2[%c0_1, %c0_2] : memref<128x128xbf16, #tpu.memory_space<vmem>>, vector<128x128xbf16>
    %cst = arith.constant dense<0.000000e+00> : vector<16x128xf32>
    %2 = tpu.matmul %0, %1, %cst {dimension_numbers = #tpu.dot_dimension_numbers<[1], [0], [0], [1], [0, 0, 1, 1], [], []>} : vector<16x128xbf16>, vector<128x128xbf16>, vector<16x128xf32> -> vector<16x128xf32>
    %c0_3 = arith.constant 0 : index
    %c0_4 = arith.constant 0 : index
    %3 = vector.load %arg3[%c0_3, %c0_4] : memref<1x128xf32, #tpu.memory_space<vmem>>, vector<1x128xf32>
    %4 = vector.broadcast %3 : vector<1x128xf32> to vector<16x128xf32>
    %5 = arith.mulf %2, %4 : vector<16x128xf32>
    %c0_5 = arith.constant 0 : index
    %c0_6 = arith.constant 0 : index
    %6 = vector.load %arg4[%c0_5, %c0_6] : memref<1x128xf32, #tpu.memory_space<vmem>>, vector<1x128xf32>
    %7 = vector.broadcast %6 : vector<1x128xf32> to vector<16x128xf32>
    %8 = arith.addf %5, %7 : vector<16x128xf32>
    %c0_7 = arith.constant 0 : index
    %c0_8 = arith.constant 0 : index
    %9 = vector.load %arg5[%c0_7, %c0_8] : memref<16x128xf32, #tpu.memory_space<vmem>>, vector<16x128xf32>
    tpu.vector_store %arg5[%c0_7, %c0_8], %8 {strides = array<i32>} : memref<16x128xf32, #tpu.memory_space<vmem>>, vector<16x128xf32>,
    return
  }
  func.func @transform_0(%arg0: i32) -> (i32, i32) {
    %c0_i32 = arith.constant 0 : i32
    %c0_i32_0 = arith.constant 0 : i32
    return %arg0, %c0_i32 : i32, i32
  }
  func.func @transform_1(%arg0: i32) -> (i32, i32) {
    %c0_i32 = arith.constant 0 : i32
    %c0_i32_0 = arith.constant 0 : i32
    %c0_i32_1 = arith.constant 0 : i32
    return %c0_i32, %c0_i32_0 : i32, i32
  }
  func.func @transform_2(%arg0: i32) -> (i32, i32) {
    %c0_i32 = arith.constant 0 : i32
    %c0_i32_0 = arith.constant 0 : i32
    %c0_i32_1 = arith.constant 0 : i32
    return %c0_i32, %c0_i32_0 : i32, i32
  }
  func.func @transform_3(%arg0: i32) -> (i32, i32) {
    %c0_i32 = arith.constant 0 : i32
    %c0_i32_0 = arith.constant 0 : i32
    %c0_i32_1 = arith.constant 0 : i32
    return %c0_i32, %c0_i32_0 : i32, i32
  }
  func.func @transform_4(%arg0: i32) -> (i32, i32) {
    %c0_i32 = arith.constant 0 : i32
    %c0_i32_0 = arith.constant 0 : i32
    return %arg0, %c0_i32 : i32, i32
  }
}

module attributes {stable_mosaic.version = 11 : i64} {
  func.func @_matmul_residual_kernel(%arg0: i32, %arg1: memref<16x1792xbf16, #tpu.memory_space<vmem>>, %arg2: memref<1792x128xbf16, #tpu.memory_space<vmem>>, %arg3: memref<16x128xf32, #tpu.memory_space<vmem>>, %arg4: memref<1x128xf32, #tpu.memory_space<vmem>>, %arg5: memref<1x128xf32, #tpu.memory_space<vmem>>, %arg6: memref<16x128xf32, #tpu.memory_space<vmem>>) attributes {dimension_semantics = [#tpu.dimension_semantics<parallel>], iteration_bounds = array<i64: 1>, scalar_prefetch = 0 : i64, scratch_operands = 0 : i64, tpu.core_type = #tpu.core_type<tc>, window_params = [{transform_indices = @transform_0, window_bounds = array<i64: 16, 1792>}, {pipeline_mode = #tpu.pipeline_mode<synchronous>, transform_indices = @transform_1, window_bounds = array<i64: 1792, 128>}, {transform_indices = @transform_2, window_bounds = array<i64: 16, 128>}, {pipeline_mode = #tpu.pipeline_mode<synchronous>, transform_indices = @transform_3, window_bounds = array<i64: 1, 128>}, {pipeline_mode = #tpu.pipeline_mode<synchronous>, transform_indices = @transform_4, window_bounds = array<i64: 1, 128>}, {transform_indices = @transform_5, window_bounds = array<i64: 16, 128>}]} {
    %c0 = arith.constant 0 : index
    %c0_0 = arith.constant 0 : index
    %0 = vector.load %arg1[%c0, %c0_0] : memref<16x1792xbf16, #tpu.memory_space<vmem>>, vector<16x1792xbf16>
    %c0_1 = arith.constant 0 : index
    %c0_2 = arith.constant 0 : index
    %1 = vector.load %arg2[%c0_1, %c0_2] : memref<1792x128xbf16, #tpu.memory_space<vmem>>, vector<1792x128xbf16>
    %cst = arith.constant dense<0.000000e+00> : vector<16x128xf32>
    %2 = tpu.matmul %0, %1, %cst {dimension_numbers = #tpu.dot_dimension_numbers<[1], [0], [0], [1], [0, 0, 1, 1], [], []>} : vector<16x1792xbf16>, vector<1792x128xbf16>, vector<16x128xf32> -> vector<16x128xf32>
    %c0_3 = arith.constant 0 : index
    %c0_4 = arith.constant 0 : index
    %3 = vector.load %arg3[%c0_3, %c0_4] : memref<16x128xf32, #tpu.memory_space<vmem>>, vector<16x128xf32>
    %4 = arith.addf %2, %3 : vector<16x128xf32>
    %c0_5 = arith.constant 0 : index
    %c0_6 = arith.constant 0 : index
    %5 = vector.load %arg4[%c0_5, %c0_6] : memref<1x128xf32, #tpu.memory_space<vmem>>, vector<1x128xf32>
    %6 = vector.broadcast %5 : vector<1x128xf32> to vector<16x128xf32>
    %7 = arith.mulf %4, %6 : vector<16x128xf32>
    %c0_7 = arith.constant 0 : index
    %c0_8 = arith.constant 0 : index
    %8 = vector.load %arg5[%c0_7, %c0_8] : memref<1x128xf32, #tpu.memory_space<vmem>>, vector<1x128xf32>
    %9 = vector.broadcast %8 : vector<1x128xf32> to vector<16x128xf32>
    %10 = arith.addf %7, %9 : vector<16x128xf32>
    %cst_9 = arith.constant 0.000000e+00 : f32
    %11 = vector.broadcast %cst_9 : f32 to vector<16x128xf32>
    %12 = arith.maximumf %10, %11 : vector<16x128xf32>
    %c0_10 = arith.constant 0 : index
    %c0_11 = arith.constant 0 : index
    %13 = vector.load %arg6[%c0_10, %c0_11] : memref<16x128xf32, #tpu.memory_space<vmem>>, vector<16x128xf32>
    tpu.vector_store %arg6[%c0_10, %c0_11], %12 {strides = array<i32>} : memref<16x128xf32, #tpu.memory_space<vmem>>, vector<16x128xf32>,
    return
  }
  func.func @transform_0(%arg0: i32) -> (i32, i32) {
    %c0_i32 = arith.constant 0 : i32
    %c0_i32_0 = arith.constant 0 : i32
    return %arg0, %c0_i32 : i32, i32
  }
  func.func @transform_1(%arg0: i32) -> (i32, i32) {
    %c0_i32 = arith.constant 0 : i32
    %c0_i32_0 = arith.constant 0 : i32
    %c0_i32_1 = arith.constant 0 : i32
    return %c0_i32, %c0_i32_0 : i32, i32
  }
  func.func @transform_2(%arg0: i32) -> (i32, i32) {
    %c0_i32 = arith.constant 0 : i32
    %c0_i32_0 = arith.constant 0 : i32
    return %arg0, %c0_i32 : i32, i32
  }
  func.func @transform_3(%arg0: i32) -> (i32, i32) {
    %c0_i32 = arith.constant 0 : i32
    %c0_i32_0 = arith.constant 0 : i32
    %c0_i32_1 = arith.constant 0 : i32
    return %c0_i32, %c0_i32_0 : i32, i32
  }
  func.func @transform_4(%arg0: i32) -> (i32, i32) {
    %c0_i32 = arith.constant 0 : i32
    %c0_i32_0 = arith.constant 0 : i32
    %c0_i32_1 = arith.constant 0 : i32
    return %c0_i32, %c0_i32_0 : i32, i32
  }
  func.func @transform_5(%arg0: i32) -> (i32, i32) {
    %c0_i32 = arith.constant 0 : i32
    %c0_i32_0 = arith.constant 0 : i32
    return %arg0, %c0_i32 : i32, i32
  }
}

</mosaic_0001>

<bundles_post_ra>
// kernel: imnet_forward.7
= control target key start
LH: loop header
LB: loop body
LE: loop exit
PB: predicated region body
PF: predicated region fallthrough
CT: control target
= control target key end

     0   :  { %s2589_s15 = smov 0   ;;  %s3056_s0 = inlined_call_operand.vmem [shape: bf16[512,768], index: 0, kind: input, shape index: {}]   ;;  %s3057_s1 = inlined_call_operand.vmem [shape: bf16[768,128], index: 1, kind: input, shape index: {}]   ;;  %s3058_s2 = inlined_call_operand.vmem [shape: f32[1,128], index: 2, kind: input, shape index: {}]   ;;  %s3059_s3 = inlined_call_operand.vmem [shape: f32[1,128], index: 3, kind: input, shape index: {}]   ;;  %s3060_s4 = inlined_call_operand.vmem [shape: f32[512,128], index: 4, kind: output, shape index: {}]  }
   0x1 LB: > { %s1846_s16 = sadd.s32 4294967295, %s2562_s15   ;;  %p1850_p0 = scmp.ge.s32.totalorder %s2562_s15, 1  ;;  %s2562_s15 = sphi %s2589_s15, %s14_s15  }
   0x2   : > { %p164_p1 = scmp.lt.s32.totalorder %s2562_s15, 3 }
   0x4   : > { %p165_p2 = pnand %p1850_p0, %p164_p1 }
   0x5   : > { %v2364_v0 = vld [vmem:[%s3057_s1 + $0x40] sm:$0xff] (!%p165_p2)   ;;  %s1851_s19 = sshll.u32 (!%p165_p2), %s1846_s16, 5  ;;  %v2366_v2 = vld [vmem:[%s3057_s1 + $0x48] sm:$0xff] (!%p165_p2)   ;;  %v2368_v4 = vld [vmem:[%s3057_s1 + $0x50] sm:$0xff] (!%p165_p2)  }
   0x6   : > { %168 = sbr.rel (%p165_p2) target bundleno = 450 (0x1c2), region = 36  ;;  %v2365_v1 = vld [vmem:[%s3057_s1] sm:$0xff] (!%p165_p2)   ;;  %2003 = vmatprep.subr.bf16.mxu0 (!%p165_p2), %v2364_v0  ;;  %2339 = vmatprep.subr.bf16.mxu1 (!%p165_p2), %v2364_v0  ;;  %p192_p3 = scmp.lt.s32.totalorder (!%p165_p2), %s1851_s19, 63  ;;  %v2367_v3 = vld [vmem:[%s3057_s1 + $0x8] sm:$0xff] (!%p165_p2)   ;;  %v2369_v5 = vld [vmem:[%s3057_s1 + $0x10] sm:$0xff] (!%p165_p2)  }
   0x7   : > { %2004 = vmatpush3.bf16.msra.mxu0 (!%p165_p2), %v2365_v1  ;;  %2347 = vmatpush3.bf16.msra.mxu1 (!%p165_p2), %v2365_v1  ;;  %v2370_v6 = vld [vmem:[%s3057_s1 + $0x58] sm:$0xff] (!%p165_p2)   ;;  %v2372_v8 = vld [vmem:[%s3057_s1 + $0x60] sm:$0xff] (!%p165_p2)   ;;  %v2374_v10 = vld [vmem:[%s3057_s1 + $0x68] sm:$0xff] (!%p165_p2)  }
   0x8   : > { %2005 = vmatprep.subr.bf16.mxu0 (!%p165_p2), %v2366_v2  ;;  %2340 = vmatprep.subr.bf16.mxu1 (!%p165_p2), %v2366_v2  ;;  %v2371_v7 = vld [vmem:[%s3057_s1 + $0x18] sm:$0xff] (!%p165_p2)   ;;  %v2373_v9 = vld [vmem:[%s3057_s1 + $0x20] sm:$0xff] (!%p165_p2)   ;;  %v2375_v13 = vld [vmem:[%s3057_s1 + $0x28] sm:$0xff] (!%p165_p2)  }
   0x9   : > { %v2376_v14 = vld [vmem:[%s3057_s1 + $0x70] sm:$0xff] (!%p165_p2)   ;;  %v2378_v16 = vld [vmem:[%s3057_s1 + $0x78] sm:$0xff] (!%p165_p2)   ;;  %v2386_v18 = vld [vmem:[%s3057_s1 + $0xc0] sm:$0xff] (!%p165_p2)  }
   0xa   : > { %v2377_v15 = vld [vmem:[%s3057_s1 + $0x30] sm:$0xff] (!%p165_p2)   ;;  %v2379_v17 = vld [vmem:[%s3057_s1 + $0x38] sm:$0xff] (!%p165_p2)   ;;  %v2388_v20 = vld [vmem:[%s3057_s1 + $0x140] sm:$0xff] (!%p165_p2)  }
   0xb   : > { %2006 = vmatpush3.bf16.msra.mxu0 (!%p165_p2), %v2367_v3  ;;  %2348 = vmatpush3.bf16.msra.mxu1 (!%p165_p2), %v2367_v3  ;;  %v2387_v22 = vld [vmem:[%s3057_s1 + $0x80] sm:$0xff] (!%p165_p2)   ;;  %v2396_v26 = vld [vmem:[%s3057_s1 + $0xc8] sm:$0xff] (!%p165_p2)   ;;  %v2406_v30 = vld [vmem:[%s3057_s1 + $0xd0] sm:$0xff] (!%p165_p2)  }
   0xc   : > { %2007 = vmatprep.subr.bf16.mxu0 (!%p165_p2), %v2368_v4  ;;  %2341 = vmatprep.subr.bf16.mxu1 (!%p165_p2), %v2368_v4  ;;  %v2389_v23 = vld [vmem:[%s3057_s1 + $0x100] sm:$0xff] (!%p165_p2)   ;;  %v2397_v27 = vld [vmem:[%s3057_s1 + $0x88] sm:$0xff] (!%p165_p2)   ;;  %v2408_v33 = vld [vmem:[%s3057_s1 + $0x150] sm:$0xff] (!%p165_p2)  }
   0xd   : > { %s3062_s19 = smov (!%p192_p3, %s1851_s19), 63  ;;  %v2398_v28 = vld [vmem:[%s3057_s1 + $0x148] sm:$0xff]   ;;  %v2407_v36 = vld [vmem:[%s3057_s1 + $0x90] sm:$0xff]   ;;  %v2416_v38 = vld [vmem:[%s3057_s1 + $0xd8] sm:$0xff]  }
   0xe   : > { %s2355_s6 = smul.u32 24, %s3062_s19  ;;  %v2399_v29 = vld [vmem:[%s3057_s1 + $0x108] sm:$0xff]   ;;  %v2409_v37 = vld [vmem:[%s3057_s1 + $0x110] sm:$0xff]   ;;  %v2418_v39 = vld [vmem:[%s3057_s1 + $0x158] sm:$0xff]   ;;  %s1854_s28 = sshll.u32 %s3062_s19, 3 }
   0xf   : > { %2008 = vmatpush3.bf16.msra.mxu0 %v2369_v5  ;;  %2349 = vmatpush3.bf16.msra.mxu1 %v2369_v5  ;;  %v2417_v42 = vld [vmem:[%s3057_s1 + $0x98] sm:$0xff]   ;;  %v2426_v46 = vld [vmem:[%s3057_s1 + $0xe0] sm:$0xff]   ;;  %v2436_v52 = vld [vmem:[%s3057_s1 + $0xe8] sm:$0xff]   ;;  %s2928_s5 = scalar_lea.vmem %s3060_s4, %s1854_s28 }
  0x10   : > { %2009 = vmatprep.subr.bf16.mxu0 %v2370_v6  ;;  %2342 = vmatprep.subr.bf16.mxu1 %v2370_v6  ;;  %s2630_s13 = scalar_lea.vmem %s3056_s0, %s2355_s6  ;;  %v2419_v43 = vld [vmem:[%s3057_s1 + $0x118] sm:$0xff]   ;;  %v2427_v47 = vld [vmem:[%s3057_s1 + $0xa0] sm:$0xff]   ;;  %v2437_v55 = vld [vmem:[%s3057_s1 + $0xa8] sm:$0xff]  }
  0x11   : > { %v2382_v11 = vld [vmem:[%s2630_s13 + $0x4] ss:$24 sps:$4 sm:$0xff]   ;;  %v2380_v19 = vld [vmem:[%s2630_s13] ss:$24 sps:$4 sm:$0xff]   ;;  %v2390_v24 = vld [vmem:[%s2630_s13 + $0x34] ss:$24 sps:$4 sm:$0xff]  }
  0x12   : > { %v2385_v12 = vld [vmem:[%s2630_s13 + $0x184] ss:$24 sps:$4 sm:$0xff]   ;;  %1197 = vmatprep.mubr.bf16.mxu0 %v2382_v11  ;;  %v2383_v21 = vld [vmem:[%s2630_s13 + $0x180] ss:$24 sps:$4 sm:$0xff]   ;;  %v2392_v25 = vld [vmem:[%s2630_s13 + $0x1b4] ss:$24 sps:$4 sm:$0xff]  }
  0x13   : > { %2010 = vmatpush3.bf16.msra.mxu0 %v2371_v7  ;;  %2350 = vmatpush3.bf16.msra.mxu1 %v2371_v7  ;;  %v2394_v31 = vld [vmem:[%s2630_s13 + $0x30] ss:$24 sps:$4 sm:$0xff]   ;;  %v2400_v34 = vld [vmem:[%s2630_s13 + $0x64] ss:$24 sps:$4 sm:$0xff]   ;;  %v2404_v40 = vld [vmem:[%s2630_s13 + $0x60] ss:$24 sps:$4 sm:$0xff]  }
  0x14   : > { %2011 = vmatprep.subr.bf16.mxu0 %v2372_v8  ;;  %2343 = vmatprep.subr.bf16.mxu1 %v2372_v8  ;;  %v2395_v32 = vld [vmem:[%s2630_s13 + $0x1b0] ss:$24 sps:$4 sm:$0xff]   ;;  %v2402_v35 = vld [vmem:[%s2630_s13 + $0x1e4] ss:$24 sps:$4 sm:$0xff]   ;;  %v2405_v41 = vld [vmem:[%s2630_s13 + $0x1e0] ss:$24 sps:$4 sm:$0xff]  }
  0x15   : > { %1261 = vmatprep.mubr.bf16.mxu1 %v2385_v12  ;;  %v2410_v44 = vld [vmem:[%s2630_s13 + $0x94] ss:$24 sps:$4 sm:$0xff]   ;;  %v2428_v48 = vld [vmem:[%s3057_s1 + $0x160] sm:$0xff]   ;;  %v2414_v50 = vld [vmem:[%s2630_s13 + $0x90] ss:$24 sps:$4 sm:$0xff]  }
  0x16   : > { %v2412_v45 = vld [vmem:[%s2630_s13 + $0x214] ss:$24 sps:$4 sm:$0xff]   ;;  %v2429_v49 = vld [vmem:[%s3057_s1 + $0x120] sm:$0xff]   ;;  %v2415_v51 = vld [vmem:[%s2630_s13 + $0x210] ss:$24 sps:$4 sm:$0xff]  }
  0x17   : > { %2012 = vmatpush3.bf16.msra.mxu0 %v2373_v9  ;;  %2351 = vmatpush3.bf16.msra.mxu1 %v2373_v9  ;;  %v2420_v53 = vld [vmem:[%s2630_s13 + $0xc4] ss:$24 sps:$4 sm:$0xff]   ;;  %v2438_v56 = vld [vmem:[%s3057_s1 + $0x168] sm:$0xff]   ;;  %v2446_v58 = vld [vmem:[%s3057_s1 + $0xf0] sm:$0xff]  }
  0x18   : > { %2013 = vmatprep.subr.bf16.mxu0 %v2374_v10  ;;  %2344 = vmatprep.subr.bf16.mxu1 %v2374_v10  ;;  %v2422_v54 = vld [vmem:[%s2630_s13 + $0x244] ss:$24 sps:$4 sm:$0xff]   ;;  %v2439_v57 = vld [vmem:[%s3057_s1 + $0x128] sm:$0xff]   ;;  %v2424_v59 = vld [vmem:[%s2630_s13 + $0xc0] ss:$24 sps:$4 sm:$0xff]  }
  0x19   : > { %v2425_v60 = vld [vmem:[%s2630_s13 + $0x240] ss:$24 sps:$4 sm:$0xff]   ;;  %v2447_v61 = vld [vmem:[%s3057_s1 + $0xb0] sm:$0xff]   ;;  %v2440_v8 = vld [vmem:[%s2630_s13 + $0x124] ss:$24 sps:$4 sm:$0xff]  }
  0x1a   : > { %v2430_v62 = vld [vmem:[%s2630_s13 + $0xf4] ss:$24 sps:$4 sm:$0xff]   ;;  %v2456_v2 = vld [vmem:[%s3057_s1 + $0xf8] sm:$0xff]   ;;  %v2434_v6 = vld [vmem:[%s2630_s13 + $0xf0] ss:$24 sps:$4 sm:$0xff]  }
  0x1b   : > { %2014 = vmatpush3.bf16.msra.mxu0 %v2375_v13  ;;  %2352 = vmatpush3.bf16.msra.mxu1 %v2375_v13  ;;  %v2448_v63 = vld [vmem:[%s3057_s1 + $0x170] sm:$0xff]   ;;  %v2457_v3 = vld [vmem:[%s3057_s1 + $0xb8] sm:$0xff]  }
  0x1c   : > { %2015 = vmatprep.subr.bf16.mxu0 %v2376_v14  ;;  %2345 = vmatprep.subr.bf16.mxu1 %v2376_v14  ;;  %v2449_v0 = vld [vmem:[%s3057_s1 + $0x130] sm:$0xff]   ;;  %v2458_v4 = vld [vmem:[%s3057_s1 + $0x178] sm:$0xff]  }
  0x1d   : > { %v2432_v1 = vld [vmem:[%s2630_s13 + $0x274] ss:$24 sps:$4 sm:$0xff]   ;;  %v2459_v5 = vld [vmem:[%s3057_s1 + $0x138] sm:$0xff]   ;;  %v2435_v7 = vld [vmem:[%s2630_s13 + $0x270] ss:$24 sps:$4 sm:$0xff]  }
  0x1e   : > { %v2442_v9 = vld [vmem:[%s2630_s13 + $0x2a4] ss:$24 sps:$4 sm:$0xff]   ;;  %v2444_v10 = vld [vmem:[%s2630_s13 + $0x120] ss:$24 sps:$4 sm:$0xff]   ;;  %v2450_v12 = vld [vmem:[%s2630_s13 + $0x154] ss:$24 sps:$4 sm:$0xff]  }
  0x1f   : > { %2016 = vmatpush3.bf16.msra.mxu0 %v2377_v15  ;;  %2353 = vmatpush3.bf16.msra.mxu1 %v2377_v15  ;;  %v2445_v11 = vld [vmem:[%s2630_s13 + $0x2a0] ss:$24 sps:$4 sm:$0xff]   ;;  %v2452_v13 = vld [vmem:[%s2630_s13 + $0x2d4] ss:$24 sps:$4 sm:$0xff]   ;;  %v2454_v14 = vld [vmem:[%s2630_s13 + $0x150] ss:$24 sps:$4 sm:$0xff]  }
  0x20   : > { %2017 = vmatprep.subr.bf16.mxu0 %v2378_v16  ;;  %2346 = vmatprep.subr.bf16.mxu1 %v2378_v16  ;;  %v2455_v15 = vld [vmem:[%s2630_s13 + $0x2d0] ss:$24 sps:$4 sm:$0xff]   ;;  %v2462_v16 = vld [vmem:[%s2630_s13 + $0xc] ss:$24 sps:$4 sm:$0xff]  }
  0x23   : > { %2018 = vmatpush3.bf16.msra.mxu0 %v2379_v17  ;;  %2354 = vmatpush3.bf16.msra.mxu1 %v2379_v17  ;;  %v2465_v17 = vld [vmem:[%s2630_s13 + $0x14] ss:$24 sps:$4 sm:$0xff]  }
  0x24   : > { %2115 = vmatprep.subr.bf16.mxu1 %v2386_v18  ;;  %2227 = vmatprep.subr.bf16.mxu0 %v2388_v20  ;;  %v2460_v18 = vld [vmem:[%s2630_s13 + $0x8] ss:$24 sps:$4 sm:$0xff]   ;;  %v2466_v20 = vld [vmem:[%s2630_s13 + $0x3c] ss:$24 sps:$4 sm:$0xff]  }
  0x26   : > { %1198 = vmatmul.mubr.bf16.vlgmr.msra.gmra.mrb[0].mxu0 %v2380_v19  ;;  %1262 = vmatmul.mubr.bf16.vlgmr.msra.gmra.mrb[0].mxu1 %v2383_v21  ;;  %v2463_v19 = vld [vmem:[%s2630_s13 + $0x10] ss:$24 sps:$4 sm:$0xff]   ;;  %v2468_v21 = vld [vmem:[%s2630_s13 + $0x44] ss:$24 sps:$4 sm:$0xff]  }
  0x27   : > { %2116 = vmatpush3.bf16.msra.mxu1 %v2387_v22  ;;  %2228 = vmatpush3.bf16.msra.mxu0 %v2389_v23  ;;  %v2470_v22 = vld [vmem:[%s2630_s13 + $0x38] ss:$24 sps:$4 sm:$0xff]  }
  0x28   : > { %1205 = vmatprep.mubr.bf16.mxu0 %v2390_v24  ;;  %1269 = vmatprep.mubr.bf16.mxu1 %v2392_v25  ;;  %v2471_v23 = vld [vmem:[%s2630_s13 + $0x40] ss:$24 sps:$4 sm:$0xff]   ;;  %v2472_v24 = vld [vmem:[%s2630_s13 + $0x6c] ss:$24 sps:$4 sm:$0xff]  }
  0x29   : > { %2117 = vmatprep.subr.bf16.mxu1 %v2396_v26  ;;  %2229 = vmatprep.subr.bf16.mxu0 %v2398_v28  ;;  %v2474_v25 = vld [vmem:[%s2630_s13 + $0x74] ss:$24 sps:$4 sm:$0xff]   ;;  %v2476_v26 = vld [vmem:[%s2630_s13 + $0x68] ss:$24 sps:$4 sm:$0xff]  }
  0x2a   : > { %v2478_v28 = vld [vmem:[%s2630_s13 + $0x9c] ss:$24 sps:$4 sm:$0xff]  }
  0x2b   : > { %2118 = vmatpush3.bf16.msra.mxu1 %v2397_v27  ;;  %2230 = vmatpush3.bf16.msra.mxu0 %v2399_v29  ;;  %v2477_v27 = vld [vmem:[%s2630_s13 + $0x70] ss:$24 sps:$4 sm:$0xff]   ;;  %v2480_v29 = vld [vmem:[%s2630_s13 + $0xa4] ss:$24 sps:$4 sm:$0xff]  }
  0x2c   : > { %2119 = vmatprep.subr.bf16.mxu1 %v2406_v30  ;;  %2231 = vmatprep.subr.bf16.mxu0 %v2408_v33  ;;  %v2482_v30 = vld [vmem:[%s2630_s13 + $0x98] ss:$24 sps:$4 sm:$0xff]   ;;  %v2486_v33 = vld [vmem:[%s2630_s13 + $0xd4] ss:$24 sps:$4 sm:$0xff]  }
  0x2e   : > { %1206 = vmatmul.mubr.bf16.gmra.mrb[4].mxu0 %v2394_v31  ;;  %1270 = vmatmul.mubr.bf16.gmra.mrb[4].mxu1 %v2395_v32  ;;  %v2483_v31 = vld [vmem:[%s2630_s13 + $0xa0] ss:$24 sps:$4 sm:$0xff]   ;;  %v2484_v32 = vld [vmem:[%s2630_s13 + $0xcc] ss:$24 sps:$4 sm:$0xff]  }
  0x2f   : > { %1213 = vmatprep.mubr.bf16.mxu0 %v2400_v34  ;;  %1277 = vmatprep.mubr.bf16.mxu1 %v2402_v35  ;;  %v2488_v34 = vld [vmem:[%s2630_s13 + $0xc8] ss:$24 sps:$4 sm:$0xff]  }
  0x30   : > { %2120 = vmatpush3.bf16.msra.mxu1 %v2407_v36  ;;  %2232 = vmatpush3.bf16.msra.mxu0 %v2409_v37  ;;  %v2489_v35 = vld [vmem:[%s2630_s13 + $0xd0] ss:$24 sps:$4 sm:$0xff]   ;;  %v2490_v36 = vld [vmem:[%s2630_s13 + $0xfc] ss:$24 sps:$4 sm:$0xff]  }
  0x31   : > { %2121 = vmatprep.subr.bf16.mxu1 %v2416_v38  ;;  %2233 = vmatprep.subr.bf16.mxu0 %v2418_v39  ;;  %v2492_v37 = vld [vmem:[%s2630_s13 + $0x104] ss:$24 sps:$4 sm:$0xff]   ;;  %v2494_v38 = vld [vmem:[%s2630_s13 + $0xf8] ss:$24 sps:$4 sm:$0xff]  }
  0x32   : > { %v2495_v39 = vld [vmem:[%s2630_s13 + $0x100] ss:$24 sps:$4 sm:$0xff]  }
  0x34   : > { %2122 = vmatpush3.bf16.msra.mxu1 %v2417_v42  ;;  %2234 = vmatpush3.bf16.msra.mxu0 %v2419_v43  ;;  %v2500_v42 = vld [vmem:[%s2630_s13 + $0x128] ss:$24 sps:$4 sm:$0xff]  }
  0x35   : > { %2123 = vmatprep.subr.bf16.mxu1 %v2426_v46  ;;  %2235 = vmatprep.subr.bf16.mxu0 %v2428_v48  ;;  %v2501_v43 = vld [vmem:[%s2630_s13 + $0x130] ss:$24 sps:$4 sm:$0xff]   ;;  %v2508_v48 = vld [vmem:[%s2630_s13 + $0x18c] ss:$24 sps:$4 sm:$0xff]  }
  0x36   : > { %1214 = vmatmul.mubr.bf16.gmra.mrb[8].mxu0 %v2404_v40  ;;  %1278 = vmatmul.mubr.bf16.gmra.mrb[8].mxu1 %v2405_v41  ;;  %v2496_v40 = vld [vmem:[%s2630_s13 + $0x12c] ss:$24 sps:$4 sm:$0xff]   ;;  %v2506_v46 = vld [vmem:[%s2630_s13 + $0x158] ss:$24 sps:$4 sm:$0xff]  }
  0x37   : > { %1221 = vmatprep.mubr.bf16.mxu0 %v2410_v44  ;;  %1285 = vmatprep.mubr.bf16.mxu1 %v2412_v45  ;;  %v2498_v41 = vld [vmem:[%s2630_s13 + $0x134] ss:$24 sps:$4 sm:$0xff]   ;;  %v2504_v45 = vld [vmem:[%s2630_s13 + $0x164] ss:$24 sps:$4 sm:$0xff]  }
  0x38   : > { %2124 = vmatpush3.bf16.msra.mxu1 %v2427_v47  ;;  %2236 = vmatpush3.bf16.msra.mxu0 %v2429_v49  ;;  %v2502_v44 = vld [vmem:[%s2630_s13 + $0x15c] ss:$24 sps:$4 sm:$0xff]   ;;  %v2507_v47 = vld [vmem:[%s2630_s13 + $0x160] ss:$24 sps:$4 sm:$0xff]  }
  0x39   : > { %2125 = vmatprep.subr.bf16.mxu1 %v2436_v52  ;;  %2237 = vmatprep.subr.bf16.mxu0 %v2438_v56  ;;  %v2510_v49 = vld [vmem:[%s2630_s13 + $0x194] ss:$24 sps:$4 sm:$0xff]  }
  0x3a   : > { %v2514_v52 = vld [vmem:[%s2630_s13 + $0x1bc] ss:$24 sps:$4 sm:$0xff]   ;;  %v2520_v56 = vld [vmem:[%s2630_s13 + $0x1ec] ss:$24 sps:$4 sm:$0xff]  }
  0x3c   : > { %2126 = vmatpush3.bf16.msra.mxu1 %v2437_v55  ;;  %2238 = vmatpush3.bf16.msra.mxu0 %v2439_v57  ;;  %v2519_v55 = vld [vmem:[%s2630_s13 + $0x1c0] ss:$24 sps:$4 sm:$0xff]   ;;  %v2522_v57 = vld [vmem:[%s2630_s13 + $0x1f4] ss:$24 sps:$4 sm:$0xff]  }
  0x3d   : > { %2127 = vmatprep.subr.bf16.mxu1 %v2446_v58  ;;  %2239 = vmatprep.subr.bf16.mxu0 %v2448_v63  ;;  %v2524_v58 = vld [vmem:[%s2630_s13 + $0x1e8] ss:$24 sps:$4 sm:$0xff]  }
  0x3e   : > { %1222 = vmatmul.mubr.bf16.gmra.mrb[12].mxu0 %v2414_v50  ;;  %1286 = vmatmul.mubr.bf16.gmra.mrb[12].mxu1 %v2415_v51  ;;  %v2512_v50 = vld [vmem:[%s2630_s13 + $0x188] ss:$24 sps:$4 sm:$0xff]  }
  0x3f   : > { %1229 = vmatprep.mubr.bf16.mxu0 %v2420_v53  ;;  %1293 = vmatprep.mubr.bf16.mxu1 %v2422_v54  ;;  %v2513_v51 = vld [vmem:[%s2630_s13 + $0x190] ss:$24 sps:$4 sm:$0xff]   ;;  %v2516_v53 = vld [vmem:[%s2630_s13 + $0x1c4] ss:$24 sps:$4 sm:$0xff]   ;;  %v2531_v63 = vld [vmem:[%s2630_s13 + $0x220] ss:$24 sps:$4 sm:$0xff]  }
  0x40   : > { %2128 = vmatpush3.bf16.msra.mxu1 %v2447_v61  ;;  %2240 = vmatpush3.bf16.msra.mxu0 %v2449_v0  ;;  %v2518_v54 = vld [vmem:[%s2630_s13 + $0x1b8] ss:$24 sps:$4 sm:$0xff]   ;;  %v2528_v61 = vld [vmem:[%s2630_s13 + $0x224] ss:$24 sps:$4 sm:$0xff]  }
  0x41   : > { %2129 = vmatprep.subr.bf16.mxu1 %v2456_v2  ;;  %2241 = vmatprep.subr.bf16.mxu0 %v2458_v4  ;;  %v2532_v0 = vld [vmem:[%s2630_s13 + $0x24c] ss:$24 sps:$4 sm:$0xff]   ;;  %v2536_v2 = vld [vmem:[%s2630_s13 + $0x248] ss:$24 sps:$4 sm:$0xff]   ;;  %v2538_v4 = vld [vmem:[%s2630_s13 + $0x27c] ss:$24 sps:$4 sm:$0xff]  }
  0x44   : > { %2130 = vmatpush3.bf16.msra.mxu1 %v2457_v3  ;;  %2242 = vmatpush3.bf16.msra.mxu0 %v2459_v5  ;;  %v2537_v3 = vld [vmem:[%s2630_s13 + $0x250] ss:$24 sps:$4 sm:$0xff]   ;;  %v2540_v5 = vld [vmem:[%s2630_s13 + $0x284] ss:$24 sps:$4 sm:$0xff]  }
  0x46   : > { %1230 = vmatmul.mubr.bf16.gmra.mrb[16].mxu0 %v2424_v59  ;;  %1294 = vmatmul.mubr.bf16.gmra.mrb[16].mxu1 %v2425_v60  ;;  %v2525_v59 = vld [vmem:[%s2630_s13 + $0x1f0] ss:$24 sps:$4 sm:$0xff]   ;;  %v2526_v60 = vld [vmem:[%s2630_s13 + $0x21c] ss:$24 sps:$4 sm:$0xff]  }
  0x47   : > { %1237 = vmatprep.mubr.bf16.mxu0 %v2430_v62  ;;  %1301 = vmatprep.mubr.bf16.mxu1 %v2432_v1  ;;  %v2530_v62 = vld [vmem:[%s2630_s13 + $0x218] ss:$24 sps:$4 sm:$0xff]   ;;  %v2534_v1 = vld [vmem:[%s2630_s13 + $0x254] ss:$24 sps:$4 sm:$0xff]  }
  0x4e   : > { %1238 = vmatmul.mubr.bf16.gmra.mrb[20].mxu0 %v2434_v6  ;;  %1302 = vmatmul.mubr.bf16.gmra.mrb[20].mxu1 %v2435_v7  ;;  %v2542_v6 = vld [vmem:[%s2630_s13 + $0x278] ss:$24 sps:$4 sm:$0xff]  }
  0x4f   : > { %1245 = vmatprep.mubr.bf16.mxu0 %v2440_v8  ;;  %1309 = vmatprep.mubr.bf16.mxu1 %v2442_v9  ;;  %v2543_v7 = vld [vmem:[%s2630_s13 + $0x280] ss:$24 sps:$4 sm:$0xff]   ;;  %v2544_v8 = vld [vmem:[%s2630_s13 + $0x2ac] ss:$24 sps:$4 sm:$0xff]  }
  0x50   : > { %v2546_v9 = vld [vmem:[%s2630_s13 + $0x2b4] ss:$24 sps:$4 sm:$0xff]  }
  0x56   : > { %1246 = vmatmul.mubr.bf16.gmra.mrb[24].mxu0 %v2444_v10  ;;  %1310 = vmatmul.mubr.bf16.gmra.mrb[24].mxu1 %v2445_v11  ;;  %v2548_v10 = vld [vmem:[%s2630_s13 + $0x2a8] ss:$24 sps:$4 sm:$0xff]  }
  0x57   : > { %1253 = vmatprep.mubr.bf16.mxu0 %v2450_v12  ;;  %1317 = vmatprep.mubr.bf16.mxu1 %v2452_v13  ;;  %v2549_v11 = vld [vmem:[%s2630_s13 + $0x2b0] ss:$24 sps:$4 sm:$0xff]   ;;  %v2550_v12 = vld [vmem:[%s2630_s13 + $0x2dc] ss:$24 sps:$4 sm:$0xff]  }
  0x58   : > { %v2552_v13 = vld [vmem:[%s2630_s13 + $0x2e4] ss:$24 sps:$4 sm:$0xff]  }
  0x5e   : > { %1254 = vmatmul.mubr.bf16.gmra.mrb[28].mxu0 %v2454_v14  ;;  %1318 = vmatmul.mubr.bf16.gmra.mrb[28].mxu1 %v2455_v15  ;;  %v2554_v14 = vld [vmem:[%s2630_s13 + $0x2d8] ss:$24 sps:$4 sm:$0xff]  }
  0x5f   : > { %1358 = vmatprep.mubr.bf16.mxu1 %v2462_v16  ;;  %1519 = vmatprep.mubr.bf16.mxu0 %v2465_v17  ;;  %v2555_v15 = vld [vmem:[%s2630_s13 + $0x2e0] ss:$24 sps:$4 sm:$0xff]  }
  0x66   : > { %1359 = vmatmul.mubr.bf16.vlgmr.msra.gmra.mrb[32].mxu1 %v2460_v18  ;;  %1520 = vmatmul.mubr.bf16.vlgmr.msra.gmra.mrb[32].mxu0 %v2463_v19 }
  0x67   : > { %1366 = vmatprep.mubr.bf16.mxu1 %v2466_v20  ;;  %1527 = vmatprep.mubr.bf16.mxu0 %v2468_v21 }
  0x6e   : > { %1367 = vmatmul.mubr.bf16.gmra.mrb[36].mxu1 %v2470_v22  ;;  %1528 = vmatmul.mubr.bf16.gmra.mrb[36].mxu0 %v2471_v23 }
  0x6f   : > { %1374 = vmatprep.mubr.bf16.mxu1 %v2472_v24  ;;  %1535 = vmatprep.mubr.bf16.mxu0 %v2474_v25 }
  0x76   : > { %1375 = vmatmul.mubr.bf16.gmra.mrb[40].mxu1 %v2476_v26  ;;  %1536 = vmatmul.mubr.bf16.gmra.mrb[40].mxu0 %v2477_v27 }
  0x77   : > { %1382 = vmatprep.mubr.bf16.mxu1 %v2478_v28  ;;  %1543 = vmatprep.mubr.bf16.mxu0 %v2480_v29 }
  0x7e   : > { %1383 = vmatmul.mubr.bf16.gmra.mrb[44].mxu1 %v2482_v30  ;;  %1544 = vmatmul.mubr.bf16.gmra.mrb[44].mxu0 %v2483_v31 }
  0x7f   : > { %1390 = vmatprep.mubr.bf16.mxu1 %v2484_v32  ;;  %1551 = vmatprep.mubr.bf16.mxu0 %v2486_v33 }
  0x86   : > { %1391 = vmatmul.mubr.bf16.gmra.mrb[48].mxu1 %v2488_v34  ;;  %1552 = vmatmul.mubr.bf16.gmra.mrb[48].mxu0 %v2489_v35 }
  0x87   : > { %1398 = vmatprep.mubr.bf16.mxu1 %v2490_v36  ;;  %1559 = vmatprep.mubr.bf16.mxu0 %v2492_v37 }
  0x8e   : > { %1399 = vmatmul.mubr.bf16.gmra.mrb[52].mxu1 %v2494_v38  ;;  %1560 = vmatmul.mubr.bf16.gmra.mrb[52].mxu0 %v2495_v39 }
  0x8f   : > { %1406 = vmatprep.mubr.bf16.mxu1 %v2496_v40  ;;  %1567 = vmatprep.mubr.bf16.mxu0 %v2498_v41 }
  0x96   : > { %1407 = vmatmul.mubr.bf16.gmra.mrb[56].mxu1 %v2500_v42  ;;  %1568 = vmatmul.mubr.bf16.gmra.mrb[56].mxu0 %v2501_v43 }
  0x97   : > { %1414 = vmatprep.mubr.bf16.mxu1 %v2502_v44  ;;  %1575 = vmatprep.mubr.bf16.mxu0 %v2504_v45 }
  0x9e   : > { %1415 = vmatmul.mubr.bf16.gmra.mrb[60].mxu1 %v2506_v46  ;;  %1576 = vmatmul.mubr.bf16.gmra.mrb[60].mxu0 %v2507_v47 }
  0x9f   : > { %1422 = vmatprep.mubr.bf16.mxu1 %v2508_v48  ;;  %1583 = vmatprep.mubr.bf16.mxu0 %v2510_v49 }
  0xa6   : > { %1423 = vmatmul.mubr.bf16.gmra.mrb[64].mxu1 %v2512_v50  ;;  %1584 = vmatmul.mubr.bf16.gmra.mrb[64].mxu0 %v2513_v51 }
  0xa7   : > { %1430 = vmatprep.mubr.bf16.mxu1 %v2514_v52  ;;  %1591 = vmatprep.mubr.bf16.mxu0 %v2516_v53 }
  0xae   : > { %1431 = vmatmul.mubr.bf16.gmra.mrb[68].mxu1 %v2518_v54  ;;  %1592 = vmatmul.mubr.bf16.gmra.mrb[68].mxu0 %v2519_v55 }
  0xaf   : > { %1438 = vmatprep.mubr.bf16.mxu1 %v2520_v56  ;;  %1599 = vmatprep.mubr.bf16.mxu0 %v2522_v57 }
  0xb6   : > { %1439 = vmatmul.mubr.bf16.gmra.mrb[72].mxu1 %v2524_v58  ;;  %1600 = vmatmul.mubr.bf16.gmra.mrb[72].mxu0 %v2525_v59 }
  0xb7   : > { %1446 = vmatprep.mubr.bf16.mxu1 %v2526_v60  ;;  %1607 = vmatprep.mubr.bf16.mxu0 %v2528_v61 }
  0xbe   : > { %1447 = vmatmul.mubr.bf16.gmra.mrb[76].mxu1 %v2530_v62  ;;  %1608 = vmatmul.mubr.bf16.gmra.mrb[76].mxu0 %v2531_v63 }
  0xbf   : > { %1454 = vmatprep.mubr.bf16.mxu1 %v2532_v0  ;;  %1615 = vmatprep.mubr.bf16.mxu0 %v2534_v1 }
  0xc6   : > { %1455 = vmatmul.mubr.bf16.gmra.mrb[80].mxu1 %v2536_v2  ;;  %1616 = vmatmul.mubr.bf16.gmra.mrb[80].mxu0 %v2537_v3 }
  0xc7   : > { %1462 = vmatprep.mubr.bf16.mxu1 %v2538_v4  ;;  %1623 = vmatprep.mubr.bf16.mxu0 %v2540_v5 }
  0xce   : > { %1463 = vmatmul.mubr.bf16.gmra.mrb[84].mxu1 %v2542_v6  ;;  %1624 = vmatmul.mubr.bf16.gmra.mrb[84].mxu0 %v2543_v7 }
  0xcf   : > { %1470 = vmatprep.mubr.bf16.mxu1 %v2544_v8  ;;  %1631 = vmatprep.mubr.bf16.mxu0 %v2546_v9 }
  0xd6   : > { %1471 = vmatmul.mubr.bf16.gmra.mrb[88].mxu1 %v2548_v10  ;;  %1632 = vmatmul.mubr.bf16.gmra.mrb[88].mxu0 %v2549_v11 }
  0xd7   : > { %1478 = vmatprep.mubr.bf16.mxu1 %v2550_v12  ;;  %1639 = vmatprep.mubr.bf16.mxu0 %v2552_v13 }
  0xde   : > { %1479 = vmatmul.mubr.bf16.gmra.mrb[92].mxu1 %v2554_v14  ;;  %1640 = vmatmul.mubr.bf16.gmra.mrb[92].mxu0 %v2555_v15 }
  0xf9   : > { %v2019_v16 = vpop.f32.mrb[0].mxu0  ;;  %v2067_v17 = vpop.f32.mrb[0].mxu1 }
  0xfa   : > { %v2020_v18 = vpop.f32.mrb[1].mxu0  ;;  %v2068_v19 = vpop.f32.mrb[1].mxu1 }
  0xfb   : > { %v2845_v20 = vadd.f32 %v2020_v18, %v2019_v16  ;;  %v2847_v21 = vadd.f32 %v2068_v19, %v2067_v17  ;;  %v2022_v22 = vpop.f32.mrb[2].mxu0  ;;  %v2070_v23 = vpop.f32.mrb[2].mxu1 }
  0xfc   : > { %v2023_v24 = vpop.f32.mrb[3].mxu0  ;;  %v2071_v25 = vpop.f32.mrb[3].mxu1 }
  0xfd   : > { %v2849_v26 = vadd.f32 %v2023_v24, %v2022_v22  ;;  %v2851_v27 = vadd.f32 %v2071_v25, %v2070_v23 }
 0x101   : > { %v2025_v28 = vpop.f32.mrb[4].mxu0  ;;  %v2073_v29 = vpop.f32.mrb[4].mxu1 }
 0x102   : > { %v2026_v30 = vpop.f32.mrb[5].mxu0  ;;  %v2074_v31 = vpop.f32.mrb[5].mxu1 }
 0x103   : > { %v2853_v32 = vadd.f32 %v2026_v30, %v2025_v28  ;;  %v2855_v33 = vadd.f32 %v2074_v31, %v2073_v29  ;;  %v2028_v34 = vpop.f32.mrb[6].mxu0  ;;  %v2076_v35 = vpop.f32.mrb[6].mxu1 }
 0x104   : > { %v2029_v36 = vpop.f32.mrb[7].mxu0  ;;  %v2077_v37 = vpop.f32.mrb[7].mxu1 }
 0x105   : > { %v2857_v38 = vadd.f32 %v2029_v36, %v2028_v34  ;;  %v2859_v39 = vadd.f32 %v2077_v37, %v2076_v35 }
 0x109   : > { %v2031_v40 = vpop.f32.mrb[8].mxu0  ;;  %v2079_v41 = vpop.f32.mrb[8].mxu1 }
 0x10a   : > { %v2032_v42 = vpop.f32.mrb[9].mxu0  ;;  %v2080_v43 = vpop.f32.mrb[9].mxu1 }
 0x10b   : > { %v2861_v44 = vadd.f32 %v2032_v42, %v2031_v40  ;;  %v2863_v45 = vadd.f32 %v2080_v43, %v2079_v41  ;;  %v2034_v46 = vpop.f32.mrb[10].mxu0  ;;  %v2082_v47 = vpop.f32.mrb[10].mxu1 }
 0x10c   : > { %v2035_v48 = vpop.f32.mrb[11].mxu0  ;;  %v2083_v49 = vpop.f32.mrb[11].mxu1 }
 0x10d   : > { %v2865_v50 = vadd.f32 %v2035_v48, %v2034_v46  ;;  %v2867_v51 = vadd.f32 %v2083_v49, %v2082_v47 }
 0x111   : > { %v2037_v52 = vpop.f32.mrb[12].mxu0  ;;  %v2085_v53 = vpop.f32.mrb[12].mxu1 }
 0x112   : > { %v2038_v54 = vpop.f32.mrb[13].mxu0  ;;  %v2086_v55 = vpop.f32.mrb[13].mxu1 }
 0x113   : > { %v2869_v56 = vadd.f32 %v2038_v54, %v2037_v52  ;;  %v2871_v57 = vadd.f32 %v2086_v55, %v2085_v53  ;;  %v2040_v58 = vpop.f32.mrb[14].mxu0  ;;  %v2088_v59 = vpop.f32.mrb[14].mxu1 }
 0x114   : > { %v2041_v60 = vpop.f32.mrb[15].mxu0  ;;  %v2089_v61 = vpop.f32.mrb[15].mxu1 }
 0x115   : > { %v2873_v62 = vadd.f32 %v2041_v60, %v2040_v58  ;;  %v2875_v63 = vadd.f32 %v2089_v61, %v2088_v59 }
 0x119   : > { %v2043_v0 = vpop.f32.mrb[16].mxu0  ;;  %v2091_v1 = vpop.f32.mrb[16].mxu1 }
 0x11a   : > { %v2044_v2 = vpop.f32.mrb[17].mxu0  ;;  %v2092_v3 = vpop.f32.mrb[17].mxu1 }
 0x11b   : > { %v2877_v4 = vadd.f32 %v2044_v2, %v2043_v0  ;;  %v2879_v5 = vadd.f32 %v2092_v3, %v2091_v1  ;;  %v2046_v6 = vpop.f32.mrb[18].mxu0  ;;  %v2094_v7 = vpop.f32.mrb[18].mxu1 }
 0x11c   : > { %v2047_v8 = vpop.f32.mrb[19].mxu0  ;;  %v2095_v9 = vpop.f32.mrb[19].mxu1 }
 0x11d   : > { %v2881_v10 = vadd.f32 %v2047_v8, %v2046_v6  ;;  %v2883_v11 = vadd.f32 %v2095_v9, %v2094_v7 }
 0x121   : > { %v2049_v12 = vpop.f32.mrb[20].mxu0  ;;  %v2097_v13 = vpop.f32.mrb[20].mxu1 }
 0x122   : > { %v2050_v14 = vpop.f32.mrb[21].mxu0  ;;  %v2098_v15 = vpop.f32.mrb[21].mxu1 }
 0x123   : > { %v2885_v16 = vadd.f32 %v2050_v14, %v2049_v12  ;;  %v2887_v17 = vadd.f32 %v2098_v15, %v2097_v13  ;;  %v2052_v18 = vpop.f32.mrb[22].mxu0  ;;  %v2100_v19 = vpop.f32.mrb[22].mxu1 }
 0x124   : > { %v2053_v22 = vpop.f32.mrb[23].mxu0  ;;  %v2101_v23 = vpop.f32.mrb[23].mxu1 }
 0x125   : > { %v2889_v24 = vadd.f32 %v2053_v22, %v2052_v18  ;;  %v2891_v25 = vadd.f32 %v2101_v23, %v2100_v19  ;;  %v2913_v19 = vld [vmem:[%s3058_s2] ss:$0 sm:$0xff] }
 0x129   : > { %v2055_v28 = vpop.f32.mrb[24].mxu0  ;;  %v2103_v29 = vpop.f32.mrb[24].mxu1 }
 0x12a   : > { %v2056_v30 = vpop.f32.mrb[25].mxu0  ;;  %v2104_v31 = vpop.f32.mrb[25].mxu1 }
 0x12b   : > { %v2893_v34 = vadd.f32 %v2056_v30, %v2055_v28  ;;  %v2895_v35 = vadd.f32 %v2104_v31, %v2103_v29  ;;  %v2058_v36 = vpop.f32.mrb[26].mxu0  ;;  %v2106_v37 = vpop.f32.mrb[26].mxu1  ;;  %v2919_v28 = vld [vmem:[%s3059_s3] ss:$0 sm:$0xff] }
 0x12c   : > { %v2059_v40 = vpop.f32.mrb[27].mxu0  ;;  %v2107_v41 = vpop.f32.mrb[27].mxu1 }
 0x12d   : > { %v2897_v42 = vadd.f32 %v2059_v40, %v2058_v36  ;;  %v2899_v43 = vadd.f32 %v2107_v41, %v2106_v37 }
 0x131   : > { %v2061_v46 = vpop.f32.mrb[28].mxu0  ;;  %v2109_v47 = vpop.f32.mrb[28].mxu1 }
 0x132   : > { %v2062_v48 = vpop.f32.mrb[29].mxu0  ;;  %v2110_v49 = vpop.f32.mrb[29].mxu1 }
 0x133   : > { %v2901_v52 = vadd.f32 %v2062_v48, %v2061_v46  ;;  %v2903_v53 = vadd.f32 %v2110_v49, %v2109_v47  ;;  %v2064_v54 = vpop.f32.mrb[30].mxu0  ;;  %v2112_v55 = vpop.f32.mrb[30].mxu1 }
 0x134   : > { %v2065_v58 = vpop.f32.mrb[31].mxu0  ;;  %v2113_v59 = vpop.f32.mrb[31].mxu1 }
 0x135   : > { %v2905_v60 = vadd.f32 %v2065_v58, %v2064_v54  ;;  %v2907_v61 = vadd.f32 %v2113_v59, %v2112_v55 }
 0x139   : > { %v2131_v0 = vpop.f32.mrb[32].mxu1  ;;  %v2243_v1 = vpop.f32.mrb[32].mxu0 }
 0x13a   : > { %v2132_v2 = vpop.f32.mrb[33].mxu1  ;;  %v2244_v3 = vpop.f32.mrb[33].mxu0 }
 0x13b   : > { %v2133_v6 = vadd.f32 %v2132_v2, %v2131_v0  ;;  %v2245_v7 = vadd.f32 %v2244_v3, %v2243_v1  ;;  %v2134_v8 = vpop.f32.mrb[34].mxu1  ;;  %v2246_v9 = vpop.f32.mrb[34].mxu0 }
 0x13c   : > { %v2135_v12 = vpop.f32.mrb[35].mxu1  ;;  %v2247_v13 = vpop.f32.mrb[35].mxu0 }
 0x13d   : > { %v1361_v14 = vadd.f32 %v2133_v6, %v2845_v20  ;;  %v2136_v15 = vadd.f32 %v2135_v12, %v2134_v8  ;;  %v2248_v18 = vadd.f32 %v2247_v13, %v2246_v9 }
 0x13f   : > { %v1522_v22 = vadd.f32 %v2245_v7, %v1361_v14  ;;  %v1364_v23 = vadd.f32 %v2136_v15, %v2849_v26 }
 0x141   : > { %v1655_v29 = vmul.f32 %v2913_v19, %v1522_v22  ;;  %v1525_v30 = vadd.f32 %v2248_v18, %v1364_v23  ;;  %v2137_v20 = vpop.f32.mrb[36].mxu1  ;;  %v2249_v31 = vpop.f32.mrb[36].mxu0 }
 0x142   : > { %v2138_v36 = vpop.f32.mrb[37].mxu1  ;;  %v2250_v37 = vpop.f32.mrb[37].mxu0 }
 0x143   : > { %v1694_v40 = vadd.f32 %v2919_v28, %v1655_v29  ;;  %v1656_v41 = vmul.f32 %v2913_v19, %v1525_v30  ;;  %v2139_v46 = vadd.f32 %v2138_v36, %v2137_v20  ;;  %v2251_v47 = vadd.f32 %v2250_v37, %v2249_v31  ;;  %v2140_v26 = vpop.f32.mrb[38].mxu1  ;;  %v2252_v48 = vpop.f32.mrb[38].mxu0 }
 0x144   : > { %v2141_v49 = vpop.f32.mrb[39].mxu1  ;;  %v2253_v54 = vpop.f32.mrb[39].mxu0 }
 0x145   : > { %v1726_v55 = vmax.f32 %v1694_v40, 0.0  ;;  %v1695_v58 = vadd.f32 %v2919_v28, %v1656_v41  ;;  %v1369_v59 = vadd.f32 %v2139_v46, %v2853_v32  ;;  %v2142_v0 = vadd.f32 %v2141_v49, %v2140_v26 }
 0x146   : > { %v2254_v1 = vadd.f32 %v2253_v54, %v2252_v48 }
 0x147   : > { %1758 = vst [vmem:[%s2928_s5] sm:$0xff] %v1726_v55  ;;  %v1727_v2 = vmax.f32 %v1695_v58, 0.0  ;;  %v1530_v3 = vadd.f32 %v2251_v47, %v1369_v59  ;;  %v1372_v6 = vadd.f32 %v2142_v0, %v2857_v38 }
 0x149   : > { %1759 = vst [vmem:[%s2928_s5 + $0x8] sm:$0xff] %v1727_v2  ;;  %v1657_v7 = vmul.f32 %v2913_v19, %v1530_v3  ;;  %v1533_v8 = vadd.f32 %v2254_v1, %v1372_v6  ;;  %v2143_v9 = vpop.f32.mrb[40].mxu1  ;;  %v2255_v12 = vpop.f32.mrb[40].mxu0 }
 0x14a   : > { %v2144_v13 = vpop.f32.mrb[41].mxu1  ;;  %v2256_v14 = vpop.f32.mrb[41].mxu0 }
 0x14b   : > { %v1696_v15 = vadd.f32 %v2919_v28, %v1657_v7  ;;  %v1658_v32 = vmul.f32 %v2913_v19, %v1533_v8  ;;  %v2145_v18 = vadd.f32 %v2144_v13, %v2143_v9  ;;  %v2257_v22 = vadd.f32 %v2256_v14, %v2255_v12  ;;  %v2146_v23 = vpop.f32.mrb[42].mxu1  ;;  %v2258_v29 = vpop.f32.mrb[42].mxu0 }
 0x14c   : > { %v2147_v30 = vpop.f32.mrb[43].mxu1  ;;  %v2259_v38 = vpop.f32.mrb[43].mxu0 }
 0x14d   : > { %v1728_v20 = vmax.f32 %v1696_v15, 0.0  ;;  %v1697_v31 = vadd.f32 %v2919_v28, %v1658_v32  ;;  %v1377_v36 = vadd.f32 %v2145_v18, %v2861_v44  ;;  %v2148_v37 = vadd.f32 %v2147_v30, %v2146_v23 }
 0x14e   : > { %v2260_v40 = vadd.f32 %v2259_v38, %v2258_v29 }
 0x14f   : > { %1760 = vst [vmem:[%s2928_s5 + $0x10] sm:$0xff] %v1728_v20  ;;  %v1729_v41 = vmax.f32 %v1697_v31, 0.0  ;;  %v1538_v46 = vadd.f32 %v2257_v22, %v1377_v36  ;;  %v1380_v47 = vadd.f32 %v2148_v37, %v2865_v50 }
 0x151   : > { %1761 = vst [vmem:[%s2928_s5 + $0x18] sm:$0xff] %v1729_v41  ;;  %v1659_v26 = vmul.f32 %v2913_v19, %v1538_v46  ;;  %v1541_v48 = vadd.f32 %v2260_v40, %v1380_v47  ;;  %v2149_v49 = vpop.f32.mrb[44].mxu1  ;;  %v2261_v54 = vpop.f32.mrb[44].mxu0 }
 0x152   : > { %v2150_v55 = vpop.f32.mrb[45].mxu1  ;;  %v2262_v58 = vpop.f32.mrb[45].mxu0 }
 0x153   : > { %v1698_v59 = vadd.f32 %v2919_v28, %v1659_v26  ;;  %v1660_v44 = vmul.f32 %v2913_v19, %v1541_v48  ;;  %v2151_v0 = vadd.f32 %v2150_v55, %v2149_v49  ;;  %v2263_v1 = vadd.f32 %v2262_v58, %v2261_v54  ;;  %v2152_v2 = vpop.f32.mrb[46].mxu1  ;;  %v2264_v3 = vpop.f32.mrb[46].mxu0 }
 0x154   : > { %v2153_v6 = vpop.f32.mrb[47].mxu1  ;;  %v2265_v50 = vpop.f32.mrb[47].mxu0 }
 0x155   : > { %v1730_v7 = vmax.f32 %v1698_v59, 0.0  ;;  %v1699_v8 = vadd.f32 %v2919_v28, %v1660_v44  ;;  %v1385_v9 = vadd.f32 %v2151_v0, %v2869_v56  ;;  %v2154_v12 = vadd.f32 %v2153_v6, %v2152_v2 }
 0x156   : > { %v2266_v13 = vadd.f32 %v2265_v50, %v2264_v3 }
 0x157   : > { %1762 = vst [vmem:[%s2928_s5 + $0x20] sm:$0xff] %v1730_v7  ;;  %v1731_v14 = vmax.f32 %v1699_v8, 0.0  ;;  %v1546_v15 = vadd.f32 %v2263_v1, %v1385_v9  ;;  %v1388_v32 = vadd.f32 %v2154_v12, %v2873_v62 }
 0x159   : > { %1763 = vst [vmem:[%s2928_s5 + $0x28] sm:$0xff] %v1731_v14  ;;  %v1661_v18 = vmul.f32 %v2913_v19, %v1546_v15  ;;  %v1549_v22 = vadd.f32 %v2266_v13, %v1388_v32  ;;  %v2155_v23 = vpop.f32.mrb[48].mxu1  ;;  %v2267_v29 = vpop.f32.mrb[48].mxu0 }
 0x15a   : > { %v2156_v30 = vpop.f32.mrb[49].mxu1  ;;  %v2268_v38 = vpop.f32.mrb[49].mxu0 }
 0x15b   : > { %v1700_v20 = vadd.f32 %v2919_v28, %v1661_v18  ;;  %v1662_v56 = vmul.f32 %v2913_v19, %v1549_v22  ;;  %v2157_v31 = vadd.f32 %v2156_v30, %v2155_v23  ;;  %v2269_v36 = vadd.f32 %v2268_v38, %v2267_v29  ;;  %v2158_v37 = vpop.f32.mrb[50].mxu1  ;;  %v2270_v40 = vpop.f32.mrb[50].mxu0 }
 0x15c   : > { %v2159_v41 = vpop.f32.mrb[51].mxu1  ;;  %v2271_v62 = vpop.f32.mrb[51].mxu0 }
 0x15d   : > { %v1732_v46 = vmax.f32 %v1700_v20, 0.0  ;;  %v1701_v47 = vadd.f32 %v2919_v28, %v1662_v56  ;;  %v1393_v26 = vadd.f32 %v2157_v31, %v2877_v4  ;;  %v2160_v48 = vadd.f32 %v2159_v41, %v2158_v37 }
 0x15e   : > { %v2272_v49 = vadd.f32 %v2271_v62, %v2270_v40 }
 0x15f   : > { %1764 = vst [vmem:[%s2928_s5 + $0x30] sm:$0xff] %v1732_v46  ;;  %v1733_v54 = vmax.f32 %v1701_v47, 0.0  ;;  %v1554_v55 = vadd.f32 %v2269_v36, %v1393_v26  ;;  %v1396_v58 = vadd.f32 %v2160_v48, %v2881_v10 }
 0x161   : > { %1765 = vst [vmem:[%s2928_s5 + $0x38] sm:$0xff] %v1733_v54  ;;  %v1663_v59 = vmul.f32 %v2913_v19, %v1554_v55  ;;  %v1557_v44 = vadd.f32 %v2272_v49, %v1396_v58  ;;  %v2161_v0 = vpop.f32.mrb[52].mxu1  ;;  %v2273_v1 = vpop.f32.mrb[52].mxu0 }
 0x162   : > { %v2162_v2 = vpop.f32.mrb[53].mxu1  ;;  %v2274_v3 = vpop.f32.mrb[53].mxu0 }
 0x163   : > { %v1702_v6 = vadd.f32 %v2919_v28, %v1663_v59  ;;  %v1664_v4 = vmul.f32 %v2913_v19, %v1557_v44  ;;  %v2163_v50 = vadd.f32 %v2162_v2, %v2161_v0  ;;  %v2275_v7 = vadd.f32 %v2274_v3, %v2273_v1  ;;  %v2164_v8 = vpop.f32.mrb[54].mxu1  ;;  %v2276_v9 = vpop.f32.mrb[54].mxu0 }
 0x164   : > { %v2165_v12 = vpop.f32.mrb[55].mxu1  ;;  %v2277_v10 = vpop.f32.mrb[55].mxu0 }
 0x165   : > { %v1734_v13 = vmax.f32 %v1702_v6, 0.0  ;;  %v1703_v14 = vadd.f32 %v2919_v28, %v1664_v4  ;;  %v1401_v15 = vadd.f32 %v2163_v50, %v2885_v16  ;;  %v2166_v32 = vadd.f32 %v2165_v12, %v2164_v8 }
 0x166   : > { %v2278_v18 = vadd.f32 %v2277_v10, %v2276_v9 }
 0x167   : > { %1766 = vst [vmem:[%s2928_s5 + $0x40] sm:$0xff] %v1734_v13  ;;  %v1735_v22 = vmax.f32 %v1703_v14, 0.0  ;;  %v1562_v23 = vadd.f32 %v2275_v7, %v1401_v15  ;;  %v1404_v29 = vadd.f32 %v2166_v32, %v2889_v24 }
 0x169   : > { %1767 = vst [vmem:[%s2928_s5 + $0x48] sm:$0xff] %v1735_v22  ;;  %v1665_v30 = vmul.f32 %v2913_v19, %v1562_v23  ;;  %v1565_v38 = vadd.f32 %v2278_v18, %v1404_v29  ;;  %v2167_v20 = vpop.f32.mrb[56].mxu1  ;;  %v2279_v56 = vpop.f32.mrb[56].mxu0 }
 0x16a   : > { %v2168_v31 = vpop.f32.mrb[57].mxu1  ;;  %v2280_v36 = vpop.f32.mrb[57].mxu0 }
 0x16b   : > { %v1704_v37 = vadd.f32 %v2919_v28, %v1665_v30  ;;  %v1666_v16 = vmul.f32 %v2913_v19, %v1565_v38  ;;  %v2169_v40 = vadd.f32 %v2168_v31, %v2167_v20  ;;  %v2281_v41 = vadd.f32 %v2280_v36, %v2279_v56  ;;  %v2170_v62 = vpop.f32.mrb[58].mxu1  ;;  %v2282_v46 = vpop.f32.mrb[58].mxu0 }
 0x16c   : > { %v2171_v47 = vpop.f32.mrb[59].mxu1  ;;  %v2283_v24 = vpop.f32.mrb[59].mxu0 }
 0x16d   : > { %v1736_v26 = vmax.f32 %v1704_v37, 0.0  ;;  %v1705_v48 = vadd.f32 %v2919_v28, %v1666_v16  ;;  %v1409_v49 = vadd.f32 %v2169_v40, %v2893_v34  ;;  %v2172_v54 = vadd.f32 %v2171_v47, %v2170_v62 }
 0x16e   : > { %v2284_v55 = vadd.f32 %v2283_v24, %v2282_v46 }
 0x16f   : > { %1768 = vst [vmem:[%s2928_s5 + $0x50] sm:$0xff] %v1736_v26  ;;  %v1737_v58 = vmax.f32 %v1705_v48, 0.0  ;;  %v1570_v59 = vadd.f32 %v2281_v41, %v1409_v49  ;;  %v1412_v44 = vadd.f32 %v2172_v54, %v2897_v42 }
 0x171   : > { %1769 = vst [vmem:[%s2928_s5 + $0x58] sm:$0xff] %v1737_v58  ;;  %v1667_v0 = vmul.f32 %v2913_v19, %v1570_v59  ;;  %v1573_v1 = vadd.f32 %v2284_v55, %v1412_v44  ;;  %v2173_v2 = vpop.f32.mrb[60].mxu1  ;;  %v2285_v3 = vpop.f32.mrb[60].mxu0 }
 0x172   : > { %v2174_v6 = vpop.f32.mrb[61].mxu1  ;;  %v2286_v4 = vpop.f32.mrb[61].mxu0 }
 0x173   : > { %v1706_v50 = vadd.f32 %v2919_v28, %v1667_v0  ;;  %v1668_v34 = vmul.f32 %v2913_v19, %v1573_v1  ;;  %v2175_v7 = vadd.f32 %v2174_v6, %v2173_v2  ;;  %v2287_v8 = vadd.f32 %v2286_v4, %v2285_v3  ;;  %v2176_v9 = vpop.f32.mrb[62].mxu1  ;;  %v2288_v12 = vpop.f32.mrb[62].mxu0 }
 0x174   : > { %v2177_v10 = vpop.f32.mrb[63].mxu1  ;;  %v2289_v42 = vpop.f32.mrb[63].mxu0 }
 0x175   : > { %v1738_v13 = vmax.f32 %v1706_v50, 0.0  ;;  %v1707_v14 = vadd.f32 %v2919_v28, %v1668_v34  ;;  %v1417_v15 = vadd.f32 %v2175_v7, %v2901_v52  ;;  %v2178_v32 = vadd.f32 %v2177_v10, %v2176_v9 }
 0x176   : > { %v2290_v18 = vadd.f32 %v2289_v42, %v2288_v12 }
 0x177   : > { %1770 = vst [vmem:[%s2928_s5 + $0x60] sm:$0xff] %v1738_v13  ;;  %v1739_v22 = vmax.f32 %v1707_v14, 0.0  ;;  %v1578_v23 = vadd.f32 %v2287_v8, %v1417_v15  ;;  %v1420_v29 = vadd.f32 %v2178_v32, %v2905_v60 }
 0x179   : > { %1771 = vst [vmem:[%s2928_s5 + $0x68] sm:$0xff] %v1739_v22  ;;  %v1669_v30 = vmul.f32 %v2913_v19, %v1578_v23  ;;  %v1581_v38 = vadd.f32 %v2290_v18, %v1420_v29  ;;  %v2179_v20 = vpop.f32.mrb[64].mxu1  ;;  %v2291_v56 = vpop.f32.mrb[64].mxu0 }
 0x17a   : > { %v2180_v31 = vpop.f32.mrb[65].mxu1  ;;  %v2292_v36 = vpop.f32.mrb[65].mxu0 }
 0x17b   : > { %v1708_v37 = vadd.f32 %v2919_v28, %v1669_v30  ;;  %v1670_v52 = vmul.f32 %v2913_v19, %v1581_v38  ;;  %v2181_v16 = vadd.f32 %v2180_v31, %v2179_v20  ;;  %v2293_v40 = vadd.f32 %v2292_v36, %v2291_v56  ;;  %v2182_v41 = vpop.f32.mrb[66].mxu1  ;;  %v2294_v62 = vpop.f32.mrb[66].mxu0 }
 0x17c   : > { %v2183_v46 = vpop.f32.mrb[67].mxu1  ;;  %v2295_v60 = vpop.f32.mrb[67].mxu0 }
 0x17d   : > { %v1740_v47 = vmax.f32 %v1708_v37, 0.0  ;;  %v1709_v24 = vadd.f32 %v2919_v28, %v1670_v52  ;;  %v1425_v26 = vadd.f32 %v2181_v16, %v2847_v21  ;;  %v2184_v48 = vadd.f32 %v2183_v46, %v2182_v41 }
 0x17e   : > { %v2296_v49 = vadd.f32 %v2295_v60, %v2294_v62 }
 0x17f   : > { %1772 = vst [vmem:[%s2928_s5 + $0x70] sm:$0xff] %v1740_v47  ;;  %v1741_v54 = vmax.f32 %v1709_v24, 0.0  ;;  %v1586_v55 = vadd.f32 %v2293_v40, %v1425_v26  ;;  %v1428_v58 = vadd.f32 %v2184_v48, %v2851_v27 }
 0x181   : > { %1773 = vst [vmem:[%s2928_s5 + $0x78] sm:$0xff] %v1741_v54  ;;  %v1671_v59 = vmul.f32 %v2913_v19, %v1586_v55  ;;  %v1589_v44 = vadd.f32 %v2296_v49, %v1428_v58  ;;  %v2185_v0 = vpop.f32.mrb[68].mxu1  ;;  %v2297_v1 = vpop.f32.mrb[68].mxu0 }
 0x182   : > { %v2186_v2 = vpop.f32.mrb[69].mxu1  ;;  %v2298_v3 = vpop.f32.mrb[69].mxu0 }
 0x183   : > { %v1710_v6 = vadd.f32 %v2919_v28, %v1671_v59  ;;  %v1672_v21 = vmul.f32 %v2913_v19, %v1589_v44  ;;  %v2187_v4 = vadd.f32 %v2186_v2, %v2185_v0  ;;  %v2299_v50 = vadd.f32 %v2298_v3, %v2297_v1  ;;  %v2188_v34 = vpop.f32.mrb[70].mxu1  ;;  %v2300_v7 = vpop.f32.mrb[70].mxu0 }
 0x184   : > { %v2189_v8 = vpop.f32.mrb[71].mxu1  ;;  %v2301_v27 = vpop.f32.mrb[71].mxu0 }
 0x185   : > { %v1742_v9 = vmax.f32 %v1710_v6, 0.0  ;;  %v1711_v12 = vadd.f32 %v2919_v28, %v1672_v21  ;;  %v1433_v10 = vadd.f32 %v2187_v4, %v2855_v33  ;;  %v2190_v42 = vadd.f32 %v2189_v8, %v2188_v34 }
 0x186   : > { %v2302_v13 = vadd.f32 %v2301_v27, %v2300_v7 }
 0x187   : > { %1774 = vst [vmem:[%s2928_s5 + $0x80] sm:$0xff] %v1742_v9  ;;  %v1743_v14 = vmax.f32 %v1711_v12, 0.0  ;;  %v1594_v15 = vadd.f32 %v2299_v50, %v1433_v10  ;;  %v1436_v32 = vadd.f32 %v2190_v42, %v2859_v39 }
 0x189   : > { %1775 = vst [vmem:[%s2928_s5 + $0x88] sm:$0xff] %v1743_v14  ;;  %v1673_v18 = vmul.f32 %v2913_v19, %v1594_v15  ;;  %v1597_v22 = vadd.f32 %v2302_v13, %v1436_v32  ;;  %v2191_v23 = vpop.f32.mrb[72].mxu1  ;;  %v2303_v29 = vpop.f32.mrb[72].mxu0 }
 0x18a   : > { %v2192_v30 = vpop.f32.mrb[73].mxu1  ;;  %v2304_v38 = vpop.f32.mrb[73].mxu0 }
 0x18b   : > { %v1712_v20 = vadd.f32 %v2919_v28, %v1673_v18  ;;  %v1674_v33 = vmul.f32 %v2913_v19, %v1597_v22  ;;  %v2193_v56 = vadd.f32 %v2192_v30, %v2191_v23  ;;  %v2305_v31 = vadd.f32 %v2304_v38, %v2303_v29  ;;  %v2194_v36 = vpop.f32.mrb[74].mxu1  ;;  %v2306_v37 = vpop.f32.mrb[74].mxu0 }
 0x18c   : > { %v2195_v52 = vpop.f32.mrb[75].mxu1  ;;  %v2307_v39 = vpop.f32.mrb[75].mxu0 }
 0x18d   : > { %v1744_v16 = vmax.f32 %v1712_v20, 0.0  ;;  %v1713_v40 = vadd.f32 %v2919_v28, %v1674_v33  ;;  %v1441_v41 = vadd.f32 %v2193_v56, %v2863_v45  ;;  %v2196_v62 = vadd.f32 %v2195_v52, %v2194_v36 }
 0x18e   : > { %v2308_v46 = vadd.f32 %v2307_v39, %v2306_v37 }
 0x18f   : > { %1776 = vst [vmem:[%s2928_s5 + $0x90] sm:$0xff] %v1744_v16  ;;  %v1745_v60 = vmax.f32 %v1713_v40, 0.0  ;;  %v1602_v47 = vadd.f32 %v2305_v31, %v1441_v41  ;;  %v1444_v24 = vadd.f32 %v2196_v62, %v2867_v51 }
 0x191   : > { %1777 = vst [vmem:[%s2928_s5 + $0x98] sm:$0xff] %v1745_v60  ;;  %v1675_v26 = vmul.f32 %v2913_v19, %v1602_v47  ;;  %v1605_v48 = vadd.f32 %v2308_v46, %v1444_v24  ;;  %v2197_v49 = vpop.f32.mrb[76].mxu1  ;;  %v2309_v54 = vpop.f32.mrb[76].mxu0 }
 0x192   : > { %v2198_v55 = vpop.f32.mrb[77].mxu1  ;;  %v2310_v58 = vpop.f32.mrb[77].mxu0 }
 0x193   : > { %v1714_v59 = vadd.f32 %v2919_v28, %v1675_v26  ;;  %v1676_v45 = vmul.f32 %v2913_v19, %v1605_v48  ;;  %v2199_v44 = vadd.f32 %v2198_v55, %v2197_v49  ;;  %v2311_v0 = vadd.f32 %v2310_v58, %v2309_v54  ;;  %v2200_v1 = vpop.f32.mrb[78].mxu1  ;;  %v2312_v2 = vpop.f32.mrb[78].mxu0 }
 0x194   : > { %v2201_v3 = vpop.f32.mrb[79].mxu1  ;;  %v2313_v51 = vpop.f32.mrb[79].mxu0 }
 0x195   : > { %v1746_v6 = vmax.f32 %v1714_v59, 0.0  ;;  %v1715_v21 = vadd.f32 %v2919_v28, %v1676_v45  ;;  %v1449_v4 = vadd.f32 %v2199_v44, %v2871_v57  ;;  %v2202_v50 = vadd.f32 %v2201_v3, %v2200_v1 }
 0x196   : > { %v2314_v34 = vadd.f32 %v2313_v51, %v2312_v2 }
 0x197   : > { %1778 = vst [vmem:[%s2928_s5 + $0xa0] sm:$0xff] %v1746_v6  ;;  %v1747_v7 = vmax.f32 %v1715_v21, 0.0  ;;  %v1610_v8 = vadd.f32 %v2311_v0, %v1449_v4  ;;  %v1452_v27 = vadd.f32 %v2202_v50, %v2875_v63 }
 0x199   : > { %1779 = vst [vmem:[%s2928_s5 + $0xa8] sm:$0xff] %v1747_v7  ;;  %v1677_v9 = vmul.f32 %v2913_v19, %v1610_v8  ;;  %v1613_v12 = vadd.f32 %v2314_v34, %v1452_v27  ;;  %v2203_v10 = vpop.f32.mrb[80].mxu1  ;;  %v2315_v42 = vpop.f32.mrb[80].mxu0 }
 0x19a   : > { %v2204_v13 = vpop.f32.mrb[81].mxu1  ;;  %v2316_v14 = vpop.f32.mrb[81].mxu0 }
 0x19b   : > { %v1716_v15 = vadd.f32 %v2919_v28, %v1677_v9  ;;  %v1678_v57 = vmul.f32 %v2913_v19, %v1613_v12  ;;  %v2205_v32 = vadd.f32 %v2204_v13, %v2203_v10  ;;  %v2317_v18 = vadd.f32 %v2316_v14, %v2315_v42  ;;  %v2206_v22 = vpop.f32.mrb[82].mxu1  ;;  %v2318_v23 = vpop.f32.mrb[82].mxu0 }
 0x19c   : > { %v2207_v29 = vpop.f32.mrb[83].mxu1  ;;  %v2319_v63 = vpop.f32.mrb[83].mxu0 }
 0x19d   : > { %v1748_v30 = vmax.f32 %v1716_v15, 0.0  ;;  %v1717_v38 = vadd.f32 %v2919_v28, %v1678_v57  ;;  %v1457_v20 = vadd.f32 %v2205_v32, %v2879_v5  ;;  %v2208_v33 = vadd.f32 %v2207_v29, %v2206_v22 }
 0x19e   : > { %v2320_v56 = vadd.f32 %v2319_v63, %v2318_v23 }
 0x19f   : > { %1780 = vst [vmem:[%s2928_s5 + $0xb0] sm:$0xff] %v1748_v30  ;;  %v1749_v31 = vmax.f32 %v1717_v38, 0.0  ;;  %v1618_v36 = vadd.f32 %v2317_v18, %v1457_v20  ;;  %v1460_v37 = vadd.f32 %v2208_v33, %v2883_v11 }
 0x1a1   : > { %1781 = vst [vmem:[%s2928_s5 + $0xb8] sm:$0xff] %v1749_v31  ;;  %v1679_v52 = vmul.f32 %v2913_v19, %v1618_v36  ;;  %v1621_v39 = vadd.f32 %v2320_v56, %v1460_v37  ;;  %v2209_v16 = vpop.f32.mrb[84].mxu1  ;;  %v2321_v40 = vpop.f32.mrb[84].mxu0 }
 0x1a2   : > { %v2210_v41 = vpop.f32.mrb[85].mxu1  ;;  %v2322_v62 = vpop.f32.mrb[85].mxu0 }
 0x1a3   : > { %v1718_v46 = vadd.f32 %v2919_v28, %v1679_v52  ;;  %v1680_v5 = vmul.f32 %v2913_v19, %v1621_v39  ;;  %v2211_v60 = vadd.f32 %v2210_v41, %v2209_v16  ;;  %v2323_v47 = vadd.f32 %v2322_v62, %v2321_v40  ;;  %v2212_v24 = vpop.f32.mrb[86].mxu1  ;;  %v2324_v26 = vpop.f32.mrb[86].mxu0 }
 0x1a4   : > { %v2213_v48 = vpop.f32.mrb[87].mxu1  ;;  %v2325_v11 = vpop.f32.mrb[87].mxu0 }
 0x1a5   : > { %v1750_v49 = vmax.f32 %v1718_v46, 0.0  ;;  %v1719_v54 = vadd.f32 %v2919_v28, %v1680_v5  ;;  %v1465_v55 = vadd.f32 %v2211_v60, %v2887_v17  ;;  %v2214_v58 = vadd.f32 %v2213_v48, %v2212_v24 }
 0x1a6   : > { %v2326_v59 = vadd.f32 %v2325_v11, %v2324_v26 }
 0x1a7   : > { %1782 = vst [vmem:[%s2928_s5 + $0xc0] sm:$0xff] %v1750_v49  ;;  %v1751_v45 = vmax.f32 %v1719_v54, 0.0  ;;  %v1626_v44 = vadd.f32 %v2323_v47, %v1465_v55  ;;  %v1468_v0 = vadd.f32 %v2214_v58, %v2891_v25 }
 0x1a9   : > { %1783 = vst [vmem:[%s2928_s5 + $0xc8] sm:$0xff] %v1751_v45  ;;  %v1681_v1 = vmul.f32 %v2913_v19, %v1626_v44  ;;  %v1629_v2 = vadd.f32 %v2326_v59, %v1468_v0  ;;  %v2215_v3 = vpop.f32.mrb[88].mxu1  ;;  %v2327_v51 = vpop.f32.mrb[88].mxu0 }
 0x1aa   : > { %v2216_v6 = vpop.f32.mrb[89].mxu1  ;;  %v2328_v21 = vpop.f32.mrb[89].mxu0 }
 0x1ab   : > { %v1720_v4 = vadd.f32 %v2919_v28, %v1681_v1  ;;  %v1682_v17 = vmul.f32 %v2913_v19, %v1629_v2  ;;  %v2217_v50 = vadd.f32 %v2216_v6, %v2215_v3  ;;  %v2329_v34 = vadd.f32 %v2328_v21, %v2327_v51  ;;  %v2218_v7 = vpop.f32.mrb[90].mxu1  ;;  %v2330_v8 = vpop.f32.mrb[90].mxu0 }
 0x1ac   : > { %v2219_v27 = vpop.f32.mrb[91].mxu1  ;;  %v2331_v25 = vpop.f32.mrb[91].mxu0 }
 0x1ad   : > { %v1752_v9 = vmax.f32 %v1720_v4, 0.0  ;;  %v1721_v12 = vadd.f32 %v2919_v28, %v1682_v17  ;;  %v1473_v10 = vadd.f32 %v2217_v50, %v2895_v35  ;;  %v2220_v42 = vadd.f32 %v2219_v27, %v2218_v7 }
 0x1ae   : > { %v2332_v13 = vadd.f32 %v2331_v25, %v2330_v8 }
 0x1af   : > { %1784 = vst [vmem:[%s2928_s5 + $0xd0] sm:$0xff] %v1752_v9  ;;  %v1753_v14 = vmax.f32 %v1721_v12, 0.0  ;;  %v1634_v15 = vadd.f32 %v2329_v34, %v1473_v10  ;;  %v1476_v57 = vadd.f32 %v2220_v42, %v2899_v43 }
 0x1b1   : > { %1785 = vst [vmem:[%s2928_s5 + $0xd8] sm:$0xff] %v1753_v14  ;;  %v1683_v32 = vmul.f32 %v2913_v19, %v1634_v15  ;;  %v1637_v18 = vadd.f32 %v2332_v13, %v1476_v57  ;;  %v2221_v22 = vpop.f32.mrb[92].mxu1  ;;  %v2333_v23 = vpop.f32.mrb[92].mxu0 }
 0x1b2   : > { %v2222_v29 = vpop.f32.mrb[93].mxu1  ;;  %v2334_v63 = vpop.f32.mrb[93].mxu0 }
 0x1b3   : > { %v1722_v30 = vadd.f32 %v2919_v28, %v1683_v32  ;;  %v1684_v35 = vmul.f32 %v2913_v19, %v1637_v18  ;;  %v2223_v38 = vadd.f32 %v2222_v29, %v2221_v22  ;;  %v2335_v20 = vadd.f32 %v2334_v63, %v2333_v23  ;;  %v2224_v33 = vpop.f32.mrb[94].mxu1  ;;  %v2336_v56 = vpop.f32.mrb[94].mxu0 }
 0x1b4   : > { %v2225_v31 = vpop.f32.mrb[95].mxu1  ;;  %v2337_v43 = vpop.f32.mrb[95].mxu0 }
 0x1b5   : > { %v1754_v36 = vmax.f32 %v1722_v30, 0.0  ;;  %v1723_v37 = vadd.f32 %v2919_v28, %v1684_v35  ;;  %v1481_v52 = vadd.f32 %v2223_v38, %v2903_v53  ;;  %v2226_v39 = vadd.f32 %v2225_v31, %v2224_v33 }
 0x1b6   : > { %v2338_v16 = vadd.f32 %v2337_v43, %v2336_v56 }
 0x1b7   : > { %1786 = vst [vmem:[%s2928_s5 + $0xe0] sm:$0xff] %v1754_v36  ;;  %v1755_v40 = vmax.f32 %v1723_v37, 0.0  ;;  %v1642_v41 = vadd.f32 %v2335_v20, %v1481_v52  ;;  %v1484_v62 = vadd.f32 %v2226_v39, %v2907_v61 }
 0x1b9   : > { %1787 = vst [vmem:[%s2928_s5 + $0xe8] sm:$0xff] %v1755_v40  ;;  %v1685_v46 = vmul.f32 %v2913_v19, %v1642_v41  ;;  %v1645_v5 = vadd.f32 %v2338_v16, %v1484_v62 }
 0x1bb   : > { %v1724_v60 = vadd.f32 %v2919_v28, %v1685_v46  ;;  %v1686_v47 = vmul.f32 %v2913_v19, %v1645_v5 }
 0x1bd   : > { %v1756_v24 = vmax.f32 %v1724_v60, 0.0  ;;  %v1725_v26 = vadd.f32 %v2919_v28, %v1686_v47 }
 0x1bf   : > { %1788 = vst [vmem:[%s2928_s5 + $0xf0] sm:$0xff] %v1756_v24  ;;  %v1757_v53 = vmax.f32 %v1725_v26, 0.0 }
 0x1c1   : > { %1789 = vst [vmem:[%s2928_s5 + $0xf8] sm:$0xff] %v1757_v53 }
 0x1c2 PF: > { %s14_s15 = sadd.s32 1, %s2562_s15  }
 0x1c3   : > { %p11_p4 = scmp.ge.s32.totalorder %s14_s15, 4  }
 0x1c5   :  { %13 = sbr.rel (!%p11_p4) target bundleno = 1 (0x1), region = 66 }

// kernel: imnet_forward.8
= control target key start
LH: loop header
LB: loop body
LE: loop exit
PB: predicated region body
PF: predicated region fallthrough
CT: control target
= control target key end

     0   :  { %s790_s0 = inlined_call_operand.vmem [shape: f32[9,128,128], index: 0, kind: input, shape index: {}]   ;;  %s791_s1 = inlined_call_operand.vmem [shape: f32[128,128], index: 1, kind: output, shape index: {}]  }
   0x1   :  { %v8_v0 = vld [vmem:[%s790_s0] sm:$0xff]  ;;  %v9_v6 = vld [vmem:[%s790_s0 + $0x8] sm:$0xff]  ;;  %v10_v15 = vld [vmem:[%s790_s0 + $0x10] sm:$0xff] }
   0x2   :  { %v24_v1 = vld [vmem:[%s790_s0 + $0x80] sm:$0xff]  ;;  %v25_v7 = vld [vmem:[%s790_s0 + $0x88] sm:$0xff]  ;;  %v26_v16 = vld [vmem:[%s790_s0 + $0x90] sm:$0xff] }
   0x3   :  { %v40_v2 = vld [vmem:[%s790_s0 + $0x100] sm:$0xff]  ;;  %v152_v3 = vmax.f32 %v8_v0, %v24_v1  ;;  %v41_v8 = vld [vmem:[%s790_s0 + $0x108] sm:$0xff]  ;;  %v160_v10 = vmax.f32 %v9_v6, %v25_v7  ;;  %v42_v17 = vld [vmem:[%s790_s0 + $0x110] sm:$0xff]  ;;  %v168_v20 = vmax.f32 %v10_v15, %v26_v16 }
   0x4   :  { %v56_v4 = vld [vmem:[%s790_s0 + $0x180] sm:$0xff]  ;;  %v57_v13 = vld [vmem:[%s790_s0 + $0x188] sm:$0xff]  ;;  %v58_v24 = vld [vmem:[%s790_s0 + $0x190] sm:$0xff] }
   0x5   :  { %v153_v5 = vmax.f32 %v152_v3, %v40_v2  ;;  %v72_v9 = vld [vmem:[%s790_s0 + $0x200] sm:$0xff]  ;;  %v161_v14 = vmax.f32 %v160_v10, %v41_v8  ;;  %v73_v19 = vld [vmem:[%s790_s0 + $0x208] sm:$0xff]  ;;  %v169_v26 = vmax.f32 %v168_v20, %v42_v17  ;;  %v11_v27 = vld [vmem:[%s790_s0 + $0x18] sm:$0xff] }
   0x6   :  { %v88_v11 = vld [vmem:[%s790_s0 + $0x280] sm:$0xff]  ;;  %v89_v22 = vld [vmem:[%s790_s0 + $0x288] sm:$0xff]  ;;  %v27_v28 = vld [vmem:[%s790_s0 + $0x98] sm:$0xff] }
   0x7   :  { %v154_v12 = vmax.f32 %v153_v5, %v56_v4  ;;  %v104_v21 = vld [vmem:[%s790_s0 + $0x300] sm:$0xff]  ;;  %v162_v23 = vmax.f32 %v161_v14, %v57_v13  ;;  %v43_v29 = vld [vmem:[%s790_s0 + $0x118] sm:$0xff]  ;;  %v74_v33 = vld [vmem:[%s790_s0 + $0x210] sm:$0xff]  ;;  %v176_v34 = vmax.f32 %v11_v27, %v27_v28  ;;  %v170_v38 = vmax.f32 %v169_v26, %v58_v24 }
   0x8   :  { %v120_v30 = vld [vmem:[%s790_s0 + $0x380] sm:$0xff]  ;;  %v105_v36 = vld [vmem:[%s790_s0 + $0x308] sm:$0xff]  ;;  %v90_v37 = vld [vmem:[%s790_s0 + $0x290] sm:$0xff] }
   0x9   :  { %v155_v18 = vmax.f32 %v154_v12, %v72_v9  ;;  %v136_v31 = vld [vmem:[%s790_s0 + $0x400] sm:$0xff]  ;;  %v163_v32 = vmax.f32 %v162_v23, %v73_v19  ;;  %v59_v39 = vld [vmem:[%s790_s0 + $0x198] sm:$0xff]  ;;  %v177_v41 = vmax.f32 %v176_v34, %v43_v29  ;;  %v121_v46 = vld [vmem:[%s790_s0 + $0x388] sm:$0xff]  ;;  %v171_v48 = vmax.f32 %v170_v38, %v74_v33 }
   0xa   :  { %v12_v42 = vld [vmem:[%s790_s0 + $0x20] sm:$0xff]  ;;  %v137_v47 = vld [vmem:[%s790_s0 + $0x408] sm:$0xff]  ;;  %v75_v49 = vld [vmem:[%s790_s0 + $0x218] sm:$0xff] }
   0xb   :  { %v156_v25 = vmax.f32 %v155_v18, %v88_v11  ;;  %v164_v40 = vmax.f32 %v163_v32, %v89_v22  ;;  %v28_v43 = vld [vmem:[%s790_s0 + $0xa0] sm:$0xff]  ;;  %v106_v52 = vld [vmem:[%s790_s0 + $0x310] sm:$0xff]  ;;  %v91_v53 = vld [vmem:[%s790_s0 + $0x298] sm:$0xff]  ;;  %v178_v54 = vmax.f32 %v177_v41, %v59_v39  ;;  %v172_v57 = vmax.f32 %v171_v48, %v90_v37 }
   0xc   :  { %v44_v44 = vld [vmem:[%s790_s0 + $0x120] sm:$0xff]  ;;  %v184_v50 = vmax.f32 %v12_v42, %v28_v43  ;;  %v13_v59 = vld [vmem:[%s790_s0 + $0x28] sm:$0xff]  ;;  %v122_v63 = vld [vmem:[%s790_s0 + $0x390] sm:$0xff] }
   0xd   :  { %v157_v35 = vmax.f32 %v156_v25, %v104_v21  ;;  %v165_v51 = vmax.f32 %v164_v40, %v105_v36  ;;  %v60_v55 = vld [vmem:[%s790_s0 + $0x1a0] sm:$0xff]  ;;  %v29_v60 = vld [vmem:[%s790_s0 + $0xa8] sm:$0xff]  ;;  %v138_v0 = vld [vmem:[%s790_s0 + $0x410] sm:$0xff]  ;;  %v179_v1 = vmax.f32 %v178_v54, %v75_v49  ;;  %v173_v4 = vmax.f32 %v172_v57, %v106_v52 }
   0xe   :  { %v185_v58 = vmax.f32 %v184_v50, %v44_v44  ;;  %v45_v61 = vld [vmem:[%s790_s0 + $0x128] sm:$0xff]  ;;  %v76_v2 = vld [vmem:[%s790_s0 + $0x220] sm:$0xff]  ;;  %v192_v3 = vmax.f32 %v13_v59, %v29_v60  ;;  %v107_v5 = vld [vmem:[%s790_s0 + $0x318] sm:$0xff] }
   0xf   :  { %v158_v45 = vmax.f32 %v157_v35, %v120_v30  ;;  %v166_v62 = vmax.f32 %v165_v51, %v121_v46  ;;  %v92_v6 = vld [vmem:[%s790_s0 + $0x2a0] sm:$0xff]  ;;  %v61_v8 = vld [vmem:[%s790_s0 + $0x1a8] sm:$0xff]  ;;  %v180_v10 = vmax.f32 %v179_v1, %v91_v53  ;;  %v14_v12 = vld [vmem:[%s790_s0 + $0x30] sm:$0xff]  ;;  %v174_v15 = vmax.f32 %v173_v4, %v122_v63 }
  0x10   :  { %v186_v7 = vmax.f32 %v185_v58, %v60_v55  ;;  %v193_v11 = vmax.f32 %v192_v3, %v45_v61  ;;  %v30_v13 = vld [vmem:[%s790_s0 + $0xb0] sm:$0xff]  ;;  %v123_v16 = vld [vmem:[%s790_s0 + $0x398] sm:$0xff]  ;;  %v77_v19 = vld [vmem:[%s790_s0 + $0x228] sm:$0xff] }
  0x11   :  { %v159_v56 = vmax.f32 %v158_v45, %v136_v31  ;;  %v167_v9 = vmax.f32 %v166_v62, %v137_v47  ;;  %v46_v14 = vld [vmem:[%s790_s0 + $0x130] sm:$0xff]  ;;  %v139_v17 = vld [vmem:[%s790_s0 + $0x418] sm:$0xff]  ;;  %v200_v20 = vmax.f32 %v14_v12, %v30_v13  ;;  %v181_v21 = vmax.f32 %v180_v10, %v107_v5  ;;  %v108_v22 = vld [vmem:[%s790_s0 + $0x320] sm:$0xff] }
  0x12   :  { %v187_v18 = vmax.f32 %v186_v7, %v76_v2  ;;  %v93_v23 = vld [vmem:[%s790_s0 + $0x2a8] sm:$0xff]  ;;  %v194_v24 = vmax.f32 %v193_v11, %v61_v8  ;;  %v62_v25 = vld [vmem:[%s790_s0 + $0x1b0] sm:$0xff]  ;;  %v175_v26 = vmax.f32 %v174_v15, %v138_v0  ;;  %v15_v29 = vld [vmem:[%s790_s0 + $0x38] sm:$0xff] }
  0x13   :  { %280 = vst [vmem:[%s791_s1] sm:$0xff] %v159_v56  ;;  %281 = vst [vmem:[%s791_s1 + $0x8] sm:$0xff] %v167_v9  ;;  %v201_v28 = vmax.f32 %v200_v20, %v46_v14  ;;  %v31_v30 = vld [vmem:[%s790_s0 + $0xb8] sm:$0xff]  ;;  %v182_v32 = vmax.f32 %v181_v21, %v123_v16  ;;  %v124_v33 = vld [vmem:[%s790_s0 + $0x3a0] sm:$0xff] }
  0x14   :  { %v188_v27 = vmax.f32 %v187_v18, %v92_v6  ;;  %v47_v31 = vld [vmem:[%s790_s0 + $0x138] sm:$0xff]  ;;  %v140_v34 = vld [vmem:[%s790_s0 + $0x420] sm:$0xff]  ;;  %v195_v35 = vmax.f32 %v194_v24, %v77_v19  ;;  %v78_v36 = vld [vmem:[%s790_s0 + $0x230] sm:$0xff]  ;;  %v208_v37 = vmax.f32 %v15_v29, %v31_v30  ;;  %282 = vst [vmem:[%s791_s1 + $0x10] sm:$0xff] %v175_v26 }
  0x15   :  { %v109_v39 = vld [vmem:[%s790_s0 + $0x328] sm:$0xff]  ;;  %v94_v40 = vld [vmem:[%s790_s0 + $0x2b0] sm:$0xff]  ;;  %v202_v41 = vmax.f32 %v201_v28, %v62_v25  ;;  %v63_v42 = vld [vmem:[%s790_s0 + $0x1b8] sm:$0xff]  ;;  %v183_v43 = vmax.f32 %v182_v32, %v139_v17 }
  0x16   :  { %v189_v38 = vmax.f32 %v188_v27, %v108_v22  ;;  %v196_v44 = vmax.f32 %v195_v35, %v93_v23  ;;  %v209_v45 = vmax.f32 %v208_v37, %v47_v31  ;;  %v16_v46 = vld [vmem:[%s790_s0 + $0x40] sm:$0xff]  ;;  %v125_v50 = vld [vmem:[%s790_s0 + $0x3a8] sm:$0xff]  ;;  %v79_v53 = vld [vmem:[%s790_s0 + $0x238] sm:$0xff] }
  0x17   :  { %v32_v47 = vld [vmem:[%s790_s0 + $0xc0] sm:$0xff]  ;;  %v141_v51 = vld [vmem:[%s790_s0 + $0x428] sm:$0xff]  ;;  %v203_v52 = vmax.f32 %v202_v41, %v78_v36  ;;  %283 = vst [vmem:[%s791_s1 + $0x18] sm:$0xff] %v183_v43  ;;  %v110_v56 = vld [vmem:[%s790_s0 + $0x330] sm:$0xff] }
  0x18   :  { %v48_v48 = vld [vmem:[%s790_s0 + $0x140] sm:$0xff]  ;;  %v190_v49 = vmax.f32 %v189_v38, %v124_v33  ;;  %v216_v54 = vmax.f32 %v16_v46, %v32_v47  ;;  %v197_v55 = vmax.f32 %v196_v44, %v109_v39  ;;  %v95_v57 = vld [vmem:[%s790_s0 + $0x2b8] sm:$0xff]  ;;  %v210_v58 = vmax.f32 %v209_v45, %v63_v42  ;;  %v17_v63 = vld [vmem:[%s790_s0 + $0x48] sm:$0xff] }
  0x19   :  { %v64_v59 = vld [vmem:[%s790_s0 + $0x1c0] sm:$0xff]  ;;  %v204_v61 = vmax.f32 %v203_v52, %v94_v40  ;;  %v33_v0 = vld [vmem:[%s790_s0 + $0xc8] sm:$0xff]  ;;  %v126_v3 = vld [vmem:[%s790_s0 + $0x3b0] sm:$0xff] }
  0x1a   :  { %v191_v60 = vmax.f32 %v190_v49, %v140_v34  ;;  %v217_v62 = vmax.f32 %v216_v54, %v48_v48  ;;  %v49_v1 = vld [vmem:[%s790_s0 + $0x148] sm:$0xff]  ;;  %v198_v2 = vmax.f32 %v197_v55, %v125_v50  ;;  %v142_v4 = vld [vmem:[%s790_s0 + $0x430] sm:$0xff]  ;;  %v211_v5 = vmax.f32 %v210_v58, %v79_v53  ;;  %v80_v6 = vld [vmem:[%s790_s0 + $0x240] sm:$0xff] }
  0x1b   :  { %v224_v7 = vmax.f32 %v17_v63, %v33_v0  ;;  %v205_v8 = vmax.f32 %v204_v61, %v110_v56  ;;  %v111_v9 = vld [vmem:[%s790_s0 + $0x338] sm:$0xff]  ;;  %v96_v10 = vld [vmem:[%s790_s0 + $0x2c0] sm:$0xff]  ;;  %v65_v12 = vld [vmem:[%s790_s0 + $0x1c8] sm:$0xff] }
  0x1c   :  { %284 = vst [vmem:[%s791_s1 + $0x20] sm:$0xff] %v191_v60  ;;  %v218_v11 = vmax.f32 %v217_v62, %v64_v59  ;;  %v199_v13 = vmax.f32 %v198_v2, %v141_v51  ;;  %v212_v14 = vmax.f32 %v211_v5, %v95_v57  ;;  %v18_v16 = vld [vmem:[%s790_s0 + $0x50] sm:$0xff]  ;;  %v127_v20 = vld [vmem:[%s790_s0 + $0x3b8] sm:$0xff]  ;;  %v81_v23 = vld [vmem:[%s790_s0 + $0x248] sm:$0xff] }
  0x1d   :  { %v225_v15 = vmax.f32 %v224_v7, %v49_v1  ;;  %v34_v17 = vld [vmem:[%s790_s0 + $0xd0] sm:$0xff]  ;;  %v206_v19 = vmax.f32 %v205_v8, %v126_v3  ;;  %v143_v21 = vld [vmem:[%s790_s0 + $0x438] sm:$0xff]  ;;  %v112_v26 = vld [vmem:[%s790_s0 + $0x340] sm:$0xff] }
  0x1e   :  { %v50_v18 = vld [vmem:[%s790_s0 + $0x150] sm:$0xff]  ;;  %v219_v22 = vmax.f32 %v218_v11, %v80_v6  ;;  %v232_v24 = vmax.f32 %v18_v16, %v34_v17  ;;  %285 = vst [vmem:[%s791_s1 + $0x28] sm:$0xff] %v199_v13  ;;  %v213_v25 = vmax.f32 %v212_v14, %v111_v9  ;;  %v97_v27 = vld [vmem:[%s790_s0 + $0x2c8] sm:$0xff]  ;;  %v19_v33 = vld [vmem:[%s790_s0 + $0x58] sm:$0xff] }
  0x1f   :  { %v226_v28 = vmax.f32 %v225_v15, %v65_v12  ;;  %v66_v29 = vld [vmem:[%s790_s0 + $0x1d0] sm:$0xff]  ;;  %v207_v30 = vmax.f32 %v206_v19, %v142_v4  ;;  %v35_v34 = vld [vmem:[%s790_s0 + $0xd8] sm:$0xff]  ;;  %v128_v37 = vld [vmem:[%s790_s0 + $0x3c0] sm:$0xff] }
  0x20   :  { %v220_v31 = vmax.f32 %v219_v22, %v96_v10  ;;  %v233_v32 = vmax.f32 %v232_v24, %v50_v18  ;;  %v51_v35 = vld [vmem:[%s790_s0 + $0x158] sm:$0xff]  ;;  %v214_v36 = vmax.f32 %v213_v25, %v127_v20  ;;  %v144_v38 = vld [vmem:[%s790_s0 + $0x440] sm:$0xff]  ;;  %v82_v40 = vld [vmem:[%s790_s0 + $0x250] sm:$0xff]  ;;  %v240_v41 = vmax.f32 %v19_v33, %v35_v34 }
  0x21   :  { %v227_v39 = vmax.f32 %v226_v28, %v81_v23  ;;  %286 = vst [vmem:[%s791_s1 + $0x30] sm:$0xff] %v207_v30  ;;  %v113_v43 = vld [vmem:[%s790_s0 + $0x348] sm:$0xff]  ;;  %v98_v44 = vld [vmem:[%s790_s0 + $0x2d0] sm:$0xff]  ;;  %v67_v46 = vld [vmem:[%s790_s0 + $0x1d8] sm:$0xff] }
  0x22   :  { %v221_v42 = vmax.f32 %v220_v31, %v112_v26  ;;  %v234_v45 = vmax.f32 %v233_v32, %v66_v29  ;;  %v215_v47 = vmax.f32 %v214_v36, %v143_v21  ;;  %v241_v49 = vmax.f32 %v240_v41, %v51_v35  ;;  %v20_v50 = vld [vmem:[%s790_s0 + $0x60] sm:$0xff]  ;;  %v129_v54 = vld [vmem:[%s790_s0 + $0x3c8] sm:$0xff]  ;;  %v83_v57 = vld [vmem:[%s790_s0 + $0x258] sm:$0xff] }
  0x23   :  { %v228_v48 = vmax.f32 %v227_v39, %v97_v27  ;;  %v36_v51 = vld [vmem:[%s790_s0 + $0xe0] sm:$0xff]  ;;  %v145_v55 = vld [vmem:[%s790_s0 + $0x448] sm:$0xff]  ;;  %v114_v60 = vld [vmem:[%s790_s0 + $0x350] sm:$0xff] }
  0x24   :  { %v52_v52 = vld [vmem:[%s790_s0 + $0x160] sm:$0xff]  ;;  %v222_v53 = vmax.f32 %v221_v42, %v128_v37  ;;  %v235_v56 = vmax.f32 %v234_v45, %v82_v40  ;;  %v248_v58 = vmax.f32 %v20_v50, %v36_v51  ;;  %287 = vst [vmem:[%s791_s1 + $0x38] sm:$0xff] %v215_v47  ;;  %v99_v61 = vld [vmem:[%s790_s0 + $0x2d8] sm:$0xff]  ;;  %v242_v62 = vmax.f32 %v241_v49, %v67_v46  ;;  %v21_v3 = vld [vmem:[%s790_s0 + $0x68] sm:$0xff] }
  0x25   :  { %v229_v59 = vmax.f32 %v228_v48, %v113_v43  ;;  %v68_v63 = vld [vmem:[%s790_s0 + $0x1e0] sm:$0xff]  ;;  %v37_v4 = vld [vmem:[%s790_s0 + $0xe8] sm:$0xff]  ;;  %v130_v7 = vld [vmem:[%s790_s0 + $0x3d0] sm:$0xff] }
  0x26   :  { %v223_v0 = vmax.f32 %v222_v53, %v144_v38  ;;  %v236_v1 = vmax.f32 %v235_v56, %v98_v44  ;;  %v249_v2 = vmax.f32 %v248_v58, %v52_v52  ;;  %v53_v5 = vld [vmem:[%s790_s0 + $0x168] sm:$0xff]  ;;  %v146_v8 = vld [vmem:[%s790_s0 + $0x450] sm:$0xff]  ;;  %v243_v9 = vmax.f32 %v242_v62, %v83_v57  ;;  %v84_v10 = vld [vmem:[%s790_s0 + $0x260] sm:$0xff] }
  0x27   :  { %v230_v6 = vmax.f32 %v229_v59, %v129_v54  ;;  %v256_v11 = vmax.f32 %v21_v3, %v37_v4  ;;  %v115_v13 = vld [vmem:[%s790_s0 + $0x358] sm:$0xff]  ;;  %v100_v14 = vld [vmem:[%s790_s0 + $0x2e0] sm:$0xff]  ;;  %v69_v16 = vld [vmem:[%s790_s0 + $0x1e8] sm:$0xff] }
  0x28   :  { %288 = vst [vmem:[%s791_s1 + $0x40] sm:$0xff] %v223_v0  ;;  %v237_v12 = vmax.f32 %v236_v1, %v114_v60  ;;  %v250_v15 = vmax.f32 %v249_v2, %v68_v63  ;;  %v244_v18 = vmax.f32 %v243_v9, %v99_v61  ;;  %v22_v20 = vld [vmem:[%s790_s0 + $0x70] sm:$0xff]  ;;  %v131_v24 = vld [vmem:[%s790_s0 + $0x3d8] sm:$0xff]  ;;  %v85_v27 = vld [vmem:[%s790_s0 + $0x268] sm:$0xff] }
  0x29   :  { %v231_v17 = vmax.f32 %v230_v6, %v145_v55  ;;  %v257_v19 = vmax.f32 %v256_v11, %v53_v5  ;;  %v38_v21 = vld [vmem:[%s790_s0 + $0xf0] sm:$0xff]  ;;  %v147_v25 = vld [vmem:[%s790_s0 + $0x458] sm:$0xff]  ;;  %v116_v30 = vld [vmem:[%s790_s0 + $0x360] sm:$0xff] }
  0x2a   :  { %v54_v22 = vld [vmem:[%s790_s0 + $0x170] sm:$0xff]  ;;  %v238_v23 = vmax.f32 %v237_v12, %v130_v7  ;;  %v251_v26 = vmax.f32 %v250_v15, %v84_v10  ;;  %v264_v28 = vmax.f32 %v22_v20, %v38_v21  ;;  %v245_v29 = vmax.f32 %v244_v18, %v115_v13  ;;  %v101_v31 = vld [vmem:[%s790_s0 + $0x2e8] sm:$0xff]  ;;  %v23_v37 = vld [vmem:[%s790_s0 + $0x78] sm:$0xff] }
  0x2b   :  { %289 = vst [vmem:[%s791_s1 + $0x48] sm:$0xff] %v231_v17  ;;  %v258_v32 = vmax.f32 %v257_v19, %v69_v16  ;;  %v70_v33 = vld [vmem:[%s790_s0 + $0x1f0] sm:$0xff]  ;;  %v39_v38 = vld [vmem:[%s790_s0 + $0xf8] sm:$0xff]  ;;  %v132_v41 = vld [vmem:[%s790_s0 + $0x3e0] sm:$0xff] }
  0x2c   :  { %v239_v34 = vmax.f32 %v238_v23, %v146_v8  ;;  %v252_v35 = vmax.f32 %v251_v26, %v100_v14  ;;  %v265_v36 = vmax.f32 %v264_v28, %v54_v22  ;;  %v55_v39 = vld [vmem:[%s790_s0 + $0x178] sm:$0xff]  ;;  %v246_v40 = vmax.f32 %v245_v29, %v131_v24  ;;  %v86_v43 = vld [vmem:[%s790_s0 + $0x270] sm:$0xff]  ;;  %v117_v46 = vld [vmem:[%s790_s0 + $0x368] sm:$0xff] }
  0x2d   :  { %v259_v42 = vmax.f32 %v258_v32, %v85_v27  ;;  %v272_v44 = vmax.f32 %v23_v37, %v39_v38  ;;  %v71_v48 = vld [vmem:[%s790_s0 + $0x1f8] sm:$0xff]  ;;  %v148_v50 = vld [vmem:[%s790_s0 + $0x460] sm:$0xff]  ;;  %v102_v52 = vld [vmem:[%s790_s0 + $0x2f0] sm:$0xff] }
  0x2e   :  { %290 = vst [vmem:[%s791_s1 + $0x50] sm:$0xff] %v239_v34  ;;  %v253_v45 = vmax.f32 %v252_v35, %v116_v30  ;;  %v266_v47 = vmax.f32 %v265_v36, %v70_v33  ;;  %v247_v49 = vmax.f32 %v246_v40, %v147_v25  ;;  %v133_v55 = vld [vmem:[%s790_s0 + $0x3e8] sm:$0xff]  ;;  %v87_v57 = vld [vmem:[%s790_s0 + $0x278] sm:$0xff]  ;;  %v118_v59 = vld [vmem:[%s790_s0 + $0x370] sm:$0xff] }
  0x2f   :  { %v260_v51 = vmax.f32 %v259_v42, %v101_v31  ;;  %v273_v53 = vmax.f32 %v272_v44, %v55_v39  ;;  %v149_v62 = vld [vmem:[%s790_s0 + $0x468] sm:$0xff]  ;;  %v103_v0 = vld [vmem:[%s790_s0 + $0x2f8] sm:$0xff]  ;;  %v134_v2 = vld [vmem:[%s790_s0 + $0x3f0] sm:$0xff] }
  0x30   :  { %v254_v54 = vmax.f32 %v253_v45, %v132_v41  ;;  %v267_v56 = vmax.f32 %v266_v47, %v86_v43  ;;  %291 = vst [vmem:[%s791_s1 + $0x58] sm:$0xff] %v247_v49  ;;  %v119_v5 = vld [vmem:[%s790_s0 + $0x378] sm:$0xff]  ;;  %v150_v7 = vld [vmem:[%s790_s0 + $0x470] sm:$0xff] }
  0x31   :  { %v261_v58 = vmax.f32 %v260_v51, %v117_v46  ;;  %v274_v60 = vmax.f32 %v273_v53, %v71_v48  ;;  %v135_v10 = vld [vmem:[%s790_s0 + $0x3f8] sm:$0xff] }
  0x32   :  { %v255_v61 = vmax.f32 %v254_v54, %v148_v50  ;;  %v268_v63 = vmax.f32 %v267_v56, %v102_v52  ;;  %v151_v13 = vld [vmem:[%s790_s0 + $0x478] sm:$0xff] }
  0x33   :  { %v262_v1 = vmax.f32 %v261_v58, %v133_v55  ;;  %v275_v3 = vmax.f32 %v274_v60, %v87_v57 }
  0x34   :  { %292 = vst [vmem:[%s791_s1 + $0x60] sm:$0xff] %v255_v61  ;;  %v269_v4 = vmax.f32 %v268_v63, %v118_v59 }
  0x35   :  { %v263_v6 = vmax.f32 %v262_v1, %v149_v62  ;;  %v276_v8 = vmax.f32 %v275_v3, %v103_v0 }
  0x36   :  { %v270_v9 = vmax.f32 %v269_v4, %v134_v2 }
  0x37   :  { %293 = vst [vmem:[%s791_s1 + $0x68] sm:$0xff] %v263_v6  ;;  %v277_v11 = vmax.f32 %v276_v8, %v119_v5 }
  0x38   :  { %v271_v12 = vmax.f32 %v270_v9, %v150_v7 }
  0x39   :  { %v278_v14 = vmax.f32 %v277_v11, %v135_v10 }
  0x3a   :  { %294 = vst [vmem:[%s791_s1 + $0x70] sm:$0xff] %v271_v12 }
  0x3b   :  { %v279_v15 = vmax.f32 %v278_v14, %v151_v13 }
  0x3d   :  { %295 = vst [vmem:[%s791_s1 + $0x78] sm:$0xff] %v279_v15 }

// kernel: imnet_forward.9
= control target key start
LH: loop header
LB: loop body
LE: loop exit
PB: predicated region body
PF: predicated region fallthrough
CT: control target
= control target key end

     0   :  { %s4230_s1 = inlined_call_operand.vmem [shape: bf16[1792,128], index: 1, kind: input, shape index: {}]   ;;  %s4231_s0 = inlined_call_operand.vmem [shape: bf16[128,1792], index: 0, kind: input, shape index: {}]   ;;  %s4232_s2 = inlined_call_operand.vmem [shape: f32[1,128], index: 2, kind: input, shape index: {}]   ;;  %s4233_s3 = inlined_call_operand.vmem [shape: f32[1,128], index: 3, kind: input, shape index: {}]   ;;  %s4234_s4 = inlined_call_operand.vmem [shape: f32[128,128], index: 4, kind: output, shape index: {}]  }
   0x1   :  { %v3037_v0 = vld [vmem:[%s4230_s1 + $0x40] sm:$0xff]   ;;  %v3039_v2 = vld [vmem:[%s4230_s1 + $0x48] sm:$0xff]   ;;  %v3041_v4 = vld [vmem:[%s4230_s1 + $0x50] sm:$0xff]  }
   0x2   :  { %v3038_v1 = vld [vmem:[%s4230_s1] sm:$0xff]   ;;  %2573 = vmatprep.subr.bf16.mxu0 %v3037_v0  ;;  %3021 = vmatprep.subr.bf16.mxu1 %v3037_v0  ;;  %v3040_v3 = vld [vmem:[%s4230_s1 + $0x8] sm:$0xff]   ;;  %v3042_v5 = vld [vmem:[%s4230_s1 + $0x10] sm:$0xff]  }
   0x3   :  { %2574 = vmatpush3.bf16.msra.mxu0 %v3038_v1  ;;  %3029 = vmatpush3.bf16.msra.mxu1 %v3038_v1  ;;  %v3043_v6 = vld [vmem:[%s4230_s1 + $0x58] sm:$0xff]   ;;  %v3045_v8 = vld [vmem:[%s4230_s1 + $0x60] sm:$0xff]   ;;  %v3047_v10 = vld [vmem:[%s4230_s1 + $0x68] sm:$0xff]  }
   0x4   :  { %2575 = vmatprep.subr.bf16.mxu0 %v3039_v2  ;;  %3022 = vmatprep.subr.bf16.mxu1 %v3039_v2  ;;  %v3044_v7 = vld [vmem:[%s4230_s1 + $0x18] sm:$0xff]   ;;  %v3046_v9 = vld [vmem:[%s4230_s1 + $0x20] sm:$0xff]   ;;  %v3048_v13 = vld [vmem:[%s4230_s1 + $0x28] sm:$0xff]  }
   0x5   :  { %v3055_v11 = vld [vmem:[%s4231_s0 + $0x4] ss:$56 sps:$4 sm:$0xff]   ;;  %v3049_v14 = vld [vmem:[%s4230_s1 + $0x70] sm:$0xff]   ;;  %v3053_v18 = vld [vmem:[%s4231_s0] ss:$56 sps:$4 sm:$0xff]  }
   0x6   :  { %v3058_v12 = vld [vmem:[%s4231_s0 + $0x1c4] ss:$56 sps:$4 sm:$0xff]   ;;  %1618 = vmatprep.mubr.bf16.mxu0 %v3055_v11  ;;  %v3050_v15 = vld [vmem:[%s4230_s1 + $0x30] sm:$0xff]   ;;  %v3056_v19 = vld [vmem:[%s4231_s0 + $0x1c0] ss:$56 sps:$4 sm:$0xff]  }
   0x7   :  { %2576 = vmatpush3.bf16.msra.mxu0 %v3040_v3  ;;  %3030 = vmatpush3.bf16.msra.mxu1 %v3040_v3  ;;  %v3051_v16 = vld [vmem:[%s4230_s1 + $0x78] sm:$0xff]   ;;  %v3059_v20 = vld [vmem:[%s4230_s1 + $0xc0] sm:$0xff]   ;;  %v3063_v24 = vld [vmem:[%s4230_s1 + $0xc8] sm:$0xff]  }
   0x8   :  { %2577 = vmatprep.subr.bf16.mxu0 %v3041_v4  ;;  %3023 = vmatprep.subr.bf16.mxu1 %v3041_v4  ;;  %v3052_v17 = vld [vmem:[%s4230_s1 + $0x38] sm:$0xff]   ;;  %v3060_v21 = vld [vmem:[%s4230_s1 + $0x140] sm:$0xff]   ;;  %v3064_v25 = vld [vmem:[%s4230_s1 + $0x148] sm:$0xff]  }
   0x9   :  { %1650 = vmatprep.mubr.bf16.mxu1 %v3058_v12  ;;  %v3061_v22 = vld [vmem:[%s4230_s1 + $0x80] sm:$0xff]   ;;  %v3067_v26 = vld [vmem:[%s4231_s0 + $0x74] ss:$56 sps:$4 sm:$0xff]   ;;  %v3071_v31 = vld [vmem:[%s4231_s0 + $0x70] ss:$56 sps:$4 sm:$0xff]  }
   0xa   :  { %v3062_v23 = vld [vmem:[%s4230_s1 + $0x100] sm:$0xff]   ;;  %v3065_v27 = vld [vmem:[%s4230_s1 + $0x88] sm:$0xff]   ;;  %v3073_v30 = vld [vmem:[%s4230_s1 + $0xd0] sm:$0xff]  }
   0xb   :  { %2578 = vmatpush3.bf16.msra.mxu0 %v3042_v5  ;;  %3031 = vmatpush3.bf16.msra.mxu1 %v3042_v5  ;;  %v3069_v28 = vld [vmem:[%s4231_s0 + $0x234] ss:$56 sps:$4 sm:$0xff]   ;;  %v3072_v33 = vld [vmem:[%s4231_s0 + $0x230] ss:$56 sps:$4 sm:$0xff]   ;;  %v3077_v36 = vld [vmem:[%s4230_s1 + $0xd8] sm:$0xff]  }
   0xc   :  { %2579 = vmatprep.subr.bf16.mxu0 %v3043_v6  ;;  %3024 = vmatprep.subr.bf16.mxu1 %v3043_v6  ;;  %v3066_v29 = vld [vmem:[%s4230_s1 + $0x108] sm:$0xff]   ;;  %v3074_v32 = vld [vmem:[%s4230_s1 + $0x150] sm:$0xff]   ;;  %v3078_v37 = vld [vmem:[%s4230_s1 + $0x158] sm:$0xff]  }
   0xd   :  { %v3075_v34 = vld [vmem:[%s4230_s1 + $0x90] sm:$0xff]   ;;  %v3081_v38 = vld [vmem:[%s4231_s0 + $0xe4] ss:$56 sps:$4 sm:$0xff]   ;;  %v3085_v43 = vld [vmem:[%s4231_s0 + $0xe0] ss:$56 sps:$4 sm:$0xff]  }
   0xe   :  { %v3076_v35 = vld [vmem:[%s4230_s1 + $0x110] sm:$0xff]   ;;  %v3079_v39 = vld [vmem:[%s4230_s1 + $0x98] sm:$0xff]   ;;  %v3087_v42 = vld [vmem:[%s4230_s1 + $0xe0] sm:$0xff]  }
   0xf   :  { %2580 = vmatpush3.bf16.msra.mxu0 %v3044_v7  ;;  %3032 = vmatpush3.bf16.msra.mxu1 %v3044_v7  ;;  %v3083_v40 = vld [vmem:[%s4231_s0 + $0x2a4] ss:$56 sps:$4 sm:$0xff]   ;;  %v3086_v44 = vld [vmem:[%s4231_s0 + $0x2a0] ss:$56 sps:$4 sm:$0xff]   ;;  %v3091_v48 = vld [vmem:[%s4230_s1 + $0xe8] sm:$0xff]  }
  0x10   :  { %2581 = vmatprep.subr.bf16.mxu0 %v3045_v8  ;;  %3025 = vmatprep.subr.bf16.mxu1 %v3045_v8  ;;  %v3080_v41 = vld [vmem:[%s4230_s1 + $0x118] sm:$0xff]   ;;  %v3088_v45 = vld [vmem:[%s4230_s1 + $0x160] sm:$0xff]   ;;  %v3092_v49 = vld [vmem:[%s4230_s1 + $0x168] sm:$0xff]  }
  0x11   :  { %v3089_v46 = vld [vmem:[%s4230_s1 + $0xa0] sm:$0xff]   ;;  %v3095_v50 = vld [vmem:[%s4231_s0 + $0x154] ss:$56 sps:$4 sm:$0xff]   ;;  %v3099_v55 = vld [vmem:[%s4231_s0 + $0x150] ss:$56 sps:$4 sm:$0xff]  }
  0x12   :  { %v3090_v47 = vld [vmem:[%s4230_s1 + $0x120] sm:$0xff]   ;;  %v3097_v51 = vld [vmem:[%s4231_s0 + $0x314] ss:$56 sps:$4 sm:$0xff]   ;;  %v3100_v56 = vld [vmem:[%s4231_s0 + $0x310] ss:$56 sps:$4 sm:$0xff]  }
  0x13   :  { %2582 = vmatpush3.bf16.msra.mxu0 %v3046_v9  ;;  %3033 = vmatpush3.bf16.msra.mxu1 %v3046_v9  ;;  %v3093_v52 = vld [vmem:[%s4230_s1 + $0xa8] sm:$0xff]   ;;  %v3101_v54 = vld [vmem:[%s4230_s1 + $0xf0] sm:$0xff]   ;;  %v3105_v60 = vld [vmem:[%s4230_s1 + $0xf8] sm:$0xff]  }
  0x14   :  { %2583 = vmatprep.subr.bf16.mxu0 %v3047_v10  ;;  %3026 = vmatprep.subr.bf16.mxu1 %v3047_v10  ;;  %v3094_v53 = vld [vmem:[%s4230_s1 + $0x128] sm:$0xff]   ;;  %v3102_v57 = vld [vmem:[%s4230_s1 + $0x170] sm:$0xff]   ;;  %v3106_v61 = vld [vmem:[%s4230_s1 + $0x178] sm:$0xff]  }
  0x15   :  { %v3103_v58 = vld [vmem:[%s4230_s1 + $0xb0] sm:$0xff]   ;;  %v3107_v62 = vld [vmem:[%s4230_s1 + $0xb8] sm:$0xff]   ;;  %v3111_v0 = vld [vmem:[%s4231_s0 + $0xc] ss:$56 sps:$4 sm:$0xff]  }
  0x16   :  { %v3104_v59 = vld [vmem:[%s4230_s1 + $0x130] sm:$0xff]   ;;  %v3108_v63 = vld [vmem:[%s4230_s1 + $0x138] sm:$0xff]   ;;  %v3109_v1 = vld [vmem:[%s4231_s0 + $0x8] ss:$56 sps:$4 sm:$0xff]  }
  0x17   :  { %2584 = vmatpush3.bf16.msra.mxu0 %v3048_v13  ;;  %3034 = vmatpush3.bf16.msra.mxu1 %v3048_v13  ;;  %v3112_v2 = vld [vmem:[%s4231_s0 + $0x10] ss:$56 sps:$4 sm:$0xff]   ;;  %v3114_v3 = vld [vmem:[%s4231_s0 + $0x14] ss:$56 sps:$4 sm:$0xff]   ;;  %v3115_v4 = vld [vmem:[%s4230_s1 + $0x1c0] sm:$0xff]  }
  0x18   :  { %2585 = vmatprep.subr.bf16.mxu0 %v3049_v14  ;;  %3027 = vmatprep.subr.bf16.mxu1 %v3049_v14  ;;  %v3116_v5 = vld [vmem:[%s4230_s1 + $0x180] sm:$0xff]   ;;  %v3119_v8 = vld [vmem:[%s4231_s0 + $0x7c] ss:$56 sps:$4 sm:$0xff]   ;;  %v3123_v10 = vld [vmem:[%s4231_s0 + $0x78] ss:$56 sps:$4 sm:$0xff]  }
  0x19   :  { %v3117_v6 = vld [vmem:[%s4230_s1 + $0x240] sm:$0xff]   ;;  %v3125_v12 = vld [vmem:[%s4230_s1 + $0x1c8] sm:$0xff]  }
  0x1a   :  { %v3118_v7 = vld [vmem:[%s4230_s1 + $0x200] sm:$0xff]   ;;  %v3126_v13 = vld [vmem:[%s4230_s1 + $0x188] sm:$0xff]  }
  0x1b   :  { %2586 = vmatpush3.bf16.msra.mxu0 %v3050_v15  ;;  %3035 = vmatpush3.bf16.msra.mxu1 %v3050_v15  ;;  %v3121_v9 = vld [vmem:[%s4231_s0 + $0x84] ss:$56 sps:$4 sm:$0xff]   ;;  %v3124_v11 = vld [vmem:[%s4231_s0 + $0x80] ss:$56 sps:$4 sm:$0xff]   ;;  %v3127_v14 = vld [vmem:[%s4230_s1 + $0x248] sm:$0xff]  }
  0x1c   :  { %2587 = vmatprep.subr.bf16.mxu0 %v3051_v16  ;;  %3028 = vmatprep.subr.bf16.mxu1 %v3051_v16  ;;  %v3128_v15 = vld [vmem:[%s4230_s1 + $0x208] sm:$0xff]  }
  0x1d   :  { %v3129_v16 = vld [vmem:[%s4231_s0 + $0xec] ss:$56 sps:$4 sm:$0xff]  }
  0x1f   :  { %2588 = vmatpush3.bf16.msra.mxu0 %v3052_v17  ;;  %3036 = vmatpush3.bf16.msra.mxu1 %v3052_v17  ;;  %v3131_v17 = vld [vmem:[%s4231_s0 + $0xf4] ss:$56 sps:$4 sm:$0xff]  }
  0x20   :  { %2637 = vmatprep.subr.bf16.mxu1 %v3059_v20  ;;  %2701 = vmatprep.subr.bf16.mxu0 %v3060_v21  ;;  %v3134_v20 = vld [vmem:[%s4231_s0 + $0xf0] ss:$56 sps:$4 sm:$0xff]  }
  0x21   :  { %v3136_v21 = vld [vmem:[%s4230_s1 + $0x190] sm:$0xff]  }
  0x22   :  { %1619 = vmatmul.mubr.bf16.vlgmr.msra.gmra.mrb[0].mxu0 %v3053_v18  ;;  %1651 = vmatmul.mubr.bf16.vlgmr.msra.gmra.mrb[0].mxu1 %v3056_v19  ;;  %v3135_v18 = vld [vmem:[%s4230_s1 + $0x1d0] sm:$0xff]   ;;  %v3133_v19 = vld [vmem:[%s4231_s0 + $0xe8] ss:$56 sps:$4 sm:$0xff]  }
  0x23   :  { %2638 = vmatpush3.bf16.msra.mxu1 %v3061_v22  ;;  %2702 = vmatpush3.bf16.msra.mxu0 %v3062_v23  ;;  %v3137_v22 = vld [vmem:[%s4230_s1 + $0x250] sm:$0xff]  }
  0x24   :  { %2639 = vmatprep.subr.bf16.mxu1 %v3063_v24  ;;  %2703 = vmatprep.subr.bf16.mxu0 %v3064_v25  ;;  %v3138_v23 = vld [vmem:[%s4230_s1 + $0x210] sm:$0xff]   ;;  %v3141_v25 = vld [vmem:[%s4231_s0 + $0x164] ss:$56 sps:$4 sm:$0xff]  }
  0x25   :  { %1626 = vmatprep.mubr.bf16.mxu0 %v3067_v26  ;;  %1658 = vmatprep.mubr.bf16.mxu1 %v3069_v28  ;;  %v3139_v24 = vld [vmem:[%s4231_s0 + $0x15c] ss:$56 sps:$4 sm:$0xff]   ;;  %v3143_v28 = vld [vmem:[%s4231_s0 + $0x158] ss:$56 sps:$4 sm:$0xff]  }
  0x26   :  { %v3145_v26 = vld [vmem:[%s4230_s1 + $0x1d8] sm:$0xff]  }
  0x27   :  { %2640 = vmatpush3.bf16.msra.mxu1 %v3065_v27  ;;  %2704 = vmatpush3.bf16.msra.mxu0 %v3066_v29  ;;  %v3146_v27 = vld [vmem:[%s4230_s1 + $0x198] sm:$0xff]  }
  0x28   :  { %2641 = vmatprep.subr.bf16.mxu1 %v3073_v30  ;;  %2705 = vmatprep.subr.bf16.mxu0 %v3074_v32  ;;  %v3147_v29 = vld [vmem:[%s4230_s1 + $0x258] sm:$0xff]   ;;  %v3149_v32 = vld [vmem:[%s4231_s0 + $0x1cc] ss:$56 sps:$4 sm:$0xff]  }
  0x29   :  { %v3148_v30 = vld [vmem:[%s4230_s1 + $0x218] sm:$0xff]  }
  0x2a   :  { %1627 = vmatmul.mubr.bf16.gmra.mrb[4].mxu0 %v3071_v31  ;;  %1659 = vmatmul.mubr.bf16.gmra.mrb[4].mxu1 %v3072_v33  ;;  %v3144_v31 = vld [vmem:[%s4231_s0 + $0x160] ss:$56 sps:$4 sm:$0xff]   ;;  %v3151_v33 = vld [vmem:[%s4231_s0 + $0x1d4] ss:$56 sps:$4 sm:$0xff]  }
  0x2b   :  { %2642 = vmatpush3.bf16.msra.mxu1 %v3075_v34  ;;  %2706 = vmatpush3.bf16.msra.mxu0 %v3076_v35  ;;  %v3155_v34 = vld [vmem:[%s4230_s1 + $0x1e0] sm:$0xff]  }
  0x2c   :  { %2643 = vmatprep.subr.bf16.mxu1 %v3077_v36  ;;  %2707 = vmatprep.subr.bf16.mxu0 %v3078_v37  ;;  %v3156_v35 = vld [vmem:[%s4230_s1 + $0x1a0] sm:$0xff]  }
  0x2d   :  { %1634 = vmatprep.mubr.bf16.mxu0 %v3081_v38  ;;  %1666 = vmatprep.mubr.bf16.mxu1 %v3083_v40  ;;  %v3157_v36 = vld [vmem:[%s4230_s1 + $0x260] sm:$0xff]   ;;  %v3159_v40 = vld [vmem:[%s4231_s0 + $0x23c] ss:$56 sps:$4 sm:$0xff]  }
  0x2e   :  { %v3158_v37 = vld [vmem:[%s4230_s1 + $0x220] sm:$0xff]  }
  0x2f   :  { %2644 = vmatpush3.bf16.msra.mxu1 %v3079_v39  ;;  %2708 = vmatpush3.bf16.msra.mxu0 %v3080_v41  ;;  %v3153_v38 = vld [vmem:[%s4231_s0 + $0x1c8] ss:$56 sps:$4 sm:$0xff]   ;;  %v3161_v41 = vld [vmem:[%s4231_s0 + $0x244] ss:$56 sps:$4 sm:$0xff]  }
  0x30   :  { %2645 = vmatprep.subr.bf16.mxu1 %v3087_v42  ;;  %2709 = vmatprep.subr.bf16.mxu0 %v3088_v45  ;;  %v3154_v39 = vld [vmem:[%s4231_s0 + $0x1d0] ss:$56 sps:$4 sm:$0xff]  }
  0x31   :  { %v3165_v42 = vld [vmem:[%s4230_s1 + $0x1e8] sm:$0xff]  }
  0x32   :  { %1635 = vmatmul.mubr.bf16.gmra.mrb[8].mxu0 %v3085_v43  ;;  %1667 = vmatmul.mubr.bf16.gmra.mrb[8].mxu1 %v3086_v44  ;;  %v3166_v43 = vld [vmem:[%s4230_s1 + $0x1a8] sm:$0xff]  }
  0x33   :  { %2646 = vmatpush3.bf16.msra.mxu1 %v3089_v46  ;;  %2710 = vmatpush3.bf16.msra.mxu0 %v3090_v47  ;;  %v3167_v44 = vld [vmem:[%s4230_s1 + $0x268] sm:$0xff]   ;;  %v3163_v46 = vld [vmem:[%s4231_s0 + $0x238] ss:$56 sps:$4 sm:$0xff]  }
  0x34   :  { %2647 = vmatprep.subr.bf16.mxu1 %v3091_v48  ;;  %2711 = vmatprep.subr.bf16.mxu0 %v3092_v49  ;;  %v3168_v45 = vld [vmem:[%s4230_s1 + $0x228] sm:$0xff]   ;;  %v3164_v47 = vld [vmem:[%s4231_s0 + $0x240] ss:$56 sps:$4 sm:$0xff]  }
  0x35   :  { %1642 = vmatprep.mubr.bf16.mxu0 %v3095_v50  ;;  %1674 = vmatprep.mubr.bf16.mxu1 %v3097_v51  ;;  %v3169_v48 = vld [vmem:[%s4231_s0 + $0x2ac] ss:$56 sps:$4 sm:$0xff]   ;;  %v3175_v50 = vld [vmem:[%s4230_s1 + $0x1f0] sm:$0xff]  }
  0x36   :  { %v3171_v49 = vld [vmem:[%s4231_s0 + $0x2b4] ss:$56 sps:$4 sm:$0xff]  }
  0x37   :  { %2648 = vmatpush3.bf16.msra.mxu1 %v3093_v52  ;;  %2712 = vmatpush3.bf16.msra.mxu0 %v3094_v53  ;;  %v3176_v51 = vld [vmem:[%s4230_s1 + $0x1b0] sm:$0xff]  }
  0x38   :  { %2649 = vmatprep.subr.bf16.mxu1 %v3101_v54  ;;  %2713 = vmatprep.subr.bf16.mxu0 %v3102_v57  ;;  %v3177_v52 = vld [vmem:[%s4230_s1 + $0x270] sm:$0xff]   ;;  %v3173_v54 = vld [vmem:[%s4231_s0 + $0x2a8] ss:$56 sps:$4 sm:$0xff]  }
  0x39   :  { %v3178_v53 = vld [vmem:[%s4230_s1 + $0x230] sm:$0xff]  }
  0x3a   :  { %1643 = vmatmul.mubr.bf16.gmra.mrb[12].mxu0 %v3099_v55  ;;  %1675 = vmatmul.mubr.bf16.gmra.mrb[12].mxu1 %v3100_v56  ;;  %v3174_v55 = vld [vmem:[%s4231_s0 + $0x2b0] ss:$56 sps:$4 sm:$0xff]   ;;  %v3185_v56 = vld [vmem:[%s4230_s1 + $0x1f8] sm:$0xff]  }
  0x3b   :  { %2650 = vmatpush3.bf16.msra.mxu1 %v3103_v58  ;;  %2714 = vmatpush3.bf16.msra.mxu0 %v3104_v59  ;;  %v3179_v57 = vld [vmem:[%s4231_s0 + $0x31c] ss:$56 sps:$4 sm:$0xff]  }
  0x3c   :  { %2651 = vmatprep.subr.bf16.mxu1 %v3105_v60  ;;  %2715 = vmatprep.subr.bf16.mxu0 %v3106_v61  ;;  %v3181_v58 = vld [vmem:[%s4231_s0 + $0x324] ss:$56 sps:$4 sm:$0xff]  }
  0x3d   :  { %1715 = vmatprep.mubr.bf16.mxu1 %v3111_v0  ;;  %1812 = vmatprep.mubr.bf16.mxu0 %v3114_v3  ;;  %v3186_v59 = vld [vmem:[%s4230_s1 + $0x1b8] sm:$0xff]  }
  0x3e   :  { %v3187_v60 = vld [vmem:[%s4230_s1 + $0x278] sm:$0xff]  }
  0x3f   :  { %2652 = vmatpush3.bf16.msra.mxu1 %v3107_v62  ;;  %2716 = vmatpush3.bf16.msra.mxu0 %v3108_v63  ;;  %v3188_v61 = vld [vmem:[%s4230_s1 + $0x238] sm:$0xff]   ;;  %v3195_v62 = vld [vmem:[%s4230_s1 + $0x2c0] sm:$0xff]  }
  0x40   :  { %2765 = vmatprep.subr.bf16.mxu1 %v3115_v4  ;;  %2829 = vmatprep.subr.bf16.mxu0 %v3117_v6  ;;  %v3183_v63 = vld [vmem:[%s4231_s0 + $0x318] ss:$56 sps:$4 sm:$0xff]   ;;  %v3194_v3 = vld [vmem:[%s4231_s0 + $0x24] ss:$56 sps:$4 sm:$0xff]  }
  0x41   :  { %v3184_v0 = vld [vmem:[%s4231_s0 + $0x320] ss:$56 sps:$4 sm:$0xff]  }
  0x42   :  { %1716 = vmatmul.mubr.bf16.vlgmr.msra.gmra.mrb[16].mxu1 %v3109_v1  ;;  %1813 = vmatmul.mubr.bf16.vlgmr.msra.gmra.mrb[16].mxu0 %v3112_v2  ;;  %v3197_v1 = vld [vmem:[%s4230_s1 + $0x340] sm:$0xff]   ;;  %v3191_v2 = vld [vmem:[%s4231_s0 + $0x1c] ss:$56 sps:$4 sm:$0xff]   ;;  %v3189_v4 = vld [vmem:[%s4231_s0 + $0x18] ss:$56 sps:$4 sm:$0xff]  }
  0x43   :  { %2766 = vmatpush3.bf16.msra.mxu1 %v3116_v5  ;;  %2830 = vmatpush3.bf16.msra.mxu0 %v3118_v7  ;;  %v3192_v5 = vld [vmem:[%s4231_s0 + $0x20] ss:$56 sps:$4 sm:$0xff]  }
  0x44   :  { %1723 = vmatprep.mubr.bf16.mxu1 %v3119_v8  ;;  %1820 = vmatprep.mubr.bf16.mxu0 %v3121_v9  ;;  %v3196_v6 = vld [vmem:[%s4230_s1 + $0x280] sm:$0xff]   ;;  %v3201_v9 = vld [vmem:[%s4231_s0 + $0x94] ss:$56 sps:$4 sm:$0xff]  }
  0x45   :  { %2767 = vmatprep.subr.bf16.mxu1 %v3125_v12  ;;  %2831 = vmatprep.subr.bf16.mxu0 %v3127_v14  ;;  %v3198_v7 = vld [vmem:[%s4230_s1 + $0x300] sm:$0xff]   ;;  %v3207_v12 = vld [vmem:[%s4230_s1 + $0x348] sm:$0xff]   ;;  %v3215_v14 = vld [vmem:[%s4230_s1 + $0x2d0] sm:$0xff]  }
  0x46   :  { %v3199_v8 = vld [vmem:[%s4231_s0 + $0x8c] ss:$56 sps:$4 sm:$0xff]  }
  0x47   :  { %2768 = vmatpush3.bf16.msra.mxu1 %v3126_v13  ;;  %2832 = vmatpush3.bf16.msra.mxu0 %v3128_v15  ;;  %v3208_v13 = vld [vmem:[%s4230_s1 + $0x308] sm:$0xff]  }
  0x48   :  { %2769 = vmatprep.subr.bf16.mxu1 %v3135_v18  ;;  %2833 = vmatprep.subr.bf16.mxu0 %v3137_v22  ;;  %v3203_v15 = vld [vmem:[%s4231_s0 + $0x88] ss:$56 sps:$4 sm:$0xff]   ;;  %v3209_v18 = vld [vmem:[%s4231_s0 + $0xfc] ss:$56 sps:$4 sm:$0xff]  }
  0x49   :  { %v3225_v22 = vld [vmem:[%s4230_s1 + $0x2d8] sm:$0xff]  }
  0x4a   :  { %1724 = vmatmul.mubr.bf16.gmra.mrb[20].mxu1 %v3123_v10  ;;  %1821 = vmatmul.mubr.bf16.gmra.mrb[20].mxu0 %v3124_v11  ;;  %v3205_v10 = vld [vmem:[%s4230_s1 + $0x2c8] sm:$0xff]  }
  0x4b   :  { %1731 = vmatprep.mubr.bf16.mxu1 %v3129_v16  ;;  %1828 = vmatprep.mubr.bf16.mxu0 %v3131_v17  ;;  %v3206_v11 = vld [vmem:[%s4230_s1 + $0x288] sm:$0xff]   ;;  %v3217_v17 = vld [vmem:[%s4230_s1 + $0x350] sm:$0xff]  }
  0x4c   :  { %2770 = vmatpush3.bf16.msra.mxu1 %v3136_v21  ;;  %2834 = vmatpush3.bf16.msra.mxu0 %v3138_v23  ;;  %v3204_v16 = vld [vmem:[%s4231_s0 + $0x90] ss:$56 sps:$4 sm:$0xff]   ;;  %v3227_v23 = vld [vmem:[%s4230_s1 + $0x358] sm:$0xff]  }
  0x4d   :  { %2771 = vmatprep.subr.bf16.mxu1 %v3145_v26  ;;  %2835 = vmatprep.subr.bf16.mxu0 %v3147_v29  ;;  %v3218_v21 = vld [vmem:[%s4230_s1 + $0x310] sm:$0xff]   ;;  %v3226_v26 = vld [vmem:[%s4230_s1 + $0x298] sm:$0xff]  }
  0x4e   :  { %v3221_v29 = vld [vmem:[%s4231_s0 + $0x174] ss:$56 sps:$4 sm:$0xff]  }
  0x50   :  { %2772 = vmatpush3.bf16.msra.mxu1 %v3146_v27  ;;  %2836 = vmatpush3.bf16.msra.mxu0 %v3148_v30  ;;  %v3228_v27 = vld [vmem:[%s4230_s1 + $0x318] sm:$0xff]   ;;  %v3235_v30 = vld [vmem:[%s4230_s1 + $0x2e0] sm:$0xff]  }
  0x51   :  { %2773 = vmatprep.subr.bf16.mxu1 %v3155_v34  ;;  %2837 = vmatprep.subr.bf16.mxu0 %v3157_v36  ;;  %v3223_v34 = vld [vmem:[%s4231_s0 + $0x168] ss:$56 sps:$4 sm:$0xff]  }
  0x52   :  { %1732 = vmatmul.mubr.bf16.gmra.mrb[24].mxu1 %v3133_v19  ;;  %1829 = vmatmul.mubr.bf16.gmra.mrb[24].mxu0 %v3134_v20  ;;  %v3211_v19 = vld [vmem:[%s4231_s0 + $0x104] ss:$56 sps:$4 sm:$0xff]   ;;  %v3216_v20 = vld [vmem:[%s4230_s1 + $0x290] sm:$0xff]   ;;  %v3245_v36 = vld [vmem:[%s4230_s1 + $0x2e8] sm:$0xff]  }
  0x53   :  { %1739 = vmatprep.mubr.bf16.mxu1 %v3139_v24  ;;  %1836 = vmatprep.mubr.bf16.mxu0 %v3141_v25  ;;  %v3213_v24 = vld [vmem:[%s4231_s0 + $0xf8] ss:$56 sps:$4 sm:$0xff]  }
  0x54   :  { %2774 = vmatpush3.bf16.msra.mxu1 %v3156_v35  ;;  %2838 = vmatpush3.bf16.msra.mxu0 %v3158_v37  ;;  %v3214_v25 = vld [vmem:[%s4231_s0 + $0x100] ss:$56 sps:$4 sm:$0xff]   ;;  %v3224_v35 = vld [vmem:[%s4231_s0 + $0x170] ss:$56 sps:$4 sm:$0xff]   ;;  %v3229_v37 = vld [vmem:[%s4231_s0 + $0x1dc] ss:$56 sps:$4 sm:$0xff]  }
  0x55   :  { %2775 = vmatprep.subr.bf16.mxu1 %v3165_v42  ;;  %2839 = vmatprep.subr.bf16.mxu0 %v3167_v44  ;;  %v3255_v42 = vld [vmem:[%s4230_s1 + $0x2f0] sm:$0xff]   ;;  %v3234_v44 = vld [vmem:[%s4231_s0 + $0x1e0] ss:$56 sps:$4 sm:$0xff]  }
  0x58   :  { %2776 = vmatpush3.bf16.msra.mxu1 %v3166_v43  ;;  %2840 = vmatpush3.bf16.msra.mxu0 %v3168_v45  ;;  %v3233_v43 = vld [vmem:[%s4231_s0 + $0x1d8] ss:$56 sps:$4 sm:$0xff]  }
  0x59   :  { %2777 = vmatprep.subr.bf16.mxu1 %v3175_v50  ;;  %2841 = vmatprep.subr.bf16.mxu0 %v3177_v52  ;;  %v3256_v45 = vld [vmem:[%s4230_s1 + $0x2b0] sm:$0xff]   ;;  %v3265_v50 = vld [vmem:[%s4230_s1 + $0x2f8] sm:$0xff]  }
  0x5a   :  { %1740 = vmatmul.mubr.bf16.gmra.mrb[28].mxu1 %v3143_v28  ;;  %1837 = vmatmul.mubr.bf16.gmra.mrb[28].mxu0 %v3144_v31  ;;  %v3219_v28 = vld [vmem:[%s4231_s0 + $0x16c] ss:$56 sps:$4 sm:$0xff]   ;;  %v3267_v52 = vld [vmem:[%s4230_s1 + $0x378] sm:$0xff]  }
  0x5b   :  { %1747 = vmatprep.mubr.bf16.mxu1 %v3149_v32  ;;  %1844 = vmatprep.mubr.bf16.mxu0 %v3151_v33  ;;  %v3236_v31 = vld [vmem:[%s4230_s1 + $0x2a0] sm:$0xff]  }
  0x5c   :  { %2778 = vmatpush3.bf16.msra.mxu1 %v3176_v51  ;;  %2842 = vmatpush3.bf16.msra.mxu0 %v3178_v53  ;;  %v3237_v32 = vld [vmem:[%s4230_s1 + $0x360] sm:$0xff]   ;;  %v3266_v51 = vld [vmem:[%s4230_s1 + $0x2b8] sm:$0xff]  }
  0x5d   :  { %2779 = vmatprep.subr.bf16.mxu1 %v3185_v56  ;;  %2843 = vmatprep.subr.bf16.mxu0 %v3187_v60  ;;  %v3238_v33 = vld [vmem:[%s4230_s1 + $0x320] sm:$0xff]   ;;  %v3268_v53 = vld [vmem:[%s4230_s1 + $0x338] sm:$0xff]  }
  0x5e   :  { %v3249_v56 = vld [vmem:[%s4231_s0 + $0x2bc] ss:$56 sps:$4 sm:$0xff]   ;;  %v3259_v60 = vld [vmem:[%s4231_s0 + $0x32c] ss:$56 sps:$4 sm:$0xff]  }
  0x60   :  { %2780 = vmatpush3.bf16.msra.mxu1 %v3186_v59  ;;  %2844 = vmatpush3.bf16.msra.mxu0 %v3188_v61  ;;  %v3254_v59 = vld [vmem:[%s4231_s0 + $0x2c0] ss:$56 sps:$4 sm:$0xff]   ;;  %v3261_v61 = vld [vmem:[%s4231_s0 + $0x334] ss:$56 sps:$4 sm:$0xff]  }
  0x61   :  { %2893 = vmatprep.subr.bf16.mxu1 %v3195_v62  ;;  %2957 = vmatprep.subr.bf16.mxu0 %v3197_v1  ;;  %v3263_v62 = vld [vmem:[%s4231_s0 + $0x328] ss:$56 sps:$4 sm:$0xff]   ;;  %v3274_v1 = vld [vmem:[%s4231_s0 + $0x34] ss:$56 sps:$4 sm:$0xff]  }
  0x62   :  { %1748 = vmatmul.mubr.bf16.gmra.mrb[32].mxu1 %v3153_v38  ;;  %1845 = vmatmul.mubr.bf16.gmra.mrb[32].mxu0 %v3154_v39  ;;  %v3231_v38 = vld [vmem:[%s4231_s0 + $0x1e4] ss:$56 sps:$4 sm:$0xff]   ;;  %v3246_v39 = vld [vmem:[%s4230_s1 + $0x2a8] sm:$0xff]  }
  0x63   :  { %1755 = vmatprep.mubr.bf16.mxu1 %v3159_v40  ;;  %1852 = vmatprep.mubr.bf16.mxu0 %v3161_v41  ;;  %v3247_v40 = vld [vmem:[%s4230_s1 + $0x368] sm:$0xff]  }
  0x64   :  { %v3248_v41 = vld [vmem:[%s4230_s1 + $0x328] sm:$0xff]  }
  0x6a   :  { %1756 = vmatmul.mubr.bf16.gmra.mrb[36].mxu1 %v3163_v46  ;;  %1853 = vmatmul.mubr.bf16.gmra.mrb[36].mxu0 %v3164_v47  ;;  %v3239_v46 = vld [vmem:[%s4231_s0 + $0x24c] ss:$56 sps:$4 sm:$0xff]   ;;  %v3257_v47 = vld [vmem:[%s4230_s1 + $0x370] sm:$0xff]  }
  0x6b   :  { %1763 = vmatprep.mubr.bf16.mxu1 %v3169_v48  ;;  %1860 = vmatprep.mubr.bf16.mxu0 %v3171_v49  ;;  %v3258_v48 = vld [vmem:[%s4230_s1 + $0x330] sm:$0xff]  }
  0x6c   :  { %v3241_v49 = vld [vmem:[%s4231_s0 + $0x254] ss:$56 sps:$4 sm:$0xff]  }
  0x72   :  { %1764 = vmatmul.mubr.bf16.gmra.mrb[40].mxu1 %v3173_v54  ;;  %1861 = vmatmul.mubr.bf16.gmra.mrb[40].mxu0 %v3174_v55  ;;  %v3243_v54 = vld [vmem:[%s4231_s0 + $0x248] ss:$56 sps:$4 sm:$0xff]  }
  0x73   :  { %1771 = vmatprep.mubr.bf16.mxu1 %v3179_v57  ;;  %1868 = vmatprep.mubr.bf16.mxu0 %v3181_v58  ;;  %v3244_v55 = vld [vmem:[%s4231_s0 + $0x250] ss:$56 sps:$4 sm:$0xff]   ;;  %v3251_v57 = vld [vmem:[%s4231_s0 + $0x2c4] ss:$56 sps:$4 sm:$0xff]  }
  0x74   :  { %v3253_v58 = vld [vmem:[%s4231_s0 + $0x2b8] ss:$56 sps:$4 sm:$0xff]  }
  0x7a   :  { %1772 = vmatmul.mubr.bf16.gmra.mrb[44].mxu1 %v3183_v63  ;;  %1869 = vmatmul.mubr.bf16.gmra.mrb[44].mxu0 %v3184_v0  ;;  %v3264_v63 = vld [vmem:[%s4231_s0 + $0x330] ss:$56 sps:$4 sm:$0xff]   ;;  %v3271_v0 = vld [vmem:[%s4231_s0 + $0x2c] ss:$56 sps:$4 sm:$0xff]  }
  0x7b   :  { %1909 = vmatprep.mubr.bf16.mxu1 %v3191_v2  ;;  %2006 = vmatprep.mubr.bf16.mxu0 %v3194_v3  ;;  %v3269_v2 = vld [vmem:[%s4231_s0 + $0x28] ss:$56 sps:$4 sm:$0xff]  }
  0x7c   :  { %v3272_v3 = vld [vmem:[%s4231_s0 + $0x30] ss:$56 sps:$4 sm:$0xff]  }
  0x82   :  { %1910 = vmatmul.mubr.bf16.vlgmr.msra.gmra.mrb[48].mxu1 %v3189_v4  ;;  %2007 = vmatmul.mubr.bf16.vlgmr.msra.gmra.mrb[48].mxu0 %v3192_v5  ;;  %v3275_v4 = vld [vmem:[%s4231_s0 + $0x9c] ss:$56 sps:$4 sm:$0xff]  }
  0x83   :  { %2894 = vmatpush3.bf16.msra.mxu1 %v3196_v6  ;;  %2958 = vmatpush3.bf16.msra.mxu0 %v3198_v7  ;;  %v3277_v5 = vld [vmem:[%s4231_s0 + $0xa4] ss:$56 sps:$4 sm:$0xff]   ;;  %v3279_v6 = vld [vmem:[%s4231_s0 + $0x98] ss:$56 sps:$4 sm:$0xff]  }
  0x84   :  { %1917 = vmatprep.mubr.bf16.mxu1 %v3199_v8  ;;  %2014 = vmatprep.mubr.bf16.mxu0 %v3201_v9  ;;  %v3280_v7 = vld [vmem:[%s4231_s0 + $0xa0] ss:$56 sps:$4 sm:$0xff]   ;;  %v3281_v8 = vld [vmem:[%s4231_s0 + $0x10c] ss:$56 sps:$4 sm:$0xff]  }
  0x85   :  { %2895 = vmatprep.subr.bf16.mxu1 %v3205_v10  ;;  %2959 = vmatprep.subr.bf16.mxu0 %v3207_v12  ;;  %v3283_v9 = vld [vmem:[%s4231_s0 + $0x114] ss:$56 sps:$4 sm:$0xff]   ;;  %v3285_v10 = vld [vmem:[%s4231_s0 + $0x108] ss:$56 sps:$4 sm:$0xff]  }
  0x86   :  { %v3287_v12 = vld [vmem:[%s4231_s0 + $0x17c] ss:$56 sps:$4 sm:$0xff]  }
  0x87   :  { %2896 = vmatpush3.bf16.msra.mxu1 %v3206_v11  ;;  %2960 = vmatpush3.bf16.msra.mxu0 %v3208_v13  ;;  %v3286_v11 = vld [vmem:[%s4231_s0 + $0x110] ss:$56 sps:$4 sm:$0xff]   ;;  %v3289_v13 = vld [vmem:[%s4231_s0 + $0x184] ss:$56 sps:$4 sm:$0xff]  }
  0x88   :  { %2897 = vmatprep.subr.bf16.mxu1 %v3215_v14  ;;  %2961 = vmatprep.subr.bf16.mxu0 %v3217_v17  ;;  %v3291_v14 = vld [vmem:[%s4231_s0 + $0x178] ss:$56 sps:$4 sm:$0xff]   ;;  %v3295_v17 = vld [vmem:[%s4231_s0 + $0x1f4] ss:$56 sps:$4 sm:$0xff]  }
  0x8a   :  { %1918 = vmatmul.mubr.bf16.gmra.mrb[52].mxu1 %v3203_v15  ;;  %2015 = vmatmul.mubr.bf16.gmra.mrb[52].mxu0 %v3204_v16  ;;  %v3292_v15 = vld [vmem:[%s4231_s0 + $0x180] ss:$56 sps:$4 sm:$0xff]   ;;  %v3293_v16 = vld [vmem:[%s4231_s0 + $0x1ec] ss:$56 sps:$4 sm:$0xff]  }
  0x8b   :  { %1925 = vmatprep.mubr.bf16.mxu1 %v3209_v18  ;;  %2022 = vmatprep.mubr.bf16.mxu0 %v3211_v19  ;;  %v3297_v18 = vld [vmem:[%s4231_s0 + $0x1e8] ss:$56 sps:$4 sm:$0xff]  }
  0x8c   :  { %2898 = vmatpush3.bf16.msra.mxu1 %v3216_v20  ;;  %2962 = vmatpush3.bf16.msra.mxu0 %v3218_v21  ;;  %v3298_v19 = vld [vmem:[%s4231_s0 + $0x1f0] ss:$56 sps:$4 sm:$0xff]   ;;  %v3299_v20 = vld [vmem:[%s4231_s0 + $0x25c] ss:$56 sps:$4 sm:$0xff]  }
  0x8d   :  { %2899 = vmatprep.subr.bf16.mxu1 %v3225_v22  ;;  %2963 = vmatprep.subr.bf16.mxu0 %v3227_v23  ;;  %v3301_v21 = vld [vmem:[%s4231_s0 + $0x264] ss:$56 sps:$4 sm:$0xff]   ;;  %v3303_v22 = vld [vmem:[%s4231_s0 + $0x258] ss:$56 sps:$4 sm:$0xff]  }
  0x8e   :  { %v3304_v23 = vld [vmem:[%s4231_s0 + $0x260] ss:$56 sps:$4 sm:$0xff]  }
  0x90   :  { %2900 = vmatpush3.bf16.msra.mxu1 %v3226_v26  ;;  %2964 = vmatpush3.bf16.msra.mxu0 %v3228_v27  ;;  %v3309_v26 = vld [vmem:[%s4231_s0 + $0x2c8] ss:$56 sps:$4 sm:$0xff]  }
  0x91   :  { %2901 = vmatprep.subr.bf16.mxu1 %v3235_v30  ;;  %2965 = vmatprep.subr.bf16.mxu0 %v3237_v32  ;;  %v3310_v27 = vld [vmem:[%s4231_s0 + $0x2d0] ss:$56 sps:$4 sm:$0xff]  }
  0x92   :  { %1926 = vmatmul.mubr.bf16.gmra.mrb[56].mxu1 %v3213_v24  ;;  %2023 = vmatmul.mubr.bf16.gmra.mrb[56].mxu0 %v3214_v25  ;;  %v3305_v24 = vld [vmem:[%s4231_s0 + $0x2cc] ss:$56 sps:$4 sm:$0xff]  }
  0x93   :  { %1933 = vmatprep.mubr.bf16.mxu1 %v3219_v28  ;;  %2030 = vmatprep.mubr.bf16.mxu0 %v3221_v29  ;;  %v3307_v25 = vld [vmem:[%s4231_s0 + $0x2d4] ss:$56 sps:$4 sm:$0xff]   ;;  %v3313_v29 = vld [vmem:[%s4231_s0 + $0x344] ss:$56 sps:$4 sm:$0xff]  }
  0x94   :  { %2902 = vmatpush3.bf16.msra.mxu1 %v3236_v31  ;;  %2966 = vmatpush3.bf16.msra.mxu0 %v3238_v33  ;;  %v3311_v28 = vld [vmem:[%s4231_s0 + $0x33c] ss:$56 sps:$4 sm:$0xff]  }
  0x95   :  { %2903 = vmatprep.subr.bf16.mxu1 %v3245_v36  ;;  %2967 = vmatprep.subr.bf16.mxu0 %v3247_v40 }
  0x98   :  { %2904 = vmatpush3.bf16.msra.mxu1 %v3246_v39  ;;  %2968 = vmatpush3.bf16.msra.mxu0 %v3248_v41 }
  0x99   :  { %2905 = vmatprep.subr.bf16.mxu1 %v3255_v42  ;;  %2969 = vmatprep.subr.bf16.mxu0 %v3257_v47 }
  0x9a   :  { %1934 = vmatmul.mubr.bf16.gmra.mrb[60].mxu1 %v3223_v34  ;;  %2031 = vmatmul.mubr.bf16.gmra.mrb[60].mxu0 %v3224_v35  ;;  %v3315_v34 = vld [vmem:[%s4231_s0 + $0x338] ss:$56 sps:$4 sm:$0xff]  }
  0x9b   :  { %1941 = vmatprep.mubr.bf16.mxu1 %v3229_v37  ;;  %2038 = vmatprep.mubr.bf16.mxu0 %v3231_v38  ;;  %v3316_v35 = vld [vmem:[%s4231_s0 + $0x340] ss:$56 sps:$4 sm:$0xff]  }
  0x9c   :  { %2906 = vmatpush3.bf16.msra.mxu1 %v3256_v45  ;;  %2970 = vmatpush3.bf16.msra.mxu0 %v3258_v48 }
  0x9d   :  { %2907 = vmatprep.subr.bf16.mxu1 %v3265_v50  ;;  %2971 = vmatprep.subr.bf16.mxu0 %v3267_v52 }
  0xa0   :  { %2908 = vmatpush3.bf16.msra.mxu1 %v3266_v51  ;;  %2972 = vmatpush3.bf16.msra.mxu0 %v3268_v53 }
  0xa2   :  { %1942 = vmatmul.mubr.bf16.gmra.mrb[64].mxu1 %v3233_v43  ;;  %2039 = vmatmul.mubr.bf16.gmra.mrb[64].mxu0 %v3234_v44 }
  0xa3   :  { %1949 = vmatprep.mubr.bf16.mxu1 %v3239_v46  ;;  %2046 = vmatprep.mubr.bf16.mxu0 %v3241_v49 }
  0xaa   :  { %1950 = vmatmul.mubr.bf16.gmra.mrb[68].mxu1 %v3243_v54  ;;  %2047 = vmatmul.mubr.bf16.gmra.mrb[68].mxu0 %v3244_v55 }
  0xab   :  { %1957 = vmatprep.mubr.bf16.mxu1 %v3249_v56  ;;  %2054 = vmatprep.mubr.bf16.mxu0 %v3251_v57 }
  0xb2   :  { %1958 = vmatmul.mubr.bf16.gmra.mrb[72].mxu1 %v3253_v58  ;;  %2055 = vmatmul.mubr.bf16.gmra.mrb[72].mxu0 %v3254_v59 }
  0xb3   :  { %1965 = vmatprep.mubr.bf16.mxu1 %v3259_v60  ;;  %2062 = vmatprep.mubr.bf16.mxu0 %v3261_v61 }
  0xba   :  { %1966 = vmatmul.mubr.bf16.gmra.mrb[76].mxu1 %v3263_v62  ;;  %2063 = vmatmul.mubr.bf16.gmra.mrb[76].mxu0 %v3264_v63 }
  0xbb   :  { %2103 = vmatprep.mubr.bf16.mxu1 %v3271_v0  ;;  %2200 = vmatprep.mubr.bf16.mxu0 %v3274_v1 }
  0xc2   :  { %2104 = vmatmul.mubr.bf16.vlgmr.msra.gmra.mrb[80].mxu1 %v3269_v2  ;;  %2201 = vmatmul.mubr.bf16.vlgmr.msra.gmra.mrb[80].mxu0 %v3272_v3 }
  0xc3   :  { %2111 = vmatprep.mubr.bf16.mxu1 %v3275_v4  ;;  %2208 = vmatprep.mubr.bf16.mxu0 %v3277_v5 }
  0xca   :  { %2112 = vmatmul.mubr.bf16.gmra.mrb[84].mxu1 %v3279_v6  ;;  %2209 = vmatmul.mubr.bf16.gmra.mrb[84].mxu0 %v3280_v7 }
  0xcb   :  { %2119 = vmatprep.mubr.bf16.mxu1 %v3281_v8  ;;  %2216 = vmatprep.mubr.bf16.mxu0 %v3283_v9 }
  0xd2   :  { %2120 = vmatmul.mubr.bf16.gmra.mrb[88].mxu1 %v3285_v10  ;;  %2217 = vmatmul.mubr.bf16.gmra.mrb[88].mxu0 %v3286_v11 }
  0xd3   :  { %2127 = vmatprep.mubr.bf16.mxu1 %v3287_v12  ;;  %2224 = vmatprep.mubr.bf16.mxu0 %v3289_v13 }
  0xda   :  { %2128 = vmatmul.mubr.bf16.gmra.mrb[92].mxu1 %v3291_v14  ;;  %2225 = vmatmul.mubr.bf16.gmra.mrb[92].mxu0 %v3292_v15 }
  0xdb   :  { %2135 = vmatprep.mubr.bf16.mxu1 %v3293_v16  ;;  %2232 = vmatprep.mubr.bf16.mxu0 %v3295_v17 }
  0xe2   :  { %2136 = vmatmul.mubr.bf16.gmra.mrb[96].mxu1 %v3297_v18  ;;  %2233 = vmatmul.mubr.bf16.gmra.mrb[96].mxu0 %v3298_v19 }
  0xe3   :  { %2143 = vmatprep.mubr.bf16.mxu1 %v3299_v20  ;;  %2240 = vmatprep.mubr.bf16.mxu0 %v3301_v21 }
  0xea   :  { %2144 = vmatmul.mubr.bf16.gmra.mrb[100].mxu1 %v3303_v22  ;;  %2241 = vmatmul.mubr.bf16.gmra.mrb[100].mxu0 %v3304_v23 }
  0xeb   :  { %2151 = vmatprep.mubr.bf16.mxu1 %v3305_v24  ;;  %2248 = vmatprep.mubr.bf16.mxu0 %v3307_v25 }
  0xf2   :  { %2152 = vmatmul.mubr.bf16.gmra.mrb[104].mxu1 %v3309_v26  ;;  %2249 = vmatmul.mubr.bf16.gmra.mrb[104].mxu0 %v3310_v27 }
  0xf3   :  { %2159 = vmatprep.mubr.bf16.mxu1 %v3311_v28  ;;  %2256 = vmatprep.mubr.bf16.mxu0 %v3313_v29 }
  0xf5   :  { %v2589_v30 = vpop.f32.mrb[0].mxu0  ;;  %v2613_v31 = vpop.f32.mrb[0].mxu1 }
  0xf6   :  { %v2590_v32 = vpop.f32.mrb[1].mxu0  ;;  %v2614_v33 = vpop.f32.mrb[1].mxu1 }
  0xf7   :  { %v2591_v36 = vadd.f32 %v2590_v32, %v2589_v30  ;;  %v4014_v37 = vadd.f32 %v2614_v33, %v2613_v31  ;;  %v2592_v38 = vpop.f32.mrb[2].mxu0  ;;  %v2616_v39 = vpop.f32.mrb[2].mxu1 }
  0xf8   :  { %v2593_v40 = vpop.f32.mrb[3].mxu0  ;;  %v2617_v41 = vpop.f32.mrb[3].mxu1 }
  0xf9   :  { %v2594_v42 = vadd.f32 %v2593_v40, %v2592_v38  ;;  %v4016_v43 = vadd.f32 %v2617_v41, %v2616_v39 }
  0xfa   :  { %2160 = vmatmul.mubr.bf16.gmra.mrb[108].mxu1 %v3315_v34  ;;  %2257 = vmatmul.mubr.bf16.gmra.mrb[108].mxu0 %v3316_v35 }
  0xfd   :  { %v2595_v44 = vpop.f32.mrb[4].mxu0  ;;  %v2619_v45 = vpop.f32.mrb[4].mxu1 }
  0xfe   :  { %v2596_v46 = vpop.f32.mrb[5].mxu0  ;;  %v2620_v47 = vpop.f32.mrb[5].mxu1 }
  0xff   :  { %v2597_v48 = vadd.f32 %v2596_v46, %v2595_v44  ;;  %v4018_v49 = vadd.f32 %v2620_v47, %v2619_v45  ;;  %v2598_v50 = vpop.f32.mrb[6].mxu0  ;;  %v2622_v51 = vpop.f32.mrb[6].mxu1 }
 0x100   :  { %v2599_v52 = vpop.f32.mrb[7].mxu0  ;;  %v2623_v53 = vpop.f32.mrb[7].mxu1 }
 0x101   :  { %v2600_v54 = vadd.f32 %v2599_v52, %v2598_v50  ;;  %v4020_v55 = vadd.f32 %v2623_v53, %v2622_v51 }
 0x105   :  { %v2601_v56 = vpop.f32.mrb[8].mxu0  ;;  %v2625_v57 = vpop.f32.mrb[8].mxu1 }
 0x106   :  { %v2602_v58 = vpop.f32.mrb[9].mxu0  ;;  %v2626_v59 = vpop.f32.mrb[9].mxu1 }
 0x107   :  { %v2603_v60 = vadd.f32 %v2602_v58, %v2601_v56  ;;  %v4022_v61 = vadd.f32 %v2626_v59, %v2625_v57  ;;  %v2604_v62 = vpop.f32.mrb[10].mxu0  ;;  %v2628_v63 = vpop.f32.mrb[10].mxu1 }
 0x108   :  { %v2605_v0 = vpop.f32.mrb[11].mxu0  ;;  %v2629_v1 = vpop.f32.mrb[11].mxu1 }
 0x109   :  { %v2606_v2 = vadd.f32 %v2605_v0, %v2604_v62  ;;  %v4024_v3 = vadd.f32 %v2629_v1, %v2628_v63 }
 0x10d   :  { %v2607_v4 = vpop.f32.mrb[12].mxu0  ;;  %v2631_v5 = vpop.f32.mrb[12].mxu1 }
 0x10e   :  { %v2608_v6 = vpop.f32.mrb[13].mxu0  ;;  %v2632_v7 = vpop.f32.mrb[13].mxu1 }
 0x10f   :  { %v4026_v8 = vadd.f32 %v2608_v6, %v2607_v4  ;;  %v4028_v9 = vadd.f32 %v2632_v7, %v2631_v5  ;;  %v2610_v10 = vpop.f32.mrb[14].mxu0  ;;  %v2634_v11 = vpop.f32.mrb[14].mxu1 }
 0x110   :  { %v2611_v12 = vpop.f32.mrb[15].mxu0  ;;  %v2635_v13 = vpop.f32.mrb[15].mxu1 }
 0x111   :  { %v4030_v14 = vadd.f32 %v2611_v12, %v2610_v10  ;;  %v4032_v15 = vadd.f32 %v2635_v13, %v2634_v11 }
 0x115   :  { %v2653_v16 = vpop.f32.mrb[16].mxu1  ;;  %v2717_v17 = vpop.f32.mrb[16].mxu0 }
 0x116   :  { %v2654_v18 = vpop.f32.mrb[17].mxu1  ;;  %v2718_v19 = vpop.f32.mrb[17].mxu0 }
 0x117   :  { %v2655_v20 = vadd.f32 %v2654_v18, %v2653_v16  ;;  %v2719_v21 = vadd.f32 %v2718_v19, %v2717_v17  ;;  %v2656_v22 = vpop.f32.mrb[18].mxu1  ;;  %v2720_v23 = vpop.f32.mrb[18].mxu0 }
 0x118   :  { %v2657_v24 = vpop.f32.mrb[19].mxu1  ;;  %v2721_v25 = vpop.f32.mrb[19].mxu0 }
 0x119   :  { %v1718_v26 = vadd.f32 %v2655_v20, %v2591_v36  ;;  %v2658_v27 = vadd.f32 %v2657_v24, %v2656_v22  ;;  %v2722_v28 = vadd.f32 %v2721_v25, %v2720_v23 }
 0x11b   :  { %v4034_v29 = vadd.f32 %v2719_v21, %v1718_v26  ;;  %v1721_v30 = vadd.f32 %v2658_v27, %v2594_v42 }
 0x11d   :  { %v4036_v31 = vadd.f32 %v2722_v28, %v1721_v30  ;;  %v2659_v32 = vpop.f32.mrb[20].mxu1  ;;  %v2723_v33 = vpop.f32.mrb[20].mxu0 }
 0x11e   :  { %v2660_v34 = vpop.f32.mrb[21].mxu1  ;;  %v2724_v35 = vpop.f32.mrb[21].mxu0 }
 0x11f   :  { %v2661_v38 = vadd.f32 %v2660_v34, %v2659_v32  ;;  %v2725_v39 = vadd.f32 %v2724_v35, %v2723_v33  ;;  %v2662_v40 = vpop.f32.mrb[22].mxu1  ;;  %v2726_v41 = vpop.f32.mrb[22].mxu0 }
 0x120   :  { %v2663_v44 = vpop.f32.mrb[23].mxu1  ;;  %v2727_v45 = vpop.f32.mrb[23].mxu0 }
 0x121   :  { %v1726_v46 = vadd.f32 %v2661_v38, %v2597_v48  ;;  %v2664_v47 = vadd.f32 %v2663_v44, %v2662_v40  ;;  %v2728_v36 = vadd.f32 %v2727_v45, %v2726_v41 }
 0x123   :  { %v4038_v50 = vadd.f32 %v2725_v39, %v1726_v46  ;;  %v1729_v51 = vadd.f32 %v2664_v47, %v2600_v54 }
 0x125   :  { %v4040_v52 = vadd.f32 %v2728_v36, %v1729_v51  ;;  %v2665_v42 = vpop.f32.mrb[24].mxu1  ;;  %v2729_v53 = vpop.f32.mrb[24].mxu0 }
 0x126   :  { %v2666_v56 = vpop.f32.mrb[25].mxu1  ;;  %v2730_v57 = vpop.f32.mrb[25].mxu0 }
 0x127   :  { %v2667_v58 = vadd.f32 %v2666_v56, %v2665_v42  ;;  %v2731_v59 = vadd.f32 %v2730_v57, %v2729_v53  ;;  %v2668_v62 = vpop.f32.mrb[26].mxu1  ;;  %v2732_v63 = vpop.f32.mrb[26].mxu0 }
 0x128   :  { %v2669_v0 = vpop.f32.mrb[27].mxu1  ;;  %v2733_v1 = vpop.f32.mrb[27].mxu0 }
 0x129   :  { %v1734_v4 = vadd.f32 %v2667_v58, %v2603_v60  ;;  %v2670_v5 = vadd.f32 %v2669_v0, %v2668_v62  ;;  %v2734_v48 = vadd.f32 %v2733_v1, %v2732_v63 }
 0x12b   :  { %v4042_v6 = vadd.f32 %v2731_v59, %v1734_v4  ;;  %v1737_v7 = vadd.f32 %v2670_v5, %v2606_v2 }
 0x12d   :  { %v4044_v10 = vadd.f32 %v2734_v48, %v1737_v7  ;;  %v2671_v54 = vpop.f32.mrb[28].mxu1  ;;  %v2735_v11 = vpop.f32.mrb[28].mxu0 }
 0x12e   :  { %v2672_v12 = vpop.f32.mrb[29].mxu1  ;;  %v2736_v13 = vpop.f32.mrb[29].mxu0 }
 0x12f   :  { %v2673_v16 = vadd.f32 %v2672_v12, %v2671_v54  ;;  %v2737_v17 = vadd.f32 %v2736_v13, %v2735_v11  ;;  %v2674_v18 = vpop.f32.mrb[30].mxu1  ;;  %v2738_v19 = vpop.f32.mrb[30].mxu0 }
 0x130   :  { %v2675_v20 = vpop.f32.mrb[31].mxu1  ;;  %v2739_v21 = vpop.f32.mrb[31].mxu0 }
 0x131   :  { %v1742_v22 = vadd.f32 %v2673_v16, %v4026_v8  ;;  %v2676_v60 = vadd.f32 %v2675_v20, %v2674_v18  ;;  %v2740_v23 = vadd.f32 %v2739_v21, %v2738_v19 }
 0x133   :  { %v4047_v24 = vadd.f32 %v2737_v17, %v1742_v22  ;;  %v1745_v2 = vadd.f32 %v2676_v60, %v4030_v14 }
 0x135   :  { %v4050_v25 = vadd.f32 %v2740_v23, %v1745_v2  ;;  %v2677_v26 = vpop.f32.mrb[32].mxu1  ;;  %v2741_v27 = vpop.f32.mrb[32].mxu0 }
 0x136   :  { %v2678_v28 = vpop.f32.mrb[33].mxu1  ;;  %v2742_v30 = vpop.f32.mrb[33].mxu0 }
 0x137   :  { %v2679_v32 = vadd.f32 %v2678_v28, %v2677_v26  ;;  %v2743_v33 = vadd.f32 %v2742_v30, %v2741_v27  ;;  %v2680_v34 = vpop.f32.mrb[34].mxu1  ;;  %v2744_v35 = vpop.f32.mrb[34].mxu0 }
 0x138   :  { %v2681_v38 = vpop.f32.mrb[35].mxu1  ;;  %v2745_v39 = vpop.f32.mrb[35].mxu0 }
 0x139   :  { %v1750_v8 = vadd.f32 %v2679_v32, %v4014_v37  ;;  %v2682_v40 = vadd.f32 %v2681_v38, %v2680_v34  ;;  %v2746_v41 = vadd.f32 %v2745_v39, %v2744_v35 }
 0x13b   :  { %v4053_v44 = vadd.f32 %v2743_v33, %v1750_v8  ;;  %v1753_v14 = vadd.f32 %v2682_v40, %v4016_v43 }
 0x13d   :  { %v4056_v45 = vadd.f32 %v2746_v41, %v1753_v14  ;;  %v2683_v46 = vpop.f32.mrb[36].mxu1  ;;  %v2747_v47 = vpop.f32.mrb[36].mxu0 }
 0x13e   :  { %v2684_v36 = vpop.f32.mrb[37].mxu1  ;;  %v2748_v51 = vpop.f32.mrb[37].mxu0 }
 0x13f   :  { %v2685_v42 = vadd.f32 %v2684_v36, %v2683_v46  ;;  %v2749_v53 = vadd.f32 %v2748_v51, %v2747_v47  ;;  %v2686_v56 = vpop.f32.mrb[38].mxu1  ;;  %v2750_v57 = vpop.f32.mrb[38].mxu0 }
 0x140   :  { %v2687_v58 = vpop.f32.mrb[39].mxu1  ;;  %v2751_v59 = vpop.f32.mrb[39].mxu0 }
 0x141   :  { %v1758_v37 = vadd.f32 %v2685_v42, %v4018_v49  ;;  %v2688_v62 = vadd.f32 %v2687_v58, %v2686_v56  ;;  %v2752_v63 = vadd.f32 %v2751_v59, %v2750_v57 }
 0x143   :  { %v4059_v0 = vadd.f32 %v2749_v53, %v1758_v37  ;;  %v1761_v43 = vadd.f32 %v2688_v62, %v4020_v55 }
 0x145   :  { %v4062_v1 = vadd.f32 %v2752_v63, %v1761_v43  ;;  %v2689_v4 = vpop.f32.mrb[40].mxu1  ;;  %v2753_v5 = vpop.f32.mrb[40].mxu0 }
 0x146   :  { %v2690_v48 = vpop.f32.mrb[41].mxu1  ;;  %v2754_v7 = vpop.f32.mrb[41].mxu0 }
 0x147   :  { %v2691_v54 = vadd.f32 %v2690_v48, %v2689_v4  ;;  %v2755_v11 = vadd.f32 %v2754_v7, %v2753_v5  ;;  %v2692_v12 = vpop.f32.mrb[42].mxu1  ;;  %v2756_v13 = vpop.f32.mrb[42].mxu0 }
 0x148   :  { %v2693_v16 = vpop.f32.mrb[43].mxu1  ;;  %v2757_v17 = vpop.f32.mrb[43].mxu0 }
 0x149   :  { %v1766_v49 = vadd.f32 %v2691_v54, %v4022_v61  ;;  %v2694_v18 = vadd.f32 %v2693_v16, %v2692_v12  ;;  %v2758_v19 = vadd.f32 %v2757_v17, %v2756_v13 }
 0x14b   :  { %v4065_v20 = vadd.f32 %v2755_v11, %v1766_v49  ;;  %v1769_v55 = vadd.f32 %v2694_v18, %v4024_v3 }
 0x14d   :  { %v4068_v21 = vadd.f32 %v2758_v19, %v1769_v55  ;;  %v2695_v22 = vpop.f32.mrb[44].mxu1  ;;  %v2759_v60 = vpop.f32.mrb[44].mxu0 }
 0x14e   :  { %v2696_v23 = vpop.f32.mrb[45].mxu1  ;;  %v2760_v2 = vpop.f32.mrb[45].mxu0 }
 0x14f   :  { %v2697_v26 = vadd.f32 %v2696_v23, %v2695_v22  ;;  %v2761_v27 = vadd.f32 %v2760_v2, %v2759_v60  ;;  %v2698_v28 = vpop.f32.mrb[46].mxu1  ;;  %v2762_v30 = vpop.f32.mrb[46].mxu0 }
 0x150   :  { %v2699_v32 = vpop.f32.mrb[47].mxu1  ;;  %v2763_v33 = vpop.f32.mrb[47].mxu0 }
 0x151   :  { %v1774_v61 = vadd.f32 %v2697_v26, %v4028_v9  ;;  %v2700_v34 = vadd.f32 %v2699_v32, %v2698_v28  ;;  %v2764_v35 = vadd.f32 %v2763_v33, %v2762_v30 }
 0x153   :  { %v4071_v38 = vadd.f32 %v2761_v27, %v1774_v61  ;;  %v1777_v3 = vadd.f32 %v2700_v34, %v4032_v15 }
 0x155   :  { %v4074_v39 = vadd.f32 %v2764_v35, %v1777_v3  ;;  %v2781_v8 = vpop.f32.mrb[48].mxu1  ;;  %v2845_v40 = vpop.f32.mrb[48].mxu0 }
 0x156   :  { %v2782_v41 = vpop.f32.mrb[49].mxu1  ;;  %v2846_v14 = vpop.f32.mrb[49].mxu0 }
 0x157   :  { %v2783_v46 = vadd.f32 %v2782_v41, %v2781_v8  ;;  %v2847_v47 = vadd.f32 %v2846_v14, %v2845_v40  ;;  %v2784_v36 = vpop.f32.mrb[50].mxu1  ;;  %v2848_v51 = vpop.f32.mrb[50].mxu0 }
 0x158   :  { %v2785_v42 = vpop.f32.mrb[51].mxu1  ;;  %v2849_v53 = vpop.f32.mrb[51].mxu0 }
 0x159   :  { %v1912_v9 = vadd.f32 %v2783_v46, %v4034_v29  ;;  %v2786_v56 = vadd.f32 %v2785_v42, %v2784_v36  ;;  %v2850_v57 = vadd.f32 %v2849_v53, %v2848_v51 }
 0x15b   :  { %v4077_v58 = vadd.f32 %v2847_v47, %v1912_v9  ;;  %v1915_v15 = vadd.f32 %v2786_v56, %v4036_v31 }
 0x15d   :  { %v4080_v59 = vadd.f32 %v2850_v57, %v1915_v15  ;;  %v2787_v37 = vpop.f32.mrb[52].mxu1  ;;  %v2851_v62 = vpop.f32.mrb[52].mxu0 }
 0x15e   :  { %v2788_v63 = vpop.f32.mrb[53].mxu1  ;;  %v2852_v43 = vpop.f32.mrb[53].mxu0 }
 0x15f   :  { %v2789_v4 = vadd.f32 %v2788_v63, %v2787_v37  ;;  %v2853_v5 = vadd.f32 %v2852_v43, %v2851_v62  ;;  %v2790_v48 = vpop.f32.mrb[54].mxu1  ;;  %v2854_v7 = vpop.f32.mrb[54].mxu0 }
 0x160   :  { %v2791_v54 = vpop.f32.mrb[55].mxu1  ;;  %v2855_v11 = vpop.f32.mrb[55].mxu0 }
 0x161   :  { %v1920_v29 = vadd.f32 %v2789_v4, %v4038_v50  ;;  %v2792_v12 = vadd.f32 %v2791_v54, %v2790_v48  ;;  %v2856_v13 = vadd.f32 %v2855_v11, %v2854_v7 }
 0x163   :  { %v4083_v16 = vadd.f32 %v2853_v5, %v1920_v29  ;;  %v1923_v31 = vadd.f32 %v2792_v12, %v4040_v52 }
 0x165   :  { %v4086_v17 = vadd.f32 %v2856_v13, %v1923_v31  ;;  %v2793_v49 = vpop.f32.mrb[56].mxu1  ;;  %v2857_v18 = vpop.f32.mrb[56].mxu0 }
 0x166   :  { %v2794_v19 = vpop.f32.mrb[57].mxu1  ;;  %v2858_v55 = vpop.f32.mrb[57].mxu0 }
 0x167   :  { %v2795_v22 = vadd.f32 %v2794_v19, %v2793_v49  ;;  %v2859_v60 = vadd.f32 %v2858_v55, %v2857_v18  ;;  %v2796_v23 = vpop.f32.mrb[58].mxu1  ;;  %v2860_v2 = vpop.f32.mrb[58].mxu0 }
 0x168   :  { %v2797_v26 = vpop.f32.mrb[59].mxu1  ;;  %v2861_v27 = vpop.f32.mrb[59].mxu0 }
 0x169   :  { %v1928_v50 = vadd.f32 %v2795_v22, %v4042_v6  ;;  %v2798_v28 = vadd.f32 %v2797_v26, %v2796_v23  ;;  %v2862_v30 = vadd.f32 %v2861_v27, %v2860_v2 }
 0x16b   :  { %v4089_v32 = vadd.f32 %v2859_v60, %v1928_v50  ;;  %v1931_v52 = vadd.f32 %v2798_v28, %v4044_v10 }
 0x16d   :  { %v4092_v33 = vadd.f32 %v2862_v30, %v1931_v52  ;;  %v2799_v61 = vpop.f32.mrb[60].mxu1  ;;  %v2863_v34 = vpop.f32.mrb[60].mxu0 }
 0x16e   :  { %v2800_v35 = vpop.f32.mrb[61].mxu1  ;;  %v2864_v3 = vpop.f32.mrb[61].mxu0 }
 0x16f   :  { %v2801_v8 = vadd.f32 %v2800_v35, %v2799_v61  ;;  %v2865_v40 = vadd.f32 %v2864_v3, %v2863_v34  ;;  %v2802_v41 = vpop.f32.mrb[62].mxu1  ;;  %v2866_v14 = vpop.f32.mrb[62].mxu0 }
 0x170   :  { %v2803_v46 = vpop.f32.mrb[63].mxu1  ;;  %v2867_v47 = vpop.f32.mrb[63].mxu0 }
 0x171   :  { %v1936_v6 = vadd.f32 %v2801_v8, %v4047_v24  ;;  %v2804_v36 = vadd.f32 %v2803_v46, %v2802_v41  ;;  %v2868_v51 = vadd.f32 %v2867_v47, %v2866_v14 }
 0x173   :  { %v4095_v42 = vadd.f32 %v2865_v40, %v1936_v6  ;;  %v1939_v10 = vadd.f32 %v2804_v36, %v4050_v25 }
 0x175   :  { %v4098_v53 = vadd.f32 %v2868_v51, %v1939_v10  ;;  %v2805_v9 = vpop.f32.mrb[64].mxu1  ;;  %v2869_v56 = vpop.f32.mrb[64].mxu0 }
 0x176   :  { %v2806_v57 = vpop.f32.mrb[65].mxu1  ;;  %v2870_v15 = vpop.f32.mrb[65].mxu0 }
 0x177   :  { %v2807_v37 = vadd.f32 %v2806_v57, %v2805_v9  ;;  %v2871_v62 = vadd.f32 %v2870_v15, %v2869_v56  ;;  %v2808_v63 = vpop.f32.mrb[66].mxu1  ;;  %v2872_v43 = vpop.f32.mrb[66].mxu0 }
 0x178   :  { %v2809_v4 = vpop.f32.mrb[67].mxu1  ;;  %v2873_v5 = vpop.f32.mrb[67].mxu0 }
 0x179   :  { %v1944_v24 = vadd.f32 %v2807_v37, %v4053_v44  ;;  %v2810_v48 = vadd.f32 %v2809_v4, %v2808_v63  ;;  %v2874_v7 = vadd.f32 %v2873_v5, %v2872_v43 }
 0x17b   :  { %v4101_v54 = vadd.f32 %v2871_v62, %v1944_v24  ;;  %v1947_v25 = vadd.f32 %v2810_v48, %v4056_v45 }
 0x17d   :  { %v4104_v11 = vadd.f32 %v2874_v7, %v1947_v25  ;;  %v2811_v29 = vpop.f32.mrb[68].mxu1  ;;  %v2875_v12 = vpop.f32.mrb[68].mxu0 }
 0x17e   :  { %v2812_v13 = vpop.f32.mrb[69].mxu1  ;;  %v2876_v31 = vpop.f32.mrb[69].mxu0 }
 0x17f   :  { %v2813_v49 = vadd.f32 %v2812_v13, %v2811_v29  ;;  %v2877_v18 = vadd.f32 %v2876_v31, %v2875_v12  ;;  %v2814_v19 = vpop.f32.mrb[70].mxu1  ;;  %v2878_v55 = vpop.f32.mrb[70].mxu0 }
 0x180   :  { %v2815_v22 = vpop.f32.mrb[71].mxu1  ;;  %v2879_v60 = vpop.f32.mrb[71].mxu0 }
 0x181   :  { %v1952_v44 = vadd.f32 %v2813_v49, %v4059_v0  ;;  %v2816_v23 = vadd.f32 %v2815_v22, %v2814_v19  ;;  %v2880_v2 = vadd.f32 %v2879_v60, %v2878_v55 }
 0x183   :  { %v4107_v26 = vadd.f32 %v2877_v18, %v1952_v44  ;;  %v1955_v45 = vadd.f32 %v2816_v23, %v4062_v1  ;;  %v4134_v44 = vld [vmem:[%s4233_s3] ss:$0 sm:$0xff] }
 0x185   :  { %v4110_v27 = vadd.f32 %v2880_v2, %v1955_v45  ;;  %v2817_v50 = vpop.f32.mrb[72].mxu1  ;;  %v2881_v28 = vpop.f32.mrb[72].mxu0 }
 0x186   :  { %v2818_v30 = vpop.f32.mrb[73].mxu1  ;;  %v2882_v52 = vpop.f32.mrb[73].mxu0 }
 0x187   :  { %v2819_v61 = vadd.f32 %v2818_v30, %v2817_v50  ;;  %v2883_v34 = vadd.f32 %v2882_v52, %v2881_v28  ;;  %v2820_v35 = vpop.f32.mrb[74].mxu1  ;;  %v2884_v3 = vpop.f32.mrb[74].mxu0 }
 0x188   :  { %v2821_v8 = vpop.f32.mrb[75].mxu1  ;;  %v2885_v40 = vpop.f32.mrb[75].mxu0 }
 0x189   :  { %v1960_v0 = vadd.f32 %v2819_v61, %v4065_v20  ;;  %v2822_v41 = vadd.f32 %v2821_v8, %v2820_v35  ;;  %v2886_v14 = vadd.f32 %v2885_v40, %v2884_v3 }
 0x18b   :  { %v4113_v46 = vadd.f32 %v2883_v34, %v1960_v0  ;;  %v1963_v1 = vadd.f32 %v2822_v41, %v4068_v21 }
 0x18d   :  { %v4116_v47 = vadd.f32 %v2886_v14, %v1963_v1  ;;  %v2823_v6 = vpop.f32.mrb[76].mxu1  ;;  %v2887_v36 = vpop.f32.mrb[76].mxu0 }
 0x18e   :  { %v2824_v51 = vpop.f32.mrb[77].mxu1  ;;  %v2888_v10 = vpop.f32.mrb[77].mxu0 }
 0x18f   :  { %v2825_v9 = vadd.f32 %v2824_v51, %v2823_v6  ;;  %v2889_v56 = vadd.f32 %v2888_v10, %v2887_v36  ;;  %v2826_v57 = vpop.f32.mrb[78].mxu1  ;;  %v2890_v15 = vpop.f32.mrb[78].mxu0 }
 0x190   :  { %v2827_v37 = vpop.f32.mrb[79].mxu1  ;;  %v2891_v62 = vpop.f32.mrb[79].mxu0 }
 0x191   :  { %v1968_v20 = vadd.f32 %v2825_v9, %v4071_v38  ;;  %v2828_v63 = vadd.f32 %v2827_v37, %v2826_v57  ;;  %v2892_v43 = vadd.f32 %v2891_v62, %v2890_v15 }
 0x193   :  { %v4119_v4 = vadd.f32 %v2889_v56, %v1968_v20  ;;  %v1971_v21 = vadd.f32 %v2828_v63, %v4074_v39  ;;  %v4128_v39 = vld [vmem:[%s4232_s2] ss:$0 sm:$0xff] }
 0x195   :  { %v4122_v5 = vadd.f32 %v2892_v43, %v1971_v21  ;;  %v2909_v24 = vpop.f32.mrb[80].mxu1  ;;  %v2973_v48 = vpop.f32.mrb[80].mxu0 }
 0x196   :  { %v2910_v7 = vpop.f32.mrb[81].mxu1  ;;  %v2974_v25 = vpop.f32.mrb[81].mxu0 }
 0x197   :  { %v2911_v29 = vadd.f32 %v2910_v7, %v2909_v24  ;;  %v2975_v12 = vadd.f32 %v2974_v25, %v2973_v48  ;;  %v2912_v13 = vpop.f32.mrb[82].mxu1  ;;  %v2976_v31 = vpop.f32.mrb[82].mxu0 }
 0x198   :  { %v2913_v49 = vpop.f32.mrb[83].mxu1  ;;  %v2977_v18 = vpop.f32.mrb[83].mxu0 }
 0x199   :  { %v2106_v38 = vadd.f32 %v2911_v29, %v4077_v58  ;;  %v2914_v19 = vadd.f32 %v2913_v49, %v2912_v13  ;;  %v2978_v55 = vadd.f32 %v2977_v18, %v2976_v31 }
 0x19b   :  { %v2203_v22 = vadd.f32 %v2975_v12, %v2106_v38  ;;  %v2109_v60 = vadd.f32 %v2914_v19, %v4080_v59 }
 0x19d   :  { %v2272_v23 = vmul.f32 %v4128_v39, %v2203_v22  ;;  %v2206_v2 = vadd.f32 %v2978_v55, %v2109_v60  ;;  %v2915_v45 = vpop.f32.mrb[84].mxu1  ;;  %v2979_v58 = vpop.f32.mrb[84].mxu0 }
 0x19e   :  { %v2916_v50 = vpop.f32.mrb[85].mxu1  ;;  %v2980_v28 = vpop.f32.mrb[85].mxu0 }
 0x19f   :  { %v2295_v30 = vadd.f32 %v4134_v44, %v2272_v23  ;;  %v2273_v52 = vmul.f32 %v4128_v39, %v2206_v2  ;;  %v2917_v61 = vadd.f32 %v2916_v50, %v2915_v45  ;;  %v2981_v34 = vadd.f32 %v2980_v28, %v2979_v58  ;;  %v2918_v35 = vpop.f32.mrb[86].mxu1  ;;  %v2982_v59 = vpop.f32.mrb[86].mxu0 }
 0x1a0   :  { %v2919_v3 = vpop.f32.mrb[87].mxu1  ;;  %v2983_v8 = vpop.f32.mrb[87].mxu0 }
 0x1a1   :  { %v2311_v40 = vmax.f32 %v2295_v30, 0.0  ;;  %v2296_v0 = vadd.f32 %v4134_v44, %v2273_v52  ;;  %v2114_v41 = vadd.f32 %v2917_v61, %v4083_v16  ;;  %v2920_v14 = vadd.f32 %v2919_v3, %v2918_v35 }
 0x1a2   :  { %v2984_v1 = vadd.f32 %v2983_v8, %v2982_v59 }
 0x1a3   :  { %2327 = vst [vmem:[%s4234_s4] sm:$0xff] %v2311_v40  ;;  %v2312_v6 = vmax.f32 %v2296_v0, 0.0  ;;  %v2211_v36 = vadd.f32 %v2981_v34, %v2114_v41  ;;  %v2117_v51 = vadd.f32 %v2920_v14, %v4086_v17 }
 0x1a5   :  { %2328 = vst [vmem:[%s4234_s4 + $0x8] sm:$0xff] %v2312_v6  ;;  %v2274_v10 = vmul.f32 %v4128_v39, %v2211_v36  ;;  %v2214_v9 = vadd.f32 %v2984_v1, %v2117_v51  ;;  %v2921_v56 = vpop.f32.mrb[88].mxu1  ;;  %v2985_v57 = vpop.f32.mrb[88].mxu0 }
 0x1a6   :  { %v2922_v16 = vpop.f32.mrb[89].mxu1  ;;  %v2986_v15 = vpop.f32.mrb[89].mxu0 }
 0x1a7   :  { %v2297_v37 = vadd.f32 %v4134_v44, %v2274_v10  ;;  %v2275_v62 = vmul.f32 %v4128_v39, %v2214_v9  ;;  %v2923_v20 = vadd.f32 %v2922_v16, %v2921_v56  ;;  %v2987_v63 = vadd.f32 %v2986_v15, %v2985_v57  ;;  %v2924_v43 = vpop.f32.mrb[90].mxu1  ;;  %v2988_v21 = vpop.f32.mrb[90].mxu0 }
 0x1a8   :  { %v2925_v17 = vpop.f32.mrb[91].mxu1  ;;  %v2989_v24 = vpop.f32.mrb[91].mxu0 }
 0x1a9   :  { %v2313_v48 = vmax.f32 %v2297_v37, 0.0  ;;  %v2298_v7 = vadd.f32 %v4134_v44, %v2275_v62  ;;  %v2122_v25 = vadd.f32 %v2923_v20, %v4089_v32  ;;  %v2926_v29 = vadd.f32 %v2925_v17, %v2924_v43 }
 0x1aa   :  { %v2990_v12 = vadd.f32 %v2989_v24, %v2988_v21 }
 0x1ab   :  { %2329 = vst [vmem:[%s4234_s4 + $0x10] sm:$0xff] %v2313_v48  ;;  %v2314_v13 = vmax.f32 %v2298_v7, 0.0  ;;  %v2219_v31 = vadd.f32 %v2987_v63, %v2122_v25  ;;  %v2125_v49 = vadd.f32 %v2926_v29, %v4092_v33 }
 0x1ad   :  { %2330 = vst [vmem:[%s4234_s4 + $0x18] sm:$0xff] %v2314_v13  ;;  %v2276_v18 = vmul.f32 %v4128_v39, %v2219_v31  ;;  %v2222_v38 = vadd.f32 %v2990_v12, %v2125_v49  ;;  %v2927_v19 = vpop.f32.mrb[92].mxu1  ;;  %v2991_v55 = vpop.f32.mrb[92].mxu0 }
 0x1ae   :  { %v2928_v32 = vpop.f32.mrb[93].mxu1  ;;  %v2992_v22 = vpop.f32.mrb[93].mxu0 }
 0x1af   :  { %v2299_v60 = vadd.f32 %v4134_v44, %v2276_v18  ;;  %v2277_v23 = vmul.f32 %v4128_v39, %v2222_v38  ;;  %v2929_v2 = vadd.f32 %v2928_v32, %v2927_v19  ;;  %v2993_v45 = vadd.f32 %v2992_v22, %v2991_v55  ;;  %v2930_v58 = vpop.f32.mrb[94].mxu1  ;;  %v2994_v50 = vpop.f32.mrb[94].mxu0 }
 0x1b0   :  { %v2931_v33 = vpop.f32.mrb[95].mxu1  ;;  %v2995_v28 = vpop.f32.mrb[95].mxu0 }
 0x1b1   :  { %v2315_v30 = vmax.f32 %v2299_v60, 0.0  ;;  %v2300_v52 = vadd.f32 %v4134_v44, %v2277_v23  ;;  %v2130_v61 = vadd.f32 %v2929_v2, %v4095_v42  ;;  %v2932_v34 = vadd.f32 %v2931_v33, %v2930_v58 }
 0x1b2   :  { %v2996_v35 = vadd.f32 %v2995_v28, %v2994_v50 }
 0x1b3   :  { %2331 = vst [vmem:[%s4234_s4 + $0x20] sm:$0xff] %v2315_v30  ;;  %v2316_v59 = vmax.f32 %v2300_v52, 0.0  ;;  %v2227_v3 = vadd.f32 %v2993_v45, %v2130_v61  ;;  %v2133_v8 = vadd.f32 %v2932_v34, %v4098_v53 }
 0x1b5   :  { %2332 = vst [vmem:[%s4234_s4 + $0x28] sm:$0xff] %v2316_v59  ;;  %v2278_v40 = vmul.f32 %v4128_v39, %v2227_v3  ;;  %v2230_v0 = vadd.f32 %v2996_v35, %v2133_v8  ;;  %v2933_v41 = vpop.f32.mrb[96].mxu1  ;;  %v2997_v14 = vpop.f32.mrb[96].mxu0 }
 0x1b6   :  { %v2934_v42 = vpop.f32.mrb[97].mxu1  ;;  %v2998_v1 = vpop.f32.mrb[97].mxu0 }
 0x1b7   :  { %v2301_v6 = vadd.f32 %v4134_v44, %v2278_v40  ;;  %v2279_v36 = vmul.f32 %v4128_v39, %v2230_v0  ;;  %v2935_v51 = vadd.f32 %v2934_v42, %v2933_v41  ;;  %v2999_v10 = vadd.f32 %v2998_v1, %v2997_v14  ;;  %v2936_v9 = vpop.f32.mrb[98].mxu1  ;;  %v3000_v56 = vpop.f32.mrb[98].mxu0 }
 0x1b8   :  { %v2937_v53 = vpop.f32.mrb[99].mxu1  ;;  %v3001_v57 = vpop.f32.mrb[99].mxu0 }
 0x1b9   :  { %v2317_v16 = vmax.f32 %v2301_v6, 0.0  ;;  %v2302_v15 = vadd.f32 %v4134_v44, %v2279_v36  ;;  %v2138_v37 = vadd.f32 %v2935_v51, %v4101_v54  ;;  %v2938_v62 = vadd.f32 %v2937_v53, %v2936_v9 }
 0x1ba   :  { %v3002_v20 = vadd.f32 %v3001_v57, %v3000_v56 }
 0x1bb   :  { %2333 = vst [vmem:[%s4234_s4 + $0x30] sm:$0xff] %v2317_v16  ;;  %v2318_v63 = vmax.f32 %v2302_v15, 0.0  ;;  %v2235_v43 = vadd.f32 %v2999_v10, %v2138_v37  ;;  %v2141_v21 = vadd.f32 %v2938_v62, %v4104_v11 }
 0x1bd   :  { %2334 = vst [vmem:[%s4234_s4 + $0x38] sm:$0xff] %v2318_v63  ;;  %v2280_v17 = vmul.f32 %v4128_v39, %v2235_v43  ;;  %v2238_v24 = vadd.f32 %v3002_v20, %v2141_v21  ;;  %v2939_v48 = vpop.f32.mrb[100].mxu1  ;;  %v3003_v7 = vpop.f32.mrb[100].mxu0 }
 0x1be   :  { %v2940_v54 = vpop.f32.mrb[101].mxu1  ;;  %v3004_v25 = vpop.f32.mrb[101].mxu0 }
 0x1bf   :  { %v2303_v29 = vadd.f32 %v4134_v44, %v2280_v17  ;;  %v2281_v12 = vmul.f32 %v4128_v39, %v2238_v24  ;;  %v2941_v13 = vadd.f32 %v2940_v54, %v2939_v48  ;;  %v3005_v31 = vadd.f32 %v3004_v25, %v3003_v7  ;;  %v2942_v49 = vpop.f32.mrb[102].mxu1  ;;  %v3006_v18 = vpop.f32.mrb[102].mxu0 }
 0x1c0   :  { %v2943_v11 = vpop.f32.mrb[103].mxu1  ;;  %v3007_v38 = vpop.f32.mrb[103].mxu0 }
 0x1c1   :  { %v2319_v19 = vmax.f32 %v2303_v29, 0.0  ;;  %v2304_v55 = vadd.f32 %v4134_v44, %v2281_v12  ;;  %v2146_v32 = vadd.f32 %v2941_v13, %v4107_v26  ;;  %v2944_v22 = vadd.f32 %v2943_v11, %v2942_v49 }
 0x1c2   :  { %v3008_v60 = vadd.f32 %v3007_v38, %v3006_v18 }
 0x1c3   :  { %2335 = vst [vmem:[%s4234_s4 + $0x40] sm:$0xff] %v2319_v19  ;;  %v2320_v23 = vmax.f32 %v2304_v55, 0.0  ;;  %v2243_v2 = vadd.f32 %v3005_v31, %v2146_v32  ;;  %v2149_v45 = vadd.f32 %v2944_v22, %v4110_v27 }
 0x1c5   :  { %2336 = vst [vmem:[%s4234_s4 + $0x48] sm:$0xff] %v2320_v23  ;;  %v2282_v58 = vmul.f32 %v4128_v39, %v2243_v2  ;;  %v2246_v50 = vadd.f32 %v3008_v60, %v2149_v45  ;;  %v2945_v33 = vpop.f32.mrb[104].mxu1  ;;  %v3009_v28 = vpop.f32.mrb[104].mxu0 }
 0x1c6   :  { %v2946_v26 = vpop.f32.mrb[105].mxu1  ;;  %v3010_v30 = vpop.f32.mrb[105].mxu0 }
 0x1c7   :  { %v2305_v52 = vadd.f32 %v4134_v44, %v2282_v58  ;;  %v2283_v61 = vmul.f32 %v4128_v39, %v2246_v50  ;;  %v2947_v34 = vadd.f32 %v2946_v26, %v2945_v33  ;;  %v3011_v35 = vadd.f32 %v3010_v30, %v3009_v28  ;;  %v2948_v59 = vpop.f32.mrb[106].mxu1  ;;  %v3012_v3 = vpop.f32.mrb[106].mxu0 }
 0x1c8   :  { %v2949_v27 = vpop.f32.mrb[107].mxu1  ;;  %v3013_v8 = vpop.f32.mrb[107].mxu0 }
 0x1c9   :  { %v2321_v40 = vmax.f32 %v2305_v52, 0.0  ;;  %v2306_v0 = vadd.f32 %v4134_v44, %v2283_v61  ;;  %v2154_v41 = vadd.f32 %v2947_v34, %v4113_v46  ;;  %v2950_v14 = vadd.f32 %v2949_v27, %v2948_v59 }
 0x1ca   :  { %v3014_v42 = vadd.f32 %v3013_v8, %v3012_v3 }
 0x1cb   :  { %2337 = vst [vmem:[%s4234_s4 + $0x50] sm:$0xff] %v2321_v40  ;;  %v2322_v1 = vmax.f32 %v2306_v0, 0.0  ;;  %v2251_v6 = vadd.f32 %v3011_v35, %v2154_v41  ;;  %v2157_v36 = vadd.f32 %v2950_v14, %v4116_v47 }
 0x1cd   :  { %2338 = vst [vmem:[%s4234_s4 + $0x58] sm:$0xff] %v2322_v1  ;;  %v2284_v51 = vmul.f32 %v4128_v39, %v2251_v6  ;;  %v2254_v10 = vadd.f32 %v3014_v42, %v2157_v36  ;;  %v2951_v9 = vpop.f32.mrb[108].mxu1  ;;  %v3015_v56 = vpop.f32.mrb[108].mxu0 }
 0x1ce   :  { %v2952_v46 = vpop.f32.mrb[109].mxu1  ;;  %v3016_v53 = vpop.f32.mrb[109].mxu0 }
 0x1cf   :  { %v2307_v57 = vadd.f32 %v4134_v44, %v2284_v51  ;;  %v2285_v16 = vmul.f32 %v4128_v39, %v2254_v10  ;;  %v2953_v15 = vadd.f32 %v2952_v46, %v2951_v9  ;;  %v3017_v37 = vadd.f32 %v3016_v53, %v3015_v56  ;;  %v2954_v62 = vpop.f32.mrb[110].mxu1  ;;  %v3018_v20 = vpop.f32.mrb[110].mxu0 }
 0x1d0   :  { %v2955_v47 = vpop.f32.mrb[111].mxu1  ;;  %v3019_v63 = vpop.f32.mrb[111].mxu0 }
 0x1d1   :  { %v2323_v43 = vmax.f32 %v2307_v57, 0.0  ;;  %v2308_v21 = vadd.f32 %v4134_v44, %v2285_v16  ;;  %v2162_v17 = vadd.f32 %v2953_v15, %v4119_v4  ;;  %v2956_v24 = vadd.f32 %v2955_v47, %v2954_v62 }
 0x1d2   :  { %v3020_v48 = vadd.f32 %v3019_v63, %v3018_v20 }
 0x1d3   :  { %2339 = vst [vmem:[%s4234_s4 + $0x60] sm:$0xff] %v2323_v43  ;;  %v2324_v7 = vmax.f32 %v2308_v21, 0.0  ;;  %v2259_v54 = vadd.f32 %v3017_v37, %v2162_v17  ;;  %v2165_v25 = vadd.f32 %v2956_v24, %v4122_v5 }
 0x1d5   :  { %2340 = vst [vmem:[%s4234_s4 + $0x68] sm:$0xff] %v2324_v7  ;;  %v2286_v29 = vmul.f32 %v4128_v39, %v2259_v54  ;;  %v2262_v12 = vadd.f32 %v3020_v48, %v2165_v25 }
 0x1d7   :  { %v2309_v13 = vadd.f32 %v4134_v44, %v2286_v29  ;;  %v2287_v4 = vmul.f32 %v4128_v39, %v2262_v12 }
 0x1d9   :  { %v2325_v31 = vmax.f32 %v2309_v13, 0.0  ;;  %v2310_v49 = vadd.f32 %v4134_v44, %v2287_v4 }
 0x1db   :  { %2341 = vst [vmem:[%s4234_s4 + $0x70] sm:$0xff] %v2325_v31  ;;  %v2326_v18 = vmax.f32 %v2310_v49, 0.0 }
 0x1dd   :  { %2342 = vst [vmem:[%s4234_s4 + $0x78] sm:$0xff] %v2326_v18 }

// kernel: imnet_forward.10
= control target key start
LH: loop header
LB: loop body
LE: loop exit
PB: predicated region body
PF: predicated region fallthrough
CT: control target
= control target key end

     0   :  { %s4308_s1 = inlined_call_operand.vmem [shape: bf16[1792,128], index: 1, kind: input, shape index: {}]   ;;  %s4309_s0 = inlined_call_operand.vmem [shape: bf16[128,1792], index: 0, kind: input, shape index: {}]   ;;  %s4310_s2 = inlined_call_operand.vmem [shape: f32[128,128], index: 2, kind: input, shape index: {}]   ;;  %s4311_s3 = inlined_call_operand.vmem [shape: f32[1,128], index: 3, kind: input, shape index: {}]   ;;  %s4312_s4 = inlined_call_operand.vmem [shape: f32[1,128], index: 4, kind: input, shape index: {}]   ;;  %s4313_s5 = inlined_call_operand.vmem [shape: f32[128,128], index: 5, kind: output, shape index: {}]  }
   0x1   :  { %v3056_v0 = vld [vmem:[%s4308_s1 + $0x40] sm:$0xff]   ;;  %v3058_v2 = vld [vmem:[%s4308_s1 + $0x48] sm:$0xff]   ;;  %v3060_v4 = vld [vmem:[%s4308_s1 + $0x50] sm:$0xff]  }
   0x2   :  { %v3057_v1 = vld [vmem:[%s4308_s1] sm:$0xff]   ;;  %2592 = vmatprep.subr.bf16.mxu0 %v3056_v0  ;;  %3040 = vmatprep.subr.bf16.mxu1 %v3056_v0  ;;  %v3059_v3 = vld [vmem:[%s4308_s1 + $0x8] sm:$0xff]   ;;  %v3061_v5 = vld [vmem:[%s4308_s1 + $0x10] sm:$0xff]  }
   0x3   :  { %2593 = vmatpush3.bf16.msra.mxu0 %v3057_v1  ;;  %3048 = vmatpush3.bf16.msra.mxu1 %v3057_v1  ;;  %v3062_v6 = vld [vmem:[%s4308_s1 + $0x58] sm:$0xff]   ;;  %v3064_v8 = vld [vmem:[%s4308_s1 + $0x60] sm:$0xff]   ;;  %v3066_v10 = vld [vmem:[%s4308_s1 + $0x68] sm:$0xff]  }
   0x4   :  { %2594 = vmatprep.subr.bf16.mxu0 %v3058_v2  ;;  %3041 = vmatprep.subr.bf16.mxu1 %v3058_v2  ;;  %v3063_v7 = vld [vmem:[%s4308_s1 + $0x18] sm:$0xff]   ;;  %v3065_v9 = vld [vmem:[%s4308_s1 + $0x20] sm:$0xff]   ;;  %v3067_v13 = vld [vmem:[%s4308_s1 + $0x28] sm:$0xff]  }
   0x5   :  { %v3074_v11 = vld [vmem:[%s4309_s0 + $0x4] ss:$56 sps:$4 sm:$0xff]   ;;  %v3068_v14 = vld [vmem:[%s4308_s1 + $0x70] sm:$0xff]   ;;  %v3072_v18 = vld [vmem:[%s4309_s0] ss:$56 sps:$4 sm:$0xff]  }
   0x6   :  { %v3077_v12 = vld [vmem:[%s4309_s0 + $0x1c4] ss:$56 sps:$4 sm:$0xff]   ;;  %1637 = vmatprep.mubr.bf16.mxu0 %v3074_v11  ;;  %v3069_v15 = vld [vmem:[%s4308_s1 + $0x30] sm:$0xff]   ;;  %v3075_v19 = vld [vmem:[%s4309_s0 + $0x1c0] ss:$56 sps:$4 sm:$0xff]  }
   0x7   :  { %2595 = vmatpush3.bf16.msra.mxu0 %v3059_v3  ;;  %3049 = vmatpush3.bf16.msra.mxu1 %v3059_v3  ;;  %v3070_v16 = vld [vmem:[%s4308_s1 + $0x78] sm:$0xff]   ;;  %v3078_v20 = vld [vmem:[%s4308_s1 + $0xc0] sm:$0xff]   ;;  %v3082_v24 = vld [vmem:[%s4308_s1 + $0xc8] sm:$0xff]  }
   0x8   :  { %2596 = vmatprep.subr.bf16.mxu0 %v3060_v4  ;;  %3042 = vmatprep.subr.bf16.mxu1 %v3060_v4  ;;  %v3071_v17 = vld [vmem:[%s4308_s1 + $0x38] sm:$0xff]   ;;  %v3079_v21 = vld [vmem:[%s4308_s1 + $0x140] sm:$0xff]   ;;  %v3083_v25 = vld [vmem:[%s4308_s1 + $0x148] sm:$0xff]  }
   0x9   :  { %1669 = vmatprep.mubr.bf16.mxu1 %v3077_v12  ;;  %v3080_v22 = vld [vmem:[%s4308_s1 + $0x80] sm:$0xff]   ;;  %v3086_v26 = vld [vmem:[%s4309_s0 + $0x74] ss:$56 sps:$4 sm:$0xff]   ;;  %v3090_v31 = vld [vmem:[%s4309_s0 + $0x70] ss:$56 sps:$4 sm:$0xff]  }
   0xa   :  { %v3081_v23 = vld [vmem:[%s4308_s1 + $0x100] sm:$0xff]   ;;  %v3084_v27 = vld [vmem:[%s4308_s1 + $0x88] sm:$0xff]   ;;  %v3092_v30 = vld [vmem:[%s4308_s1 + $0xd0] sm:$0xff]  }
   0xb   :  { %2597 = vmatpush3.bf16.msra.mxu0 %v3061_v5  ;;  %3050 = vmatpush3.bf16.msra.mxu1 %v3061_v5  ;;  %v3088_v28 = vld [vmem:[%s4309_s0 + $0x234] ss:$56 sps:$4 sm:$0xff]   ;;  %v3091_v33 = vld [vmem:[%s4309_s0 + $0x230] ss:$56 sps:$4 sm:$0xff]   ;;  %v3096_v36 = vld [vmem:[%s4308_s1 + $0xd8] sm:$0xff]  }
   0xc   :  { %2598 = vmatprep.subr.bf16.mxu0 %v3062_v6  ;;  %3043 = vmatprep.subr.bf16.mxu1 %v3062_v6  ;;  %v3085_v29 = vld [vmem:[%s4308_s1 + $0x108] sm:$0xff]   ;;  %v3093_v32 = vld [vmem:[%s4308_s1 + $0x150] sm:$0xff]   ;;  %v3097_v37 = vld [vmem:[%s4308_s1 + $0x158] sm:$0xff]  }
   0xd   :  { %v3094_v34 = vld [vmem:[%s4308_s1 + $0x90] sm:$0xff]   ;;  %v3100_v38 = vld [vmem:[%s4309_s0 + $0xe4] ss:$56 sps:$4 sm:$0xff]   ;;  %v3104_v43 = vld [vmem:[%s4309_s0 + $0xe0] ss:$56 sps:$4 sm:$0xff]  }
   0xe   :  { %v3095_v35 = vld [vmem:[%s4308_s1 + $0x110] sm:$0xff]   ;;  %v3098_v39 = vld [vmem:[%s4308_s1 + $0x98] sm:$0xff]   ;;  %v3106_v42 = vld [vmem:[%s4308_s1 + $0xe0] sm:$0xff]  }
   0xf   :  { %2599 = vmatpush3.bf16.msra.mxu0 %v3063_v7  ;;  %3051 = vmatpush3.bf16.msra.mxu1 %v3063_v7  ;;  %v3102_v40 = vld [vmem:[%s4309_s0 + $0x2a4] ss:$56 sps:$4 sm:$0xff]   ;;  %v3105_v44 = vld [vmem:[%s4309_s0 + $0x2a0] ss:$56 sps:$4 sm:$0xff]   ;;  %v3110_v48 = vld [vmem:[%s4308_s1 + $0xe8] sm:$0xff]  }
  0x10   :  { %2600 = vmatprep.subr.bf16.mxu0 %v3064_v8  ;;  %3044 = vmatprep.subr.bf16.mxu1 %v3064_v8  ;;  %v3099_v41 = vld [vmem:[%s4308_s1 + $0x118] sm:$0xff]   ;;  %v3107_v45 = vld [vmem:[%s4308_s1 + $0x160] sm:$0xff]   ;;  %v3111_v49 = vld [vmem:[%s4308_s1 + $0x168] sm:$0xff]  }
  0x11   :  { %v3108_v46 = vld [vmem:[%s4308_s1 + $0xa0] sm:$0xff]   ;;  %v3114_v50 = vld [vmem:[%s4309_s0 + $0x154] ss:$56 sps:$4 sm:$0xff]   ;;  %v3118_v55 = vld [vmem:[%s4309_s0 + $0x150] ss:$56 sps:$4 sm:$0xff]  }
  0x12   :  { %v3109_v47 = vld [vmem:[%s4308_s1 + $0x120] sm:$0xff]   ;;  %v3116_v51 = vld [vmem:[%s4309_s0 + $0x314] ss:$56 sps:$4 sm:$0xff]   ;;  %v3119_v56 = vld [vmem:[%s4309_s0 + $0x310] ss:$56 sps:$4 sm:$0xff]  }
  0x13   :  { %2601 = vmatpush3.bf16.msra.mxu0 %v3065_v9  ;;  %3052 = vmatpush3.bf16.msra.mxu1 %v3065_v9  ;;  %v3112_v52 = vld [vmem:[%s4308_s1 + $0xa8] sm:$0xff]   ;;  %v3120_v54 = vld [vmem:[%s4308_s1 + $0xf0] sm:$0xff]   ;;  %v3124_v60 = vld [vmem:[%s4308_s1 + $0xf8] sm:$0xff]  }
  0x14   :  { %2602 = vmatprep.subr.bf16.mxu0 %v3066_v10  ;;  %3045 = vmatprep.subr.bf16.mxu1 %v3066_v10  ;;  %v3113_v53 = vld [vmem:[%s4308_s1 + $0x128] sm:$0xff]   ;;  %v3121_v57 = vld [vmem:[%s4308_s1 + $0x170] sm:$0xff]   ;;  %v3125_v61 = vld [vmem:[%s4308_s1 + $0x178] sm:$0xff]  }
  0x15   :  { %v3122_v58 = vld [vmem:[%s4308_s1 + $0xb0] sm:$0xff]   ;;  %v3126_v62 = vld [vmem:[%s4308_s1 + $0xb8] sm:$0xff]   ;;  %v3130_v0 = vld [vmem:[%s4309_s0 + $0xc] ss:$56 sps:$4 sm:$0xff]  }
  0x16   :  { %v3123_v59 = vld [vmem:[%s4308_s1 + $0x130] sm:$0xff]   ;;  %v3127_v63 = vld [vmem:[%s4308_s1 + $0x138] sm:$0xff]   ;;  %v3128_v1 = vld [vmem:[%s4309_s0 + $0x8] ss:$56 sps:$4 sm:$0xff]  }
  0x17   :  { %2603 = vmatpush3.bf16.msra.mxu0 %v3067_v13  ;;  %3053 = vmatpush3.bf16.msra.mxu1 %v3067_v13  ;;  %v3131_v2 = vld [vmem:[%s4309_s0 + $0x10] ss:$56 sps:$4 sm:$0xff]   ;;  %v3133_v3 = vld [vmem:[%s4309_s0 + $0x14] ss:$56 sps:$4 sm:$0xff]   ;;  %v3134_v4 = vld [vmem:[%s4308_s1 + $0x1c0] sm:$0xff]  }
  0x18   :  { %2604 = vmatprep.subr.bf16.mxu0 %v3068_v14  ;;  %3046 = vmatprep.subr.bf16.mxu1 %v3068_v14  ;;  %v3135_v5 = vld [vmem:[%s4308_s1 + $0x180] sm:$0xff]   ;;  %v3138_v8 = vld [vmem:[%s4309_s0 + $0x7c] ss:$56 sps:$4 sm:$0xff]   ;;  %v3142_v10 = vld [vmem:[%s4309_s0 + $0x78] ss:$56 sps:$4 sm:$0xff]  }
  0x19   :  { %v3136_v6 = vld [vmem:[%s4308_s1 + $0x240] sm:$0xff]   ;;  %v3144_v12 = vld [vmem:[%s4308_s1 + $0x1c8] sm:$0xff]  }
  0x1a   :  { %v3137_v7 = vld [vmem:[%s4308_s1 + $0x200] sm:$0xff]   ;;  %v3145_v13 = vld [vmem:[%s4308_s1 + $0x188] sm:$0xff]  }
  0x1b   :  { %2605 = vmatpush3.bf16.msra.mxu0 %v3069_v15  ;;  %3054 = vmatpush3.bf16.msra.mxu1 %v3069_v15  ;;  %v3140_v9 = vld [vmem:[%s4309_s0 + $0x84] ss:$56 sps:$4 sm:$0xff]   ;;  %v3143_v11 = vld [vmem:[%s4309_s0 + $0x80] ss:$56 sps:$4 sm:$0xff]   ;;  %v3146_v14 = vld [vmem:[%s4308_s1 + $0x248] sm:$0xff]  }
  0x1c   :  { %2606 = vmatprep.subr.bf16.mxu0 %v3070_v16  ;;  %3047 = vmatprep.subr.bf16.mxu1 %v3070_v16  ;;  %v3147_v15 = vld [vmem:[%s4308_s1 + $0x208] sm:$0xff]  }
  0x1d   :  { %v3148_v16 = vld [vmem:[%s4309_s0 + $0xec] ss:$56 sps:$4 sm:$0xff]  }
  0x1f   :  { %2607 = vmatpush3.bf16.msra.mxu0 %v3071_v17  ;;  %3055 = vmatpush3.bf16.msra.mxu1 %v3071_v17  ;;  %v3150_v17 = vld [vmem:[%s4309_s0 + $0xf4] ss:$56 sps:$4 sm:$0xff]  }
  0x20   :  { %2656 = vmatprep.subr.bf16.mxu1 %v3078_v20  ;;  %2720 = vmatprep.subr.bf16.mxu0 %v3079_v21  ;;  %v3153_v20 = vld [vmem:[%s4309_s0 + $0xf0] ss:$56 sps:$4 sm:$0xff]  }
  0x21   :  { %v3155_v21 = vld [vmem:[%s4308_s1 + $0x190] sm:$0xff]  }
  0x22   :  { %1638 = vmatmul.mubr.bf16.vlgmr.msra.gmra.mrb[0].mxu0 %v3072_v18  ;;  %1670 = vmatmul.mubr.bf16.vlgmr.msra.gmra.mrb[0].mxu1 %v3075_v19  ;;  %v3154_v18 = vld [vmem:[%s4308_s1 + $0x1d0] sm:$0xff]   ;;  %v3152_v19 = vld [vmem:[%s4309_s0 + $0xe8] ss:$56 sps:$4 sm:$0xff]  }
  0x23   :  { %2657 = vmatpush3.bf16.msra.mxu1 %v3080_v22  ;;  %2721 = vmatpush3.bf16.msra.mxu0 %v3081_v23  ;;  %v3156_v22 = vld [vmem:[%s4308_s1 + $0x250] sm:$0xff]  }
  0x24   :  { %2658 = vmatprep.subr.bf16.mxu1 %v3082_v24  ;;  %2722 = vmatprep.subr.bf16.mxu0 %v3083_v25  ;;  %v3157_v23 = vld [vmem:[%s4308_s1 + $0x210] sm:$0xff]   ;;  %v3160_v25 = vld [vmem:[%s4309_s0 + $0x164] ss:$56 sps:$4 sm:$0xff]  }
  0x25   :  { %1645 = vmatprep.mubr.bf16.mxu0 %v3086_v26  ;;  %1677 = vmatprep.mubr.bf16.mxu1 %v3088_v28  ;;  %v3158_v24 = vld [vmem:[%s4309_s0 + $0x15c] ss:$56 sps:$4 sm:$0xff]   ;;  %v3162_v28 = vld [vmem:[%s4309_s0 + $0x158] ss:$56 sps:$4 sm:$0xff]  }
  0x26   :  { %v3164_v26 = vld [vmem:[%s4308_s1 + $0x1d8] sm:$0xff]  }
  0x27   :  { %2659 = vmatpush3.bf16.msra.mxu1 %v3084_v27  ;;  %2723 = vmatpush3.bf16.msra.mxu0 %v3085_v29  ;;  %v3165_v27 = vld [vmem:[%s4308_s1 + $0x198] sm:$0xff]  }
  0x28   :  { %2660 = vmatprep.subr.bf16.mxu1 %v3092_v30  ;;  %2724 = vmatprep.subr.bf16.mxu0 %v3093_v32  ;;  %v3166_v29 = vld [vmem:[%s4308_s1 + $0x258] sm:$0xff]   ;;  %v3168_v32 = vld [vmem:[%s4309_s0 + $0x1cc] ss:$56 sps:$4 sm:$0xff]  }
  0x29   :  { %v3167_v30 = vld [vmem:[%s4308_s1 + $0x218] sm:$0xff]  }
  0x2a   :  { %1646 = vmatmul.mubr.bf16.gmra.mrb[4].mxu0 %v3090_v31  ;;  %1678 = vmatmul.mubr.bf16.gmra.mrb[4].mxu1 %v3091_v33  ;;  %v3163_v31 = vld [vmem:[%s4309_s0 + $0x160] ss:$56 sps:$4 sm:$0xff]   ;;  %v3170_v33 = vld [vmem:[%s4309_s0 + $0x1d4] ss:$56 sps:$4 sm:$0xff]  }
  0x2b   :  { %2661 = vmatpush3.bf16.msra.mxu1 %v3094_v34  ;;  %2725 = vmatpush3.bf16.msra.mxu0 %v3095_v35  ;;  %v3174_v34 = vld [vmem:[%s4308_s1 + $0x1e0] sm:$0xff]  }
  0x2c   :  { %2662 = vmatprep.subr.bf16.mxu1 %v3096_v36  ;;  %2726 = vmatprep.subr.bf16.mxu0 %v3097_v37  ;;  %v3175_v35 = vld [vmem:[%s4308_s1 + $0x1a0] sm:$0xff]  }
  0x2d   :  { %1653 = vmatprep.mubr.bf16.mxu0 %v3100_v38  ;;  %1685 = vmatprep.mubr.bf16.mxu1 %v3102_v40  ;;  %v3176_v36 = vld [vmem:[%s4308_s1 + $0x260] sm:$0xff]   ;;  %v3178_v40 = vld [vmem:[%s4309_s0 + $0x23c] ss:$56 sps:$4 sm:$0xff]  }
  0x2e   :  { %v3177_v37 = vld [vmem:[%s4308_s1 + $0x220] sm:$0xff]  }
  0x2f   :  { %2663 = vmatpush3.bf16.msra.mxu1 %v3098_v39  ;;  %2727 = vmatpush3.bf16.msra.mxu0 %v3099_v41  ;;  %v3172_v38 = vld [vmem:[%s4309_s0 + $0x1c8] ss:$56 sps:$4 sm:$0xff]   ;;  %v3180_v41 = vld [vmem:[%s4309_s0 + $0x244] ss:$56 sps:$4 sm:$0xff]  }
  0x30   :  { %2664 = vmatprep.subr.bf16.mxu1 %v3106_v42  ;;  %2728 = vmatprep.subr.bf16.mxu0 %v3107_v45  ;;  %v3173_v39 = vld [vmem:[%s4309_s0 + $0x1d0] ss:$56 sps:$4 sm:$0xff]  }
  0x31   :  { %v3184_v42 = vld [vmem:[%s4308_s1 + $0x1e8] sm:$0xff]  }
  0x32   :  { %1654 = vmatmul.mubr.bf16.gmra.mrb[8].mxu0 %v3104_v43  ;;  %1686 = vmatmul.mubr.bf16.gmra.mrb[8].mxu1 %v3105_v44  ;;  %v3185_v43 = vld [vmem:[%s4308_s1 + $0x1a8] sm:$0xff]  }
  0x33   :  { %2665 = vmatpush3.bf16.msra.mxu1 %v3108_v46  ;;  %2729 = vmatpush3.bf16.msra.mxu0 %v3109_v47  ;;  %v3186_v44 = vld [vmem:[%s4308_s1 + $0x268] sm:$0xff]   ;;  %v3182_v46 = vld [vmem:[%s4309_s0 + $0x238] ss:$56 sps:$4 sm:$0xff]  }
  0x34   :  { %2666 = vmatprep.subr.bf16.mxu1 %v3110_v48  ;;  %2730 = vmatprep.subr.bf16.mxu0 %v3111_v49  ;;  %v3187_v45 = vld [vmem:[%s4308_s1 + $0x228] sm:$0xff]   ;;  %v3183_v47 = vld [vmem:[%s4309_s0 + $0x240] ss:$56 sps:$4 sm:$0xff]  }
  0x35   :  { %1661 = vmatprep.mubr.bf16.mxu0 %v3114_v50  ;;  %1693 = vmatprep.mubr.bf16.mxu1 %v3116_v51  ;;  %v3188_v48 = vld [vmem:[%s4309_s0 + $0x2ac] ss:$56 sps:$4 sm:$0xff]   ;;  %v3194_v50 = vld [vmem:[%s4308_s1 + $0x1f0] sm:$0xff]  }
  0x36   :  { %v3190_v49 = vld [vmem:[%s4309_s0 + $0x2b4] ss:$56 sps:$4 sm:$0xff]  }
  0x37   :  { %2667 = vmatpush3.bf16.msra.mxu1 %v3112_v52  ;;  %2731 = vmatpush3.bf16.msra.mxu0 %v3113_v53  ;;  %v3195_v51 = vld [vmem:[%s4308_s1 + $0x1b0] sm:$0xff]  }
  0x38   :  { %2668 = vmatprep.subr.bf16.mxu1 %v3120_v54  ;;  %2732 = vmatprep.subr.bf16.mxu0 %v3121_v57  ;;  %v3196_v52 = vld [vmem:[%s4308_s1 + $0x270] sm:$0xff]   ;;  %v3192_v54 = vld [vmem:[%s4309_s0 + $0x2a8] ss:$56 sps:$4 sm:$0xff]  }
  0x39   :  { %v3197_v53 = vld [vmem:[%s4308_s1 + $0x230] sm:$0xff]  }
  0x3a   :  { %1662 = vmatmul.mubr.bf16.gmra.mrb[12].mxu0 %v3118_v55  ;;  %1694 = vmatmul.mubr.bf16.gmra.mrb[12].mxu1 %v3119_v56  ;;  %v3193_v55 = vld [vmem:[%s4309_s0 + $0x2b0] ss:$56 sps:$4 sm:$0xff]   ;;  %v3204_v56 = vld [vmem:[%s4308_s1 + $0x1f8] sm:$0xff]  }
  0x3b   :  { %2669 = vmatpush3.bf16.msra.mxu1 %v3122_v58  ;;  %2733 = vmatpush3.bf16.msra.mxu0 %v3123_v59  ;;  %v3198_v57 = vld [vmem:[%s4309_s0 + $0x31c] ss:$56 sps:$4 sm:$0xff]  }
  0x3c   :  { %2670 = vmatprep.subr.bf16.mxu1 %v3124_v60  ;;  %2734 = vmatprep.subr.bf16.mxu0 %v3125_v61  ;;  %v3200_v58 = vld [vmem:[%s4309_s0 + $0x324] ss:$56 sps:$4 sm:$0xff]  }
  0x3d   :  { %1734 = vmatprep.mubr.bf16.mxu1 %v3130_v0  ;;  %1831 = vmatprep.mubr.bf16.mxu0 %v3133_v3  ;;  %v3205_v59 = vld [vmem:[%s4308_s1 + $0x1b8] sm:$0xff]  }
  0x3e   :  { %v3206_v60 = vld [vmem:[%s4308_s1 + $0x278] sm:$0xff]  }
  0x3f   :  { %2671 = vmatpush3.bf16.msra.mxu1 %v3126_v62  ;;  %2735 = vmatpush3.bf16.msra.mxu0 %v3127_v63  ;;  %v3207_v61 = vld [vmem:[%s4308_s1 + $0x238] sm:$0xff]   ;;  %v3214_v62 = vld [vmem:[%s4308_s1 + $0x2c0] sm:$0xff]  }
  0x40   :  { %2784 = vmatprep.subr.bf16.mxu1 %v3134_v4  ;;  %2848 = vmatprep.subr.bf16.mxu0 %v3136_v6  ;;  %v3202_v63 = vld [vmem:[%s4309_s0 + $0x318] ss:$56 sps:$4 sm:$0xff]   ;;  %v3213_v3 = vld [vmem:[%s4309_s0 + $0x24] ss:$56 sps:$4 sm:$0xff]  }
  0x41   :  { %v3203_v0 = vld [vmem:[%s4309_s0 + $0x320] ss:$56 sps:$4 sm:$0xff]  }
  0x42   :  { %1735 = vmatmul.mubr.bf16.vlgmr.msra.gmra.mrb[16].mxu1 %v3128_v1  ;;  %1832 = vmatmul.mubr.bf16.vlgmr.msra.gmra.mrb[16].mxu0 %v3131_v2  ;;  %v3216_v1 = vld [vmem:[%s4308_s1 + $0x340] sm:$0xff]   ;;  %v3210_v2 = vld [vmem:[%s4309_s0 + $0x1c] ss:$56 sps:$4 sm:$0xff]   ;;  %v3208_v4 = vld [vmem:[%s4309_s0 + $0x18] ss:$56 sps:$4 sm:$0xff]  }
  0x43   :  { %2785 = vmatpush3.bf16.msra.mxu1 %v3135_v5  ;;  %2849 = vmatpush3.bf16.msra.mxu0 %v3137_v7  ;;  %v3211_v5 = vld [vmem:[%s4309_s0 + $0x20] ss:$56 sps:$4 sm:$0xff]  }
  0x44   :  { %1742 = vmatprep.mubr.bf16.mxu1 %v3138_v8  ;;  %1839 = vmatprep.mubr.bf16.mxu0 %v3140_v9  ;;  %v3215_v6 = vld [vmem:[%s4308_s1 + $0x280] sm:$0xff]   ;;  %v3220_v9 = vld [vmem:[%s4309_s0 + $0x94] ss:$56 sps:$4 sm:$0xff]  }
  0x45   :  { %2786 = vmatprep.subr.bf16.mxu1 %v3144_v12  ;;  %2850 = vmatprep.subr.bf16.mxu0 %v3146_v14  ;;  %v3217_v7 = vld [vmem:[%s4308_s1 + $0x300] sm:$0xff]   ;;  %v3226_v12 = vld [vmem:[%s4308_s1 + $0x348] sm:$0xff]   ;;  %v3234_v14 = vld [vmem:[%s4308_s1 + $0x2d0] sm:$0xff]  }
  0x46   :  { %v3218_v8 = vld [vmem:[%s4309_s0 + $0x8c] ss:$56 sps:$4 sm:$0xff]  }
  0x47   :  { %2787 = vmatpush3.bf16.msra.mxu1 %v3145_v13  ;;  %2851 = vmatpush3.bf16.msra.mxu0 %v3147_v15  ;;  %v3227_v13 = vld [vmem:[%s4308_s1 + $0x308] sm:$0xff]  }
  0x48   :  { %2788 = vmatprep.subr.bf16.mxu1 %v3154_v18  ;;  %2852 = vmatprep.subr.bf16.mxu0 %v3156_v22  ;;  %v3222_v15 = vld [vmem:[%s4309_s0 + $0x88] ss:$56 sps:$4 sm:$0xff]   ;;  %v3228_v18 = vld [vmem:[%s4309_s0 + $0xfc] ss:$56 sps:$4 sm:$0xff]  }
  0x49   :  { %v3244_v22 = vld [vmem:[%s4308_s1 + $0x2d8] sm:$0xff]  }
  0x4a   :  { %1743 = vmatmul.mubr.bf16.gmra.mrb[20].mxu1 %v3142_v10  ;;  %1840 = vmatmul.mubr.bf16.gmra.mrb[20].mxu0 %v3143_v11  ;;  %v3224_v10 = vld [vmem:[%s4308_s1 + $0x2c8] sm:$0xff]  }
  0x4b   :  { %1750 = vmatprep.mubr.bf16.mxu1 %v3148_v16  ;;  %1847 = vmatprep.mubr.bf16.mxu0 %v3150_v17  ;;  %v3225_v11 = vld [vmem:[%s4308_s1 + $0x288] sm:$0xff]   ;;  %v3236_v17 = vld [vmem:[%s4308_s1 + $0x350] sm:$0xff]  }
  0x4c   :  { %2789 = vmatpush3.bf16.msra.mxu1 %v3155_v21  ;;  %2853 = vmatpush3.bf16.msra.mxu0 %v3157_v23  ;;  %v3223_v16 = vld [vmem:[%s4309_s0 + $0x90] ss:$56 sps:$4 sm:$0xff]   ;;  %v3246_v23 = vld [vmem:[%s4308_s1 + $0x358] sm:$0xff]  }
  0x4d   :  { %2790 = vmatprep.subr.bf16.mxu1 %v3164_v26  ;;  %2854 = vmatprep.subr.bf16.mxu0 %v3166_v29  ;;  %v3237_v21 = vld [vmem:[%s4308_s1 + $0x310] sm:$0xff]   ;;  %v3245_v26 = vld [vmem:[%s4308_s1 + $0x298] sm:$0xff]  }
  0x4e   :  { %v3240_v29 = vld [vmem:[%s4309_s0 + $0x174] ss:$56 sps:$4 sm:$0xff]  }
  0x50   :  { %2791 = vmatpush3.bf16.msra.mxu1 %v3165_v27  ;;  %2855 = vmatpush3.bf16.msra.mxu0 %v3167_v30  ;;  %v3247_v27 = vld [vmem:[%s4308_s1 + $0x318] sm:$0xff]   ;;  %v3254_v30 = vld [vmem:[%s4308_s1 + $0x2e0] sm:$0xff]  }
  0x51   :  { %2792 = vmatprep.subr.bf16.mxu1 %v3174_v34  ;;  %2856 = vmatprep.subr.bf16.mxu0 %v3176_v36  ;;  %v3242_v34 = vld [vmem:[%s4309_s0 + $0x168] ss:$56 sps:$4 sm:$0xff]  }
  0x52   :  { %1751 = vmatmul.mubr.bf16.gmra.mrb[24].mxu1 %v3152_v19  ;;  %1848 = vmatmul.mubr.bf16.gmra.mrb[24].mxu0 %v3153_v20  ;;  %v3230_v19 = vld [vmem:[%s4309_s0 + $0x104] ss:$56 sps:$4 sm:$0xff]   ;;  %v3235_v20 = vld [vmem:[%s4308_s1 + $0x290] sm:$0xff]   ;;  %v3264_v36 = vld [vmem:[%s4308_s1 + $0x2e8] sm:$0xff]  }
  0x53   :  { %1758 = vmatprep.mubr.bf16.mxu1 %v3158_v24  ;;  %1855 = vmatprep.mubr.bf16.mxu0 %v3160_v25  ;;  %v3232_v24 = vld [vmem:[%s4309_s0 + $0xf8] ss:$56 sps:$4 sm:$0xff]  }
  0x54   :  { %2793 = vmatpush3.bf16.msra.mxu1 %v3175_v35  ;;  %2857 = vmatpush3.bf16.msra.mxu0 %v3177_v37  ;;  %v3233_v25 = vld [vmem:[%s4309_s0 + $0x100] ss:$56 sps:$4 sm:$0xff]   ;;  %v3243_v35 = vld [vmem:[%s4309_s0 + $0x170] ss:$56 sps:$4 sm:$0xff]   ;;  %v3248_v37 = vld [vmem:[%s4309_s0 + $0x1dc] ss:$56 sps:$4 sm:$0xff]  }
  0x55   :  { %2794 = vmatprep.subr.bf16.mxu1 %v3184_v42  ;;  %2858 = vmatprep.subr.bf16.mxu0 %v3186_v44  ;;  %v3274_v42 = vld [vmem:[%s4308_s1 + $0x2f0] sm:$0xff]   ;;  %v3253_v44 = vld [vmem:[%s4309_s0 + $0x1e0] ss:$56 sps:$4 sm:$0xff]  }
  0x58   :  { %2795 = vmatpush3.bf16.msra.mxu1 %v3185_v43  ;;  %2859 = vmatpush3.bf16.msra.mxu0 %v3187_v45  ;;  %v3252_v43 = vld [vmem:[%s4309_s0 + $0x1d8] ss:$56 sps:$4 sm:$0xff]  }
  0x59   :  { %2796 = vmatprep.subr.bf16.mxu1 %v3194_v50  ;;  %2860 = vmatprep.subr.bf16.mxu0 %v3196_v52  ;;  %v3275_v45 = vld [vmem:[%s4308_s1 + $0x2b0] sm:$0xff]   ;;  %v3284_v50 = vld [vmem:[%s4308_s1 + $0x2f8] sm:$0xff]  }
  0x5a   :  { %1759 = vmatmul.mubr.bf16.gmra.mrb[28].mxu1 %v3162_v28  ;;  %1856 = vmatmul.mubr.bf16.gmra.mrb[28].mxu0 %v3163_v31  ;;  %v3238_v28 = vld [vmem:[%s4309_s0 + $0x16c] ss:$56 sps:$4 sm:$0xff]   ;;  %v3286_v52 = vld [vmem:[%s4308_s1 + $0x378] sm:$0xff]  }
  0x5b   :  { %1766 = vmatprep.mubr.bf16.mxu1 %v3168_v32  ;;  %1863 = vmatprep.mubr.bf16.mxu0 %v3170_v33  ;;  %v3255_v31 = vld [vmem:[%s4308_s1 + $0x2a0] sm:$0xff]  }
  0x5c   :  { %2797 = vmatpush3.bf16.msra.mxu1 %v3195_v51  ;;  %2861 = vmatpush3.bf16.msra.mxu0 %v3197_v53  ;;  %v3256_v32 = vld [vmem:[%s4308_s1 + $0x360] sm:$0xff]   ;;  %v3285_v51 = vld [vmem:[%s4308_s1 + $0x2b8] sm:$0xff]  }
  0x5d   :  { %2798 = vmatprep.subr.bf16.mxu1 %v3204_v56  ;;  %2862 = vmatprep.subr.bf16.mxu0 %v3206_v60  ;;  %v3257_v33 = vld [vmem:[%s4308_s1 + $0x320] sm:$0xff]   ;;  %v3287_v53 = vld [vmem:[%s4308_s1 + $0x338] sm:$0xff]  }
  0x5e   :  { %v3268_v56 = vld [vmem:[%s4309_s0 + $0x2bc] ss:$56 sps:$4 sm:$0xff]   ;;  %v3278_v60 = vld [vmem:[%s4309_s0 + $0x32c] ss:$56 sps:$4 sm:$0xff]  }
  0x60   :  { %2799 = vmatpush3.bf16.msra.mxu1 %v3205_v59  ;;  %2863 = vmatpush3.bf16.msra.mxu0 %v3207_v61  ;;  %v3273_v59 = vld [vmem:[%s4309_s0 + $0x2c0] ss:$56 sps:$4 sm:$0xff]   ;;  %v3280_v61 = vld [vmem:[%s4309_s0 + $0x334] ss:$56 sps:$4 sm:$0xff]  }
  0x61   :  { %2912 = vmatprep.subr.bf16.mxu1 %v3214_v62  ;;  %2976 = vmatprep.subr.bf16.mxu0 %v3216_v1  ;;  %v3282_v62 = vld [vmem:[%s4309_s0 + $0x328] ss:$56 sps:$4 sm:$0xff]   ;;  %v3293_v1 = vld [vmem:[%s4309_s0 + $0x34] ss:$56 sps:$4 sm:$0xff]  }
  0x62   :  { %1767 = vmatmul.mubr.bf16.gmra.mrb[32].mxu1 %v3172_v38  ;;  %1864 = vmatmul.mubr.bf16.gmra.mrb[32].mxu0 %v3173_v39  ;;  %v3250_v38 = vld [vmem:[%s4309_s0 + $0x1e4] ss:$56 sps:$4 sm:$0xff]   ;;  %v3265_v39 = vld [vmem:[%s4308_s1 + $0x2a8] sm:$0xff]  }
  0x63   :  { %1774 = vmatprep.mubr.bf16.mxu1 %v3178_v40  ;;  %1871 = vmatprep.mubr.bf16.mxu0 %v3180_v41  ;;  %v3266_v40 = vld [vmem:[%s4308_s1 + $0x368] sm:$0xff]  }
  0x64   :  { %v3267_v41 = vld [vmem:[%s4308_s1 + $0x328] sm:$0xff]  }
  0x6a   :  { %1775 = vmatmul.mubr.bf16.gmra.mrb[36].mxu1 %v3182_v46  ;;  %1872 = vmatmul.mubr.bf16.gmra.mrb[36].mxu0 %v3183_v47  ;;  %v3258_v46 = vld [vmem:[%s4309_s0 + $0x24c] ss:$56 sps:$4 sm:$0xff]   ;;  %v3276_v47 = vld [vmem:[%s4308_s1 + $0x370] sm:$0xff]  }
  0x6b   :  { %1782 = vmatprep.mubr.bf16.mxu1 %v3188_v48  ;;  %1879 = vmatprep.mubr.bf16.mxu0 %v3190_v49  ;;  %v3277_v48 = vld [vmem:[%s4308_s1 + $0x330] sm:$0xff]  }
  0x6c   :  { %v3260_v49 = vld [vmem:[%s4309_s0 + $0x254] ss:$56 sps:$4 sm:$0xff]  }
  0x72   :  { %1783 = vmatmul.mubr.bf16.gmra.mrb[40].mxu1 %v3192_v54  ;;  %1880 = vmatmul.mubr.bf16.gmra.mrb[40].mxu0 %v3193_v55  ;;  %v3262_v54 = vld [vmem:[%s4309_s0 + $0x248] ss:$56 sps:$4 sm:$0xff]  }
  0x73   :  { %1790 = vmatprep.mubr.bf16.mxu1 %v3198_v57  ;;  %1887 = vmatprep.mubr.bf16.mxu0 %v3200_v58  ;;  %v3263_v55 = vld [vmem:[%s4309_s0 + $0x250] ss:$56 sps:$4 sm:$0xff]   ;;  %v3270_v57 = vld [vmem:[%s4309_s0 + $0x2c4] ss:$56 sps:$4 sm:$0xff]  }
  0x74   :  { %v3272_v58 = vld [vmem:[%s4309_s0 + $0x2b8] ss:$56 sps:$4 sm:$0xff]  }
  0x7a   :  { %1791 = vmatmul.mubr.bf16.gmra.mrb[44].mxu1 %v3202_v63  ;;  %1888 = vmatmul.mubr.bf16.gmra.mrb[44].mxu0 %v3203_v0  ;;  %v3283_v63 = vld [vmem:[%s4309_s0 + $0x330] ss:$56 sps:$4 sm:$0xff]   ;;  %v3290_v0 = vld [vmem:[%s4309_s0 + $0x2c] ss:$56 sps:$4 sm:$0xff]  }
  0x7b   :  { %1928 = vmatprep.mubr.bf16.mxu1 %v3210_v2  ;;  %2025 = vmatprep.mubr.bf16.mxu0 %v3213_v3  ;;  %v3288_v2 = vld [vmem:[%s4309_s0 + $0x28] ss:$56 sps:$4 sm:$0xff]  }
  0x7c   :  { %v3291_v3 = vld [vmem:[%s4309_s0 + $0x30] ss:$56 sps:$4 sm:$0xff]  }
  0x82   :  { %1929 = vmatmul.mubr.bf16.vlgmr.msra.gmra.mrb[48].mxu1 %v3208_v4  ;;  %2026 = vmatmul.mubr.bf16.vlgmr.msra.gmra.mrb[48].mxu0 %v3211_v5  ;;  %v3294_v4 = vld [vmem:[%s4309_s0 + $0x9c] ss:$56 sps:$4 sm:$0xff]  }
  0x83   :  { %2913 = vmatpush3.bf16.msra.mxu1 %v3215_v6  ;;  %2977 = vmatpush3.bf16.msra.mxu0 %v3217_v7  ;;  %v3296_v5 = vld [vmem:[%s4309_s0 + $0xa4] ss:$56 sps:$4 sm:$0xff]   ;;  %v3298_v6 = vld [vmem:[%s4309_s0 + $0x98] ss:$56 sps:$4 sm:$0xff]  }
  0x84   :  { %1936 = vmatprep.mubr.bf16.mxu1 %v3218_v8  ;;  %2033 = vmatprep.mubr.bf16.mxu0 %v3220_v9  ;;  %v3299_v7 = vld [vmem:[%s4309_s0 + $0xa0] ss:$56 sps:$4 sm:$0xff]   ;;  %v3300_v8 = vld [vmem:[%s4309_s0 + $0x10c] ss:$56 sps:$4 sm:$0xff]  }
  0x85   :  { %2914 = vmatprep.subr.bf16.mxu1 %v3224_v10  ;;  %2978 = vmatprep.subr.bf16.mxu0 %v3226_v12  ;;  %v3302_v9 = vld [vmem:[%s4309_s0 + $0x114] ss:$56 sps:$4 sm:$0xff]   ;;  %v3304_v10 = vld [vmem:[%s4309_s0 + $0x108] ss:$56 sps:$4 sm:$0xff]  }
  0x86   :  { %v3306_v12 = vld [vmem:[%s4309_s0 + $0x17c] ss:$56 sps:$4 sm:$0xff]  }
  0x87   :  { %2915 = vmatpush3.bf16.msra.mxu1 %v3225_v11  ;;  %2979 = vmatpush3.bf16.msra.mxu0 %v3227_v13  ;;  %v3305_v11 = vld [vmem:[%s4309_s0 + $0x110] ss:$56 sps:$4 sm:$0xff]   ;;  %v3308_v13 = vld [vmem:[%s4309_s0 + $0x184] ss:$56 sps:$4 sm:$0xff]  }
  0x88   :  { %2916 = vmatprep.subr.bf16.mxu1 %v3234_v14  ;;  %2980 = vmatprep.subr.bf16.mxu0 %v3236_v17  ;;  %v3310_v14 = vld [vmem:[%s4309_s0 + $0x178] ss:$56 sps:$4 sm:$0xff]   ;;  %v3314_v17 = vld [vmem:[%s4309_s0 + $0x1f4] ss:$56 sps:$4 sm:$0xff]  }
  0x8a   :  { %1937 = vmatmul.mubr.bf16.gmra.mrb[52].mxu1 %v3222_v15  ;;  %2034 = vmatmul.mubr.bf16.gmra.mrb[52].mxu0 %v3223_v16  ;;  %v3311_v15 = vld [vmem:[%s4309_s0 + $0x180] ss:$56 sps:$4 sm:$0xff]   ;;  %v3312_v16 = vld [vmem:[%s4309_s0 + $0x1ec] ss:$56 sps:$4 sm:$0xff]  }
  0x8b   :  { %1944 = vmatprep.mubr.bf16.mxu1 %v3228_v18  ;;  %2041 = vmatprep.mubr.bf16.mxu0 %v3230_v19  ;;  %v3316_v18 = vld [vmem:[%s4309_s0 + $0x1e8] ss:$56 sps:$4 sm:$0xff]  }
  0x8c   :  { %2917 = vmatpush3.bf16.msra.mxu1 %v3235_v20  ;;  %2981 = vmatpush3.bf16.msra.mxu0 %v3237_v21  ;;  %v3317_v19 = vld [vmem:[%s4309_s0 + $0x1f0] ss:$56 sps:$4 sm:$0xff]   ;;  %v3318_v20 = vld [vmem:[%s4309_s0 + $0x25c] ss:$56 sps:$4 sm:$0xff]  }
  0x8d   :  { %2918 = vmatprep.subr.bf16.mxu1 %v3244_v22  ;;  %2982 = vmatprep.subr.bf16.mxu0 %v3246_v23  ;;  %v3320_v21 = vld [vmem:[%s4309_s0 + $0x264] ss:$56 sps:$4 sm:$0xff]   ;;  %v3322_v22 = vld [vmem:[%s4309_s0 + $0x258] ss:$56 sps:$4 sm:$0xff]  }
  0x8e   :  { %v3323_v23 = vld [vmem:[%s4309_s0 + $0x260] ss:$56 sps:$4 sm:$0xff]  }
  0x90   :  { %2919 = vmatpush3.bf16.msra.mxu1 %v3245_v26  ;;  %2983 = vmatpush3.bf16.msra.mxu0 %v3247_v27  ;;  %v3328_v26 = vld [vmem:[%s4309_s0 + $0x2c8] ss:$56 sps:$4 sm:$0xff]  }
  0x91   :  { %2920 = vmatprep.subr.bf16.mxu1 %v3254_v30  ;;  %2984 = vmatprep.subr.bf16.mxu0 %v3256_v32  ;;  %v3329_v27 = vld [vmem:[%s4309_s0 + $0x2d0] ss:$56 sps:$4 sm:$0xff]  }
  0x92   :  { %1945 = vmatmul.mubr.bf16.gmra.mrb[56].mxu1 %v3232_v24  ;;  %2042 = vmatmul.mubr.bf16.gmra.mrb[56].mxu0 %v3233_v25  ;;  %v3324_v24 = vld [vmem:[%s4309_s0 + $0x2cc] ss:$56 sps:$4 sm:$0xff]  }
  0x93   :  { %1952 = vmatprep.mubr.bf16.mxu1 %v3238_v28  ;;  %2049 = vmatprep.mubr.bf16.mxu0 %v3240_v29  ;;  %v3326_v25 = vld [vmem:[%s4309_s0 + $0x2d4] ss:$56 sps:$4 sm:$0xff]   ;;  %v3332_v29 = vld [vmem:[%s4309_s0 + $0x344] ss:$56 sps:$4 sm:$0xff]  }
  0x94   :  { %2921 = vmatpush3.bf16.msra.mxu1 %v3255_v31  ;;  %2985 = vmatpush3.bf16.msra.mxu0 %v3257_v33  ;;  %v3330_v28 = vld [vmem:[%s4309_s0 + $0x33c] ss:$56 sps:$4 sm:$0xff]  }
  0x95   :  { %2922 = vmatprep.subr.bf16.mxu1 %v3264_v36  ;;  %2986 = vmatprep.subr.bf16.mxu0 %v3266_v40 }
  0x98   :  { %2923 = vmatpush3.bf16.msra.mxu1 %v3265_v39  ;;  %2987 = vmatpush3.bf16.msra.mxu0 %v3267_v41 }
  0x99   :  { %2924 = vmatprep.subr.bf16.mxu1 %v3274_v42  ;;  %2988 = vmatprep.subr.bf16.mxu0 %v3276_v47 }
  0x9a   :  { %1953 = vmatmul.mubr.bf16.gmra.mrb[60].mxu1 %v3242_v34  ;;  %2050 = vmatmul.mubr.bf16.gmra.mrb[60].mxu0 %v3243_v35  ;;  %v3334_v34 = vld [vmem:[%s4309_s0 + $0x338] ss:$56 sps:$4 sm:$0xff]  }
  0x9b   :  { %1960 = vmatprep.mubr.bf16.mxu1 %v3248_v37  ;;  %2057 = vmatprep.mubr.bf16.mxu0 %v3250_v38  ;;  %v3335_v35 = vld [vmem:[%s4309_s0 + $0x340] ss:$56 sps:$4 sm:$0xff]  }
  0x9c   :  { %2925 = vmatpush3.bf16.msra.mxu1 %v3275_v45  ;;  %2989 = vmatpush3.bf16.msra.mxu0 %v3277_v48 }
  0x9d   :  { %2926 = vmatprep.subr.bf16.mxu1 %v3284_v50  ;;  %2990 = vmatprep.subr.bf16.mxu0 %v3286_v52 }
  0xa0   :  { %2927 = vmatpush3.bf16.msra.mxu1 %v3285_v51  ;;  %2991 = vmatpush3.bf16.msra.mxu0 %v3287_v53 }
  0xa2   :  { %1961 = vmatmul.mubr.bf16.gmra.mrb[64].mxu1 %v3252_v43  ;;  %2058 = vmatmul.mubr.bf16.gmra.mrb[64].mxu0 %v3253_v44 }
  0xa3   :  { %1968 = vmatprep.mubr.bf16.mxu1 %v3258_v46  ;;  %2065 = vmatprep.mubr.bf16.mxu0 %v3260_v49 }
  0xaa   :  { %1969 = vmatmul.mubr.bf16.gmra.mrb[68].mxu1 %v3262_v54  ;;  %2066 = vmatmul.mubr.bf16.gmra.mrb[68].mxu0 %v3263_v55 }
  0xab   :  { %1976 = vmatprep.mubr.bf16.mxu1 %v3268_v56  ;;  %2073 = vmatprep.mubr.bf16.mxu0 %v3270_v57 }
  0xb2   :  { %1977 = vmatmul.mubr.bf16.gmra.mrb[72].mxu1 %v3272_v58  ;;  %2074 = vmatmul.mubr.bf16.gmra.mrb[72].mxu0 %v3273_v59 }
  0xb3   :  { %1984 = vmatprep.mubr.bf16.mxu1 %v3278_v60  ;;  %2081 = vmatprep.mubr.bf16.mxu0 %v3280_v61 }
  0xba   :  { %1985 = vmatmul.mubr.bf16.gmra.mrb[76].mxu1 %v3282_v62  ;;  %2082 = vmatmul.mubr.bf16.gmra.mrb[76].mxu0 %v3283_v63 }
  0xbb   :  { %2122 = vmatprep.mubr.bf16.mxu1 %v3290_v0  ;;  %2219 = vmatprep.mubr.bf16.mxu0 %v3293_v1 }
  0xc2   :  { %2123 = vmatmul.mubr.bf16.vlgmr.msra.gmra.mrb[80].mxu1 %v3288_v2  ;;  %2220 = vmatmul.mubr.bf16.vlgmr.msra.gmra.mrb[80].mxu0 %v3291_v3 }
  0xc3   :  { %2130 = vmatprep.mubr.bf16.mxu1 %v3294_v4  ;;  %2227 = vmatprep.mubr.bf16.mxu0 %v3296_v5 }
  0xca   :  { %2131 = vmatmul.mubr.bf16.gmra.mrb[84].mxu1 %v3298_v6  ;;  %2228 = vmatmul.mubr.bf16.gmra.mrb[84].mxu0 %v3299_v7 }
  0xcb   :  { %2138 = vmatprep.mubr.bf16.mxu1 %v3300_v8  ;;  %2235 = vmatprep.mubr.bf16.mxu0 %v3302_v9 }
  0xd2   :  { %2139 = vmatmul.mubr.bf16.gmra.mrb[88].mxu1 %v3304_v10  ;;  %2236 = vmatmul.mubr.bf16.gmra.mrb[88].mxu0 %v3305_v11 }
  0xd3   :  { %2146 = vmatprep.mubr.bf16.mxu1 %v3306_v12  ;;  %2243 = vmatprep.mubr.bf16.mxu0 %v3308_v13 }
  0xda   :  { %2147 = vmatmul.mubr.bf16.gmra.mrb[92].mxu1 %v3310_v14  ;;  %2244 = vmatmul.mubr.bf16.gmra.mrb[92].mxu0 %v3311_v15 }
  0xdb   :  { %2154 = vmatprep.mubr.bf16.mxu1 %v3312_v16  ;;  %2251 = vmatprep.mubr.bf16.mxu0 %v3314_v17  ;;  %v357_v16 = vld [vmem:[%s4310_s2] sm:$0xff] }
  0xe2   :  { %2155 = vmatmul.mubr.bf16.gmra.mrb[96].mxu1 %v3316_v18  ;;  %2252 = vmatmul.mubr.bf16.gmra.mrb[96].mxu0 %v3317_v19  ;;  %v358_v19 = vld [vmem:[%s4310_s2 + $0x8] sm:$0xff] }
  0xe3   :  { %2162 = vmatprep.mubr.bf16.mxu1 %v3318_v20  ;;  %2259 = vmatprep.mubr.bf16.mxu0 %v3320_v21 }
  0xea   :  { %2163 = vmatmul.mubr.bf16.gmra.mrb[100].mxu1 %v3322_v22  ;;  %2260 = vmatmul.mubr.bf16.gmra.mrb[100].mxu0 %v3323_v23 }
  0xeb   :  { %2170 = vmatprep.mubr.bf16.mxu1 %v3324_v24  ;;  %2267 = vmatprep.mubr.bf16.mxu0 %v3326_v25 }
  0xf2   :  { %2171 = vmatmul.mubr.bf16.gmra.mrb[104].mxu1 %v3328_v26  ;;  %2268 = vmatmul.mubr.bf16.gmra.mrb[104].mxu0 %v3329_v27 }
  0xf3   :  { %2178 = vmatprep.mubr.bf16.mxu1 %v3330_v28  ;;  %2275 = vmatprep.mubr.bf16.mxu0 %v3332_v29 }
  0xf5   :  { %v2608_v30 = vpop.f32.mrb[0].mxu0  ;;  %v2632_v31 = vpop.f32.mrb[0].mxu1 }
  0xf6   :  { %v2609_v32 = vpop.f32.mrb[1].mxu0  ;;  %v2633_v33 = vpop.f32.mrb[1].mxu1 }
  0xf7   :  { %v2610_v36 = vadd.f32 %v2609_v32, %v2608_v30  ;;  %v4038_v37 = vadd.f32 %v2633_v33, %v2632_v31  ;;  %v2611_v38 = vpop.f32.mrb[2].mxu0  ;;  %v2635_v39 = vpop.f32.mrb[2].mxu1 }
  0xf8   :  { %v2612_v40 = vpop.f32.mrb[3].mxu0  ;;  %v2636_v41 = vpop.f32.mrb[3].mxu1 }
  0xf9   :  { %v2613_v42 = vadd.f32 %v2612_v40, %v2611_v38  ;;  %v4040_v43 = vadd.f32 %v2636_v41, %v2635_v39  ;;  %v1640_v22 = vadd.f32 %v2610_v36, %v357_v16  ;;  %v360_v40 = vld [vmem:[%s4310_s2 + $0x18] sm:$0xff] }
  0xfa   :  { %2179 = vmatmul.mubr.bf16.gmra.mrb[108].mxu1 %v3334_v34  ;;  %2276 = vmatmul.mubr.bf16.gmra.mrb[108].mxu0 %v3335_v35  ;;  %v359_v35 = vld [vmem:[%s4310_s2 + $0x10] sm:$0xff] }
  0xfb   :  { %v1643_v29 = vadd.f32 %v2613_v42, %v358_v19 }
  0xfd   :  { %v2614_v44 = vpop.f32.mrb[4].mxu0  ;;  %v2638_v45 = vpop.f32.mrb[4].mxu1 }
  0xfe   :  { %v2615_v46 = vpop.f32.mrb[5].mxu0  ;;  %v2639_v47 = vpop.f32.mrb[5].mxu1 }
  0xff   :  { %v2616_v48 = vadd.f32 %v2615_v46, %v2614_v44  ;;  %v4042_v49 = vadd.f32 %v2639_v47, %v2638_v45  ;;  %v2617_v50 = vpop.f32.mrb[6].mxu0  ;;  %v2641_v51 = vpop.f32.mrb[6].mxu1 }
 0x100   :  { %v2618_v52 = vpop.f32.mrb[7].mxu0  ;;  %v2642_v53 = vpop.f32.mrb[7].mxu1 }
 0x101   :  { %v2619_v54 = vadd.f32 %v2618_v52, %v2617_v50  ;;  %v4044_v55 = vadd.f32 %v2642_v53, %v2641_v51  ;;  %v1648_v44 = vadd.f32 %v2616_v48, %v359_v35 }
 0x103   :  { %v1651_v53 = vadd.f32 %v2619_v54, %v360_v40 }
 0x105   :  { %v2620_v56 = vpop.f32.mrb[8].mxu0  ;;  %v2644_v57 = vpop.f32.mrb[8].mxu1 }
 0x106   :  { %v2621_v58 = vpop.f32.mrb[9].mxu0  ;;  %v2645_v59 = vpop.f32.mrb[9].mxu1 }
 0x107   :  { %v4046_v60 = vadd.f32 %v2621_v58, %v2620_v56  ;;  %v4048_v61 = vadd.f32 %v2645_v59, %v2644_v57  ;;  %v2623_v62 = vpop.f32.mrb[10].mxu0  ;;  %v2647_v63 = vpop.f32.mrb[10].mxu1 }
 0x108   :  { %v2624_v0 = vpop.f32.mrb[11].mxu0  ;;  %v2648_v1 = vpop.f32.mrb[11].mxu1 }
 0x109   :  { %v4050_v2 = vadd.f32 %v2624_v0, %v2623_v62  ;;  %v4052_v3 = vadd.f32 %v2648_v1, %v2647_v63  ;;  %v361_v63 = vld [vmem:[%s4310_s2 + $0x20] sm:$0xff] }
 0x10d   :  { %v2626_v4 = vpop.f32.mrb[12].mxu0  ;;  %v2650_v5 = vpop.f32.mrb[12].mxu1 }
 0x10e   :  { %v2627_v6 = vpop.f32.mrb[13].mxu0  ;;  %v2651_v7 = vpop.f32.mrb[13].mxu1 }
 0x10f   :  { %v4054_v8 = vadd.f32 %v2627_v6, %v2626_v4  ;;  %v4056_v9 = vadd.f32 %v2651_v7, %v2650_v5  ;;  %v2629_v10 = vpop.f32.mrb[14].mxu0  ;;  %v2653_v11 = vpop.f32.mrb[14].mxu1  ;;  %v362_v4 = vld [vmem:[%s4310_s2 + $0x28] sm:$0xff]  ;;  %v1656_v6 = vadd.f32 %v4046_v60, %v361_v63 }
 0x110   :  { %v2630_v12 = vpop.f32.mrb[15].mxu0  ;;  %v2654_v13 = vpop.f32.mrb[15].mxu1 }
 0x111   :  { %v4058_v14 = vadd.f32 %v2630_v12, %v2629_v10  ;;  %v4060_v15 = vadd.f32 %v2654_v13, %v2653_v11 }
 0x115   :  { %v2672_v17 = vpop.f32.mrb[16].mxu1  ;;  %v2736_v18 = vpop.f32.mrb[16].mxu0 }
 0x116   :  { %v2673_v20 = vpop.f32.mrb[17].mxu1  ;;  %v2737_v21 = vpop.f32.mrb[17].mxu0 }
 0x117   :  { %v2674_v23 = vadd.f32 %v2673_v20, %v2672_v17  ;;  %v2738_v24 = vadd.f32 %v2737_v21, %v2736_v18  ;;  %v2675_v25 = vpop.f32.mrb[18].mxu1  ;;  %v2739_v26 = vpop.f32.mrb[18].mxu0  ;;  %v1659_v17 = vadd.f32 %v4050_v2, %v362_v4 }
 0x118   :  { %v2676_v27 = vpop.f32.mrb[19].mxu1  ;;  %v2740_v28 = vpop.f32.mrb[19].mxu0 }
 0x119   :  { %v1737_v30 = vadd.f32 %v2674_v23, %v1640_v22  ;;  %v2677_v31 = vadd.f32 %v2676_v27, %v2675_v25  ;;  %v2741_v32 = vadd.f32 %v2740_v28, %v2739_v26  ;;  %v363_v23 = vld [vmem:[%s4310_s2 + $0x30] sm:$0xff]  ;;  %v364_v26 = vld [vmem:[%s4310_s2 + $0x38] sm:$0xff] }
 0x11a   :  { %v1664_v28 = vadd.f32 %v4054_v8, %v363_v23 }
 0x11b   :  { %v4068_v33 = vadd.f32 %v2738_v24, %v1737_v30  ;;  %v1740_v34 = vadd.f32 %v2677_v31, %v1643_v29 }
 0x11d   :  { %v4073_v38 = vadd.f32 %v2741_v32, %v1740_v34  ;;  %v2678_v36 = vpop.f32.mrb[20].mxu1  ;;  %v2742_v39 = vpop.f32.mrb[20].mxu0 }
 0x11e   :  { %v2679_v41 = vpop.f32.mrb[21].mxu1  ;;  %v2743_v42 = vpop.f32.mrb[21].mxu0 }
 0x11f   :  { %v2680_v45 = vadd.f32 %v2679_v41, %v2678_v36  ;;  %v2744_v46 = vadd.f32 %v2743_v42, %v2742_v39  ;;  %v2681_v47 = vpop.f32.mrb[22].mxu1  ;;  %v2745_v50 = vpop.f32.mrb[22].mxu0  ;;  %v1667_v36 = vadd.f32 %v4058_v14, %v364_v26 }
 0x120   :  { %v2682_v51 = vpop.f32.mrb[23].mxu1  ;;  %v2746_v52 = vpop.f32.mrb[23].mxu0 }
 0x121   :  { %v1745_v56 = vadd.f32 %v2680_v45, %v1648_v44  ;;  %v2683_v57 = vadd.f32 %v2682_v51, %v2681_v47  ;;  %v2747_v58 = vadd.f32 %v2746_v52, %v2745_v50  ;;  %v365_v45 = vld [vmem:[%s4310_s2 + $0x40] sm:$0xff]  ;;  %v366_v50 = vld [vmem:[%s4310_s2 + $0x48] sm:$0xff] }
 0x122   :  { %v1672_v52 = vadd.f32 %v4038_v37, %v365_v45 }
 0x123   :  { %v4078_v59 = vadd.f32 %v2744_v46, %v1745_v56  ;;  %v1748_v62 = vadd.f32 %v2683_v57, %v1651_v53 }
 0x125   :  { %v4083_v0 = vadd.f32 %v2747_v58, %v1748_v62  ;;  %v2684_v48 = vpop.f32.mrb[24].mxu1  ;;  %v2748_v1 = vpop.f32.mrb[24].mxu0 }
 0x126   :  { %v2685_v5 = vpop.f32.mrb[25].mxu1  ;;  %v2749_v54 = vpop.f32.mrb[25].mxu0 }
 0x127   :  { %v2686_v7 = vadd.f32 %v2685_v5, %v2684_v48  ;;  %v2750_v10 = vadd.f32 %v2749_v54, %v2748_v1  ;;  %v2687_v11 = vpop.f32.mrb[26].mxu1  ;;  %v2751_v12 = vpop.f32.mrb[26].mxu0  ;;  %v1675_v48 = vadd.f32 %v4040_v43, %v366_v50 }
 0x128   :  { %v2688_v13 = vpop.f32.mrb[27].mxu1  ;;  %v2752_v16 = vpop.f32.mrb[27].mxu0 }
 0x129   :  { %v1753_v18 = vadd.f32 %v2686_v7, %v1656_v6  ;;  %v2689_v19 = vadd.f32 %v2688_v13, %v2687_v11  ;;  %v2753_v20 = vadd.f32 %v2752_v16, %v2751_v12  ;;  %v367_v7 = vld [vmem:[%s4310_s2 + $0x50] sm:$0xff]  ;;  %v368_v12 = vld [vmem:[%s4310_s2 + $0x58] sm:$0xff] }
 0x12a   :  { %v1680_v16 = vadd.f32 %v4042_v49, %v367_v7 }
 0x12b   :  { %v4090_v21 = vadd.f32 %v2750_v10, %v1753_v18  ;;  %v1756_v22 = vadd.f32 %v2689_v19, %v1659_v17 }
 0x12d   :  { %v4095_v24 = vadd.f32 %v2753_v20, %v1756_v22  ;;  %v2690_v60 = vpop.f32.mrb[28].mxu1  ;;  %v2754_v25 = vpop.f32.mrb[28].mxu0 }
 0x12e   :  { %v2691_v27 = vpop.f32.mrb[29].mxu1  ;;  %v2755_v2 = vpop.f32.mrb[29].mxu0 }
 0x12f   :  { %v2692_v29 = vadd.f32 %v2691_v27, %v2690_v60  ;;  %v2756_v30 = vadd.f32 %v2755_v2, %v2754_v25  ;;  %v2693_v31 = vpop.f32.mrb[30].mxu1  ;;  %v2757_v32 = vpop.f32.mrb[30].mxu0  ;;  %v1683_v60 = vadd.f32 %v4044_v55, %v368_v12 }
 0x130   :  { %v2694_v34 = vpop.f32.mrb[31].mxu1  ;;  %v2758_v35 = vpop.f32.mrb[31].mxu0 }
 0x131   :  { %v1761_v39 = vadd.f32 %v2692_v29, %v1664_v28  ;;  %v2695_v40 = vadd.f32 %v2694_v34, %v2693_v31  ;;  %v2759_v41 = vadd.f32 %v2758_v35, %v2757_v32  ;;  %v369_v29 = vld [vmem:[%s4310_s2 + $0x60] sm:$0xff]  ;;  %v370_v32 = vld [vmem:[%s4310_s2 + $0x68] sm:$0xff] }
 0x132   :  { %v1688_v35 = vadd.f32 %v4048_v61, %v369_v29 }
 0x133   :  { %v4102_v42 = vadd.f32 %v2756_v30, %v1761_v39  ;;  %v1764_v44 = vadd.f32 %v2695_v40, %v1667_v36 }
 0x135   :  { %v4107_v46 = vadd.f32 %v2759_v41, %v1764_v44  ;;  %v2696_v8 = vpop.f32.mrb[32].mxu1  ;;  %v2760_v47 = vpop.f32.mrb[32].mxu0 }
 0x136   :  { %v2697_v51 = vpop.f32.mrb[33].mxu1  ;;  %v2761_v14 = vpop.f32.mrb[33].mxu0 }
 0x137   :  { %v2698_v53 = vadd.f32 %v2697_v51, %v2696_v8  ;;  %v2762_v56 = vadd.f32 %v2761_v14, %v2760_v47  ;;  %v2699_v57 = vpop.f32.mrb[34].mxu1  ;;  %v2763_v58 = vpop.f32.mrb[34].mxu0  ;;  %v1691_v8 = vadd.f32 %v4052_v3, %v370_v32 }
 0x138   :  { %v2700_v62 = vpop.f32.mrb[35].mxu1  ;;  %v2764_v63 = vpop.f32.mrb[35].mxu0 }
 0x139   :  { %v1769_v1 = vadd.f32 %v2698_v53, %v1672_v52  ;;  %v2701_v4 = vadd.f32 %v2700_v62, %v2699_v57  ;;  %v2765_v5 = vadd.f32 %v2764_v63, %v2763_v58  ;;  %v371_v53 = vld [vmem:[%s4310_s2 + $0x70] sm:$0xff]  ;;  %v372_v58 = vld [vmem:[%s4310_s2 + $0x78] sm:$0xff] }
 0x13a   :  { %v1696_v63 = vadd.f32 %v4056_v9, %v371_v53 }
 0x13b   :  { %v4114_v54 = vadd.f32 %v2762_v56, %v1769_v1  ;;  %v1772_v6 = vadd.f32 %v2701_v4, %v1675_v48 }
 0x13d   :  { %v4119_v10 = vadd.f32 %v2765_v5, %v1772_v6  ;;  %v2702_v37 = vpop.f32.mrb[36].mxu1  ;;  %v2766_v11 = vpop.f32.mrb[36].mxu0 }
 0x13e   :  { %v2703_v13 = vpop.f32.mrb[37].mxu1  ;;  %v2767_v43 = vpop.f32.mrb[37].mxu0 }
 0x13f   :  { %v2704_v17 = vadd.f32 %v2703_v13, %v2702_v37  ;;  %v2768_v18 = vadd.f32 %v2767_v43, %v2766_v11  ;;  %v2705_v19 = vpop.f32.mrb[38].mxu1  ;;  %v2769_v20 = vpop.f32.mrb[38].mxu0  ;;  %v1699_v37 = vadd.f32 %v4060_v15, %v372_v58 }
 0x140   :  { %v2706_v22 = vpop.f32.mrb[39].mxu1  ;;  %v2770_v23 = vpop.f32.mrb[39].mxu0 }
 0x141   :  { %v1777_v25 = vadd.f32 %v2704_v17, %v1680_v16  ;;  %v2707_v26 = vadd.f32 %v2706_v22, %v2705_v19  ;;  %v2771_v27 = vadd.f32 %v2770_v23, %v2769_v20 }
 0x143   :  { %v4126_v2 = vadd.f32 %v2768_v18, %v1777_v25  ;;  %v1780_v28 = vadd.f32 %v2707_v26, %v1683_v60 }
 0x145   :  { %v4131_v30 = vadd.f32 %v2771_v27, %v1780_v28  ;;  %v2708_v49 = vpop.f32.mrb[40].mxu1  ;;  %v2772_v31 = vpop.f32.mrb[40].mxu0 }
 0x146   :  { %v2709_v34 = vpop.f32.mrb[41].mxu1  ;;  %v2773_v55 = vpop.f32.mrb[41].mxu0 }
 0x147   :  { %v2710_v36 = vadd.f32 %v2709_v34, %v2708_v49  ;;  %v2774_v39 = vadd.f32 %v2773_v55, %v2772_v31  ;;  %v2711_v40 = vpop.f32.mrb[42].mxu1  ;;  %v2775_v41 = vpop.f32.mrb[42].mxu0 }
 0x148   :  { %v2712_v44 = vpop.f32.mrb[43].mxu1  ;;  %v2776_v45 = vpop.f32.mrb[43].mxu0 }
 0x149   :  { %v1785_v47 = vadd.f32 %v2710_v36, %v1688_v35  ;;  %v2713_v50 = vadd.f32 %v2712_v44, %v2711_v40  ;;  %v2777_v51 = vadd.f32 %v2776_v45, %v2775_v41 }
 0x14b   :  { %v4138_v14 = vadd.f32 %v2774_v39, %v1785_v47  ;;  %v1788_v52 = vadd.f32 %v2713_v50, %v1691_v8 }
 0x14d   :  { %v4143_v56 = vadd.f32 %v2777_v51, %v1788_v52  ;;  %v2714_v61 = vpop.f32.mrb[44].mxu1  ;;  %v2778_v57 = vpop.f32.mrb[44].mxu0 }
 0x14e   :  { %v2715_v62 = vpop.f32.mrb[45].mxu1  ;;  %v2779_v3 = vpop.f32.mrb[45].mxu0 }
 0x14f   :  { %v2716_v48 = vadd.f32 %v2715_v62, %v2714_v61  ;;  %v2780_v1 = vadd.f32 %v2779_v3, %v2778_v57  ;;  %v2717_v4 = vpop.f32.mrb[46].mxu1  ;;  %v2781_v5 = vpop.f32.mrb[46].mxu0 }
 0x150   :  { %v2718_v6 = vpop.f32.mrb[47].mxu1  ;;  %v2782_v7 = vpop.f32.mrb[47].mxu0 }
 0x151   :  { %v1793_v11 = vadd.f32 %v2716_v48, %v1696_v63  ;;  %v2719_v12 = vadd.f32 %v2718_v6, %v2717_v4  ;;  %v2783_v13 = vadd.f32 %v2782_v7, %v2781_v5 }
 0x153   :  { %v4150_v43 = vadd.f32 %v2780_v1, %v1793_v11  ;;  %v1796_v16 = vadd.f32 %v2719_v12, %v1699_v37 }
 0x155   :  { %v4152_v17 = vadd.f32 %v2783_v13, %v1796_v16  ;;  %v2800_v18 = vpop.f32.mrb[48].mxu1  ;;  %v2864_v19 = vpop.f32.mrb[48].mxu0 }
 0x156   :  { %v2801_v20 = vpop.f32.mrb[49].mxu1  ;;  %v2865_v9 = vpop.f32.mrb[49].mxu0 }
 0x157   :  { %v2802_v22 = vadd.f32 %v2801_v20, %v2800_v18  ;;  %v2866_v23 = vadd.f32 %v2865_v9, %v2864_v19  ;;  %v2803_v60 = vpop.f32.mrb[50].mxu1  ;;  %v2867_v25 = vpop.f32.mrb[50].mxu0 }
 0x158   :  { %v2804_v26 = vpop.f32.mrb[51].mxu1  ;;  %v2868_v27 = vpop.f32.mrb[51].mxu0 }
 0x159   :  { %v1931_v15 = vadd.f32 %v2802_v22, %v4068_v33  ;;  %v2805_v28 = vadd.f32 %v2804_v26, %v2803_v60  ;;  %v2869_v29 = vadd.f32 %v2868_v27, %v2867_v25 }
 0x15b   :  { %v4155_v49 = vadd.f32 %v2866_v23, %v1931_v15  ;;  %v1934_v31 = vadd.f32 %v2805_v28, %v4073_v38 }
 0x15d   :  { %v4158_v32 = vadd.f32 %v2869_v29, %v1934_v31  ;;  %v2806_v34 = vpop.f32.mrb[52].mxu1  ;;  %v2870_v55 = vpop.f32.mrb[52].mxu0 }
 0x15e   :  { %v2807_v35 = vpop.f32.mrb[53].mxu1  ;;  %v2871_v36 = vpop.f32.mrb[53].mxu0 }
 0x15f   :  { %v2808_v39 = vadd.f32 %v2807_v35, %v2806_v34  ;;  %v2872_v40 = vadd.f32 %v2871_v36, %v2870_v55  ;;  %v2809_v41 = vpop.f32.mrb[54].mxu1  ;;  %v2873_v44 = vpop.f32.mrb[54].mxu0 }
 0x160   :  { %v2810_v45 = vpop.f32.mrb[55].mxu1  ;;  %v2874_v8 = vpop.f32.mrb[55].mxu0 }
 0x161   :  { %v1939_v33 = vadd.f32 %v2808_v39, %v4078_v59  ;;  %v2811_v47 = vadd.f32 %v2810_v45, %v2809_v41  ;;  %v2875_v50 = vadd.f32 %v2874_v8, %v2873_v44 }
 0x163   :  { %v4161_v51 = vadd.f32 %v2872_v40, %v1939_v33  ;;  %v1942_v38 = vadd.f32 %v2811_v47, %v4083_v0 }
 0x165   :  { %v4164_v52 = vadd.f32 %v2875_v50, %v1942_v38  ;;  %v2812_v53 = vpop.f32.mrb[56].mxu1  ;;  %v2876_v61 = vpop.f32.mrb[56].mxu0 }
 0x166   :  { %v2813_v57 = vpop.f32.mrb[57].mxu1  ;;  %v2877_v58 = vpop.f32.mrb[57].mxu0 }
 0x167   :  { %v2814_v62 = vadd.f32 %v2813_v57, %v2812_v53  ;;  %v2878_v3 = vadd.f32 %v2877_v58, %v2876_v61  ;;  %v2815_v63 = vpop.f32.mrb[58].mxu1  ;;  %v2879_v48 = vpop.f32.mrb[58].mxu0 }
 0x168   :  { %v2816_v1 = vpop.f32.mrb[59].mxu1  ;;  %v2880_v4 = vpop.f32.mrb[59].mxu0 }
 0x169   :  { %v1947_v59 = vadd.f32 %v2814_v62, %v4090_v21  ;;  %v2817_v5 = vadd.f32 %v2816_v1, %v2815_v63  ;;  %v2881_v6 = vadd.f32 %v2880_v4, %v2879_v48 }
 0x16b   :  { %v4167_v7 = vadd.f32 %v2878_v3, %v1947_v59  ;;  %v1950_v0 = vadd.f32 %v2817_v5, %v4095_v24 }
 0x16d   :  { %v4170_v37 = vadd.f32 %v2881_v6, %v1950_v0  ;;  %v2818_v11 = vpop.f32.mrb[60].mxu1  ;;  %v2882_v12 = vpop.f32.mrb[60].mxu0 }
 0x16e   :  { %v2819_v13 = vpop.f32.mrb[61].mxu1  ;;  %v2883_v16 = vpop.f32.mrb[61].mxu0 }
 0x16f   :  { %v2820_v18 = vadd.f32 %v2819_v13, %v2818_v11  ;;  %v2884_v19 = vadd.f32 %v2883_v16, %v2882_v12  ;;  %v2821_v20 = vpop.f32.mrb[62].mxu1  ;;  %v2885_v9 = vpop.f32.mrb[62].mxu0 }
 0x170   :  { %v2822_v22 = vpop.f32.mrb[63].mxu1  ;;  %v2886_v23 = vpop.f32.mrb[63].mxu0 }
 0x171   :  { %v1955_v21 = vadd.f32 %v2820_v18, %v4102_v42  ;;  %v2823_v60 = vadd.f32 %v2822_v22, %v2821_v20  ;;  %v2887_v25 = vadd.f32 %v2886_v23, %v2885_v9 }
 0x173   :  { %v4173_v26 = vadd.f32 %v2884_v19, %v1955_v21  ;;  %v1958_v24 = vadd.f32 %v2823_v60, %v4107_v46 }
 0x175   :  { %v4176_v27 = vadd.f32 %v2887_v25, %v1958_v24  ;;  %v2824_v15 = vpop.f32.mrb[64].mxu1  ;;  %v2888_v28 = vpop.f32.mrb[64].mxu0 }
 0x176   :  { %v2825_v29 = vpop.f32.mrb[65].mxu1  ;;  %v2889_v31 = vpop.f32.mrb[65].mxu0 }
 0x177   :  { %v2826_v34 = vadd.f32 %v2825_v29, %v2824_v15  ;;  %v2890_v55 = vadd.f32 %v2889_v31, %v2888_v28  ;;  %v2827_v35 = vpop.f32.mrb[66].mxu1  ;;  %v2891_v36 = vpop.f32.mrb[66].mxu0 }
 0x178   :  { %v2828_v39 = vpop.f32.mrb[67].mxu1  ;;  %v2892_v40 = vpop.f32.mrb[67].mxu0 }
 0x179   :  { %v1963_v42 = vadd.f32 %v2826_v34, %v4114_v54  ;;  %v2829_v41 = vadd.f32 %v2828_v39, %v2827_v35  ;;  %v2893_v44 = vadd.f32 %v2892_v40, %v2891_v36 }
 0x17b   :  { %v4179_v45 = vadd.f32 %v2890_v55, %v1963_v42  ;;  %v1966_v46 = vadd.f32 %v2829_v41, %v4119_v10 }
 0x17d   :  { %v4182_v8 = vadd.f32 %v2893_v44, %v1966_v46  ;;  %v2830_v33 = vpop.f32.mrb[68].mxu1  ;;  %v2894_v47 = vpop.f32.mrb[68].mxu0 }
 0x17e   :  { %v2831_v50 = vpop.f32.mrb[69].mxu1  ;;  %v2895_v38 = vpop.f32.mrb[69].mxu0 }
 0x17f   :  { %v2832_v53 = vadd.f32 %v2831_v50, %v2830_v33  ;;  %v2896_v61 = vadd.f32 %v2895_v38, %v2894_v47  ;;  %v2833_v57 = vpop.f32.mrb[70].mxu1  ;;  %v2897_v58 = vpop.f32.mrb[70].mxu0 }
 0x180   :  { %v2834_v62 = vpop.f32.mrb[71].mxu1  ;;  %v2898_v3 = vpop.f32.mrb[71].mxu0 }
 0x181   :  { %v1971_v54 = vadd.f32 %v2832_v53, %v4126_v2  ;;  %v2835_v63 = vadd.f32 %v2834_v62, %v2833_v57  ;;  %v2899_v48 = vadd.f32 %v2898_v3, %v2897_v58 }
 0x183   :  { %v4185_v1 = vadd.f32 %v2896_v61, %v1971_v54  ;;  %v1974_v10 = vadd.f32 %v2835_v63, %v4131_v30  ;;  %v4212_v54 = vld [vmem:[%s4312_s4] ss:$0 sm:$0xff] }
 0x185   :  { %v4188_v4 = vadd.f32 %v2899_v48, %v1974_v10  ;;  %v2836_v59 = vpop.f32.mrb[72].mxu1  ;;  %v2900_v5 = vpop.f32.mrb[72].mxu0 }
 0x186   :  { %v2837_v6 = vpop.f32.mrb[73].mxu1  ;;  %v2901_v0 = vpop.f32.mrb[73].mxu0 }
 0x187   :  { %v2838_v11 = vadd.f32 %v2837_v6, %v2836_v59  ;;  %v2902_v12 = vadd.f32 %v2901_v0, %v2900_v5  ;;  %v2839_v13 = vpop.f32.mrb[74].mxu1  ;;  %v2903_v16 = vpop.f32.mrb[74].mxu0 }
 0x188   :  { %v2840_v18 = vpop.f32.mrb[75].mxu1  ;;  %v2904_v19 = vpop.f32.mrb[75].mxu0 }
 0x189   :  { %v1979_v2 = vadd.f32 %v2838_v11, %v4138_v14  ;;  %v2841_v20 = vadd.f32 %v2840_v18, %v2839_v13  ;;  %v2905_v9 = vadd.f32 %v2904_v19, %v2903_v16 }
 0x18b   :  { %v4191_v22 = vadd.f32 %v2902_v12, %v1979_v2  ;;  %v1982_v30 = vadd.f32 %v2841_v20, %v4143_v56 }
 0x18d   :  { %v4194_v23 = vadd.f32 %v2905_v9, %v1982_v30  ;;  %v2842_v21 = vpop.f32.mrb[76].mxu1  ;;  %v2906_v60 = vpop.f32.mrb[76].mxu0 }
 0x18e   :  { %v2843_v25 = vpop.f32.mrb[77].mxu1  ;;  %v2907_v24 = vpop.f32.mrb[77].mxu0 }
 0x18f   :  { %v2844_v15 = vadd.f32 %v2843_v25, %v2842_v21  ;;  %v2908_v28 = vadd.f32 %v2907_v24, %v2906_v60  ;;  %v2845_v29 = vpop.f32.mrb[78].mxu1  ;;  %v2909_v31 = vpop.f32.mrb[78].mxu0 }
 0x190   :  { %v2846_v34 = vpop.f32.mrb[79].mxu1  ;;  %v2910_v55 = vpop.f32.mrb[79].mxu0 }
 0x191   :  { %v1987_v14 = vadd.f32 %v2844_v15, %v4150_v43  ;;  %v2847_v35 = vadd.f32 %v2846_v34, %v2845_v29  ;;  %v2911_v36 = vadd.f32 %v2910_v55, %v2909_v31 }
 0x193   :  { %v4197_v39 = vadd.f32 %v2908_v28, %v1987_v14  ;;  %v1990_v56 = vadd.f32 %v2847_v35, %v4152_v17  ;;  %v4206_v17 = vld [vmem:[%s4311_s3] ss:$0 sm:$0xff] }
 0x195   :  { %v4200_v40 = vadd.f32 %v2911_v36, %v1990_v56  ;;  %v2928_v42 = vpop.f32.mrb[80].mxu1  ;;  %v2992_v41 = vpop.f32.mrb[80].mxu0 }
 0x196   :  { %v2929_v44 = vpop.f32.mrb[81].mxu1  ;;  %v2993_v46 = vpop.f32.mrb[81].mxu0 }
 0x197   :  { %v2930_v33 = vadd.f32 %v2929_v44, %v2928_v42  ;;  %v2994_v47 = vadd.f32 %v2993_v46, %v2992_v41  ;;  %v2931_v50 = vpop.f32.mrb[82].mxu1  ;;  %v2995_v38 = vpop.f32.mrb[82].mxu0 }
 0x198   :  { %v2932_v53 = vpop.f32.mrb[83].mxu1  ;;  %v2996_v61 = vpop.f32.mrb[83].mxu0 }
 0x199   :  { %v2125_v43 = vadd.f32 %v2930_v33, %v4155_v49  ;;  %v2933_v57 = vadd.f32 %v2932_v53, %v2931_v50  ;;  %v2997_v58 = vadd.f32 %v2996_v61, %v2995_v38 }
 0x19b   :  { %v2222_v62 = vadd.f32 %v2994_v47, %v2125_v43  ;;  %v2128_v3 = vadd.f32 %v2933_v57, %v4158_v32 }
 0x19d   :  { %v2291_v63 = vmul.f32 %v4206_v17, %v2222_v62  ;;  %v2225_v48 = vadd.f32 %v2997_v58, %v2128_v3  ;;  %v2934_v10 = vpop.f32.mrb[84].mxu1  ;;  %v2998_v49 = vpop.f32.mrb[84].mxu0 }
 0x19e   :  { %v2935_v59 = vpop.f32.mrb[85].mxu1  ;;  %v2999_v5 = vpop.f32.mrb[85].mxu0 }
 0x19f   :  { %v2314_v6 = vadd.f32 %v4212_v54, %v2291_v63  ;;  %v2292_v0 = vmul.f32 %v4206_v17, %v2225_v48  ;;  %v2936_v11 = vadd.f32 %v2935_v59, %v2934_v10  ;;  %v3000_v12 = vadd.f32 %v2999_v5, %v2998_v49  ;;  %v2937_v13 = vpop.f32.mrb[86].mxu1  ;;  %v3001_v32 = vpop.f32.mrb[86].mxu0 }
 0x1a0   :  { %v2938_v16 = vpop.f32.mrb[87].mxu1  ;;  %v3002_v18 = vpop.f32.mrb[87].mxu0 }
 0x1a1   :  { %v2330_v19 = vmax.f32 %v2314_v6, 0.0  ;;  %v2315_v2 = vadd.f32 %v4212_v54, %v2292_v0  ;;  %v2133_v20 = vadd.f32 %v2936_v11, %v4161_v51  ;;  %v2939_v9 = vadd.f32 %v2938_v16, %v2937_v13 }
 0x1a2   :  { %v3003_v30 = vadd.f32 %v3002_v18, %v3001_v32 }
 0x1a3   :  { %2346 = vst [vmem:[%s4313_s5] sm:$0xff] %v2330_v19  ;;  %v2331_v21 = vmax.f32 %v2315_v2, 0.0  ;;  %v2230_v60 = vadd.f32 %v3000_v12, %v2133_v20  ;;  %v2136_v25 = vadd.f32 %v2939_v9, %v4164_v52 }
 0x1a5   :  { %2347 = vst [vmem:[%s4313_s5 + $0x8] sm:$0xff] %v2331_v21  ;;  %v2293_v24 = vmul.f32 %v4206_v17, %v2230_v60  ;;  %v2233_v15 = vadd.f32 %v3003_v30, %v2136_v25  ;;  %v2940_v28 = vpop.f32.mrb[88].mxu1  ;;  %v3004_v29 = vpop.f32.mrb[88].mxu0 }
 0x1a6   :  { %v2941_v51 = vpop.f32.mrb[89].mxu1  ;;  %v3005_v31 = vpop.f32.mrb[89].mxu0 }
 0x1a7   :  { %v2316_v34 = vadd.f32 %v4212_v54, %v2293_v24  ;;  %v2294_v55 = vmul.f32 %v4206_v17, %v2233_v15  ;;  %v2942_v14 = vadd.f32 %v2941_v51, %v2940_v28  ;;  %v3006_v35 = vadd.f32 %v3005_v31, %v3004_v29  ;;  %v2943_v36 = vpop.f32.mrb[90].mxu1  ;;  %v3007_v56 = vpop.f32.mrb[90].mxu0 }
 0x1a8   :  { %v2944_v52 = vpop.f32.mrb[91].mxu1  ;;  %v3008_v42 = vpop.f32.mrb[91].mxu0 }
 0x1a9   :  { %v2332_v41 = vmax.f32 %v2316_v34, 0.0  ;;  %v2317_v44 = vadd.f32 %v4212_v54, %v2294_v55  ;;  %v2141_v46 = vadd.f32 %v2942_v14, %v4167_v7  ;;  %v2945_v33 = vadd.f32 %v2944_v52, %v2943_v36 }
 0x1aa   :  { %v3009_v47 = vadd.f32 %v3008_v42, %v3007_v56 }
 0x1ab   :  { %2348 = vst [vmem:[%s4313_s5 + $0x10] sm:$0xff] %v2332_v41  ;;  %v2333_v50 = vmax.f32 %v2317_v44, 0.0  ;;  %v2238_v38 = vadd.f32 %v3006_v35, %v2141_v46  ;;  %v2144_v53 = vadd.f32 %v2945_v33, %v4170_v37 }
 0x1ad   :  { %2349 = vst [vmem:[%s4313_s5 + $0x18] sm:$0xff] %v2333_v50  ;;  %v2295_v61 = vmul.f32 %v4206_v17, %v2238_v38  ;;  %v2241_v43 = vadd.f32 %v3009_v47, %v2144_v53  ;;  %v2946_v57 = vpop.f32.mrb[92].mxu1  ;;  %v3010_v58 = vpop.f32.mrb[92].mxu0 }
 0x1ae   :  { %v2947_v7 = vpop.f32.mrb[93].mxu1  ;;  %v3011_v62 = vpop.f32.mrb[93].mxu0 }
 0x1af   :  { %v2318_v3 = vadd.f32 %v4212_v54, %v2295_v61  ;;  %v2296_v63 = vmul.f32 %v4206_v17, %v2241_v43  ;;  %v2948_v48 = vadd.f32 %v2947_v7, %v2946_v57  ;;  %v3012_v10 = vadd.f32 %v3011_v62, %v3010_v58  ;;  %v2949_v49 = vpop.f32.mrb[94].mxu1  ;;  %v3013_v59 = vpop.f32.mrb[94].mxu0 }
 0x1b0   :  { %v2950_v37 = vpop.f32.mrb[95].mxu1  ;;  %v3014_v5 = vpop.f32.mrb[95].mxu0 }
 0x1b1   :  { %v2334_v6 = vmax.f32 %v2318_v3, 0.0  ;;  %v2319_v0 = vadd.f32 %v4212_v54, %v2296_v63  ;;  %v2149_v11 = vadd.f32 %v2948_v48, %v4173_v26  ;;  %v2951_v12 = vadd.f32 %v2950_v37, %v2949_v49 }
 0x1b2   :  { %v3015_v13 = vadd.f32 %v3014_v5, %v3013_v59 }
 0x1b3   :  { %2350 = vst [vmem:[%s4313_s5 + $0x20] sm:$0xff] %v2334_v6  ;;  %v2335_v32 = vmax.f32 %v2319_v0, 0.0  ;;  %v2246_v16 = vadd.f32 %v3012_v10, %v2149_v11  ;;  %v2152_v18 = vadd.f32 %v2951_v12, %v4176_v27 }
 0x1b5   :  { %2351 = vst [vmem:[%s4313_s5 + $0x28] sm:$0xff] %v2335_v32  ;;  %v2297_v19 = vmul.f32 %v4206_v17, %v2246_v16  ;;  %v2249_v2 = vadd.f32 %v3015_v13, %v2152_v18  ;;  %v2952_v20 = vpop.f32.mrb[96].mxu1  ;;  %v3016_v9 = vpop.f32.mrb[96].mxu0 }
 0x1b6   :  { %v2953_v26 = vpop.f32.mrb[97].mxu1  ;;  %v3017_v30 = vpop.f32.mrb[97].mxu0 }
 0x1b7   :  { %v2320_v21 = vadd.f32 %v4212_v54, %v2297_v19  ;;  %v2298_v60 = vmul.f32 %v4206_v17, %v2249_v2  ;;  %v2954_v25 = vadd.f32 %v2953_v26, %v2952_v20  ;;  %v3018_v24 = vadd.f32 %v3017_v30, %v3016_v9  ;;  %v2955_v15 = vpop.f32.mrb[98].mxu1  ;;  %v3019_v28 = vpop.f32.mrb[98].mxu0 }
 0x1b8   :  { %v2956_v27 = vpop.f32.mrb[99].mxu1  ;;  %v3020_v29 = vpop.f32.mrb[99].mxu0 }
 0x1b9   :  { %v2336_v51 = vmax.f32 %v2320_v21, 0.0  ;;  %v2321_v31 = vadd.f32 %v4212_v54, %v2298_v60  ;;  %v2157_v34 = vadd.f32 %v2954_v25, %v4179_v45  ;;  %v2957_v55 = vadd.f32 %v2956_v27, %v2955_v15 }
 0x1ba   :  { %v3021_v14 = vadd.f32 %v3020_v29, %v3019_v28 }
 0x1bb   :  { %2352 = vst [vmem:[%s4313_s5 + $0x30] sm:$0xff] %v2336_v51  ;;  %v2337_v35 = vmax.f32 %v2321_v31, 0.0  ;;  %v2254_v36 = vadd.f32 %v3018_v24, %v2157_v34  ;;  %v2160_v56 = vadd.f32 %v2957_v55, %v4182_v8 }
 0x1bd   :  { %2353 = vst [vmem:[%s4313_s5 + $0x38] sm:$0xff] %v2337_v35  ;;  %v2299_v52 = vmul.f32 %v4206_v17, %v2254_v36  ;;  %v2257_v42 = vadd.f32 %v3021_v14, %v2160_v56  ;;  %v2958_v41 = vpop.f32.mrb[100].mxu1  ;;  %v3022_v44 = vpop.f32.mrb[100].mxu0 }
 0x1be   :  { %v2959_v45 = vpop.f32.mrb[101].mxu1  ;;  %v3023_v46 = vpop.f32.mrb[101].mxu0 }
 0x1bf   :  { %v2322_v33 = vadd.f32 %v4212_v54, %v2299_v52  ;;  %v2300_v47 = vmul.f32 %v4206_v17, %v2257_v42  ;;  %v2960_v50 = vadd.f32 %v2959_v45, %v2958_v41  ;;  %v3024_v38 = vadd.f32 %v3023_v46, %v3022_v44  ;;  %v2961_v53 = vpop.f32.mrb[102].mxu1  ;;  %v3025_v61 = vpop.f32.mrb[102].mxu0 }
 0x1c0   :  { %v2962_v8 = vpop.f32.mrb[103].mxu1  ;;  %v3026_v43 = vpop.f32.mrb[103].mxu0 }
 0x1c1   :  { %v2338_v57 = vmax.f32 %v2322_v33, 0.0  ;;  %v2323_v58 = vadd.f32 %v4212_v54, %v2300_v47  ;;  %v2165_v7 = vadd.f32 %v2960_v50, %v4185_v1  ;;  %v2963_v62 = vadd.f32 %v2962_v8, %v2961_v53 }
 0x1c2   :  { %v3027_v3 = vadd.f32 %v3026_v43, %v3025_v61 }
 0x1c3   :  { %2354 = vst [vmem:[%s4313_s5 + $0x40] sm:$0xff] %v2338_v57  ;;  %v2339_v63 = vmax.f32 %v2323_v58, 0.0  ;;  %v2262_v48 = vadd.f32 %v3024_v38, %v2165_v7  ;;  %v2168_v10 = vadd.f32 %v2963_v62, %v4188_v4 }
 0x1c5   :  { %2355 = vst [vmem:[%s4313_s5 + $0x48] sm:$0xff] %v2339_v63  ;;  %v2301_v49 = vmul.f32 %v4206_v17, %v2262_v48  ;;  %v2265_v59 = vadd.f32 %v3027_v3, %v2168_v10  ;;  %v2964_v37 = vpop.f32.mrb[104].mxu1  ;;  %v3028_v5 = vpop.f32.mrb[104].mxu0 }
 0x1c6   :  { %v2965_v1 = vpop.f32.mrb[105].mxu1  ;;  %v3029_v6 = vpop.f32.mrb[105].mxu0 }
 0x1c7   :  { %v2324_v0 = vadd.f32 %v4212_v54, %v2301_v49  ;;  %v2302_v11 = vmul.f32 %v4206_v17, %v2265_v59  ;;  %v2966_v12 = vadd.f32 %v2965_v1, %v2964_v37  ;;  %v3030_v13 = vadd.f32 %v3029_v6, %v3028_v5  ;;  %v2967_v32 = vpop.f32.mrb[106].mxu1  ;;  %v3031_v16 = vpop.f32.mrb[106].mxu0 }
 0x1c8   :  { %v2968_v4 = vpop.f32.mrb[107].mxu1  ;;  %v3032_v18 = vpop.f32.mrb[107].mxu0 }
 0x1c9   :  { %v2340_v19 = vmax.f32 %v2324_v0, 0.0  ;;  %v2325_v2 = vadd.f32 %v4212_v54, %v2302_v11  ;;  %v2173_v20 = vadd.f32 %v2966_v12, %v4191_v22  ;;  %v2969_v9 = vadd.f32 %v2968_v4, %v2967_v32 }
 0x1ca   :  { %v3033_v26 = vadd.f32 %v3032_v18, %v3031_v16 }
 0x1cb   :  { %2356 = vst [vmem:[%s4313_s5 + $0x50] sm:$0xff] %v2340_v19  ;;  %v2341_v30 = vmax.f32 %v2325_v2, 0.0  ;;  %v2270_v21 = vadd.f32 %v3030_v13, %v2173_v20  ;;  %v2176_v60 = vadd.f32 %v2969_v9, %v4194_v23 }
 0x1cd   :  { %2357 = vst [vmem:[%s4313_s5 + $0x58] sm:$0xff] %v2341_v30  ;;  %v2303_v25 = vmul.f32 %v4206_v17, %v2270_v21  ;;  %v2273_v24 = vadd.f32 %v3033_v26, %v2176_v60  ;;  %v2970_v15 = vpop.f32.mrb[108].mxu1  ;;  %v3034_v28 = vpop.f32.mrb[108].mxu0 }
 0x1ce   :  { %v2971_v22 = vpop.f32.mrb[109].mxu1  ;;  %v3035_v27 = vpop.f32.mrb[109].mxu0 }
 0x1cf   :  { %v2326_v29 = vadd.f32 %v4212_v54, %v2303_v25  ;;  %v2304_v51 = vmul.f32 %v4206_v17, %v2273_v24  ;;  %v2972_v31 = vadd.f32 %v2971_v22, %v2970_v15  ;;  %v3036_v34 = vadd.f32 %v3035_v27, %v3034_v28  ;;  %v2973_v55 = vpop.f32.mrb[110].mxu1  ;;  %v3037_v14 = vpop.f32.mrb[110].mxu0 }
 0x1d0   :  { %v2974_v23 = vpop.f32.mrb[111].mxu1  ;;  %v3038_v35 = vpop.f32.mrb[111].mxu0 }
 0x1d1   :  { %v2342_v36 = vmax.f32 %v2326_v29, 0.0  ;;  %v2327_v56 = vadd.f32 %v4212_v54, %v2304_v51  ;;  %v2181_v52 = vadd.f32 %v2972_v31, %v4197_v39  ;;  %v2975_v42 = vadd.f32 %v2974_v23, %v2973_v55 }
 0x1d2   :  { %v3039_v41 = vadd.f32 %v3038_v35, %v3037_v14 }
 0x1d3   :  { %2358 = vst [vmem:[%s4313_s5 + $0x60] sm:$0xff] %v2342_v36  ;;  %v2343_v44 = vmax.f32 %v2327_v56, 0.0  ;;  %v2278_v45 = vadd.f32 %v3036_v34, %v2181_v52  ;;  %v2184_v46 = vadd.f32 %v2975_v42, %v4200_v40 }
 0x1d5   :  { %2359 = vst [vmem:[%s4313_s5 + $0x68] sm:$0xff] %v2343_v44  ;;  %v2305_v33 = vmul.f32 %v4206_v17, %v2278_v45  ;;  %v2281_v47 = vadd.f32 %v3039_v41, %v2184_v46 }
 0x1d7   :  { %v2328_v50 = vadd.f32 %v4212_v54, %v2305_v33  ;;  %v2306_v39 = vmul.f32 %v4206_v17, %v2281_v47 }
 0x1d9   :  { %v2344_v38 = vmax.f32 %v2328_v50, 0.0  ;;  %v2329_v53 = vadd.f32 %v4212_v54, %v2306_v39 }
 0x1db   :  { %2360 = vst [vmem:[%s4313_s5 + $0x70] sm:$0xff] %v2344_v38  ;;  %v2345_v61 = vmax.f32 %v2329_v53, 0.0 }
 0x1dd   :  { %2361 = vst [vmem:[%s4313_s5 + $0x78] sm:$0xff] %v2345_v61 }

// kernel: imnet_forward.12
= control target key start
LH: loop header
LB: loop body
LE: loop exit
PB: predicated region body
PF: predicated region fallthrough
CT: control target
= control target key end

     0   :  { %v206_v0 = vmov 0.0   ;;  %vm207_vm0 = vmmov 0   ;;  %s272_s1 = inlined_call_operand.vmem [shape: bf16[128,128], index: 1, kind: input, shape index: {}]   ;;  %s273_s0 = inlined_call_operand.vmem [shape: bf16[16,128], index: 0, kind: input, shape index: {}]   ;;  %s274_s2 = inlined_call_operand.vmem [shape: f32[1,128], index: 2, kind: input, shape index: {}]   ;;  %s275_s3 = inlined_call_operand.vmem [shape: f32[1,128], index: 3, kind: input, shape index: {}]   ;;  %s276_s4 = inlined_call_operand.vmem [shape: f32[16,128], index: 4, kind: output, shape index: {}]  }
   0x1   :  { %175 = vmatprep.subr.bf16.mxu0 %v206_v0  ;;  %v197_v1 = vld [vmem:[%s272_s1] sm:$0xff]   ;;  %191 = vmatprep.mubr.msk.bf16.mxu0 %vm207_vm0, %v206_v0  ;;  %v198_v2 = vld [vmem:[%s272_s1 + $0x8] sm:$0xff]   ;;  %v199_v3 = vld [vmem:[%s272_s1 + $0x10] sm:$0xff]  }
   0x2   :  { %176 = vmatpush3.bf16.msra.mxu0 %v197_v1  ;;  %v200_v4 = vld [vmem:[%s272_s1 + $0x18] sm:$0xff]   ;;  %v201_v5 = vld [vmem:[%s272_s1 + $0x20] sm:$0xff]   ;;  %v202_v6 = vld [vmem:[%s272_s1 + $0x28] sm:$0xff]  }
   0x3   :  { %177 = vmatprep.subr.bf16.mxu0 %v206_v0  ;;  %v203_v7 = vld [vmem:[%s272_s1 + $0x30] sm:$0xff]   ;;  %v204_v8 = vld [vmem:[%s272_s1 + $0x38] sm:$0xff]   ;;  %v205_v9 = vld [vmem:[%s273_s0] sm:$0xff]  }
   0x4   :  { %v164_v10 = vld [vmem:[%s274_s2] ss:$0 sm:$0xff] }
   0x5   :  { %v165_v12 = vld [vmem:[%s275_s3] ss:$0 sm:$0xff] }
   0x6   :  { %178 = vmatpush3.bf16.msra.mxu0 %v198_v2 }
   0x7   :  { %179 = vmatprep.subr.bf16.mxu0 %v206_v0 }
   0xa   :  { %180 = vmatpush3.bf16.msra.mxu0 %v199_v3 }
   0xb   :  { %181 = vmatprep.subr.bf16.mxu0 %v206_v0 }
   0xe   :  { %182 = vmatpush3.bf16.msra.mxu0 %v200_v4 }
   0xf   :  { %183 = vmatprep.subr.bf16.mxu0 %v206_v0 }
  0x12   :  { %184 = vmatpush3.bf16.msra.mxu0 %v201_v5 }
  0x13   :  { %185 = vmatprep.subr.bf16.mxu0 %v206_v0 }
  0x16   :  { %186 = vmatpush3.bf16.msra.mxu0 %v202_v6 }
  0x17   :  { %187 = vmatprep.subr.bf16.mxu0 %v206_v0 }
  0x1a   :  { %188 = vmatpush3.bf16.msra.mxu0 %v203_v7 }
  0x1b   :  { %189 = vmatprep.subr.bf16.mxu0 %v206_v0 }
  0x1e   :  { %190 = vmatpush3.bf16.msra.mxu0 %v204_v8 }
  0x21   :  { %192 = vmatmul.mubr.bf16.vlgmr.msra.gmra.mrb[0].mxu0 %v205_v9 }
  0xf4   :  { %v124_v11 = vpop.f32.mrb[0].mxu0 }
  0xf5   :  { %v138_v13 = vmul.f32 %v164_v10, %v124_v11  ;;  %v193_v14 = vpop.f32.mrb[1].mxu0 }
  0xf6   :  { %v127_v15 = vpop.f32.mrb[2].mxu0 }
  0xf7   :  { %v147_v16 = vadd.f32 %v165_v12, %v138_v13  ;;  %v139_v17 = vmul.f32 %v164_v10, %v127_v15  ;;  %v194_v18 = vpop.f32.mrb[3].mxu0 }
  0xf9   :  { %149 = vst [vmem:[%s276_s4] sm:$0xff] %v147_v16  ;;  %v148_v19 = vadd.f32 %v165_v12, %v139_v17 }
  0xfb   :  { %150 = vst [vmem:[%s276_s4 + $0x8] sm:$0xff] %v148_v19 }

// kernel: imnet_forward.11
= control target key start
LH: loop header
LB: loop body
LE: loop exit
PB: predicated region body
PF: predicated region fallthrough
CT: control target
= control target key end

     0   :  { %s2141_s1 = inlined_call_operand.vmem [shape: bf16[1792,128], index: 1, kind: input, shape index: {}]   ;;  %s2142_s0 = inlined_call_operand.vmem [shape: bf16[16,1792], index: 0, kind: input, shape index: {}]   ;;  %s2143_s2 = inlined_call_operand.vmem [shape: f32[1,128], index: 2, kind: input, shape index: {}]   ;;  %s2144_s3 = inlined_call_operand.vmem [shape: f32[1,128], index: 3, kind: input, shape index: {}]   ;;  %s2145_s4 = inlined_call_operand.vmem [shape: f32[16,128], index: 4, kind: output, shape index: {}]  }
   0x1   :  { %v1593_v0 = vld [vmem:[%s2141_s1 + $0x40] sm:$0xff]   ;;  %v1597_v4 = vld [vmem:[%s2141_s1 + $0x48] sm:$0xff]   ;;  %v1601_v8 = vld [vmem:[%s2141_s1 + $0x50] sm:$0xff]  }
   0x2   :  { %v1594_v1 = vld [vmem:[%s2141_s1 + $0xc0] sm:$0xff]   ;;  %1439 = vmatprep.subr.bf16.mxu0 %v1593_v0  ;;  %v1598_v5 = vld [vmem:[%s2141_s1 + $0xc8] sm:$0xff]   ;;  %v1602_v9 = vld [vmem:[%s2141_s1 + $0xd0] sm:$0xff]  }
   0x3   :  { %v1595_v2 = vld [vmem:[%s2141_s1] sm:$0xff]   ;;  %1461 = vmatprep.subr.bf16.mxu1 %v1594_v1  ;;  %v1599_v6 = vld [vmem:[%s2141_s1 + $0x8] sm:$0xff]   ;;  %v1603_v10 = vld [vmem:[%s2141_s1 + $0x10] sm:$0xff]  }
   0x4   :  { %v1596_v3 = vld [vmem:[%s2141_s1 + $0x80] sm:$0xff]   ;;  %1440 = vmatpush3.bf16.msra.mxu0 %v1595_v2  ;;  %v1600_v7 = vld [vmem:[%s2141_s1 + $0x88] sm:$0xff]   ;;  %v1604_v11 = vld [vmem:[%s2141_s1 + $0x90] sm:$0xff]  }
   0x5   :  { %1462 = vmatpush3.bf16.msra.mxu1 %v1596_v3  ;;  %1441 = vmatprep.subr.bf16.mxu0 %v1597_v4  ;;  %v1605_v12 = vld [vmem:[%s2141_s1 + $0x58] sm:$0xff]   ;;  %v1609_v16 = vld [vmem:[%s2141_s1 + $0x60] sm:$0xff]   ;;  %v1613_v20 = vld [vmem:[%s2141_s1 + $0x68] sm:$0xff]  }
   0x6   :  { %1463 = vmatprep.subr.bf16.mxu1 %v1598_v5  ;;  %v1606_v13 = vld [vmem:[%s2141_s1 + $0xd8] sm:$0xff]   ;;  %v1610_v17 = vld [vmem:[%s2141_s1 + $0xe0] sm:$0xff]   ;;  %v1614_v21 = vld [vmem:[%s2141_s1 + $0xe8] sm:$0xff]  }
   0x7   :  { %v1607_v14 = vld [vmem:[%s2141_s1 + $0x18] sm:$0xff]   ;;  %v1611_v18 = vld [vmem:[%s2141_s1 + $0x20] sm:$0xff]   ;;  %v1615_v22 = vld [vmem:[%s2141_s1 + $0x28] sm:$0xff]  }
   0x8   :  { %1442 = vmatpush3.bf16.msra.mxu0 %v1599_v6  ;;  %v1608_v15 = vld [vmem:[%s2141_s1 + $0x98] sm:$0xff]   ;;  %v1612_v19 = vld [vmem:[%s2141_s1 + $0xa0] sm:$0xff]   ;;  %v1616_v23 = vld [vmem:[%s2141_s1 + $0xa8] sm:$0xff]  }
   0x9   :  { %1464 = vmatpush3.bf16.msra.mxu1 %v1600_v7  ;;  %1443 = vmatprep.subr.bf16.mxu0 %v1601_v8  ;;  %v1617_v24 = vld [vmem:[%s2141_s1 + $0x70] sm:$0xff]   ;;  %v1621_v28 = vld [vmem:[%s2141_s1 + $0x78] sm:$0xff]   ;;  %v1628_v34 = vld [vmem:[%s2142_s0 + $0x8] ss:$56 sps:$4 sm:$0xff]  }
   0xa   :  { %1465 = vmatprep.subr.bf16.mxu1 %v1602_v9  ;;  %v1618_v25 = vld [vmem:[%s2141_s1 + $0xf0] sm:$0xff]   ;;  %v1622_v29 = vld [vmem:[%s2141_s1 + $0xf8] sm:$0xff]   ;;  %v1630_v35 = vld [vmem:[%s2142_s0 + $0xc] ss:$56 sps:$4 sm:$0xff]  }
   0xb   :  { %v1619_v26 = vld [vmem:[%s2141_s1 + $0x30] sm:$0xff]   ;;  %v1623_v30 = vld [vmem:[%s2141_s1 + $0x38] sm:$0xff]   ;;  %v1631_v36 = vld [vmem:[%s2141_s1 + $0x140] sm:$0xff]   ;;  %1071 = vmatprep.mubr.bf16.mxu1 %v1630_v35 }
   0xc   :  { %1444 = vmatpush3.bf16.msra.mxu0 %v1603_v10  ;;  %v1620_v27 = vld [vmem:[%s2141_s1 + $0xb0] sm:$0xff]   ;;  %v1624_v31 = vld [vmem:[%s2141_s1 + $0xb8] sm:$0xff]   ;;  %v1632_v37 = vld [vmem:[%s2141_s1 + $0x100] sm:$0xff]  }
   0xd   :  { %1466 = vmatpush3.bf16.msra.mxu1 %v1604_v11  ;;  %1445 = vmatprep.subr.bf16.mxu0 %v1605_v12  ;;  %v1625_v32 = vld [vmem:[%s2142_s0] ss:$56 sps:$4 sm:$0xff]   ;;  %v1627_v33 = vld [vmem:[%s2142_s0 + $0x4] ss:$56 sps:$4 sm:$0xff]   ;;  %v1635_v40 = vld [vmem:[%s2141_s1 + $0x148] sm:$0xff]  }
   0xe   :  { %1467 = vmatprep.subr.bf16.mxu1 %v1606_v13  ;;  %1030 = vmatprep.mubr.bf16.mxu0 %v1627_v33  ;;  %v1633_v38 = vld [vmem:[%s2141_s1 + $0x1c0] sm:$0xff]   ;;  %v1636_v41 = vld [vmem:[%s2141_s1 + $0x108] sm:$0xff]   ;;  %v1639_v44 = vld [vmem:[%s2141_s1 + $0x150] sm:$0xff]  }
   0xf   :  { %v1634_v39 = vld [vmem:[%s2141_s1 + $0x180] sm:$0xff]   ;;  %v1637_v42 = vld [vmem:[%s2141_s1 + $0x1c8] sm:$0xff]   ;;  %v1640_v45 = vld [vmem:[%s2141_s1 + $0x110] sm:$0xff]  }
  0x10   :  { %1446 = vmatpush3.bf16.msra.mxu0 %v1607_v14  ;;  %v1638_v43 = vld [vmem:[%s2141_s1 + $0x188] sm:$0xff]   ;;  %v1641_v46 = vld [vmem:[%s2141_s1 + $0x1d0] sm:$0xff]   ;;  %v1643_v48 = vld [vmem:[%s2141_s1 + $0x158] sm:$0xff]  }
  0x11   :  { %1468 = vmatpush3.bf16.msra.mxu1 %v1608_v15  ;;  %1447 = vmatprep.subr.bf16.mxu0 %v1609_v16  ;;  %v1642_v47 = vld [vmem:[%s2141_s1 + $0x190] sm:$0xff]   ;;  %v1644_v49 = vld [vmem:[%s2141_s1 + $0x118] sm:$0xff]   ;;  %v1647_v52 = vld [vmem:[%s2141_s1 + $0x160] sm:$0xff]  }
  0x12   :  { %1469 = vmatprep.subr.bf16.mxu1 %v1610_v17  ;;  %v1645_v50 = vld [vmem:[%s2141_s1 + $0x1d8] sm:$0xff]   ;;  %v1648_v53 = vld [vmem:[%s2141_s1 + $0x120] sm:$0xff]   ;;  %v1651_v56 = vld [vmem:[%s2141_s1 + $0x168] sm:$0xff]  }
  0x13   :  { %v1646_v51 = vld [vmem:[%s2141_s1 + $0x198] sm:$0xff]   ;;  %v1649_v54 = vld [vmem:[%s2141_s1 + $0x1e0] sm:$0xff]   ;;  %v1652_v57 = vld [vmem:[%s2141_s1 + $0x128] sm:$0xff]  }
  0x14   :  { %1448 = vmatpush3.bf16.msra.mxu0 %v1611_v18  ;;  %v1650_v55 = vld [vmem:[%s2141_s1 + $0x1a0] sm:$0xff]   ;;  %v1653_v58 = vld [vmem:[%s2141_s1 + $0x1e8] sm:$0xff]   ;;  %v1655_v60 = vld [vmem:[%s2141_s1 + $0x170] sm:$0xff]  }
  0x15   :  { %1470 = vmatpush3.bf16.msra.mxu1 %v1612_v19  ;;  %1449 = vmatprep.subr.bf16.mxu0 %v1613_v20  ;;  %v1654_v59 = vld [vmem:[%s2141_s1 + $0x1a8] sm:$0xff]   ;;  %v1656_v61 = vld [vmem:[%s2141_s1 + $0x130] sm:$0xff]   ;;  %v1659_v0 = vld [vmem:[%s2141_s1 + $0x178] sm:$0xff]  }
  0x16   :  { %1471 = vmatprep.subr.bf16.mxu1 %v1614_v21  ;;  %v1657_v62 = vld [vmem:[%s2141_s1 + $0x1f0] sm:$0xff]   ;;  %v1660_v1 = vld [vmem:[%s2141_s1 + $0x138] sm:$0xff]   ;;  %v1666_v6 = vld [vmem:[%s2141_s1 + $0x240] sm:$0xff]  }
  0x17   :  { %v1658_v63 = vld [vmem:[%s2141_s1 + $0x1b0] sm:$0xff]   ;;  %v1661_v2 = vld [vmem:[%s2141_s1 + $0x1f8] sm:$0xff]   ;;  %v1670_v9 = vld [vmem:[%s2141_s1 + $0x200] sm:$0xff]  }
  0x18   :  { %1450 = vmatpush3.bf16.msra.mxu0 %v1615_v22  ;;  %v1662_v3 = vld [vmem:[%s2142_s0 + $0x10] ss:$56 sps:$4 sm:$0xff]   ;;  %v1664_v4 = vld [vmem:[%s2142_s0 + $0x14] ss:$56 sps:$4 sm:$0xff]   ;;  %v1665_v5 = vld [vmem:[%s2141_s1 + $0x1b8] sm:$0xff]  }
  0x19   :  { %1472 = vmatpush3.bf16.msra.mxu1 %v1616_v23  ;;  %1451 = vmatprep.subr.bf16.mxu0 %v1617_v24  ;;  %v1667_v7 = vld [vmem:[%s2142_s0 + $0x18] ss:$56 sps:$4 sm:$0xff]   ;;  %v1669_v8 = vld [vmem:[%s2142_s0 + $0x1c] ss:$56 sps:$4 sm:$0xff]   ;;  %v1671_v10 = vld [vmem:[%s2141_s1 + $0x2c0] sm:$0xff]  }
  0x1a   :  { %1473 = vmatprep.subr.bf16.mxu1 %v1618_v25  ;;  %v1672_v11 = vld [vmem:[%s2141_s1 + $0x280] sm:$0xff]   ;;  %v1673_v12 = vld [vmem:[%s2141_s1 + $0x248] sm:$0xff]   ;;  %v1677_v16 = vld [vmem:[%s2141_s1 + $0x250] sm:$0xff]  }
  0x1b   :  { %v1674_v13 = vld [vmem:[%s2141_s1 + $0x208] sm:$0xff]   ;;  %v1678_v17 = vld [vmem:[%s2141_s1 + $0x210] sm:$0xff]   ;;  %v1681_v20 = vld [vmem:[%s2141_s1 + $0x258] sm:$0xff]  }
  0x1c   :  { %1452 = vmatpush3.bf16.msra.mxu0 %v1619_v26  ;;  %v1675_v14 = vld [vmem:[%s2141_s1 + $0x2c8] sm:$0xff]   ;;  %v1679_v18 = vld [vmem:[%s2141_s1 + $0x2d0] sm:$0xff]   ;;  %v1682_v21 = vld [vmem:[%s2141_s1 + $0x218] sm:$0xff]  }
  0x1d   :  { %1474 = vmatpush3.bf16.msra.mxu1 %v1620_v27  ;;  %1453 = vmatprep.subr.bf16.mxu0 %v1621_v28  ;;  %v1676_v15 = vld [vmem:[%s2141_s1 + $0x288] sm:$0xff]   ;;  %v1680_v19 = vld [vmem:[%s2141_s1 + $0x290] sm:$0xff]   ;;  %v1683_v22 = vld [vmem:[%s2141_s1 + $0x2d8] sm:$0xff]  }
  0x1e   :  { %1475 = vmatprep.subr.bf16.mxu1 %v1622_v29  ;;  %v1684_v23 = vld [vmem:[%s2141_s1 + $0x298] sm:$0xff]   ;;  %v1685_v24 = vld [vmem:[%s2141_s1 + $0x260] sm:$0xff]   ;;  %v1689_v28 = vld [vmem:[%s2141_s1 + $0x268] sm:$0xff]  }
  0x1f   :  { %v1686_v25 = vld [vmem:[%s2141_s1 + $0x220] sm:$0xff]   ;;  %v1690_v29 = vld [vmem:[%s2141_s1 + $0x228] sm:$0xff]   ;;  %v1694_v33 = vld [vmem:[%s2141_s1 + $0x230] sm:$0xff]  }
  0x20   :  { %1454 = vmatpush3.bf16.msra.mxu0 %v1623_v30  ;;  %v1687_v26 = vld [vmem:[%s2141_s1 + $0x2e0] sm:$0xff]   ;;  %v1691_v30 = vld [vmem:[%s2141_s1 + $0x2e8] sm:$0xff]   ;;  %v1696_v35 = vld [vmem:[%s2141_s1 + $0x2b0] sm:$0xff]  }
  0x21   :  { %1476 = vmatpush3.bf16.msra.mxu1 %v1624_v31  ;;  %1483 = vmatprep.subr.bf16.mxu0 %v1631_v36  ;;  %v1688_v27 = vld [vmem:[%s2141_s1 + $0x2a0] sm:$0xff]   ;;  %v1692_v31 = vld [vmem:[%s2141_s1 + $0x2a8] sm:$0xff]   ;;  %v1697_v36 = vld [vmem:[%s2141_s1 + $0x278] sm:$0xff]  }
  0x22   :  { %1505 = vmatprep.subr.bf16.mxu1 %v1633_v38  ;;  %v1699_v38 = vld [vmem:[%s2141_s1 + $0x2f8] sm:$0xff]  }
  0x23   :  { %1031 = vmatmul.mubr.bf16.vlgmr.msra.gmra.mrb[0].mxu0 %v1625_v32  ;;  %v1693_v32 = vld [vmem:[%s2141_s1 + $0x270] sm:$0xff]  }
  0x24   :  { %1072 = vmatmul.mubr.bf16.vlgmr.msra.gmra.mrb[0].mxu1 %v1628_v34  ;;  %1484 = vmatpush3.bf16.msra.mxu0 %v1632_v37  ;;  %v1695_v34 = vld [vmem:[%s2141_s1 + $0x2f0] sm:$0xff]   ;;  %v1698_v37 = vld [vmem:[%s2141_s1 + $0x238] sm:$0xff]  }
  0x25   :  { %1506 = vmatpush3.bf16.msra.mxu1 %v1634_v39  ;;  %1485 = vmatprep.subr.bf16.mxu0 %v1635_v40  ;;  %v1700_v39 = vld [vmem:[%s2142_s0 + $0x20] ss:$56 sps:$4 sm:$0xff]   ;;  %v1702_v40 = vld [vmem:[%s2142_s0 + $0x24] ss:$56 sps:$4 sm:$0xff]  }
  0x26   :  { %1507 = vmatprep.subr.bf16.mxu1 %v1637_v42  ;;  %1112 = vmatprep.mubr.bf16.mxu0 %v1664_v4  ;;  %v1704_v42 = vld [vmem:[%s2141_s1 + $0x340] sm:$0xff]  }
  0x27   :  { %1153 = vmatprep.mubr.bf16.mxu1 %v1669_v8 }
  0x28   :  { %1486 = vmatpush3.bf16.msra.mxu0 %v1636_v41  ;;  %v1703_v41 = vld [vmem:[%s2141_s1 + $0x2b8] sm:$0xff]  }
  0x29   :  { %1508 = vmatpush3.bf16.msra.mxu1 %v1638_v43  ;;  %1487 = vmatprep.subr.bf16.mxu0 %v1639_v44  ;;  %v1705_v43 = vld [vmem:[%s2142_s0 + $0x28] ss:$56 sps:$4 sm:$0xff]   ;;  %v1707_v44 = vld [vmem:[%s2142_s0 + $0x2c] ss:$56 sps:$4 sm:$0xff]  }
  0x2a   :  { %1509 = vmatprep.subr.bf16.mxu1 %v1641_v46  ;;  %v1709_v46 = vld [vmem:[%s2141_s1 + $0x348] sm:$0xff]  }
  0x2c   :  { %1488 = vmatpush3.bf16.msra.mxu0 %v1640_v45  ;;  %v1708_v45 = vld [vmem:[%s2141_s1 + $0x300] sm:$0xff]  }
  0x2d   :  { %1510 = vmatpush3.bf16.msra.mxu1 %v1642_v47  ;;  %1489 = vmatprep.subr.bf16.mxu0 %v1643_v48  ;;  %v1710_v47 = vld [vmem:[%s2141_s1 + $0x308] sm:$0xff]   ;;  %v1711_v48 = vld [vmem:[%s2141_s1 + $0x350] sm:$0xff]  }
  0x2e   :  { %1511 = vmatprep.subr.bf16.mxu1 %v1645_v50  ;;  %v1713_v50 = vld [vmem:[%s2141_s1 + $0x358] sm:$0xff]  }
  0x30   :  { %1490 = vmatpush3.bf16.msra.mxu0 %v1644_v49  ;;  %v1712_v49 = vld [vmem:[%s2141_s1 + $0x310] sm:$0xff]  }
  0x31   :  { %1512 = vmatpush3.bf16.msra.mxu1 %v1646_v51  ;;  %1491 = vmatprep.subr.bf16.mxu0 %v1647_v52  ;;  %v1714_v51 = vld [vmem:[%s2141_s1 + $0x318] sm:$0xff]   ;;  %v1715_v52 = vld [vmem:[%s2141_s1 + $0x360] sm:$0xff]  }
  0x32   :  { %1513 = vmatprep.subr.bf16.mxu1 %v1649_v54  ;;  %v1717_v54 = vld [vmem:[%s2141_s1 + $0x368] sm:$0xff]  }
  0x34   :  { %1492 = vmatpush3.bf16.msra.mxu0 %v1648_v53  ;;  %v1716_v53 = vld [vmem:[%s2141_s1 + $0x320] sm:$0xff]  }
  0x35   :  { %1514 = vmatpush3.bf16.msra.mxu1 %v1650_v55  ;;  %1493 = vmatprep.subr.bf16.mxu0 %v1651_v56  ;;  %v1725_v55 = vld [vmem:[%s2142_s0 + $0x34] ss:$56 sps:$4 sm:$0xff]  }
  0x36   :  { %1515 = vmatprep.subr.bf16.mxu1 %v1653_v58  ;;  %v1718_v56 = vld [vmem:[%s2141_s1 + $0x328] sm:$0xff]   ;;  %v1720_v58 = vld [vmem:[%s2141_s1 + $0x330] sm:$0xff]  }
  0x38   :  { %1494 = vmatpush3.bf16.msra.mxu0 %v1652_v57  ;;  %v1719_v57 = vld [vmem:[%s2141_s1 + $0x370] sm:$0xff]  }
  0x39   :  { %1516 = vmatpush3.bf16.msra.mxu1 %v1654_v59  ;;  %1495 = vmatprep.subr.bf16.mxu0 %v1655_v60  ;;  %v1721_v59 = vld [vmem:[%s2141_s1 + $0x378] sm:$0xff]  }
  0x3a   :  { %1517 = vmatprep.subr.bf16.mxu1 %v1657_v62  ;;  %v1722_v60 = vld [vmem:[%s2141_s1 + $0x338] sm:$0xff]  }
  0x3c   :  { %1496 = vmatpush3.bf16.msra.mxu0 %v1656_v61  ;;  %v1723_v61 = vld [vmem:[%s2142_s0 + $0x30] ss:$56 sps:$4 sm:$0xff]  }
  0x3d   :  { %1518 = vmatpush3.bf16.msra.mxu1 %v1658_v63  ;;  %1497 = vmatprep.subr.bf16.mxu0 %v1659_v0 }
  0x3e   :  { %1519 = vmatprep.subr.bf16.mxu1 %v1661_v2 }
  0x40   :  { %1498 = vmatpush3.bf16.msra.mxu0 %v1660_v1 }
  0x41   :  { %1520 = vmatpush3.bf16.msra.mxu1 %v1665_v5  ;;  %1527 = vmatprep.subr.bf16.mxu0 %v1666_v6 }
  0x42   :  { %1549 = vmatprep.subr.bf16.mxu1 %v1671_v10 }
  0x43   :  { %1113 = vmatmul.mubr.bf16.vlgmr.msra.gmra.mrb[4].mxu0 %v1662_v3 }
  0x44   :  { %1528 = vmatpush3.bf16.msra.mxu0 %v1670_v9  ;;  %1154 = vmatmul.mubr.bf16.vlgmr.msra.gmra.mrb[4].mxu1 %v1667_v7 }
  0x45   :  { %1550 = vmatpush3.bf16.msra.mxu1 %v1672_v11  ;;  %1529 = vmatprep.subr.bf16.mxu0 %v1673_v12 }
  0x46   :  { %1551 = vmatprep.subr.bf16.mxu1 %v1675_v14  ;;  %1194 = vmatprep.mubr.bf16.mxu0 %v1702_v40 }
  0x47   :  { %1235 = vmatprep.mubr.bf16.mxu1 %v1707_v44 }
  0x48   :  { %1530 = vmatpush3.bf16.msra.mxu0 %v1674_v13 }
  0x49   :  { %1552 = vmatpush3.bf16.msra.mxu1 %v1676_v15  ;;  %1531 = vmatprep.subr.bf16.mxu0 %v1677_v16 }
  0x4a   :  { %1553 = vmatprep.subr.bf16.mxu1 %v1679_v18 }
  0x4c   :  { %1532 = vmatpush3.bf16.msra.mxu0 %v1678_v17 }
  0x4d   :  { %1554 = vmatpush3.bf16.msra.mxu1 %v1680_v19  ;;  %1533 = vmatprep.subr.bf16.mxu0 %v1681_v20 }
  0x4e   :  { %1555 = vmatprep.subr.bf16.mxu1 %v1683_v22 }
  0x50   :  { %1534 = vmatpush3.bf16.msra.mxu0 %v1682_v21 }
  0x51   :  { %1556 = vmatpush3.bf16.msra.mxu1 %v1684_v23  ;;  %1535 = vmatprep.subr.bf16.mxu0 %v1685_v24 }
  0x52   :  { %1557 = vmatprep.subr.bf16.mxu1 %v1687_v26 }
  0x54   :  { %1536 = vmatpush3.bf16.msra.mxu0 %v1686_v25 }
  0x55   :  { %1558 = vmatpush3.bf16.msra.mxu1 %v1688_v27  ;;  %1537 = vmatprep.subr.bf16.mxu0 %v1689_v28 }
  0x56   :  { %1559 = vmatprep.subr.bf16.mxu1 %v1691_v30 }
  0x58   :  { %1538 = vmatpush3.bf16.msra.mxu0 %v1690_v29 }
  0x59   :  { %1560 = vmatpush3.bf16.msra.mxu1 %v1692_v31  ;;  %1539 = vmatprep.subr.bf16.mxu0 %v1693_v32 }
  0x5a   :  { %1561 = vmatprep.subr.bf16.mxu1 %v1695_v34 }
  0x5c   :  { %1540 = vmatpush3.bf16.msra.mxu0 %v1694_v33 }
  0x5d   :  { %1562 = vmatpush3.bf16.msra.mxu1 %v1696_v35  ;;  %1541 = vmatprep.subr.bf16.mxu0 %v1697_v36 }
  0x5e   :  { %1563 = vmatprep.subr.bf16.mxu1 %v1699_v38 }
  0x60   :  { %1542 = vmatpush3.bf16.msra.mxu0 %v1698_v37 }
  0x61   :  { %1564 = vmatpush3.bf16.msra.mxu1 %v1703_v41  ;;  %1571 = vmatprep.subr.bf16.mxu0 %v1704_v42 }
  0x63   :  { %1195 = vmatmul.mubr.bf16.vlgmr.msra.gmra.mrb[8].mxu0 %v1700_v39 }
  0x64   :  { %1572 = vmatpush3.bf16.msra.mxu0 %v1708_v45  ;;  %1236 = vmatmul.mubr.bf16.vlgmr.msra.gmra.mrb[8].mxu1 %v1705_v43 }
  0x65   :  { %1573 = vmatprep.subr.bf16.mxu0 %v1709_v46  ;;  %1276 = vmatprep.mubr.bf16.mxu0 %v1725_v55 }
  0x68   :  { %1574 = vmatpush3.bf16.msra.mxu0 %v1710_v47 }
  0x69   :  { %1575 = vmatprep.subr.bf16.mxu0 %v1711_v48  ;;  %v1437_v48 = vld [vmem:[%s2143_s2] ss:$0 sm:$0xff] }
  0x6c   :  { %1576 = vmatpush3.bf16.msra.mxu0 %v1712_v49 }
  0x6d   :  { %1577 = vmatprep.subr.bf16.mxu0 %v1713_v50 }
  0x70   :  { %1578 = vmatpush3.bf16.msra.mxu0 %v1714_v51 }
  0x71   :  { %1579 = vmatprep.subr.bf16.mxu0 %v1715_v52  ;;  %v1438_v52 = vld [vmem:[%s2144_s3] ss:$0 sm:$0xff] }
  0x74   :  { %1580 = vmatpush3.bf16.msra.mxu0 %v1716_v53 }
  0x75   :  { %1581 = vmatprep.subr.bf16.mxu0 %v1717_v54 }
  0x78   :  { %1582 = vmatpush3.bf16.msra.mxu0 %v1718_v56 }
  0x79   :  { %1583 = vmatprep.subr.bf16.mxu0 %v1719_v57 }
  0x7c   :  { %1584 = vmatpush3.bf16.msra.mxu0 %v1720_v58 }
  0x7d   :  { %1585 = vmatprep.subr.bf16.mxu0 %v1721_v59 }
  0x80   :  { %1586 = vmatpush3.bf16.msra.mxu0 %v1722_v60 }
  0x83   :  { %1277 = vmatmul.mubr.bf16.vlgmr.msra.gmra.mrb[12].mxu0 %v1723_v61 }
  0xf6   :  { %v1455_v62 = vpop.f32.mrb[0].mxu0 }
  0xf7   :  { %v1477_v63 = vpop.f32.mrb[0].mxu1  ;;  %v1456_v0 = vpop.f32.mrb[1].mxu0 }
  0xf8   :  { %v1457_v1 = vadd.f32 %v1456_v0, %v1455_v62  ;;  %v1478_v2 = vpop.f32.mrb[1].mxu1  ;;  %v1458_v3 = vpop.f32.mrb[2].mxu0 }
  0xf9   :  { %v1479_v4 = vadd.f32 %v1478_v2, %v1477_v63  ;;  %v1480_v5 = vpop.f32.mrb[2].mxu1  ;;  %v1459_v6 = vpop.f32.mrb[3].mxu0 }
  0xfa   :  { %v1460_v7 = vadd.f32 %v1459_v6, %v1458_v3  ;;  %v1481_v8 = vpop.f32.mrb[3].mxu1 }
  0xfb   :  { %v1074_v9 = vadd.f32 %v1479_v4, %v1457_v1  ;;  %v1482_v10 = vadd.f32 %v1481_v8, %v1480_v5 }
  0xfd   :  { %v1077_v11 = vadd.f32 %v1482_v10, %v1460_v7 }
 0x116   :  { %v1499_v12 = vpop.f32.mrb[4].mxu0 }
 0x117   :  { %v1500_v13 = vpop.f32.mrb[5].mxu0  ;;  %v1521_v18 = vpop.f32.mrb[4].mxu1 }
 0x118   :  { %v1501_v14 = vadd.f32 %v1500_v13, %v1499_v12  ;;  %v1502_v15 = vpop.f32.mrb[6].mxu0  ;;  %v1522_v20 = vpop.f32.mrb[5].mxu1 }
 0x119   :  { %v1503_v16 = vpop.f32.mrb[7].mxu0  ;;  %v1523_v22 = vadd.f32 %v1522_v20, %v1521_v18  ;;  %v1524_v23 = vpop.f32.mrb[6].mxu1 }
 0x11a   :  { %v1115_v17 = vadd.f32 %v1501_v14, %v1074_v9  ;;  %v1504_v19 = vadd.f32 %v1503_v16, %v1502_v15  ;;  %v1525_v24 = vpop.f32.mrb[7].mxu1 }
 0x11b   :  { %v1526_v26 = vadd.f32 %v1525_v24, %v1524_v23 }
 0x11c   :  { %v1118_v21 = vadd.f32 %v1504_v19, %v1077_v11  ;;  %v1156_v25 = vadd.f32 %v1523_v22, %v1115_v17 }
 0x11e   :  { %v1159_v27 = vadd.f32 %v1526_v26, %v1118_v21 }
 0x136   :  { %v1543_v28 = vpop.f32.mrb[8].mxu0 }
 0x137   :  { %v1544_v29 = vpop.f32.mrb[9].mxu0  ;;  %v1565_v32 = vpop.f32.mrb[8].mxu1 }
 0x138   :  { %v1545_v30 = vadd.f32 %v1544_v29, %v1543_v28  ;;  %v1546_v31 = vpop.f32.mrb[10].mxu0  ;;  %v1566_v36 = vpop.f32.mrb[9].mxu1 }
 0x139   :  { %v1547_v33 = vpop.f32.mrb[11].mxu0  ;;  %v1567_v37 = vadd.f32 %v1566_v36, %v1565_v32  ;;  %v1568_v38 = vpop.f32.mrb[10].mxu1 }
 0x13a   :  { %v1197_v34 = vadd.f32 %v1545_v30, %v1156_v25  ;;  %v1548_v35 = vadd.f32 %v1547_v33, %v1546_v31  ;;  %v1569_v40 = vpop.f32.mrb[11].mxu1 }
 0x13b   :  { %v1570_v42 = vadd.f32 %v1569_v40, %v1568_v38 }
 0x13c   :  { %v1200_v39 = vadd.f32 %v1548_v35, %v1159_v27  ;;  %v1238_v41 = vadd.f32 %v1567_v37, %v1197_v34 }
 0x13e   :  { %v1241_v43 = vadd.f32 %v1570_v42, %v1200_v39 }
 0x156   :  { %v1587_v44 = vpop.f32.mrb[12].mxu0 }
 0x157   :  { %v1588_v45 = vpop.f32.mrb[13].mxu0 }
 0x158   :  { %v1589_v46 = vadd.f32 %v1588_v45, %v1587_v44  ;;  %v1590_v47 = vpop.f32.mrb[14].mxu0 }
 0x159   :  { %v1591_v49 = vpop.f32.mrb[15].mxu0 }
 0x15a   :  { %v1279_v50 = vadd.f32 %v1589_v46, %v1238_v41  ;;  %v1592_v51 = vadd.f32 %v1591_v49, %v1590_v47 }
 0x15c   :  { %v1292_v53 = vmul.f32 %v1437_v48, %v1279_v50  ;;  %v1282_v54 = vadd.f32 %v1592_v51, %v1241_v43 }
 0x15e   :  { %v1301_v55 = vadd.f32 %v1438_v52, %v1292_v53  ;;  %v1293_v56 = vmul.f32 %v1437_v48, %v1282_v54 }
 0x160   :  { %v1303_v57 = vmax.f32 %v1301_v55, 0.0  ;;  %v1302_v58 = vadd.f32 %v1438_v52, %v1293_v56 }
 0x162   :  { %1305 = vst [vmem:[%s2145_s4] sm:$0xff] %v1303_v57  ;;  %v1304_v59 = vmax.f32 %v1302_v58, 0.0 }
 0x164   :  { %1306 = vst [vmem:[%s2145_s4 + $0x8] sm:$0xff] %v1304_v59 }

// kernel: imnet_forward.13
= control target key start
LH: loop header
LB: loop body
LE: loop exit
PB: predicated region body
PF: predicated region fallthrough
CT: control target
= control target key end

     0   :  { %s2157_s1 = inlined_call_operand.vmem [shape: bf16[1792,128], index: 1, kind: input, shape index: {}]   ;;  %s2158_s0 = inlined_call_operand.vmem [shape: bf16[16,1792], index: 0, kind: input, shape index: {}]   ;;  %s2159_s2 = inlined_call_operand.vmem [shape: f32[16,128], index: 2, kind: input, shape index: {}]   ;;  %s2160_s3 = inlined_call_operand.vmem [shape: f32[1,128], index: 3, kind: input, shape index: {}]   ;;  %s2161_s4 = inlined_call_operand.vmem [shape: f32[1,128], index: 4, kind: input, shape index: {}]   ;;  %s2162_s5 = inlined_call_operand.vmem [shape: f32[16,128], index: 5, kind: output, shape index: {}]  }
   0x1   :  { %v1598_v0 = vld [vmem:[%s2157_s1 + $0x40] sm:$0xff]   ;;  %v1602_v4 = vld [vmem:[%s2157_s1 + $0x48] sm:$0xff]   ;;  %v1606_v8 = vld [vmem:[%s2157_s1 + $0x50] sm:$0xff]  }
   0x2   :  { %v1599_v1 = vld [vmem:[%s2157_s1] sm:$0xff]   ;;  %1444 = vmatprep.subr.bf16.mxu0 %v1598_v0  ;;  %v1603_v5 = vld [vmem:[%s2157_s1 + $0x8] sm:$0xff]   ;;  %v1607_v9 = vld [vmem:[%s2157_s1 + $0x10] sm:$0xff]  }
   0x3   :  { %v1600_v2 = vld [vmem:[%s2157_s1 + $0xc0] sm:$0xff]   ;;  %1445 = vmatpush3.bf16.msra.mxu0 %v1599_v1  ;;  %v1604_v6 = vld [vmem:[%s2157_s1 + $0xc8] sm:$0xff]   ;;  %v1608_v10 = vld [vmem:[%s2157_s1 + $0xd0] sm:$0xff]  }
   0x4   :  { %v1601_v3 = vld [vmem:[%s2157_s1 + $0x80] sm:$0xff]   ;;  %1466 = vmatprep.subr.bf16.mxu1 %v1600_v2  ;;  %1446 = vmatprep.subr.bf16.mxu0 %v1602_v4  ;;  %v1605_v7 = vld [vmem:[%s2157_s1 + $0x88] sm:$0xff]   ;;  %v1609_v11 = vld [vmem:[%s2157_s1 + $0x90] sm:$0xff]  }
   0x5   :  { %1467 = vmatpush3.bf16.msra.mxu1 %v1601_v3  ;;  %v1610_v12 = vld [vmem:[%s2157_s1 + $0x58] sm:$0xff]   ;;  %v1614_v16 = vld [vmem:[%s2157_s1 + $0x60] sm:$0xff]   ;;  %v1618_v20 = vld [vmem:[%s2157_s1 + $0x68] sm:$0xff]  }
   0x6   :  { %1468 = vmatprep.subr.bf16.mxu1 %v1604_v6  ;;  %v1611_v13 = vld [vmem:[%s2157_s1 + $0x18] sm:$0xff]   ;;  %v1615_v17 = vld [vmem:[%s2157_s1 + $0x20] sm:$0xff]   ;;  %v1619_v21 = vld [vmem:[%s2157_s1 + $0x28] sm:$0xff]  }
   0x7   :  { %1447 = vmatpush3.bf16.msra.mxu0 %v1603_v5  ;;  %v1612_v14 = vld [vmem:[%s2157_s1 + $0xd8] sm:$0xff]   ;;  %v1616_v18 = vld [vmem:[%s2157_s1 + $0xe0] sm:$0xff]   ;;  %v1620_v22 = vld [vmem:[%s2157_s1 + $0xe8] sm:$0xff]  }
   0x8   :  { %1448 = vmatprep.subr.bf16.mxu0 %v1606_v8  ;;  %v1613_v15 = vld [vmem:[%s2157_s1 + $0x98] sm:$0xff]   ;;  %v1617_v19 = vld [vmem:[%s2157_s1 + $0xa0] sm:$0xff]   ;;  %v1621_v23 = vld [vmem:[%s2157_s1 + $0xa8] sm:$0xff]  }
   0x9   :  { %1469 = vmatpush3.bf16.msra.mxu1 %v1605_v7  ;;  %v1622_v24 = vld [vmem:[%s2157_s1 + $0x70] sm:$0xff]   ;;  %v1626_v28 = vld [vmem:[%s2157_s1 + $0x78] sm:$0xff]   ;;  %v1633_v34 = vld [vmem:[%s2157_s1 + $0x140] sm:$0xff]  }
   0xa   :  { %1470 = vmatprep.subr.bf16.mxu1 %v1608_v10  ;;  %v1623_v25 = vld [vmem:[%s2157_s1 + $0x30] sm:$0xff]   ;;  %v1627_v29 = vld [vmem:[%s2157_s1 + $0x38] sm:$0xff]   ;;  %v1634_v35 = vld [vmem:[%s2158_s0 + $0x8] ss:$56 sps:$4 sm:$0xff]  }
   0xb   :  { %1449 = vmatpush3.bf16.msra.mxu0 %v1607_v9  ;;  %v1624_v26 = vld [vmem:[%s2157_s1 + $0xf0] sm:$0xff]   ;;  %v1628_v30 = vld [vmem:[%s2157_s1 + $0xf8] sm:$0xff]   ;;  %v1636_v36 = vld [vmem:[%s2158_s0 + $0xc] ss:$56 sps:$4 sm:$0xff]  }
   0xc   :  { %1450 = vmatprep.subr.bf16.mxu0 %v1610_v12  ;;  %v1625_v27 = vld [vmem:[%s2157_s1 + $0xb0] sm:$0xff]   ;;  %v1629_v31 = vld [vmem:[%s2158_s0] ss:$56 sps:$4 sm:$0xff]   ;;  %v1631_v32 = vld [vmem:[%s2158_s0 + $0x4] ss:$56 sps:$4 sm:$0xff]   ;;  %1076 = vmatprep.mubr.bf16.mxu1 %v1636_v36 }
   0xd   :  { %1471 = vmatpush3.bf16.msra.mxu1 %v1609_v11  ;;  %v1632_v33 = vld [vmem:[%s2157_s1 + $0xb8] sm:$0xff]   ;;  %1035 = vmatprep.mubr.bf16.mxu0 %v1631_v32  ;;  %v1637_v37 = vld [vmem:[%s2157_s1 + $0x100] sm:$0xff]   ;;  %v1640_v40 = vld [vmem:[%s2157_s1 + $0x148] sm:$0xff]  }
   0xe   :  { %1472 = vmatprep.subr.bf16.mxu1 %v1612_v14  ;;  %v1638_v38 = vld [vmem:[%s2157_s1 + $0x1c0] sm:$0xff]   ;;  %v1641_v41 = vld [vmem:[%s2157_s1 + $0x108] sm:$0xff]   ;;  %v1644_v44 = vld [vmem:[%s2157_s1 + $0x150] sm:$0xff]  }
   0xf   :  { %1451 = vmatpush3.bf16.msra.mxu0 %v1611_v13  ;;  %v1639_v39 = vld [vmem:[%s2157_s1 + $0x180] sm:$0xff]   ;;  %v1642_v42 = vld [vmem:[%s2157_s1 + $0x1c8] sm:$0xff]   ;;  %v1645_v45 = vld [vmem:[%s2157_s1 + $0x110] sm:$0xff]  }
  0x10   :  { %1452 = vmatprep.subr.bf16.mxu0 %v1614_v16  ;;  %v1643_v43 = vld [vmem:[%s2157_s1 + $0x188] sm:$0xff]   ;;  %v1646_v46 = vld [vmem:[%s2157_s1 + $0x1d0] sm:$0xff]   ;;  %v1648_v48 = vld [vmem:[%s2157_s1 + $0x158] sm:$0xff]  }
  0x11   :  { %1473 = vmatpush3.bf16.msra.mxu1 %v1613_v15  ;;  %v1647_v47 = vld [vmem:[%s2157_s1 + $0x190] sm:$0xff]   ;;  %v1649_v49 = vld [vmem:[%s2157_s1 + $0x118] sm:$0xff]   ;;  %v1652_v52 = vld [vmem:[%s2157_s1 + $0x160] sm:$0xff]  }
  0x12   :  { %1474 = vmatprep.subr.bf16.mxu1 %v1616_v18  ;;  %v1650_v50 = vld [vmem:[%s2157_s1 + $0x1d8] sm:$0xff]   ;;  %v1653_v53 = vld [vmem:[%s2157_s1 + $0x120] sm:$0xff]   ;;  %v1656_v56 = vld [vmem:[%s2157_s1 + $0x168] sm:$0xff]  }
  0x13   :  { %1453 = vmatpush3.bf16.msra.mxu0 %v1615_v17  ;;  %v1651_v51 = vld [vmem:[%s2157_s1 + $0x198] sm:$0xff]   ;;  %v1654_v54 = vld [vmem:[%s2157_s1 + $0x1e0] sm:$0xff]   ;;  %v1657_v57 = vld [vmem:[%s2157_s1 + $0x128] sm:$0xff]  }
  0x14   :  { %1454 = vmatprep.subr.bf16.mxu0 %v1618_v20  ;;  %v1655_v55 = vld [vmem:[%s2157_s1 + $0x1a0] sm:$0xff]   ;;  %v1658_v58 = vld [vmem:[%s2157_s1 + $0x1e8] sm:$0xff]   ;;  %v1660_v60 = vld [vmem:[%s2157_s1 + $0x170] sm:$0xff]  }
  0x15   :  { %1475 = vmatpush3.bf16.msra.mxu1 %v1617_v19  ;;  %v1659_v59 = vld [vmem:[%s2157_s1 + $0x1a8] sm:$0xff]   ;;  %v1661_v61 = vld [vmem:[%s2157_s1 + $0x130] sm:$0xff]   ;;  %v1664_v0 = vld [vmem:[%s2157_s1 + $0x178] sm:$0xff]  }
  0x16   :  { %1476 = vmatprep.subr.bf16.mxu1 %v1620_v22  ;;  %v1662_v62 = vld [vmem:[%s2157_s1 + $0x1f0] sm:$0xff]   ;;  %v1665_v1 = vld [vmem:[%s2157_s1 + $0x138] sm:$0xff]   ;;  %v1671_v6 = vld [vmem:[%s2157_s1 + $0x240] sm:$0xff]  }
  0x17   :  { %1455 = vmatpush3.bf16.msra.mxu0 %v1619_v21  ;;  %v1663_v63 = vld [vmem:[%s2157_s1 + $0x1b0] sm:$0xff]   ;;  %v1666_v2 = vld [vmem:[%s2157_s1 + $0x1f8] sm:$0xff]   ;;  %v1675_v9 = vld [vmem:[%s2157_s1 + $0x200] sm:$0xff]  }
  0x18   :  { %1456 = vmatprep.subr.bf16.mxu0 %v1622_v24  ;;  %v1667_v3 = vld [vmem:[%s2158_s0 + $0x10] ss:$56 sps:$4 sm:$0xff]   ;;  %v1669_v4 = vld [vmem:[%s2158_s0 + $0x14] ss:$56 sps:$4 sm:$0xff]   ;;  %v1670_v5 = vld [vmem:[%s2157_s1 + $0x1b8] sm:$0xff]  }
  0x19   :  { %1477 = vmatpush3.bf16.msra.mxu1 %v1621_v23  ;;  %v1672_v7 = vld [vmem:[%s2158_s0 + $0x18] ss:$56 sps:$4 sm:$0xff]   ;;  %v1674_v8 = vld [vmem:[%s2158_s0 + $0x1c] ss:$56 sps:$4 sm:$0xff]   ;;  %v1676_v10 = vld [vmem:[%s2157_s1 + $0x2c0] sm:$0xff]  }
  0x1a   :  { %1478 = vmatprep.subr.bf16.mxu1 %v1624_v26  ;;  %v1677_v11 = vld [vmem:[%s2157_s1 + $0x280] sm:$0xff]   ;;  %v1678_v12 = vld [vmem:[%s2157_s1 + $0x248] sm:$0xff]   ;;  %v1682_v16 = vld [vmem:[%s2157_s1 + $0x250] sm:$0xff]  }
  0x1b   :  { %1457 = vmatpush3.bf16.msra.mxu0 %v1623_v25  ;;  %v1679_v13 = vld [vmem:[%s2157_s1 + $0x208] sm:$0xff]   ;;  %v1683_v17 = vld [vmem:[%s2157_s1 + $0x210] sm:$0xff]   ;;  %v1686_v20 = vld [vmem:[%s2157_s1 + $0x258] sm:$0xff]  }
  0x1c   :  { %1458 = vmatprep.subr.bf16.mxu0 %v1626_v28  ;;  %v1680_v14 = vld [vmem:[%s2157_s1 + $0x2c8] sm:$0xff]   ;;  %v1684_v18 = vld [vmem:[%s2157_s1 + $0x2d0] sm:$0xff]   ;;  %v1687_v21 = vld [vmem:[%s2157_s1 + $0x218] sm:$0xff]  }
  0x1d   :  { %1479 = vmatpush3.bf16.msra.mxu1 %v1625_v27  ;;  %v1681_v15 = vld [vmem:[%s2157_s1 + $0x288] sm:$0xff]   ;;  %v1685_v19 = vld [vmem:[%s2157_s1 + $0x290] sm:$0xff]   ;;  %v1688_v22 = vld [vmem:[%s2157_s1 + $0x2d8] sm:$0xff]  }
  0x1e   :  { %1480 = vmatprep.subr.bf16.mxu1 %v1628_v30  ;;  %v1689_v23 = vld [vmem:[%s2157_s1 + $0x298] sm:$0xff]   ;;  %v1690_v24 = vld [vmem:[%s2157_s1 + $0x260] sm:$0xff]   ;;  %v1694_v28 = vld [vmem:[%s2157_s1 + $0x268] sm:$0xff]  }
  0x1f   :  { %1459 = vmatpush3.bf16.msra.mxu0 %v1627_v29  ;;  %v1691_v25 = vld [vmem:[%s2157_s1 + $0x220] sm:$0xff]   ;;  %v1695_v29 = vld [vmem:[%s2157_s1 + $0x228] sm:$0xff]   ;;  %v1698_v32 = vld [vmem:[%s2157_s1 + $0x270] sm:$0xff]  }
  0x20   :  { %1488 = vmatprep.subr.bf16.mxu0 %v1633_v34  ;;  %v1692_v26 = vld [vmem:[%s2157_s1 + $0x2e0] sm:$0xff]   ;;  %v1696_v30 = vld [vmem:[%s2157_s1 + $0x2e8] sm:$0xff]   ;;  %v1700_v34 = vld [vmem:[%s2157_s1 + $0x2f0] sm:$0xff]  }
  0x21   :  { %1481 = vmatpush3.bf16.msra.mxu1 %v1632_v33  ;;  %v1693_v27 = vld [vmem:[%s2157_s1 + $0x2a0] sm:$0xff]   ;;  %v1699_v33 = vld [vmem:[%s2157_s1 + $0x230] sm:$0xff]   ;;  %v1702_v36 = vld [vmem:[%s2157_s1 + $0x278] sm:$0xff]  }
  0x22   :  { %1036 = vmatmul.mubr.bf16.vlgmr.msra.gmra.mrb[0].mxu0 %v1629_v31  ;;  %1510 = vmatprep.subr.bf16.mxu1 %v1638_v38  ;;  %v1697_v31 = vld [vmem:[%s2157_s1 + $0x2a8] sm:$0xff]   ;;  %v1704_v38 = vld [vmem:[%s2157_s1 + $0x2f8] sm:$0xff]  }
  0x23   :  { %1489 = vmatpush3.bf16.msra.mxu0 %v1637_v37  ;;  %1117 = vmatprep.mubr.bf16.mxu0 %v1669_v4  ;;  %v1703_v37 = vld [vmem:[%s2157_s1 + $0x238] sm:$0xff]   ;;  %v260_v4 = vld [vmem:[%s2159_s2 + $0x8] sm:$0xff] }
  0x24   :  { %1077 = vmatmul.mubr.bf16.vlgmr.msra.gmra.mrb[0].mxu1 %v1634_v35  ;;  %1490 = vmatprep.subr.bf16.mxu0 %v1640_v40  ;;  %v1701_v35 = vld [vmem:[%s2157_s1 + $0x2b0] sm:$0xff]   ;;  %v1707_v40 = vld [vmem:[%s2158_s0 + $0x24] ss:$56 sps:$4 sm:$0xff]  }
  0x25   :  { %1511 = vmatpush3.bf16.msra.mxu1 %v1639_v39  ;;  %1158 = vmatprep.mubr.bf16.mxu1 %v1674_v8  ;;  %v1705_v39 = vld [vmem:[%s2158_s0 + $0x20] ss:$56 sps:$4 sm:$0xff]  }
  0x26   :  { %1512 = vmatprep.subr.bf16.mxu1 %v1642_v42  ;;  %v1709_v42 = vld [vmem:[%s2157_s1 + $0x340] sm:$0xff]  }
  0x27   :  { %1491 = vmatpush3.bf16.msra.mxu0 %v1641_v41  ;;  %v1708_v41 = vld [vmem:[%s2157_s1 + $0x2b8] sm:$0xff]  }
  0x28   :  { %1492 = vmatprep.subr.bf16.mxu0 %v1644_v44  ;;  %v1712_v44 = vld [vmem:[%s2158_s0 + $0x2c] ss:$56 sps:$4 sm:$0xff]  }
  0x29   :  { %1513 = vmatpush3.bf16.msra.mxu1 %v1643_v43  ;;  %v1710_v43 = vld [vmem:[%s2158_s0 + $0x28] ss:$56 sps:$4 sm:$0xff]  }
  0x2a   :  { %1514 = vmatprep.subr.bf16.mxu1 %v1646_v46  ;;  %v1714_v46 = vld [vmem:[%s2157_s1 + $0x348] sm:$0xff]  }
  0x2b   :  { %1493 = vmatpush3.bf16.msra.mxu0 %v1645_v45  ;;  %v1713_v45 = vld [vmem:[%s2157_s1 + $0x300] sm:$0xff]  }
  0x2c   :  { %1494 = vmatprep.subr.bf16.mxu0 %v1648_v48  ;;  %v1716_v48 = vld [vmem:[%s2157_s1 + $0x350] sm:$0xff]  }
  0x2d   :  { %1515 = vmatpush3.bf16.msra.mxu1 %v1647_v47  ;;  %v1715_v47 = vld [vmem:[%s2157_s1 + $0x308] sm:$0xff]  }
  0x2e   :  { %1516 = vmatprep.subr.bf16.mxu1 %v1650_v50  ;;  %v1718_v50 = vld [vmem:[%s2157_s1 + $0x358] sm:$0xff]  }
  0x2f   :  { %1495 = vmatpush3.bf16.msra.mxu0 %v1649_v49  ;;  %v1717_v49 = vld [vmem:[%s2157_s1 + $0x310] sm:$0xff]  }
  0x30   :  { %1496 = vmatprep.subr.bf16.mxu0 %v1652_v52  ;;  %v1720_v52 = vld [vmem:[%s2157_s1 + $0x360] sm:$0xff]  }
  0x31   :  { %1517 = vmatpush3.bf16.msra.mxu1 %v1651_v51  ;;  %v1719_v51 = vld [vmem:[%s2157_s1 + $0x318] sm:$0xff]  }
  0x32   :  { %1518 = vmatprep.subr.bf16.mxu1 %v1654_v54  ;;  %v1722_v54 = vld [vmem:[%s2157_s1 + $0x368] sm:$0xff]  }
  0x33   :  { %1497 = vmatpush3.bf16.msra.mxu0 %v1653_v53  ;;  %v1721_v53 = vld [vmem:[%s2157_s1 + $0x320] sm:$0xff]  }
  0x34   :  { %1498 = vmatprep.subr.bf16.mxu0 %v1656_v56  ;;  %v1723_v56 = vld [vmem:[%s2157_s1 + $0x328] sm:$0xff]  }
  0x35   :  { %1519 = vmatpush3.bf16.msra.mxu1 %v1655_v55  ;;  %v1730_v55 = vld [vmem:[%s2158_s0 + $0x34] ss:$56 sps:$4 sm:$0xff]  }
  0x36   :  { %1520 = vmatprep.subr.bf16.mxu1 %v1658_v58  ;;  %v1725_v58 = vld [vmem:[%s2157_s1 + $0x330] sm:$0xff]  }
  0x37   :  { %1499 = vmatpush3.bf16.msra.mxu0 %v1657_v57  ;;  %v1724_v57 = vld [vmem:[%s2157_s1 + $0x370] sm:$0xff]  }
  0x38   :  { %1500 = vmatprep.subr.bf16.mxu0 %v1660_v60  ;;  %v1727_v60 = vld [vmem:[%s2157_s1 + $0x338] sm:$0xff]  }
  0x39   :  { %1521 = vmatpush3.bf16.msra.mxu1 %v1659_v59  ;;  %v1726_v59 = vld [vmem:[%s2157_s1 + $0x378] sm:$0xff]  }
  0x3a   :  { %1522 = vmatprep.subr.bf16.mxu1 %v1662_v62 }
  0x3b   :  { %1501 = vmatpush3.bf16.msra.mxu0 %v1661_v61  ;;  %v1728_v61 = vld [vmem:[%s2158_s0 + $0x30] ss:$56 sps:$4 sm:$0xff]  }
  0x3c   :  { %1502 = vmatprep.subr.bf16.mxu0 %v1664_v0 }
  0x3d   :  { %1523 = vmatpush3.bf16.msra.mxu1 %v1663_v63  ;;  %v259_v63 = vld [vmem:[%s2159_s2] sm:$0xff] }
  0x3e   :  { %1524 = vmatprep.subr.bf16.mxu1 %v1666_v2 }
  0x3f   :  { %1503 = vmatpush3.bf16.msra.mxu0 %v1665_v1 }
  0x40   :  { %1532 = vmatprep.subr.bf16.mxu0 %v1671_v6 }
  0x41   :  { %1525 = vmatpush3.bf16.msra.mxu1 %v1670_v5 }
  0x42   :  { %1118 = vmatmul.mubr.bf16.vlgmr.msra.gmra.mrb[4].mxu0 %v1667_v3  ;;  %1554 = vmatprep.subr.bf16.mxu1 %v1676_v10 }
  0x43   :  { %1533 = vmatpush3.bf16.msra.mxu0 %v1675_v9  ;;  %1199 = vmatprep.mubr.bf16.mxu0 %v1707_v40 }
  0x44   :  { %1159 = vmatmul.mubr.bf16.vlgmr.msra.gmra.mrb[4].mxu1 %v1672_v7  ;;  %1534 = vmatprep.subr.bf16.mxu0 %v1678_v12 }
  0x45   :  { %1555 = vmatpush3.bf16.msra.mxu1 %v1677_v11  ;;  %1240 = vmatprep.mubr.bf16.mxu1 %v1712_v44 }
  0x46   :  { %1556 = vmatprep.subr.bf16.mxu1 %v1680_v14 }
  0x47   :  { %1535 = vmatpush3.bf16.msra.mxu0 %v1679_v13 }
  0x48   :  { %1536 = vmatprep.subr.bf16.mxu0 %v1682_v16 }
  0x49   :  { %1557 = vmatpush3.bf16.msra.mxu1 %v1681_v15 }
  0x4a   :  { %1558 = vmatprep.subr.bf16.mxu1 %v1684_v18 }
  0x4b   :  { %1537 = vmatpush3.bf16.msra.mxu0 %v1683_v17 }
  0x4c   :  { %1538 = vmatprep.subr.bf16.mxu0 %v1686_v20 }
  0x4d   :  { %1559 = vmatpush3.bf16.msra.mxu1 %v1685_v19 }
  0x4e   :  { %1560 = vmatprep.subr.bf16.mxu1 %v1688_v22 }
  0x4f   :  { %1539 = vmatpush3.bf16.msra.mxu0 %v1687_v21 }
  0x50   :  { %1540 = vmatprep.subr.bf16.mxu0 %v1690_v24 }
  0x51   :  { %1561 = vmatpush3.bf16.msra.mxu1 %v1689_v23 }
  0x52   :  { %1562 = vmatprep.subr.bf16.mxu1 %v1692_v26 }
  0x53   :  { %1541 = vmatpush3.bf16.msra.mxu0 %v1691_v25 }
  0x54   :  { %1542 = vmatprep.subr.bf16.mxu0 %v1694_v28 }
  0x55   :  { %1563 = vmatpush3.bf16.msra.mxu1 %v1693_v27 }
  0x56   :  { %1564 = vmatprep.subr.bf16.mxu1 %v1696_v30 }
  0x57   :  { %1543 = vmatpush3.bf16.msra.mxu0 %v1695_v29 }
  0x58   :  { %1544 = vmatprep.subr.bf16.mxu0 %v1698_v32 }
  0x59   :  { %1565 = vmatpush3.bf16.msra.mxu1 %v1697_v31 }
  0x5a   :  { %1566 = vmatprep.subr.bf16.mxu1 %v1700_v34 }
  0x5b   :  { %1545 = vmatpush3.bf16.msra.mxu0 %v1699_v33 }
  0x5c   :  { %1546 = vmatprep.subr.bf16.mxu0 %v1702_v36 }
  0x5d   :  { %1567 = vmatpush3.bf16.msra.mxu1 %v1701_v35 }
  0x5e   :  { %1568 = vmatprep.subr.bf16.mxu1 %v1704_v38 }
  0x5f   :  { %1547 = vmatpush3.bf16.msra.mxu0 %v1703_v37 }
  0x60   :  { %1576 = vmatprep.subr.bf16.mxu0 %v1709_v42 }
  0x61   :  { %1569 = vmatpush3.bf16.msra.mxu1 %v1708_v41 }
  0x62   :  { %1200 = vmatmul.mubr.bf16.vlgmr.msra.gmra.mrb[8].mxu0 %v1705_v39 }
  0x63   :  { %1577 = vmatpush3.bf16.msra.mxu0 %v1713_v45  ;;  %1281 = vmatprep.mubr.bf16.mxu0 %v1730_v55 }
  0x64   :  { %1241 = vmatmul.mubr.bf16.vlgmr.msra.gmra.mrb[8].mxu1 %v1710_v43  ;;  %1578 = vmatprep.subr.bf16.mxu0 %v1714_v46 }
  0x67   :  { %1579 = vmatpush3.bf16.msra.mxu0 %v1715_v47 }
  0x68   :  { %1580 = vmatprep.subr.bf16.mxu0 %v1716_v48 }
  0x6b   :  { %1581 = vmatpush3.bf16.msra.mxu0 %v1717_v49 }
  0x6c   :  { %1582 = vmatprep.subr.bf16.mxu0 %v1718_v50 }
  0x6f   :  { %1583 = vmatpush3.bf16.msra.mxu0 %v1719_v51 }
  0x70   :  { %1584 = vmatprep.subr.bf16.mxu0 %v1720_v52  ;;  %v1442_v52 = vld [vmem:[%s2160_s3] ss:$0 sm:$0xff] }
  0x73   :  { %1585 = vmatpush3.bf16.msra.mxu0 %v1721_v53 }
  0x74   :  { %1586 = vmatprep.subr.bf16.mxu0 %v1722_v54 }
  0x77   :  { %1587 = vmatpush3.bf16.msra.mxu0 %v1723_v56  ;;  %v1443_v56 = vld [vmem:[%s2161_s4] ss:$0 sm:$0xff] }
  0x78   :  { %1588 = vmatprep.subr.bf16.mxu0 %v1724_v57 }
  0x7b   :  { %1589 = vmatpush3.bf16.msra.mxu0 %v1725_v58 }
  0x7c   :  { %1590 = vmatprep.subr.bf16.mxu0 %v1726_v59 }
  0x7f   :  { %1591 = vmatpush3.bf16.msra.mxu0 %v1727_v60 }
  0x82   :  { %1282 = vmatmul.mubr.bf16.vlgmr.msra.gmra.mrb[12].mxu0 %v1728_v61 }
  0xf5   :  { %v1460_v62 = vpop.f32.mrb[0].mxu0 }
  0xf6   :  { %v1461_v0 = vpop.f32.mrb[1].mxu0 }
  0xf7   :  { %v1462_v1 = vadd.f32 %v1461_v0, %v1460_v62  ;;  %v1463_v2 = vpop.f32.mrb[2].mxu0  ;;  %v1482_v3 = vpop.f32.mrb[0].mxu1 }
  0xf8   :  { %v1464_v5 = vpop.f32.mrb[3].mxu0  ;;  %v1483_v8 = vpop.f32.mrb[1].mxu1 }
  0xf9   :  { %v1038_v6 = vadd.f32 %v1462_v1, %v259_v63  ;;  %v1465_v7 = vadd.f32 %v1464_v5, %v1463_v2  ;;  %v1484_v9 = vadd.f32 %v1483_v8, %v1482_v3  ;;  %v1485_v10 = vpop.f32.mrb[2].mxu1 }
  0xfa   :  { %v1486_v12 = vpop.f32.mrb[3].mxu1 }
  0xfb   :  { %v1041_v11 = vadd.f32 %v1465_v7, %v260_v4  ;;  %v1079_v13 = vadd.f32 %v1484_v9, %v1038_v6  ;;  %v1487_v14 = vadd.f32 %v1486_v12, %v1485_v10 }
  0xfd   :  { %v1082_v15 = vadd.f32 %v1487_v14, %v1041_v11 }
 0x115   :  { %v1504_v16 = vpop.f32.mrb[4].mxu0 }
 0x116   :  { %v1505_v17 = vpop.f32.mrb[5].mxu0 }
 0x117   :  { %v1506_v18 = vadd.f32 %v1505_v17, %v1504_v16  ;;  %v1507_v19 = vpop.f32.mrb[6].mxu0  ;;  %v1526_v22 = vpop.f32.mrb[4].mxu1 }
 0x118   :  { %v1508_v20 = vpop.f32.mrb[7].mxu0  ;;  %v1527_v24 = vpop.f32.mrb[5].mxu1 }
 0x119   :  { %v1120_v21 = vadd.f32 %v1506_v18, %v1079_v13  ;;  %v1509_v23 = vadd.f32 %v1508_v20, %v1507_v19  ;;  %v1528_v26 = vadd.f32 %v1527_v24, %v1526_v22  ;;  %v1529_v27 = vpop.f32.mrb[6].mxu1 }
 0x11a   :  { %v1530_v28 = vpop.f32.mrb[7].mxu1 }
 0x11b   :  { %v1123_v25 = vadd.f32 %v1509_v23, %v1082_v15  ;;  %v1161_v29 = vadd.f32 %v1528_v26, %v1120_v21  ;;  %v1531_v30 = vadd.f32 %v1530_v28, %v1529_v27 }
 0x11d   :  { %v1164_v31 = vadd.f32 %v1531_v30, %v1123_v25 }
 0x135   :  { %v1548_v32 = vpop.f32.mrb[8].mxu0 }
 0x136   :  { %v1549_v33 = vpop.f32.mrb[9].mxu0 }
 0x137   :  { %v1550_v34 = vadd.f32 %v1549_v33, %v1548_v32  ;;  %v1551_v35 = vpop.f32.mrb[10].mxu0  ;;  %v1570_v36 = vpop.f32.mrb[8].mxu1 }
 0x138   :  { %v1552_v37 = vpop.f32.mrb[11].mxu0  ;;  %v1571_v40 = vpop.f32.mrb[9].mxu1 }
 0x139   :  { %v1202_v38 = vadd.f32 %v1550_v34, %v1161_v29  ;;  %v1553_v39 = vadd.f32 %v1552_v37, %v1551_v35  ;;  %v1572_v41 = vadd.f32 %v1571_v40, %v1570_v36  ;;  %v1573_v42 = vpop.f32.mrb[10].mxu1 }
 0x13a   :  { %v1574_v44 = vpop.f32.mrb[11].mxu1 }
 0x13b   :  { %v1205_v43 = vadd.f32 %v1553_v39, %v1164_v31  ;;  %v1243_v45 = vadd.f32 %v1572_v41, %v1202_v38  ;;  %v1575_v46 = vadd.f32 %v1574_v44, %v1573_v42 }
 0x13d   :  { %v1246_v47 = vadd.f32 %v1575_v46, %v1205_v43 }
 0x155   :  { %v1592_v48 = vpop.f32.mrb[12].mxu0 }
 0x156   :  { %v1593_v49 = vpop.f32.mrb[13].mxu0 }
 0x157   :  { %v1594_v50 = vadd.f32 %v1593_v49, %v1592_v48  ;;  %v1595_v51 = vpop.f32.mrb[14].mxu0 }
 0x158   :  { %v1596_v53 = vpop.f32.mrb[15].mxu0 }
 0x159   :  { %v1284_v54 = vadd.f32 %v1594_v50, %v1243_v45  ;;  %v1597_v55 = vadd.f32 %v1596_v53, %v1595_v51 }
 0x15b   :  { %v1297_v57 = vmul.f32 %v1442_v52, %v1284_v54  ;;  %v1287_v58 = vadd.f32 %v1597_v55, %v1246_v47 }
 0x15d   :  { %v1306_v59 = vadd.f32 %v1443_v56, %v1297_v57  ;;  %v1298_v60 = vmul.f32 %v1442_v52, %v1287_v58 }
 0x15f   :  { %v1308_v61 = vmax.f32 %v1306_v59, 0.0  ;;  %v1307_v62 = vadd.f32 %v1443_v56, %v1298_v60 }
 0x161   :  { %1310 = vst [vmem:[%s2162_s5] sm:$0xff] %v1308_v61  ;;  %v1309_v63 = vmax.f32 %v1307_v62, 0.0 }
 0x163   :  { %1311 = vst [vmem:[%s2162_s5 + $0x8] sm:$0xff] %v1309_v63 }

</bundles_post_ra>
